<compile_context>
chip_gen: v7x
topology: tpu7x:2x2x1
jax: 0.10.0
libtpu: 0.0.40
codegen_flags: <defaults>
</compile_context>

<pallas_src>
import functools

import numpy as np
import jax
import jax.numpy as jnp
from jax.experimental import pallas as pl
from jax.experimental.pallas import tpu as pltpu


def _round_up(x, m):
    return (x + m - 1) // m * m


# ----------------------------------------------------------------------------
# Kernel 1: stride-1 conv as tap-accumulated MXU matmuls on one VMEM image.
#   x_ref: (1, R, Cin) bf16   (flattened rows h*W + w, zero-padded at the end)
#   w_ref: (ntaps, Cin, Cout) bf16
#   b_ref: (1, Cout) f32
#   o_ref: (1, rows, Cout) bf16   (rows = Ho * W; columns >= Wo are garbage and
#                                  are ignored / zero-weighted downstream)
# ----------------------------------------------------------------------------
def _conv_taps_kernel(x_ref, w_ref, b_ref, o_ref, *, shifts, rows):
    acc = jnp.dot(x_ref[0, shifts[0]:shifts[0] + rows, :], w_ref[0],
                  preferred_element_type=jnp.float32)
    for t in range(1, len(shifts)):
        s = shifts[t]
        acc = acc + jnp.dot(x_ref[0, s:s + rows, :], w_ref[t],
                            preferred_element_type=jnp.float32)
    acc = jnp.maximum(acc + b_ref[...], 0.0)
    o_ref[0] = acc.astype(o_ref.dtype)


def conv_taps(x, w, b, *, shifts, rows, cout):
    """x: (N, R, Cin) bf16, w: (ntaps, Cin, cout) bf16, b: (1, cout) f32.
    Returns (N, rows, cout) bf16 (ReLU applied)."""
    N, R, Cin = x.shape
    ntaps = w.shape[0]
    assert w.shape == (ntaps, Cin, cout) and b.shape == (1, cout)
    assert max(shifts) + rows <= R, (shifts, rows, R)

    cost = pl.CostEstimate(
        flops=2 * N * rows * Cin * cout * ntaps,
        transcendentals=0,
        bytes_accessed=(N * R * Cin * 2 + ntaps * Cin * cout * 2
                        + cout * 4 + N * rows * cout * 2),
    )
    return pl.pallas_call(
        functools.partial(_conv_taps_kernel, shifts=tuple(shifts), rows=rows),
        out_shape=jax.ShapeDtypeStruct((N, rows, cout), jnp.bfloat16),
        grid=(N,),
        in_specs=[
            pl.BlockSpec((1, R, Cin), lambda n: (n, 0, 0)),
            pl.BlockSpec((ntaps, Cin, cout), lambda n: (0, 0, 0)),
            pl.BlockSpec((1, cout), lambda n: (0, 0)),
        ],
        out_specs=pl.BlockSpec((1, rows, cout), lambda n: (n, 0, 0)),
        compiler_params=pltpu.CompilerParams(
            dimension_semantics=("parallel",),
            vmem_limit_bytes=16 * 1024 * 1024,
        ),
        cost_estimate=cost,
    )(x, w, b)


# ----------------------------------------------------------------------------
# Kernel 2: fused  head = (relu(x @ lin_w + lin_b)) @ head_w + head_b
#   bf16 MXU inputs, f32 accumulation, f32 output (critic precision).
# ----------------------------------------------------------------------------
def _lin_head_kernel(x_ref, lw_ref, lb_ref, hw_ref, hb_ref, o_ref):
    fc = jnp.dot(x_ref[...], lw_ref[...], preferred_element_type=jnp.float32)
    fc = jnp.maximum(fc + lb_ref[...], 0.0)
    out = jnp.dot(fc.astype(jnp.bfloat16), hw_ref[...],
                  preferred_element_type=jnp.float32)
    o_ref[...] = out + hb_ref[...]


def lin_head(x, lw, lb, hw, hb, *, max_tm=256):
    """x: (M, K) bf16, lw: (K, F) bf16, lb: (1, F) f32,
    hw: (F, Nh) bf16, hb: (1, Nh) f32. Returns (M, Nh) f32."""
    M, K = x.shape
    Kl, F = lw.shape
    F2, Nh = hw.shape
    assert K == Kl and F == F2

    # bf16 sublane packing -> M tile multiple of 16; split into >=2 grid steps
    # when possible so v7x's two TensorCores both get work.
    M_pad0 = _round_up(M, 16)
    tm = min(max_tm, _round_up((M_pad0 + 1) // 2, 16))
    M_pad = _round_up(M, tm)
    if M_pad != M:
        x = jnp.pad(x, ((0, M_pad - M), (0, 0)))
    grid_m = M_pad // tm

    cost = pl.CostEstimate(
        flops=2 * M_pad * (K * F + F * Nh),
        transcendentals=0,
        bytes_accessed=(M_pad * K * 2 + K * F * 2 + F * Nh * 2
                        + (F + Nh) * 4 + M_pad * Nh * 4),
    )
    out = pl.pallas_call(
        _lin_head_kernel,
        out_shape=jax.ShapeDtypeStruct((M_pad, Nh), jnp.float32),
        grid=(grid_m,),
        in_specs=[
            pl.BlockSpec((tm, K), lambda i: (i, 0)),
            pl.BlockSpec((K, F), lambda i: (0, 0)),
            pl.BlockSpec((1, F), lambda i: (0, 0)),
            pl.BlockSpec((F, Nh), lambda i: (0, 0)),
            pl.BlockSpec((1, Nh), lambda i: (0, 0)),
        ],
        out_specs=pl.BlockSpec((tm, Nh), lambda i: (i, 0)),
        compiler_params=pltpu.CompilerParams(
            dimension_semantics=("parallel",),
            vmem_limit_bytes=40 * 1024 * 1024,
        ),
        cost_estimate=cost,
    )(x, lw, lb, hw, hb)
    return out[:M]


# ----------------------------------------------------------------------------
# Deterministic orthogonal init (port of baselines ortho_init)
# ----------------------------------------------------------------------------
def ortho_weights(shape, scale, rng):
    shape = tuple(shape)
    if len(shape) == 2:
        flat_shape = (shape[1], shape[0])
    elif len(shape) == 4:
        flat_shape = (int(np.prod(shape[1:])), shape[0])
    else:
        raise NotImplementedError
    a = rng.normal(0.0, 1.0, flat_shape)
    u, _, v = np.linalg.svd(a, full_matrices=False)
    q = u if u.shape == flat_shape else v
    q = q.transpose().copy().reshape(shape)
    if len(shape) == 4:
        q = q[:, :shape[1], :shape[2]]
    return (scale * q).astype(np.float32)


def init_params(num_actions, seed=0):
    rng = np.random.RandomState(seed)
    s2 = np.sqrt(2.0)
    return {
        "conv1_w": ortho_weights((32, 4, 8, 8), s2, rng),
        "conv1_b": np.zeros((32,), np.float32),
        "conv2_w": ortho_weights((64, 32, 4, 4), s2, rng),
        "conv2_b": np.zeros((64,), np.float32),
        "conv3_w": ortho_weights((64, 64, 3, 3), s2, rng),
        "conv3_b": np.zeros((64,), np.float32),
        "lin_w": ortho_weights((512, 64 * 7 * 7), s2, rng),   # (out, in), torch layout
        "lin_b": np.zeros((512,), np.float32),
        "a_w": ortho_weights((num_actions, 512), 0.01, rng),
        "a_b": np.zeros((num_actions,), np.float32),
        "c_w": ortho_weights((1, 512), 1.0, rng),
        "c_b": np.zeros((1,), np.float32),
    }


# ----------------------------------------------------------------------------
# One-time weight packing (all transposes / permutations / padding at init).
# ----------------------------------------------------------------------------
def pack_params(raw, num_actions):
    assert num_actions + 1 <= 128

    def s2d_conv_weight(w, s):
        # torch OIHW -> (ntaps=(k/s)^2, s*s*Cin, Cout) bf16, tap = (ai, aj),
        # lane order of the s2d input = (bi, bj, c).
        o_, c_, kh, kw = w.shape
        r = kh // s
        w6 = np.asarray(w).reshape(o_, c_, r, s, r, s)       # (o, c, ai, bi, aj, bj)
        wt = w6.transpose(2, 4, 3, 5, 1, 0)                  # (ai, aj, bi, bj, c, o)
        return jnp.asarray(wt.reshape(r * r, s * s * c_, o_), dtype=jnp.bfloat16)

    def bias(b):
        return jnp.asarray(np.asarray(b).reshape(1, -1), dtype=jnp.float32)

    p = {
        "conv1_w": s2d_conv_weight(raw["conv1_w"], 4),       # (4, 64, 32)
        "conv1_b": bias(raw["conv1_b"]),
        "conv2_w": s2d_conv_weight(raw["conv2_w"], 2),       # (4, 128, 64)
        "conv2_b": bias(raw["conv2_b"]),
        "conv3_w": s2d_conv_weight(raw["conv3_w"], 1),       # (9, 64, 64)
        "conv3_b": bias(raw["conv3_b"]),
    }

    # lin: permute K rows from torch's (c, h, w) flatten to the kernel's
    # (h, w10, c) layout; rows for the 3 garbage columns (w10 in 7..9) are zero,
    # so the conv3 output feeds lin with NO transpose / slice / pad at runtime.
    lw = np.asarray(raw["lin_w"])                            # (512, 3136)
    wlin = np.zeros((7 * 10 * 64, 512), np.float32)          # (4480, 512)
    for hh in range(7):
        for ww in range(7):
            rows = (hh * 10 + ww) * 64 + np.arange(64)
            cols = np.arange(64) * 49 + hh * 7 + ww
            wlin[rows, :] = lw[:, cols].T
    p["lin_w"] = jnp.asarray(wlin, dtype=jnp.bfloat16)
    p["lin_b"] = bias(raw["lin_b"])                          # (1, 512)

    # actor + critic heads fused into one lane-padded (512, 128) matmul.
    hw = np.concatenate([np.asarray(raw["a_w"]), np.asarray(raw["c_w"])], 0).T
    hw = np.pad(hw, ((0, 0), (0, 128 - hw.shape[1])))
    hb = np.concatenate([np.asarray(raw["a_b"]), np.asarray(raw["c_b"])], 0)
    hb = np.pad(hb, (0, 128 - hb.shape[0]))
    p["head_w"] = jnp.asarray(hw, dtype=jnp.bfloat16)        # (512, 128)
    p["head_b"] = jnp.asarray(hb.reshape(1, 128), dtype=jnp.float32)
    return p


# ----------------------------------------------------------------------------
# ActorCritic forward
# ----------------------------------------------------------------------------
def actor_critic_forward(x_nchw, packed, *, num_actions):
    N = x_nchw.shape[0]
    assert x_nchw.shape[1:] == (4, 84, 84)

    # conv1: 8x8 stride 4  ==  space-to-depth(4) + 2x2 stride-1 tap-sum conv.
    # (bf16 cast fused into the repack copy; +1 zero row for the last tap.)
    x = x_nchw.astype(jnp.bfloat16)
    x = x.reshape(N, 4, 21, 4, 21, 4).transpose(0, 2, 4, 3, 5, 1)
    x = x.reshape(N, 21 * 21, 64)
    x = jnp.pad(x, ((0, 0), (0, 1), (0, 0)))                 # (N, 442, 64)
    h1 = conv_taps(x, packed["conv1_w"], packed["conv1_b"],
                   shifts=(0, 1, 21, 22), rows=20 * 21, cout=32)   # (N, 420, 32)

    # conv2: 4x4 stride 2  ==  space-to-depth(2) + 2x2 stride-1 tap-sum conv.
    h1 = h1.reshape(N, 20, 21, 32)[:, :, :20, :]             # drop garbage column
    h1 = h1.reshape(N, 10, 2, 10, 2, 32).transpose(0, 1, 3, 2, 4, 5)
    h1 = h1.reshape(N, 100, 128)
    h1 = jnp.pad(h1, ((0, 0), (0, 1), (0, 0)))               # (N, 101, 128)
    h2 = conv_taps(h1, packed["conv2_w"], packed["conv2_b"],
                   shifts=(0, 1, 10, 11), rows=9 * 10, cout=64)    # (N, 90, 64)

    # conv3: 3x3 stride 1, directly on conv2's (9 rows x width-10) output; its
    # garbage column 9 is never read by valid taps, only 2 zero rows appended.
    h2 = jnp.pad(h2, ((0, 0), (0, 2), (0, 0)))               # (N, 92, 64)
    shifts3 = tuple(ai * 10 + aj for ai in range(3) for aj in range(3))
    h3 = conv_taps(h2, packed["conv3_w"], packed["conv3_b"],
                   shifts=shifts3, rows=7 * 10, cout=64)            # (N, 70, 64)

    # fused lin (ReLU) + actor/critic heads; lin_w rows were permuted at pack
    # time, so this reshape is a free row-major collapse (no transpose/slice).
    flat = h3.reshape(N, 70 * 64)                            # (N, 4480) bf16
    head = lin_head(flat, packed["lin_w"], packed["lin_b"],
                    packed["head_w"], packed["head_b"])      # (N, 128) f32
    a = head[:, :num_actions]
    c = head[:, num_actions:num_actions + 1]
    return a, c


# Pure-JAX (f32) reference for the correctness check.
def reference_forward(x, params):
    def conv(h, w, b, stride):
        y = jax.lax.conv_general_dilated(
            h, jnp.asarray(w), (stride, stride), "VALID",
            dimension_numbers=("NCHW", "OIHW", "NCHW"))
        return jax.nn.relu(y + jnp.asarray(b)[None, :, None, None])

    h = conv(x, params["conv1_w"], params["conv1_b"], 4)
    h = conv(h, params["conv2_w"], params["conv2_b"], 2)
    h = conv(h, params["conv3_w"], params["conv3_b"], 1)
    h = h.reshape(x.shape[0], -1)
    fc = jax.nn.relu(h @ jnp.asarray(params["lin_w"]).T + jnp.asarray(params["lin_b"]))
    a = fc @ jnp.asarray(params["a_w"]).T + jnp.asarray(params["a_b"])
    c = fc @ jnp.asarray(params["c_w"]).T + jnp.asarray(params["c_b"])
    return a, c


if __name__ == "__main__":
    num_actions = 6
    batch = 2
    # Atari-style input: the module's 64*7*7 flatten implies 84x84x4.
    key = jax.random.PRNGKey(0)
    x = jax.random.uniform(key, (batch, 4, 84, 84), dtype=jnp.float32)

    raw = init_params(num_actions, seed=0)
    packed = pack_params(raw, num_actions)

    fwd = jax.jit(actor_critic_forward, static_argnames=("num_actions",))
    a, c = fwd(x, packed, num_actions=num_actions)
    a = jax.block_until_ready(a)
    c = jax.block_until_ready(c)

    a_ref, c_ref = reference_forward(x, raw)
    # Tolerance covers bf16 MXU inputs / bf16 intermediates with f32 accumulation.
    np.testing.assert_allclose(np.asarray(a), np.asarray(a_ref), rtol=5e-2, atol=5e-2)
    np.testing.assert_allclose(np.asarray(c), np.asarray(c_ref), rtol=5e-2, atol=5e-2)
    assert a.shape == (batch, num_actions) and c.shape == (batch, 1)

    print("KERNEL_OK")
</pallas_src>

<mosaic_0001>
module attributes {stable_mosaic.version = 11 : i64} {
  func.func @_conv_taps_kernel(%arg0: i32, %arg1: memref<1x442x64xbf16, #tpu.memory_space<vmem>>, %arg2: memref<4x64x32xbf16, #tpu.memory_space<vmem>>, %arg3: memref<1x32xf32, #tpu.memory_space<vmem>>, %arg4: memref<1x420x32xbf16, #tpu.memory_space<vmem>>) attributes {dimension_semantics = [#tpu.dimension_semantics<parallel>], iteration_bounds = array<i64: 2>, scalar_prefetch = 0 : i64, scratch_operands = 0 : i64, tpu.core_type = #tpu.core_type<tc>, window_params = [{transform_indices = @transform_0, window_bounds = array<i64: 1, 442, 64>}, {pipeline_mode = #tpu.pipeline_mode<synchronous>, transform_indices = @transform_1, window_bounds = array<i64: 4, 64, 32>}, {pipeline_mode = #tpu.pipeline_mode<synchronous>, transform_indices = @transform_2, window_bounds = array<i64: 1, 32>}, {transform_indices = @transform_3, window_bounds = array<i64: 1, 420, 32>}]} {
    %c0 = arith.constant 0 : index
    %c0_0 = arith.constant 0 : index
    %c0_1 = arith.constant 0 : index
    %0 = vector.load %arg1[%c0, %c0_0, %c0_1] : memref<1x442x64xbf16, #tpu.memory_space<vmem>>, vector<1x420x64xbf16>
    %1 = vector.shape_cast %0 : vector<1x420x64xbf16> to vector<420x64xbf16>
    %c0_2 = arith.constant 0 : index
    %c0_3 = arith.constant 0 : index
    %c0_4 = arith.constant 0 : index
    %2 = vector.load %arg2[%c0_2, %c0_3, %c0_4] : memref<4x64x32xbf16, #tpu.memory_space<vmem>>, vector<1x64x32xbf16>
    %3 = vector.shape_cast %2 : vector<1x64x32xbf16> to vector<64x32xbf16>
    %cst = arith.constant dense<0.000000e+00> : vector<420x32xf32>
    %4 = tpu.matmul %1, %3, %cst {dimension_numbers = #tpu.dot_dimension_numbers<[1], [0], [0], [1], [0, 0, 1, 1], [], []>} : vector<420x64xbf16>, vector<64x32xbf16>, vector<420x32xf32> -> vector<420x32xf32>
    %c0_5 = arith.constant 0 : index
    %c1 = arith.constant 1 : index
    %c0_6 = arith.constant 0 : index
    %5 = vector.load %arg1[%c0_5, %c1, %c0_6] : memref<1x442x64xbf16, #tpu.memory_space<vmem>>, vector<1x420x64xbf16>
    %6 = vector.shape_cast %5 : vector<1x420x64xbf16> to vector<420x64xbf16>
    %c1_7 = arith.constant 1 : index
    %c0_8 = arith.constant 0 : index
    %c0_9 = arith.constant 0 : index
    %7 = vector.load %arg2[%c1_7, %c0_8, %c0_9] : memref<4x64x32xbf16, #tpu.memory_space<vmem>>, vector<1x64x32xbf16>
    %8 = vector.shape_cast %7 : vector<1x64x32xbf16> to vector<64x32xbf16>
    %cst_10 = arith.constant dense<0.000000e+00> : vector<420x32xf32>
    %9 = tpu.matmul %6, %8, %cst_10 {dimension_numbers = #tpu.dot_dimension_numbers<[1], [0], [0], [1], [0, 0, 1, 1], [], []>} : vector<420x64xbf16>, vector<64x32xbf16>, vector<420x32xf32> -> vector<420x32xf32>
    %10 = arith.addf %4, %9 : vector<420x32xf32>
    %c0_11 = arith.constant 0 : index
    %c21 = arith.constant 21 : index
    %c0_12 = arith.constant 0 : index
    %11 = vector.load %arg1[%c0_11, %c21, %c0_12] : memref<1x442x64xbf16, #tpu.memory_space<vmem>>, vector<1x420x64xbf16>
    %12 = vector.shape_cast %11 : vector<1x420x64xbf16> to vector<420x64xbf16>
    %c2 = arith.constant 2 : index
    %c0_13 = arith.constant 0 : index
    %c0_14 = arith.constant 0 : index
    %13 = vector.load %arg2[%c2, %c0_13, %c0_14] : memref<4x64x32xbf16, #tpu.memory_space<vmem>>, vector<1x64x32xbf16>
    %14 = vector.shape_cast %13 : vector<1x64x32xbf16> to vector<64x32xbf16>
    %cst_15 = arith.constant dense<0.000000e+00> : vector<420x32xf32>
    %15 = tpu.matmul %12, %14, %cst_15 {dimension_numbers = #tpu.dot_dimension_numbers<[1], [0], [0], [1], [0, 0, 1, 1], [], []>} : vector<420x64xbf16>, vector<64x32xbf16>, vector<420x32xf32> -> vector<420x32xf32>
    %16 = arith.addf %10, %15 : vector<420x32xf32>
    %c0_16 = arith.constant 0 : index
    %c22 = arith.constant 22 : index
    %c0_17 = arith.constant 0 : index
    %17 = vector.load %arg1[%c0_16, %c22, %c0_17] : memref<1x442x64xbf16, #tpu.memory_space<vmem>>, vector<1x420x64xbf16>
    %18 = vector.shape_cast %17 : vector<1x420x64xbf16> to vector<420x64xbf16>
    %c3 = arith.constant 3 : index
    %c0_18 = arith.constant 0 : index
    %c0_19 = arith.constant 0 : index
    %19 = vector.load %arg2[%c3, %c0_18, %c0_19] : memref<4x64x32xbf16, #tpu.memory_space<vmem>>, vector<1x64x32xbf16>
    %20 = vector.shape_cast %19 : vector<1x64x32xbf16> to vector<64x32xbf16>
    %cst_20 = arith.constant dense<0.000000e+00> : vector<420x32xf32>
    %21 = tpu.matmul %18, %20, %cst_20 {dimension_numbers = #tpu.dot_dimension_numbers<[1], [0], [0], [1], [0, 0, 1, 1], [], []>} : vector<420x64xbf16>, vector<64x32xbf16>, vector<420x32xf32> -> vector<420x32xf32>
    %22 = arith.addf %16, %21 : vector<420x32xf32>
    %c0_21 = arith.constant 0 : index
    %c0_22 = arith.constant 0 : index
    %23 = vector.load %arg3[%c0_21, %c0_22] : memref<1x32xf32, #tpu.memory_space<vmem>>, vector<1x32xf32>
    %24 = vector.broadcast %23 : vector<1x32xf32> to vector<420x32xf32>
    %25 = arith.addf %22, %24 : vector<420x32xf32>
    %cst_23 = arith.constant 0.000000e+00 : f32
    %26 = vector.broadcast %cst_23 : f32 to vector<420x32xf32>
    %27 = arith.maximumf %25, %26 : vector<420x32xf32>
    %28 = arith.truncf %27 : vector<420x32xf32> to vector<420x32xbf16>
    %c0_24 = arith.constant 0 : index
    %c0_25 = arith.constant 0 : index
    %c0_26 = arith.constant 0 : index
    %29 = vector.load %arg4[%c0_24, %c0_25, %c0_26] : memref<1x420x32xbf16, #tpu.memory_space<vmem>>, vector<1x420x32xbf16>
    %30 = vector.shape_cast %29 : vector<1x420x32xbf16> to vector<420x32xbf16>
    %31 = vector.shape_cast %28 : vector<420x32xbf16> to vector<1x420x32xbf16>
    tpu.vector_store %arg4[%c0_24, %c0_25, %c0_26], %31 {strides = array<i32>} : memref<1x420x32xbf16, #tpu.memory_space<vmem>>, vector<1x420x32xbf16>,
    return
  }
  func.func @transform_0(%arg0: i32) -> (i32, i32, i32) {
    %c0_i32 = arith.constant 0 : i32
    %c0_i32_0 = arith.constant 0 : i32
    %c0_i32_1 = arith.constant 0 : i32
    return %arg0, %c0_i32, %c0_i32_0 : i32, i32, i32
  }
  func.func @transform_1(%arg0: i32) -> (i32, i32, i32) {
    %c0_i32 = arith.constant 0 : i32
    %c0_i32_0 = arith.constant 0 : i32
    %c0_i32_1 = arith.constant 0 : i32
    %c0_i32_2 = arith.constant 0 : i32
    return %c0_i32, %c0_i32_0, %c0_i32_1 : i32, i32, i32
  }
  func.func @transform_2(%arg0: i32) -> (i32, i32) {
    %c0_i32 = arith.constant 0 : i32
    %c0_i32_0 = arith.constant 0 : i32
    %c0_i32_1 = arith.constant 0 : i32
    return %c0_i32, %c0_i32_0 : i32, i32
  }
  func.func @transform_3(%arg0: i32) -> (i32, i32, i32) {
    %c0_i32 = arith.constant 0 : i32
    %c0_i32_0 = arith.constant 0 : i32
    %c0_i32_1 = arith.constant 0 : i32
    return %arg0, %c0_i32, %c0_i32_0 : i32, i32, i32
  }
}

module attributes {stable_mosaic.version = 11 : i64} {
  func.func @_conv_taps_kernel(%arg0: i32, %arg1: memref<1x101x128xbf16, #tpu.memory_space<vmem>>, %arg2: memref<4x128x64xbf16, #tpu.memory_space<vmem>>, %arg3: memref<1x64xf32, #tpu.memory_space<vmem>>, %arg4: memref<1x90x64xbf16, #tpu.memory_space<vmem>>) attributes {dimension_semantics = [#tpu.dimension_semantics<parallel>], iteration_bounds = array<i64: 2>, scalar_prefetch = 0 : i64, scratch_operands = 0 : i64, tpu.core_type = #tpu.core_type<tc>, window_params = [{transform_indices = @transform_0, window_bounds = array<i64: 1, 101, 128>}, {pipeline_mode = #tpu.pipeline_mode<synchronous>, transform_indices = @transform_1, window_bounds = array<i64: 4, 128, 64>}, {pipeline_mode = #tpu.pipeline_mode<synchronous>, transform_indices = @transform_2, window_bounds = array<i64: 1, 64>}, {transform_indices = @transform_3, window_bounds = array<i64: 1, 90, 64>}]} {
    %c0 = arith.constant 0 : index
    %c0_0 = arith.constant 0 : index
    %c0_1 = arith.constant 0 : index
    %0 = vector.load %arg1[%c0, %c0_0, %c0_1] : memref<1x101x128xbf16, #tpu.memory_space<vmem>>, vector<1x90x128xbf16>
    %1 = vector.shape_cast %0 : vector<1x90x128xbf16> to vector<90x128xbf16>
    %c0_2 = arith.constant 0 : index
    %c0_3 = arith.constant 0 : index
    %c0_4 = arith.constant 0 : index
    %2 = vector.load %arg2[%c0_2, %c0_3, %c0_4] : memref<4x128x64xbf16, #tpu.memory_space<vmem>>, vector<1x128x64xbf16>
    %3 = vector.shape_cast %2 : vector<1x128x64xbf16> to vector<128x64xbf16>
    %cst = arith.constant dense<0.000000e+00> : vector<90x64xf32>
    %4 = tpu.matmul %1, %3, %cst {dimension_numbers = #tpu.dot_dimension_numbers<[1], [0], [0], [1], [0, 0, 1, 1], [], []>} : vector<90x128xbf16>, vector<128x64xbf16>, vector<90x64xf32> -> vector<90x64xf32>
    %c0_5 = arith.constant 0 : index
    %c1 = arith.constant 1 : index
    %c0_6 = arith.constant 0 : index
    %5 = vector.load %arg1[%c0_5, %c1, %c0_6] : memref<1x101x128xbf16, #tpu.memory_space<vmem>>, vector<1x90x128xbf16>
    %6 = vector.shape_cast %5 : vector<1x90x128xbf16> to vector<90x128xbf16>
    %c1_7 = arith.constant 1 : index
    %c0_8 = arith.constant 0 : index
    %c0_9 = arith.constant 0 : index
    %7 = vector.load %arg2[%c1_7, %c0_8, %c0_9] : memref<4x128x64xbf16, #tpu.memory_space<vmem>>, vector<1x128x64xbf16>
    %8 = vector.shape_cast %7 : vector<1x128x64xbf16> to vector<128x64xbf16>
    %cst_10 = arith.constant dense<0.000000e+00> : vector<90x64xf32>
    %9 = tpu.matmul %6, %8, %cst_10 {dimension_numbers = #tpu.dot_dimension_numbers<[1], [0], [0], [1], [0, 0, 1, 1], [], []>} : vector<90x128xbf16>, vector<128x64xbf16>, vector<90x64xf32> -> vector<90x64xf32>
    %10 = arith.addf %4, %9 : vector<90x64xf32>
    %c0_11 = arith.constant 0 : index
    %c10 = arith.constant 10 : index
    %c0_12 = arith.constant 0 : index
    %11 = vector.load %arg1[%c0_11, %c10, %c0_12] : memref<1x101x128xbf16, #tpu.memory_space<vmem>>, vector<1x90x128xbf16>
    %12 = vector.shape_cast %11 : vector<1x90x128xbf16> to vector<90x128xbf16>
    %c2 = arith.constant 2 : index
    %c0_13 = arith.constant 0 : index
    %c0_14 = arith.constant 0 : index
    %13 = vector.load %arg2[%c2, %c0_13, %c0_14] : memref<4x128x64xbf16, #tpu.memory_space<vmem>>, vector<1x128x64xbf16>
    %14 = vector.shape_cast %13 : vector<1x128x64xbf16> to vector<128x64xbf16>
    %cst_15 = arith.constant dense<0.000000e+00> : vector<90x64xf32>
    %15 = tpu.matmul %12, %14, %cst_15 {dimension_numbers = #tpu.dot_dimension_numbers<[1], [0], [0], [1], [0, 0, 1, 1], [], []>} : vector<90x128xbf16>, vector<128x64xbf16>, vector<90x64xf32> -> vector<90x64xf32>
    %16 = arith.addf %10, %15 : vector<90x64xf32>
    %c0_16 = arith.constant 0 : index
    %c11 = arith.constant 11 : index
    %c0_17 = arith.constant 0 : index
    %17 = vector.load %arg1[%c0_16, %c11, %c0_17] : memref<1x101x128xbf16, #tpu.memory_space<vmem>>, vector<1x90x128xbf16>
    %18 = vector.shape_cast %17 : vector<1x90x128xbf16> to vector<90x128xbf16>
    %c3 = arith.constant 3 : index
    %c0_18 = arith.constant 0 : index
    %c0_19 = arith.constant 0 : index
    %19 = vector.load %arg2[%c3, %c0_18, %c0_19] : memref<4x128x64xbf16, #tpu.memory_space<vmem>>, vector<1x128x64xbf16>
    %20 = vector.shape_cast %19 : vector<1x128x64xbf16> to vector<128x64xbf16>
    %cst_20 = arith.constant dense<0.000000e+00> : vector<90x64xf32>
    %21 = tpu.matmul %18, %20, %cst_20 {dimension_numbers = #tpu.dot_dimension_numbers<[1], [0], [0], [1], [0, 0, 1, 1], [], []>} : vector<90x128xbf16>, vector<128x64xbf16>, vector<90x64xf32> -> vector<90x64xf32>
    %22 = arith.addf %16, %21 : vector<90x64xf32>
    %c0_21 = arith.constant 0 : index
    %c0_22 = arith.constant 0 : index
    %23 = vector.load %arg3[%c0_21, %c0_22] : memref<1x64xf32, #tpu.memory_space<vmem>>, vector<1x64xf32>
    %24 = vector.broadcast %23 : vector<1x64xf32> to vector<90x64xf32>
    %25 = arith.addf %22, %24 : vector<90x64xf32>
    %cst_23 = arith.constant 0.000000e+00 : f32
    %26 = vector.broadcast %cst_23 : f32 to vector<90x64xf32>
    %27 = arith.maximumf %25, %26 : vector<90x64xf32>
    %28 = arith.truncf %27 : vector<90x64xf32> to vector<90x64xbf16>
    %c0_24 = arith.constant 0 : index
    %c0_25 = arith.constant 0 : index
    %c0_26 = arith.constant 0 : index
    %29 = vector.load %arg4[%c0_24, %c0_25, %c0_26] : memref<1x90x64xbf16, #tpu.memory_space<vmem>>, vector<1x90x64xbf16>
    %30 = vector.shape_cast %29 : vector<1x90x64xbf16> to vector<90x64xbf16>
    %31 = vector.shape_cast %28 : vector<90x64xbf16> to vector<1x90x64xbf16>
    tpu.vector_store %arg4[%c0_24, %c0_25, %c0_26], %31 {strides = array<i32>} : memref<1x90x64xbf16, #tpu.memory_space<vmem>>, vector<1x90x64xbf16>,
    return
  }
  func.func @transform_0(%arg0: i32) -> (i32, i32, i32) {
    %c0_i32 = arith.constant 0 : i32
    %c0_i32_0 = arith.constant 0 : i32
    %c0_i32_1 = arith.constant 0 : i32
    return %arg0, %c0_i32, %c0_i32_0 : i32, i32, i32
  }
  func.func @transform_1(%arg0: i32) -> (i32, i32, i32) {
    %c0_i32 = arith.constant 0 : i32
    %c0_i32_0 = arith.constant 0 : i32
    %c0_i32_1 = arith.constant 0 : i32
    %c0_i32_2 = arith.constant 0 : i32
    return %c0_i32, %c0_i32_0, %c0_i32_1 : i32, i32, i32
  }
  func.func @transform_2(%arg0: i32) -> (i32, i32) {
    %c0_i32 = arith.constant 0 : i32
    %c0_i32_0 = arith.constant 0 : i32
    %c0_i32_1 = arith.constant 0 : i32
    return %c0_i32, %c0_i32_0 : i32, i32
  }
  func.func @transform_3(%arg0: i32) -> (i32, i32, i32) {
    %c0_i32 = arith.constant 0 : i32
    %c0_i32_0 = arith.constant 0 : i32
    %c0_i32_1 = arith.constant 0 : i32
    return %arg0, %c0_i32, %c0_i32_0 : i32, i32, i32
  }
}

module attributes {stable_mosaic.version = 11 : i64} {
  func.func @_conv_taps_kernel(%arg0: i32, %arg1: memref<1x92x64xbf16, #tpu.memory_space<vmem>>, %arg2: memref<9x64x64xbf16, #tpu.memory_space<vmem>>, %arg3: memref<1x64xf32, #tpu.memory_space<vmem>>, %arg4: memref<1x70x64xbf16, #tpu.memory_space<vmem>>) attributes {dimension_semantics = [#tpu.dimension_semantics<parallel>], iteration_bounds = array<i64: 2>, scalar_prefetch = 0 : i64, scratch_operands = 0 : i64, tpu.core_type = #tpu.core_type<tc>, window_params = [{transform_indices = @transform_0, window_bounds = array<i64: 1, 92, 64>}, {pipeline_mode = #tpu.pipeline_mode<synchronous>, transform_indices = @transform_1, window_bounds = array<i64: 9, 64, 64>}, {pipeline_mode = #tpu.pipeline_mode<synchronous>, transform_indices = @transform_2, window_bounds = array<i64: 1, 64>}, {transform_indices = @transform_3, window_bounds = array<i64: 1, 70, 64>}]} {
    %c0 = arith.constant 0 : index
    %c0_0 = arith.constant 0 : index
    %c0_1 = arith.constant 0 : index
    %0 = vector.load %arg1[%c0, %c0_0, %c0_1] : memref<1x92x64xbf16, #tpu.memory_space<vmem>>, vector<1x70x64xbf16>
    %1 = vector.shape_cast %0 : vector<1x70x64xbf16> to vector<70x64xbf16>
    %c0_2 = arith.constant 0 : index
    %c0_3 = arith.constant 0 : index
    %c0_4 = arith.constant 0 : index
    %2 = vector.load %arg2[%c0_2, %c0_3, %c0_4] : memref<9x64x64xbf16, #tpu.memory_space<vmem>>, vector<1x64x64xbf16>
    %3 = vector.shape_cast %2 : vector<1x64x64xbf16> to vector<64x64xbf16>
    %cst = arith.constant dense<0.000000e+00> : vector<70x64xf32>
    %4 = tpu.matmul %1, %3, %cst {dimension_numbers = #tpu.dot_dimension_numbers<[1], [0], [0], [1], [0, 0, 1, 1], [], []>} : vector<70x64xbf16>, vector<64x64xbf16>, vector<70x64xf32> -> vector<70x64xf32>
    %c0_5 = arith.constant 0 : index
    %c1 = arith.constant 1 : index
    %c0_6 = arith.constant 0 : index
    %5 = vector.load %arg1[%c0_5, %c1, %c0_6] : memref<1x92x64xbf16, #tpu.memory_space<vmem>>, vector<1x70x64xbf16>
    %6 = vector.shape_cast %5 : vector<1x70x64xbf16> to vector<70x64xbf16>
    %c1_7 = arith.constant 1 : index
    %c0_8 = arith.constant 0 : index
    %c0_9 = arith.constant 0 : index
    %7 = vector.load %arg2[%c1_7, %c0_8, %c0_9] : memref<9x64x64xbf16, #tpu.memory_space<vmem>>, vector<1x64x64xbf16>
    %8 = vector.shape_cast %7 : vector<1x64x64xbf16> to vector<64x64xbf16>
    %cst_10 = arith.constant dense<0.000000e+00> : vector<70x64xf32>
    %9 = tpu.matmul %6, %8, %cst_10 {dimension_numbers = #tpu.dot_dimension_numbers<[1], [0], [0], [1], [0, 0, 1, 1], [], []>} : vector<70x64xbf16>, vector<64x64xbf16>, vector<70x64xf32> -> vector<70x64xf32>
    %10 = arith.addf %4, %9 : vector<70x64xf32>
    %c0_11 = arith.constant 0 : index
    %c2 = arith.constant 2 : index
    %c0_12 = arith.constant 0 : index
    %11 = vector.load %arg1[%c0_11, %c2, %c0_12] : memref<1x92x64xbf16, #tpu.memory_space<vmem>>, vector<1x70x64xbf16>
    %12 = vector.shape_cast %11 : vector<1x70x64xbf16> to vector<70x64xbf16>
    %c2_13 = arith.constant 2 : index
    %c0_14 = arith.constant 0 : index
    %c0_15 = arith.constant 0 : index
    %13 = vector.load %arg2[%c2_13, %c0_14, %c0_15] : memref<9x64x64xbf16, #tpu.memory_space<vmem>>, vector<1x64x64xbf16>
    %14 = vector.shape_cast %13 : vector<1x64x64xbf16> to vector<64x64xbf16>
    %cst_16 = arith.constant dense<0.000000e+00> : vector<70x64xf32>
    %15 = tpu.matmul %12, %14, %cst_16 {dimension_numbers = #tpu.dot_dimension_numbers<[1], [0], [0], [1], [0, 0, 1, 1], [], []>} : vector<70x64xbf16>, vector<64x64xbf16>, vector<70x64xf32> -> vector<70x64xf32>
    %16 = arith.addf %10, %15 : vector<70x64xf32>
    %c0_17 = arith.constant 0 : index
    %c10 = arith.constant 10 : index
    %c0_18 = arith.constant 0 : index
    %17 = vector.load %arg1[%c0_17, %c10, %c0_18] : memref<1x92x64xbf16, #tpu.memory_space<vmem>>, vector<1x70x64xbf16>
    %18 = vector.shape_cast %17 : vector<1x70x64xbf16> to vector<70x64xbf16>
    %c3 = arith.constant 3 : index
    %c0_19 = arith.constant 0 : index
    %c0_20 = arith.constant 0 : index
    %19 = vector.load %arg2[%c3, %c0_19, %c0_20] : memref<9x64x64xbf16, #tpu.memory_space<vmem>>, vector<1x64x64xbf16>
    %20 = vector.shape_cast %19 : vector<1x64x64xbf16> to vector<64x64xbf16>
    %cst_21 = arith.constant dense<0.000000e+00> : vector<70x64xf32>
    %21 = tpu.matmul %18, %20, %cst_21 {dimension_numbers = #tpu.dot_dimension_numbers<[1], [0], [0], [1], [0, 0, 1, 1], [], []>} : vector<70x64xbf16>, vector<64x64xbf16>, vector<70x64xf32> -> vector<70x64xf32>
    %22 = arith.addf %16, %21 : vector<70x64xf32>
    %c0_22 = arith.constant 0 : index
    %c11 = arith.constant 11 : index
    %c0_23 = arith.constant 0 : index
    %23 = vector.load %arg1[%c0_22, %c11, %c0_23] : memref<1x92x64xbf16, #tpu.memory_space<vmem>>, vector<1x70x64xbf16>
    %24 = vector.shape_cast %23 : vector<1x70x64xbf16> to vector<70x64xbf16>
    %c4 = arith.constant 4 : index
    %c0_24 = arith.constant 0 : index
    %c0_25 = arith.constant 0 : index
    %25 = vector.load %arg2[%c4, %c0_24, %c0_25] : memref<9x64x64xbf16, #tpu.memory_space<vmem>>, vector<1x64x64xbf16>
    %26 = vector.shape_cast %25 : vector<1x64x64xbf16> to vector<64x64xbf16>
    %cst_26 = arith.constant dense<0.000000e+00> : vector<70x64xf32>
    %27 = tpu.matmul %24, %26, %cst_26 {dimension_numbers = #tpu.dot_dimension_numbers<[1], [0], [0], [1], [0, 0, 1, 1], [], []>} : vector<70x64xbf16>, vector<64x64xbf16>, vector<70x64xf32> -> vector<70x64xf32>
    %28 = arith.addf %22, %27 : vector<70x64xf32>
    %c0_27 = arith.constant 0 : index
    %c12 = arith.constant 12 : index
    %c0_28 = arith.constant 0 : index
    %29 = vector.load %arg1[%c0_27, %c12, %c0_28] : memref<1x92x64xbf16, #tpu.memory_space<vmem>>, vector<1x70x64xbf16>
    %30 = vector.shape_cast %29 : vector<1x70x64xbf16> to vector<70x64xbf16>
    %c5 = arith.constant 5 : index
    %c0_29 = arith.constant 0 : index
    %c0_30 = arith.constant 0 : index
    %31 = vector.load %arg2[%c5, %c0_29, %c0_30] : memref<9x64x64xbf16, #tpu.memory_space<vmem>>, vector<1x64x64xbf16>
    %32 = vector.shape_cast %31 : vector<1x64x64xbf16> to vector<64x64xbf16>
    %cst_31 = arith.constant dense<0.000000e+00> : vector<70x64xf32>
    %33 = tpu.matmul %30, %32, %cst_31 {dimension_numbers = #tpu.dot_dimension_numbers<[1], [0], [0], [1], [0, 0, 1, 1], [], []>} : vector<70x64xbf16>, vector<64x64xbf16>, vector<70x64xf32> -> vector<70x64xf32>
    %34 = arith.addf %28, %33 : vector<70x64xf32>
    %c0_32 = arith.constant 0 : index
    %c20 = arith.constant 20 : index
    %c0_33 = arith.constant 0 : index
    %35 = vector.load %arg1[%c0_32, %c20, %c0_33] : memref<1x92x64xbf16, #tpu.memory_space<vmem>>, vector<1x70x64xbf16>
    %36 = vector.shape_cast %35 : vector<1x70x64xbf16> to vector<70x64xbf16>
    %c6 = arith.constant 6 : index
    %c0_34 = arith.constant 0 : index
    %c0_35 = arith.constant 0 : index
    %37 = vector.load %arg2[%c6, %c0_34, %c0_35] : memref<9x64x64xbf16, #tpu.memory_space<vmem>>, vector<1x64x64xbf16>
    %38 = vector.shape_cast %37 : vector<1x64x64xbf16> to vector<64x64xbf16>
    %cst_36 = arith.constant dense<0.000000e+00> : vector<70x64xf32>
    %39 = tpu.matmul %36, %38, %cst_36 {dimension_numbers = #tpu.dot_dimension_numbers<[1], [0], [0], [1], [0, 0, 1, 1], [], []>} : vector<70x64xbf16>, vector<64x64xbf16>, vector<70x64xf32> -> vector<70x64xf32>
    %40 = arith.addf %34, %39 : vector<70x64xf32>
    %c0_37 = arith.constant 0 : index
    %c21 = arith.constant 21 : index
    %c0_38 = arith.constant 0 : index
    %41 = vector.load %arg1[%c0_37, %c21, %c0_38] : memref<1x92x64xbf16, #tpu.memory_space<vmem>>, vector<1x70x64xbf16>
    %42 = vector.shape_cast %41 : vector<1x70x64xbf16> to vector<70x64xbf16>
    %c7 = arith.constant 7 : index
    %c0_39 = arith.constant 0 : index
    %c0_40 = arith.constant 0 : index
    %43 = vector.load %arg2[%c7, %c0_39, %c0_40] : memref<9x64x64xbf16, #tpu.memory_space<vmem>>, vector<1x64x64xbf16>
    %44 = vector.shape_cast %43 : vector<1x64x64xbf16> to vector<64x64xbf16>
    %cst_41 = arith.constant dense<0.000000e+00> : vector<70x64xf32>
    %45 = tpu.matmul %42, %44, %cst_41 {dimension_numbers = #tpu.dot_dimension_numbers<[1], [0], [0], [1], [0, 0, 1, 1], [], []>} : vector<70x64xbf16>, vector<64x64xbf16>, vector<70x64xf32> -> vector<70x64xf32>
    %46 = arith.addf %40, %45 : vector<70x64xf32>
    %c0_42 = arith.constant 0 : index
    %c22 = arith.constant 22 : index
    %c0_43 = arith.constant 0 : index
    %47 = vector.load %arg1[%c0_42, %c22, %c0_43] : memref<1x92x64xbf16, #tpu.memory_space<vmem>>, vector<1x70x64xbf16>
    %48 = vector.shape_cast %47 : vector<1x70x64xbf16> to vector<70x64xbf16>
    %c8 = arith.constant 8 : index
    %c0_44 = arith.constant 0 : index
    %c0_45 = arith.constant 0 : index
    %49 = vector.load %arg2[%c8, %c0_44, %c0_45] : memref<9x64x64xbf16, #tpu.memory_space<vmem>>, vector<1x64x64xbf16>
    %50 = vector.shape_cast %49 : vector<1x64x64xbf16> to vector<64x64xbf16>
    %cst_46 = arith.constant dense<0.000000e+00> : vector<70x64xf32>
    %51 = tpu.matmul %48, %50, %cst_46 {dimension_numbers = #tpu.dot_dimension_numbers<[1], [0], [0], [1], [0, 0, 1, 1], [], []>} : vector<70x64xbf16>, vector<64x64xbf16>, vector<70x64xf32> -> vector<70x64xf32>
    %52 = arith.addf %46, %51 : vector<70x64xf32>
    %c0_47 = arith.constant 0 : index
    %c0_48 = arith.constant 0 : index
    %53 = vector.load %arg3[%c0_47, %c0_48] : memref<1x64xf32, #tpu.memory_space<vmem>>, vector<1x64xf32>
    %54 = vector.broadcast %53 : vector<1x64xf32> to vector<70x64xf32>
    %55 = arith.addf %52, %54 : vector<70x64xf32>
    %cst_49 = arith.constant 0.000000e+00 : f32
    %56 = vector.broadcast %cst_49 : f32 to vector<70x64xf32>
    %57 = arith.maximumf %55, %56 : vector<70x64xf32>
    %58 = arith.truncf %57 : vector<70x64xf32> to vector<70x64xbf16>
    %c0_50 = arith.constant 0 : index
    %c0_51 = arith.constant 0 : index
    %c0_52 = arith.constant 0 : index
    %59 = vector.load %arg4[%c0_50, %c0_51, %c0_52] : memref<1x70x64xbf16, #tpu.memory_space<vmem>>, vector<1x70x64xbf16>
    %60 = vector.shape_cast %59 : vector<1x70x64xbf16> to vector<70x64xbf16>
    %61 = vector.shape_cast %58 : vector<70x64xbf16> to vector<1x70x64xbf16>
    tpu.vector_store %arg4[%c0_50, %c0_51, %c0_52], %61 {strides = array<i32>} : memref<1x70x64xbf16, #tpu.memory_space<vmem>>, vector<1x70x64xbf16>,
    return
  }
  func.func @transform_0(%arg0: i32) -> (i32, i32, i32) {
    %c0_i32 = arith.constant 0 : i32
    %c0_i32_0 = arith.constant 0 : i32
    %c0_i32_1 = arith.constant 0 : i32
    return %arg0, %c0_i32, %c0_i32_0 : i32, i32, i32
  }
  func.func @transform_1(%arg0: i32) -> (i32, i32, i32) {
    %c0_i32 = arith.constant 0 : i32
    %c0_i32_0 = arith.constant 0 : i32
    %c0_i32_1 = arith.constant 0 : i32
    %c0_i32_2 = arith.constant 0 : i32
    return %c0_i32, %c0_i32_0, %c0_i32_1 : i32, i32, i32
  }
  func.func @transform_2(%arg0: i32) -> (i32, i32) {
    %c0_i32 = arith.constant 0 : i32
    %c0_i32_0 = arith.constant 0 : i32
    %c0_i32_1 = arith.constant 0 : i32
    return %c0_i32, %c0_i32_0 : i32, i32
  }
  func.func @transform_3(%arg0: i32) -> (i32, i32, i32) {
    %c0_i32 = arith.constant 0 : i32
    %c0_i32_0 = arith.constant 0 : i32
    %c0_i32_1 = arith.constant 0 : i32
    return %arg0, %c0_i32, %c0_i32_0 : i32, i32, i32
  }
}

module attributes {stable_mosaic.version = 11 : i64} {
  func.func @_lin_head_kernel(%arg0: i32, %arg1: memref<16x4480xbf16, #tpu.memory_space<vmem>>, %arg2: memref<4480x512xbf16, #tpu.memory_space<vmem>>, %arg3: memref<1x512xf32, #tpu.memory_space<vmem>>, %arg4: memref<512x128xbf16, #tpu.memory_space<vmem>>, %arg5: memref<1x128xf32, #tpu.memory_space<vmem>>, %arg6: memref<16x128xf32, #tpu.memory_space<vmem>>) attributes {dimension_semantics = [#tpu.dimension_semantics<parallel>], iteration_bounds = array<i64: 1>, scalar_prefetch = 0 : i64, scratch_operands = 0 : i64, tpu.core_type = #tpu.core_type<tc>, window_params = [{transform_indices = @transform_0, window_bounds = array<i64: 16, 4480>}, {pipeline_mode = #tpu.pipeline_mode<synchronous>, transform_indices = @transform_1, window_bounds = array<i64: 4480, 512>}, {pipeline_mode = #tpu.pipeline_mode<synchronous>, transform_indices = @transform_2, window_bounds = array<i64: 1, 512>}, {pipeline_mode = #tpu.pipeline_mode<synchronous>, transform_indices = @transform_3, window_bounds = array<i64: 512, 128>}, {pipeline_mode = #tpu.pipeline_mode<synchronous>, transform_indices = @transform_4, window_bounds = array<i64: 1, 128>}, {transform_indices = @transform_5, window_bounds = array<i64: 16, 128>}]} {
    %c0 = arith.constant 0 : index
    %c0_0 = arith.constant 0 : index
    %0 = vector.load %arg1[%c0, %c0_0] : memref<16x4480xbf16, #tpu.memory_space<vmem>>, vector<16x4480xbf16>
    %c0_1 = arith.constant 0 : index
    %c0_2 = arith.constant 0 : index
    %1 = vector.load %arg2[%c0_1, %c0_2] : memref<4480x512xbf16, #tpu.memory_space<vmem>>, vector<4480x512xbf16>
    %cst = arith.constant dense<0.000000e+00> : vector<16x512xf32>
    %2 = tpu.matmul %0, %1, %cst {dimension_numbers = #tpu.dot_dimension_numbers<[1], [0], [0], [1], [0, 0, 1, 1], [], []>} : vector<16x4480xbf16>, vector<4480x512xbf16>, vector<16x512xf32> -> vector<16x512xf32>
    %c0_3 = arith.constant 0 : index
    %c0_4 = arith.constant 0 : index
    %3 = vector.load %arg3[%c0_3, %c0_4] : memref<1x512xf32, #tpu.memory_space<vmem>>, vector<1x512xf32>
    %4 = vector.broadcast %3 : vector<1x512xf32> to vector<16x512xf32>
    %5 = arith.addf %2, %4 : vector<16x512xf32>
    %cst_5 = arith.constant 0.000000e+00 : f32
    %6 = vector.broadcast %cst_5 : f32 to vector<16x512xf32>
    %7 = arith.maximumf %5, %6 : vector<16x512xf32>
    %8 = arith.truncf %7 : vector<16x512xf32> to vector<16x512xbf16>
    %c0_6 = arith.constant 0 : index
    %c0_7 = arith.constant 0 : index
    %9 = vector.load %arg4[%c0_6, %c0_7] : memref<512x128xbf16, #tpu.memory_space<vmem>>, vector<512x128xbf16>
    %cst_8 = arith.constant dense<0.000000e+00> : vector<16x128xf32>
    %10 = tpu.matmul %8, %9, %cst_8 {dimension_numbers = #tpu.dot_dimension_numbers<[1], [0], [0], [1], [0, 0, 1, 1], [], []>} : vector<16x512xbf16>, vector<512x128xbf16>, vector<16x128xf32> -> vector<16x128xf32>
    %c0_9 = arith.constant 0 : index
    %c0_10 = arith.constant 0 : index
    %11 = vector.load %arg5[%c0_9, %c0_10] : memref<1x128xf32, #tpu.memory_space<vmem>>, vector<1x128xf32>
    %12 = vector.broadcast %11 : vector<1x128xf32> to vector<16x128xf32>
    %13 = arith.addf %10, %12 : vector<16x128xf32>
    %c0_11 = arith.constant 0 : index
    %c0_12 = arith.constant 0 : index
    %14 = vector.load %arg6[%c0_11, %c0_12] : memref<16x128xf32, #tpu.memory_space<vmem>>, vector<16x128xf32>
    tpu.vector_store %arg6[%c0_11, %c0_12], %13 {strides = array<i32>} : memref<16x128xf32, #tpu.memory_space<vmem>>, vector<16x128xf32>,
    return
  }
  func.func @transform_0(%arg0: i32) -> (i32, i32) {
    %c0_i32 = arith.constant 0 : i32
    %c0_i32_0 = arith.constant 0 : i32
    return %arg0, %c0_i32 : i32, i32
  }
  func.func @transform_1(%arg0: i32) -> (i32, i32) {
    %c0_i32 = arith.constant 0 : i32
    %c0_i32_0 = arith.constant 0 : i32
    %c0_i32_1 = arith.constant 0 : i32
    return %c0_i32, %c0_i32_0 : i32, i32
  }
  func.func @transform_2(%arg0: i32) -> (i32, i32) {
    %c0_i32 = arith.constant 0 : i32
    %c0_i32_0 = arith.constant 0 : i32
    %c0_i32_1 = arith.constant 0 : i32
    return %c0_i32, %c0_i32_0 : i32, i32
  }
  func.func @transform_3(%arg0: i32) -> (i32, i32) {
    %c0_i32 = arith.constant 0 : i32
    %c0_i32_0 = arith.constant 0 : i32
    %c0_i32_1 = arith.constant 0 : i32
    return %c0_i32, %c0_i32_0 : i32, i32
  }
  func.func @transform_4(%arg0: i32) -> (i32, i32) {
    %c0_i32 = arith.constant 0 : i32
    %c0_i32_0 = arith.constant 0 : i32
    %c0_i32_1 = arith.constant 0 : i32
    return %c0_i32, %c0_i32_0 : i32, i32
  }
  func.func @transform_5(%arg0: i32) -> (i32, i32) {
    %c0_i32 = arith.constant 0 : i32
    %c0_i32_0 = arith.constant 0 : i32
    return %arg0, %c0_i32 : i32, i32
  }
}

</mosaic_0001>

<bundles_post_ra>
// kernel: actor_critic_forward.4
= control target key start
LH: loop header
LB: loop body
LE: loop exit
PB: predicated region body
PF: predicated region fallthrough
CT: control target
= control target key end

     0   :  { %s4055_s12 = smov 0   ;;  %s5046_s0 = inlined_call_operand.vmem [shape: bf16[2,442,64], index: 0, kind: input, shape index: {}]   ;;  %s5047_s1 = inlined_call_operand.vmem [shape: bf16[4,64,32], index: 1, kind: input, shape index: {}]   ;;  %s5048_s2 = inlined_call_operand.vmem [shape: f32[1,32], index: 2, kind: input, shape index: {}]   ;;  %s5049_s3 = inlined_call_operand.vmem [shape: bf16[2,420,32], index: 3, kind: output, shape index: {}]  }
   0x1 LB: > { %s3032_s13 = sadd.s32 4294967295, %s4031_s12   ;;  %p3036_p0 = scmp.ge.s32.totalorder %s4031_s12, 1  ;;  %s4031_s12 = sphi %s4055_s12, %s13_s12  }
   0x2   : > { %p137_p1 = scmp.lt.s32.totalorder %s4031_s12, 3 }
   0x4   : > { %p138_p2 = pnand %p3036_p0, %p137_p1 }
   0x6   : > { %141 = sbr.rel (%p138_p2) target bundleno = 677 (0x2a5), region = 32 }
   0xd   : > { %v3952_v0 = vld [vmem:[%s5047_s1 + $0x20] sm:$0xff]   ;;  %v5050_v1 = vmov 0.0   ;;  %v3954_v3 = vld [vmem:[%s5047_s1 + $0x28] sm:$0xff]   ;;  %vm4034_vm0 = vmmov 0   ;;  %p161_p3 = scmp.lt.s32.totalorder %s3032_s13, 1  ;;  %v3956_v5 = vld [vmem:[%s5047_s1 + $0x30] sm:$0xff]  }
   0xe   : > { %3476 = vmatprep.subr.bf16.mxu0 %v5050_v1  ;;  %3592 = vmatprep.subr.bf16.mxu1 %v5050_v1  ;;  %v3953_v2 = vld [vmem:[%s5047_s1] sm:$0xff]   ;;  %v3955_v4 = vld [vmem:[%s5047_s1 + $0x8] sm:$0xff]   ;;  %v3957_v6 = vld [vmem:[%s5047_s1 + $0x10] sm:$0xff]   ;;  %vm376_vm1 = vsmask.f32 7424  ;;  %vm616_vm2 = vcmask 523264  }
   0xf   : > { %3477 = vmatpush3.bf16.msra.mxu0 %v3952_v0  ;;  %3484 = vmatprep.mubr.msk.bf16.mxu0 %vm4034_vm0, %v5050_v1  ;;  %s5068_s13 = smov (!%p161_p3, %s3032_s13), 1  ;;  %v3958_v7 = vld [vmem:[%s5047_s1 + $0x38] sm:$0xff]   ;;  %v3962_v17 = vld [vmem:[%s5047_s1 + $0x40] sm:$0xff]   ;;  %v3970_v26 = vld [vmem:[%s5047_s1 + $0x48] sm:$0xff]   ;;  %vm2136_vm3 = vcmask 1044480   ;;  %vm2922_vm5 = vcmask 257024  }
  0x10   : > { %3593 = vmatpush3.bf16.msra.mxu1 %v3953_v2  ;;  %3478 = vmatprep.subr.bf16.mxu0 %v5050_v1  ;;  %s3940_s24 = smul.u32 224, %s5068_s13  ;;  %v3959_v8 = vld [vmem:[%s5047_s1 + $0x18] sm:$0xff]   ;;  %v3963_v18 = vld [vmem:[%s5047_s1 + $0x60] sm:$0xff]   ;;  %v3972_v27 = vld [vmem:[%s5047_s1 + $0x68] sm:$0xff]   ;;  %vm1474_vm4 = vsmask.f32 5376 }
  0x11   : > { %3594 = vmatprep.subr.bf16.mxu1 %v5050_v1  ;;  %3600 = vmatprep.mubr.msk.bf16.mxu1 %vm4034_vm0, %v5050_v1  ;;  %v3979_v37 = vld [vmem:[%s5047_s1 + $0x50] sm:$0xff]   ;;  %v3988_v51 = vld [vmem:[%s5047_s1 + $0x58] sm:$0xff]   ;;  %s3941_s27 = smul.u32 212, %s5068_s13  ;;  %vm2975_vm6 = vcmask 254976  }
  0x12   : > { %s4100_s4 = scalar_lea.vmem %s5046_s0, %s3940_s24  ;;  %v3980_v38 = vld [vmem:[%s5047_s1 + $0x70] sm:$0xff]   ;;  %v3989_v52 = vld [vmem:[%s5047_s1 + $0x78] sm:$0xff]  }
  0x13   : > { %3479 = vmatpush3.bf16.msra.mxu0 %v3954_v3  ;;  %v3960_v9 = vld [vmem:[%s4100_s4] sm:$0xff]   ;;  %v3961_v10 = vld [vmem:[%s4100_s4 + $0x8] sm:$0xff]   ;;  %v3964_v14 = vld [vmem:[%s4100_s4 + $0x10] sm:$0xff]   ;;  %s4833_s30 = scalar_lea.vmem %s5049_s3, %s3941_s27 }
  0x14   : > { %3595 = vmatpush3.bf16.msra.mxu1 %v3955_v4  ;;  %3480 = vmatprep.subr.bf16.mxu0 %v5050_v1  ;;  %v378_v11 = vshrl.u32 %v3960_v9, 16  ;;  %v380_v12 = vshll.u32 %v3960_v9, 16  ;;  %v385_v13 = vshll.u32 %v3961_v10, 16  ;;  %v389_v20 = vshrl.u32 %v3961_v10, 16  ;;  %v3965_v25 = vld [vmem:[%s4100_s4 + $0x18] sm:$0xff]   ;;  %v3966_v31 = vld [vmem:[%s4100_s4 + $0x20] sm:$0xff]  }
  0x15   : > { %3596 = vmatprep.subr.bf16.mxu1 %v5050_v1  ;;  %v393_v21 = vshll.u32 %v3964_v14, 16  ;;  %v397_v29 = vshrl.u32 %v3964_v14, 16  ;;  %v401_v30 = vshll.u32 %v3965_v25, 16  ;;  %v409_v34 = vshll.u32 %v3966_v31, 16  ;;  %v3967_v40 = vld [vmem:[%s4100_s4 + $0x28] sm:$0xff]   ;;  %v3968_v47 = vld [vmem:[%s4100_s4 + $0x30] sm:$0xff]  }
  0x16   : > { %v382_v15 = vrot.slane %v380_v12, 1  ;;  %v387_v16 = vrot.slane %v385_v13, 1  ;;  %v405_v36 = vshrl.u32 %v3965_v25, 16  ;;  %v413_v43 = vshrl.u32 %v3966_v31, 16  ;;  %v3969_v55 = vld [vmem:[%s4100_s4 + $0x38] sm:$0xff]   ;;  %v3971_v61 = vld [vmem:[%s4100_s4 + $0x40] sm:$0xff]  }
  0x17   : > { %3481 = vmatpush3.bf16.msra.mxu0 %v3956_v5  ;;  %v395_v24 = vrot.slane %v393_v21, 1  ;;  %v403_v33 = vrot.slane %v401_v30, 1  ;;  %v411_v39 = vrot.slane %v409_v34, 1  ;;  %v417_v44 = vshll.u32 %v3967_v40, 16  ;;  %v3973_v4 = vld [vmem:[%s4100_s4 + $0x48] sm:$0xff]   ;;  %v3978_v34 = vld [vmem:[%s4100_s4 + $0x70] sm:$0xff]  }
  0x18   : > { %3597 = vmatpush3.bf16.msra.mxu1 %v3957_v6  ;;  %3482 = vmatprep.subr.bf16.mxu0 %v5050_v1  ;;  %v383_v19 = vor.u32 %v382_v15, %v378_v11  ;;  %v391_v23 = vor.u32 %v389_v20, %v387_v16  ;;  %v421_v49 = vshrl.u32 %v3967_v40, 16  ;;  %v425_v50 = vshll.u32 %v3968_v47, 16 }
  0x19   : > { %3598 = vmatprep.subr.bf16.mxu1 %v5050_v1  ;;  %v399_v32 = vor.u32 %v397_v29, %v395_v24  ;;  %v407_v41 = vor.u32 %v405_v36, %v403_v33  ;;  %v415_v45 = vor.u32 %v413_v43, %v411_v39  ;;  %v419_v46 = vrot.slane %v417_v44, 1 }
  0x1a   : > { %v388_v22 = vsel %vm376_vm1, %v383_v19, %v387_v16  ;;  %v396_v28 = vsel %vm376_vm1, %v391_v23, %v395_v24  ;;  %v427_v54 = vrot.slane %v425_v50, 1  ;;  %v429_v57 = vshrl.u32 %v3968_v47, 16  ;;  %v3975_v16 = vld [vmem:[%s4100_s4 + $0x58] sm:$0xff]  }
  0x1b   : > { %3483 = vmatpush3.bf16.msra.mxu0 %v3958_v7  ;;  %v404_v35 = vsel %vm376_vm1, %v399_v32, %v403_v33  ;;  %v412_v42 = vsel %vm376_vm1, %v407_v41, %v411_v39  ;;  %v420_v48 = vsel %vm376_vm1, %v415_v45, %v419_v46  ;;  %v423_v53 = vor.u32 %v421_v49, %v419_v46  ;;  %v3982_v46 = vld [vmem:[%s4100_s4 + $0x80] sm:$0xff]  }
  0x1c   : > { %3599 = vmatpush3.bf16.msra.mxu1 %v3959_v8  ;;  %3708 = vmatprep.subr.bf16.mxu0 %v5050_v1  ;;  %v433_v58 = vshll.u32 %v3969_v55, 16  ;;  %v431_v59 = vor.u32 %v429_v57, %v427_v54  ;;  %v437_v63 = vshrl.u32 %v3969_v55, 16  ;;  %v441_v0 = vshll.u32 %v3971_v61, 16 }
  0x1d   : > { %3824 = vmatprep.subr.bf16.mxu1 %v5050_v1  ;;  %v428_v56 = vsel %vm376_vm1, %v423_v53, %v427_v54  ;;  %v445_v6 = vshrl.u32 %v3971_v61, 16  ;;  %v449_v7 = vshll.u32 %v3973_v4, 16  ;;  %v453_v12 = vshrl.u32 %v3973_v4, 16 }
  0x1e   : > { %3485 = vmatmul.mubr.msk.bf16.vlgmr.msra.gmra.mrb[0].mxu0 %vm616_vm2, %v388_v22  ;;  %v435_v60 = vrot.slane %v433_v58, 1  ;;  %v443_v3 = vrot.slane %v441_v0, 1  ;;  %v465_v19 = vshll.u32 %v3975_v16, 16  ;;  %v3976_v22 = vld [vmem:[%s4100_s4 + $0x60] sm:$0xff]   ;;  %v469_v24 = vshrl.u32 %v3975_v16, 16  ;;  %v3984_v58 = vld [vmem:[%s4100_s4 + $0x90] sm:$0xff]  }
  0x1f   : > { %3601 = vmatmul.mubr.msk.bf16.vlgmr.msra.gmra.mrb[0].mxu1 %vm616_vm2, %v3960_v9  ;;  %3709 = vmatpush3.bf16.msra.mxu0 %v3962_v17  ;;  %v451_v9 = vrot.slane %v449_v7, 1  ;;  %v477_v30 = vshrl.u32 %v3976_v22, 16  ;;  %v505_v49 = vshll.u32 %v3982_v46, 16  ;;  %v509_v54 = vshrl.u32 %v3982_v46, 16  ;;  %v3985_v0 = vld [vmem:[%s4100_s4 + $0x98] sm:$0xff]   ;;  %v3986_v7 = vld [vmem:[%s4100_s4 + $0xa0] sm:$0xff]  }
  0x20   : > { %3825 = vmatpush3.bf16.msra.mxu1 %v3963_v18  ;;  %3488 = vmatprep.mubr.msk.bf16.mxu0 %vm4034_vm0, %v5050_v1  ;;  %v436_v62 = vsel %vm376_vm1, %v431_v59, %v435_v60  ;;  %v439_v2 = vor.u32 %v437_v63, %v435_v60  ;;  %v447_v8 = vor.u32 %v445_v6, %v443_v3  ;;  %v467_v21 = vrot.slane %v465_v19, 1  ;;  %v3990_v19 = vld [vmem:[%s4100_s4 + $0xb0] sm:$0xff]  }
  0x21   : > { %3604 = vmatprep.mubr.msk.bf16.mxu1 %vm4034_vm0, %v5050_v1  ;;  %3710 = vmatprep.subr.bf16.mxu0 %v5050_v1 }
  0x22   : > { %3826 = vmatprep.subr.bf16.mxu1 %v5050_v1  ;;  %v444_v5 = vsel %vm376_vm1, %v439_v2, %v443_v3  ;;  %v452_v11 = vsel %vm376_vm1, %v447_v8, %v451_v9  ;;  %v525_v3 = vshrl.u32 %v3984_v58, 16 }
  0x23   : > { %3711 = vmatpush3.bf16.msra.mxu0 %v3970_v26  ;;  %v471_v26 = vor.u32 %v469_v24, %v467_v21 }
  0x24   : > { %3827 = vmatpush3.bf16.msra.mxu1 %v3972_v27  ;;  %3712 = vmatprep.subr.bf16.mxu0 %v5050_v1 }
  0x25   : > { %3828 = vmatprep.subr.bf16.mxu1 %v5050_v1 }
  0x26   : > { %3489 = vmatmul.mubr.msk.bf16.gmra.mrb[4].mxu0 %vm616_vm2, %v396_v28  ;;  %v3977_v28 = vld [vmem:[%s4100_s4 + $0x68] sm:$0xff]  }
  0x27   : > { %3605 = vmatmul.mubr.msk.bf16.gmra.mrb[4].mxu1 %vm616_vm2, %v3961_v10  ;;  %3492 = vmatprep.mubr.msk.bf16.mxu0 %vm4034_vm0, %v5050_v1  ;;  %v3974_v10 = vld [vmem:[%s4100_s4 + $0x50] sm:$0xff]   ;;  %v485_v36 = vshrl.u32 %v3977_v28, 16 }
  0x28   : > { %3608 = vmatprep.mubr.msk.bf16.mxu1 %vm4034_vm0, %v5050_v1  ;;  %3713 = vmatpush3.bf16.msra.mxu0 %v3979_v37  ;;  %v457_v13 = vshll.u32 %v3974_v10, 16  ;;  %v461_v18 = vshrl.u32 %v3974_v10, 16  ;;  %v489_v37 = vshll.u32 %v3978_v34, 16 }
  0x29   : > { %3829 = vmatpush3.bf16.msra.mxu1 %v3980_v38  ;;  %3714 = vmatprep.subr.bf16.mxu0 %v5050_v1 }
  0x2a   : > { %3830 = vmatprep.subr.bf16.mxu1 %v5050_v1  ;;  %v459_v15 = vrot.slane %v457_v13, 1  ;;  %v491_v39 = vrot.slane %v489_v37, 1  ;;  %v3987_v13 = vld [vmem:[%s4100_s4 + $0xa8] sm:$0xff]  }
  0x2b   : > { %v3993_v37 = vld [vmem:[%s4100_s4 + $0xc8] sm:$0xff]  }
  0x2c   : > { %3715 = vmatpush3.bf16.msra.mxu0 %v3988_v51  ;;  %v463_v20 = vor.u32 %v461_v18, %v459_v15  ;;  %v507_v51 = vrot.slane %v505_v49, 1  ;;  %v1276_v49 = vld [vmem:[%s4100_s4 + $0x8] sm:$0xc] }
  0x2d   : > { %3831 = vmatpush3.bf16.msra.mxu1 %v3989_v52  ;;  %v3983_v52 = vld [vmem:[%s4100_s4 + $0x88] sm:$0xff]  }
  0x2e   : > { %3493 = vmatmul.mubr.msk.bf16.gmra.mrb[8].mxu0 %vm616_vm2, %v404_v35  ;;  %v468_v23 = vsel %vm376_vm1, %v463_v20, %v467_v21  ;;  %v517_v60 = vshrl.u32 %v3983_v52, 16  ;;  %v549_v21 = vshrl.u32 %v3987_v13, 16 }
  0x2f   : > { %3609 = vmatmul.mubr.msk.bf16.gmra.mrb[8].mxu1 %vm616_vm2, %v3964_v14  ;;  %3496 = vmatprep.mubr.msk.bf16.mxu0 %vm4034_vm0, %v5050_v1  ;;  %v455_v14 = vor.u32 %v453_v12, %v451_v9  ;;  %v533_v9 = vshrl.u32 %v3985_v0, 16 }
  0x30   : > { %3612 = vmatprep.mubr.msk.bf16.mxu1 %vm4034_vm0, %v5050_v1 }
  0x31   : > { %v460_v17 = vsel %vm376_vm1, %v455_v14, %v459_v15  ;;  %v541_v15 = vshrl.u32 %v3986_v7, 16 }
  0x36   : > { %3497 = vmatmul.mubr.msk.bf16.gmra.mrb[12].mxu0 %vm616_vm2, %v412_v42  ;;  %v493_v42 = vshrl.u32 %v3978_v34, 16 }
  0x37   : > { %3613 = vmatmul.mubr.msk.bf16.gmra.mrb[12].mxu1 %vm616_vm2, %v3965_v25  ;;  %3500 = vmatprep.mubr.msk.bf16.mxu0 %vm4034_vm0, %v5050_v1  ;;  %v473_v25 = vshll.u32 %v3976_v22, 16 }
  0x38   : > { %3616 = vmatprep.mubr.msk.bf16.mxu1 %vm4034_vm0, %v5050_v1  ;;  %v495_v44 = vor.u32 %v493_v42, %v491_v39 }
  0x39   : > { %v475_v27 = vrot.slane %v473_v25, 1  ;;  %v3991_v25 = vld [vmem:[%s4100_s4 + $0xb8] sm:$0xff]  }
  0x3b   : > { %v476_v29 = vsel %vm376_vm1, %v471_v26, %v475_v27  ;;  %v479_v32 = vor.u32 %v477_v30, %v475_v27  ;;  %v557_v27 = vshrl.u32 %v3990_v19, 16 }
  0x3e   : > { %3501 = vmatmul.mubr.msk.bf16.gmra.mrb[16].mxu0 %vm616_vm2, %v420_v48 }
  0x3f   : > { %3617 = vmatmul.mubr.msk.bf16.gmra.mrb[16].mxu1 %vm616_vm2, %v3966_v31  ;;  %3504 = vmatprep.mubr.msk.bf16.mxu0 %vm4034_vm0, %v5050_v1  ;;  %v481_v31 = vshll.u32 %v3977_v28, 16 }
  0x40   : > { %3620 = vmatprep.mubr.msk.bf16.mxu1 %vm4034_vm0, %v5050_v1 }
  0x41   : > { %v483_v33 = vrot.slane %v481_v31, 1  ;;  %v3992_v31 = vld [vmem:[%s4100_s4 + $0xc0] sm:$0xff]  }
  0x43   : > { %v484_v35 = vsel %vm376_vm1, %v479_v32, %v483_v33  ;;  %v487_v38 = vor.u32 %v485_v36, %v483_v33  ;;  %v565_v33 = vshrl.u32 %v3991_v25, 16 }
  0x45   : > { %v492_v41 = vsel %vm376_vm1, %v487_v38, %v491_v39  ;;  %v573_v39 = vshrl.u32 %v3992_v31, 16 }
  0x46   : > { %3505 = vmatmul.mubr.msk.bf16.gmra.mrb[20].mxu0 %vm616_vm2, %v428_v56  ;;  %v511_v56 = vor.u32 %v509_v54, %v507_v51 }
  0x47   : > { %3621 = vmatmul.mubr.msk.bf16.gmra.mrb[20].mxu1 %vm616_vm2, %v3967_v40  ;;  %3508 = vmatprep.mubr.msk.bf16.mxu0 %vm4034_vm0, %v5050_v1  ;;  %v3981_v40 = vld [vmem:[%s4100_s4 + $0x78] sm:$0xff]  }
  0x48   : > { %3624 = vmatprep.mubr.msk.bf16.mxu1 %vm4034_vm0, %v5050_v1  ;;  %v497_v43 = vshll.u32 %v3981_v40, 16  ;;  %v501_v48 = vshrl.u32 %v3981_v40, 16 }
  0x4a   : > { %v499_v45 = vrot.slane %v497_v43, 1  ;;  %v3994_v43 = vld [vmem:[%s4100_s4 + $0xd0] ss:$0 sps:$4 sm:$0x77]  }
  0x4b   : > { %v589_v54 = vshrl.u32 %v3994_v43, 16 }
  0x4c   : > { %v503_v50 = vor.u32 %v501_v48, %v499_v45 }
  0x4e   : > { %3509 = vmatmul.mubr.msk.bf16.gmra.mrb[24].mxu0 %vm616_vm2, %v436_v62  ;;  %v508_v53 = vsel %vm376_vm1, %v503_v50, %v507_v51  ;;  %v1277_v50 = vld [vmem:[%s4100_s4 + $0xc] sm:$0xf]  ;;  %v4344_v51 = vld [vmem:[%s4100_s4 + $0x10] sm:$0xff]  }
  0x4f   : > { %3625 = vmatmul.mubr.msk.bf16.gmra.mrb[24].mxu1 %vm616_vm2, %v3968_v47  ;;  %3512 = vmatprep.mubr.msk.bf16.mxu0 %vm4034_vm0, %v5050_v1  ;;  %v500_v47 = vsel %vm376_vm1, %v495_v44, %v499_v45  ;;  %v581_v45 = vshrl.u32 %v3993_v37, 16 }
  0x50   : > { %3628 = vmatprep.mubr.msk.bf16.mxu1 %vm4034_vm0, %v5050_v1 }
  0x56   : > { %3513 = vmatmul.mubr.msk.bf16.gmra.mrb[28].mxu0 %vm616_vm2, %v444_v5 }
  0x57   : > { %3629 = vmatmul.mubr.msk.bf16.gmra.mrb[28].mxu1 %vm616_vm2, %v3969_v55  ;;  %3516 = vmatprep.mubr.msk.bf16.mxu0 %vm4034_vm0, %v5050_v1  ;;  %v513_v55 = vshll.u32 %v3983_v52, 16 }
  0x58   : > { %3632 = vmatprep.mubr.msk.bf16.mxu1 %vm4034_vm0, %v5050_v1 }
  0x59   : > { %v515_v57 = vrot.slane %v513_v55, 1  ;;  %v1484_v55 = vshrl.u32 %v4344_v51, 16 }
  0x5b   : > { %v516_v59 = vsel %vm376_vm1, %v511_v56, %v515_v57  ;;  %v519_v62 = vor.u32 %v517_v60, %v515_v57  ;;  %v1487_v56 = vshll.u32 %v4344_v51, 16  ;;  %v3995_v60 = vld [vmem:[%s4100_s4 + $0xd0] ss:$0 sps:$4 sm:$0x33]  }
  0x5e   : > { %3517 = vmatmul.mubr.msk.bf16.gmra.mrb[32].mxu0 %vm616_vm2, %v452_v11 }
  0x5f   : > { %3633 = vmatmul.mubr.msk.bf16.gmra.mrb[32].mxu1 %vm616_vm2, %v3971_v61  ;;  %3520 = vmatprep.mubr.msk.bf16.mxu0 %vm4034_vm0, %v5050_v1  ;;  %v521_v61 = vshll.u32 %v3984_v58, 16 }
  0x60   : > { %3636 = vmatprep.mubr.msk.bf16.mxu1 %vm4034_vm0, %v5050_v1 }
  0x61   : > { %v523_v63 = vrot.slane %v521_v61, 1 }
  0x63   : > { %v524_v2 = vsel %vm376_vm1, %v519_v62, %v523_v63  ;;  %v527_v5 = vor.u32 %v525_v3, %v523_v63  ;;  %v1486_v62 = vrot.slane %v1484_v55, 2  ;;  %v1489_v63 = vrot.slane %v1487_v56, 3 }
  0x66   : > { %3521 = vmatmul.mubr.msk.bf16.gmra.mrb[36].mxu0 %vm616_vm2, %v460_v17 }
  0x67   : > { %3637 = vmatmul.mubr.msk.bf16.gmra.mrb[36].mxu1 %vm616_vm2, %v3973_v4  ;;  %3524 = vmatprep.mubr.msk.bf16.mxu0 %vm4034_vm0, %v5050_v1  ;;  %v529_v4 = vshll.u32 %v3985_v0, 16 }
  0x68   : > { %3640 = vmatprep.mubr.msk.bf16.mxu1 %vm4034_vm0, %v5050_v1 }
  0x69   : > { %v531_v6 = vrot.slane %v529_v4, 1  ;;  %v4358_v4 = vld [vmem:[%s4100_s4 + $0x18] sm:$0xff]  }
  0x6b   : > { %v532_v8 = vsel %vm376_vm1, %v527_v5, %v531_v6  ;;  %v535_v11 = vor.u32 %v533_v9, %v531_v6  ;;  %v1490_v5 = vor.u32 %v1489_v63, %v1486_v62  ;;  %v1493_v9 = vshrl.u32 %v4358_v4, 16 }
  0x6e   : > { %3525 = vmatmul.mubr.msk.bf16.gmra.mrb[40].mxu0 %vm616_vm2, %v468_v23 }
  0x6f   : > { %3641 = vmatmul.mubr.msk.bf16.gmra.mrb[40].mxu1 %vm616_vm2, %v3974_v10  ;;  %3528 = vmatprep.mubr.msk.bf16.mxu0 %vm4034_vm0, %v5050_v1  ;;  %v537_v10 = vshll.u32 %v3986_v7, 16 }
  0x70   : > { %3644 = vmatprep.mubr.msk.bf16.mxu1 %vm4034_vm0, %v5050_v1 }
  0x71   : > { %v539_v12 = vrot.slane %v537_v10, 1  ;;  %v1496_v10 = vshll.u32 %v4358_v4, 16 }
  0x73   : > { %v540_v14 = vsel %vm376_vm1, %v535_v11, %v539_v12  ;;  %v543_v17 = vor.u32 %v541_v15, %v539_v12 }
  0x76   : > { %3529 = vmatmul.mubr.msk.bf16.gmra.mrb[44].mxu0 %vm616_vm2, %v476_v29 }
  0x77   : > { %3645 = vmatmul.mubr.msk.bf16.gmra.mrb[44].mxu1 %vm616_vm2, %v3975_v16  ;;  %3532 = vmatprep.mubr.msk.bf16.mxu0 %vm4034_vm0, %v5050_v1  ;;  %v545_v16 = vshll.u32 %v3987_v13, 16 }
  0x78   : > { %3648 = vmatprep.mubr.msk.bf16.mxu1 %vm4034_vm0, %v5050_v1 }
  0x79   : > { %v547_v18 = vrot.slane %v545_v16, 1 }
  0x7b   : > { %v548_v20 = vsel %vm376_vm1, %v543_v17, %v547_v18  ;;  %v551_v23 = vor.u32 %v549_v21, %v547_v18  ;;  %v1495_v21 = vrot.slane %v1493_v9, 2 }
  0x7e   : > { %3533 = vmatmul.mubr.msk.bf16.gmra.mrb[48].mxu0 %vm616_vm2, %v484_v35 }
  0x7f   : > { %3649 = vmatmul.mubr.msk.bf16.gmra.mrb[48].mxu1 %vm616_vm2, %v3976_v22  ;;  %3536 = vmatprep.mubr.msk.bf16.mxu0 %vm4034_vm0, %v5050_v1  ;;  %v553_v22 = vshll.u32 %v3990_v19, 16 }
  0x80   : > { %3652 = vmatprep.mubr.msk.bf16.mxu1 %vm4034_vm0, %v5050_v1 }
  0x81   : > { %v555_v24 = vrot.slane %v553_v22, 1  ;;  %v1498_v22 = vrot.slane %v1496_v10, 3 }
  0x83   : > { %v556_v26 = vsel %vm376_vm1, %v551_v23, %v555_v24  ;;  %v559_v29 = vor.u32 %v557_v27, %v555_v24  ;;  %v4374_v23 = vld [vmem:[%s4100_s4 + $0x20] sm:$0xff]   ;;  %v1499_v27 = vor.u32 %v1498_v22, %v1495_v21 }
  0x86   : > { %3537 = vmatmul.mubr.msk.bf16.gmra.mrb[52].mxu0 %vm616_vm2, %v492_v41 }
  0x87   : > { %3653 = vmatmul.mubr.msk.bf16.gmra.mrb[52].mxu1 %vm616_vm2, %v3977_v28  ;;  %3540 = vmatprep.mubr.msk.bf16.mxu0 %vm4034_vm0, %v5050_v1  ;;  %v561_v28 = vshll.u32 %v3991_v25, 16 }
  0x88   : > { %3656 = vmatprep.mubr.msk.bf16.mxu1 %vm4034_vm0, %v5050_v1 }
  0x89   : > { %v563_v30 = vrot.slane %v561_v28, 1  ;;  %v1502_v28 = vshrl.u32 %v4374_v23, 16 }
  0x8b   : > { %v564_v32 = vsel %vm376_vm1, %v559_v29, %v563_v30  ;;  %v567_v35 = vor.u32 %v565_v33, %v563_v30  ;;  %v1505_v29 = vshll.u32 %v4374_v23, 16 }
  0x8e   : > { %3541 = vmatmul.mubr.msk.bf16.gmra.mrb[56].mxu0 %vm616_vm2, %v500_v47 }
  0x8f   : > { %3657 = vmatmul.mubr.msk.bf16.gmra.mrb[56].mxu1 %vm616_vm2, %v3978_v34  ;;  %3544 = vmatprep.mubr.msk.bf16.mxu0 %vm4034_vm0, %v5050_v1  ;;  %v569_v34 = vshll.u32 %v3992_v31, 16 }
  0x90   : > { %3660 = vmatprep.mubr.msk.bf16.mxu1 %vm4034_vm0, %v5050_v1 }
  0x91   : > { %v571_v36 = vrot.slane %v569_v34, 1 }
  0x93   : > { %v572_v38 = vsel %vm376_vm1, %v567_v35, %v571_v36  ;;  %v575_v41 = vor.u32 %v573_v39, %v571_v36  ;;  %v1500_v39 = vsel %vm1474_vm4, %v1490_v5, %v1499_v27 }
  0x96   : > { %3545 = vmatmul.mubr.msk.bf16.gmra.mrb[60].mxu0 %vm616_vm2, %v508_v53  ;;  %v3145_v53 = vcombine.low %v1276_v49, %v1277_v50 }
  0x97   : > { %3661 = vmatmul.mubr.msk.bf16.gmra.mrb[60].mxu1 %vm616_vm2, %v3981_v40  ;;  %3548 = vmatprep.mubr.msk.bf16.mxu0 %vm4034_vm0, %v5050_v1  ;;  %v577_v40 = vshll.u32 %v3993_v37, 16 }
  0x98   : > { %3664 = vmatprep.mubr.msk.bf16.mxu1 %vm4034_vm0, %v5050_v1  ;;  %v1476_v57 = vshrl.u32 %v3145_v53, 16 }
  0x99   : > { %v579_v42 = vrot.slane %v577_v40, 1  ;;  %v1504_v40 = vrot.slane %v1502_v28, 2 }
  0x9b   : > { %v580_v44 = vsel %vm376_vm1, %v575_v41, %v579_v42  ;;  %v583_v47 = vor.u32 %v581_v45, %v579_v42  ;;  %v1507_v41 = vrot.slane %v1505_v29, 3  ;;  %v4392_v42 = vld [vmem:[%s4100_s4 + $0x28] sm:$0xff]   ;;  %v2142_v45 = vrot.slane %v4374_v23, 3 }
  0x9e   : > { %3549 = vmatmul.mubr.msk.bf16.gmra.mrb[64].mxu0 %vm616_vm2, %v516_v59  ;;  %v2123_v59 = vld [vmem:[%s4100_s4 + $0x8] sm:$0x8] }
  0x9f   : > { %3665 = vmatmul.mubr.msk.bf16.gmra.mrb[64].mxu1 %vm616_vm2, %v3982_v46  ;;  %3552 = vmatprep.mubr.msk.bf16.mxu0 %vm4034_vm0, %v5050_v1  ;;  %v585_v46 = vshll.u32 %v3994_v43, 16 }
  0xa0   : > { %3668 = vmatprep.mubr.msk.bf16.mxu1 %vm4034_vm0, %v5050_v1 }
  0xa1   : > { %v587_v48 = vrot.slane %v585_v46, 1  ;;  %v1508_v46 = vor.u32 %v1507_v41, %v1504_v40 }
  0xa3   : > { %v591_v61 = vor.u32 %v589_v54, %v587_v48 }
  0xa6   : > { %3553 = vmatmul.mubr.msk.bf16.gmra.mrb[68].mxu0 %vm616_vm2, %v524_v2  ;;  %v1478_v2 = vrot.slane %v1476_v57, 2 }
  0xa7   : > { %3669 = vmatmul.mubr.msk.bf16.gmra.mrb[68].mxu1 %vm616_vm2, %v3983_v52  ;;  %3556 = vmatprep.mubr.msk.bf16.mxu0 %vm4034_vm0, %v5050_v1  ;;  %v588_v52 = vsel %vm376_vm1, %v583_v47, %v587_v48  ;;  %v1511_v47 = vshrl.u32 %v4392_v42, 16  ;;  %v1514_v48 = vshll.u32 %v4392_v42, 16 }
  0xa8   : > { %3672 = vmatprep.mubr.msk.bf16.mxu1 %vm4034_vm0, %v5050_v1 }
  0xae   : > { %3557 = vmatmul.mubr.msk.bf16.gmra.mrb[72].mxu0 %vm616_vm2, %v532_v8 }
  0xaf   : > { %3673 = vmatmul.mubr.msk.bf16.gmra.mrb[72].mxu1 %vm616_vm2, %v3984_v58  ;;  %3560 = vmatprep.mubr.msk.bf16.mxu0 %vm4034_vm0, %v5050_v1  ;;  %v1479_v58 = vshll.u32 %v3145_v53, 16 }
  0xb0   : > { %3676 = vmatprep.mubr.msk.bf16.mxu1 %vm4034_vm0, %v5050_v1 }
  0xb1   : > { %v1481_v3 = vrot.slane %v1479_v58, 3  ;;  %v1509_v58 = vsel %vm1474_vm4, %v1499_v27, %v1508_v46 }
  0xb3   : > { %v1482_v8 = vor.u32 %v1481_v3, %v1478_v2 }
  0xb6   : > { %3561 = vmatmul.mubr.msk.bf16.gmra.mrb[76].mxu0 %vm616_vm2, %v540_v14 }
  0xb7   : > { %3677 = vmatmul.mubr.msk.bf16.gmra.mrb[76].mxu1 %vm616_vm2, %v3985_v0  ;;  %3564 = vmatprep.mubr.msk.bf16.mxu0 %vm4034_vm0, %v5050_v1  ;;  %v3211_v0 = vcombine.low %v2123_v59, %v1277_v50  ;;  %v1513_v59 = vrot.slane %v1511_v47, 2 }
  0xb8   : > { %3680 = vmatprep.mubr.msk.bf16.mxu1 %vm4034_vm0, %v5050_v1 }
  0xb9   : > { %v2137_v6 = vrot.slane %v3211_v0, 3  ;;  %v2144_v0 = vrot.slane %v4392_v42, 3 }
  0xbe   : > { %3565 = vmatmul.mubr.msk.bf16.gmra.mrb[80].mxu0 %vm616_vm2, %v548_v20  ;;  %v1491_v20 = vsel %vm1474_vm4, %v1482_v8, %v1490_v5 }
  0xbf   : > { %3681 = vmatmul.mubr.msk.bf16.gmra.mrb[80].mxu1 %vm616_vm2, %v3986_v7  ;;  %3568 = vmatprep.mubr.msk.bf16.mxu0 %vm4034_vm0, %v5050_v1  ;;  %v2138_v7 = vrot.slane %v4344_v51, 3 }
  0xc0   : > { %3684 = vmatprep.mubr.msk.bf16.mxu1 %vm4034_vm0, %v5050_v1 }
  0xc1   : > { %v2139_v17 = vsel %vm2136_vm3, %v2137_v6, %v2138_v7 }
  0xc6   : > { %3569 = vmatmul.mubr.msk.bf16.gmra.mrb[84].mxu0 %vm616_vm2, %v556_v26  ;;  %v2140_v26 = vrot.slane %v4358_v4, 3 }
  0xc7   : > { %3685 = vmatmul.mubr.msk.bf16.gmra.mrb[84].mxu1 %vm616_vm2, %v3987_v13  ;;  %3572 = vmatprep.mubr.msk.bf16.mxu0 %vm4034_vm0, %v5050_v1 }
  0xc8   : > { %3688 = vmatprep.mubr.msk.bf16.mxu1 %vm4034_vm0, %v5050_v1  ;;  %v2141_v36 = vsel %vm2136_vm3, %v2138_v7, %v2140_v26  ;;  %v2143_v55 = vsel %vm2136_vm3, %v2140_v26, %v2142_v45 }
  0xce   : > { %3573 = vmatmul.mubr.msk.bf16.gmra.mrb[88].mxu0 %vm616_vm2, %v564_v32 }
  0xcf   : > { %3689 = vmatmul.mubr.msk.bf16.gmra.mrb[88].mxu1 %vm616_vm2, %v3990_v19  ;;  %3576 = vmatprep.mubr.msk.bf16.mxu0 %vm4034_vm0, %v5050_v1 }
  0xd0   : > { %3692 = vmatprep.mubr.msk.bf16.mxu1 %vm4034_vm0, %v5050_v1 }
  0xd6   : > { %3577 = vmatmul.mubr.msk.bf16.gmra.mrb[92].mxu0 %vm616_vm2, %v572_v38 }
  0xd7   : > { %3693 = vmatmul.mubr.msk.bf16.gmra.mrb[92].mxu1 %vm616_vm2, %v3991_v25  ;;  %3580 = vmatprep.mubr.msk.bf16.mxu0 %vm4034_vm0, %v5050_v1 }
  0xd8   : > { %3696 = vmatprep.mubr.msk.bf16.mxu1 %vm4034_vm0, %v5050_v1 }
  0xde   : > { %3581 = vmatmul.mubr.msk.bf16.gmra.mrb[96].mxu0 %vm616_vm2, %v580_v44 }
  0xdf   : > { %3697 = vmatmul.mubr.msk.bf16.gmra.mrb[96].mxu1 %vm616_vm2, %v3992_v31  ;;  %3584 = vmatprep.mubr.msk.bf16.mxu0 %vm4034_vm0, %v5050_v1 }
  0xe0   : > { %3700 = vmatprep.mubr.msk.bf16.mxu1 %vm4034_vm0, %v5050_v1 }
  0xe6   : > { %3585 = vmatmul.mubr.msk.bf16.gmra.mrb[100].mxu0 %vm616_vm2, %v588_v52 }
  0xe7   : > { %3701 = vmatmul.mubr.msk.bf16.gmra.mrb[100].mxu1 %vm616_vm2, %v3993_v37  ;;  %3588 = vmatprep.mubr.msk.bf16.mxu0 %vm4034_vm0, %v5050_v1 }
  0xe8   : > { %3704 = vmatprep.mubr.msk.bf16.mxu1 %vm4034_vm0, %v5050_v1 }
  0xee   : > { %3589 = vmatmul.mubr.msk.bf16.gmra.mrb[104].mxu0 %vm616_vm2, %v591_v61  ;;  %v4410_v61 = vld [vmem:[%s4100_s4 + $0x30] sm:$0xff]  }
  0xef   : > { %3705 = vmatmul.mubr.msk.bf16.gmra.mrb[104].mxu1 %vm616_vm2, %v3995_v60  ;;  %3716 = vmatprep.mubr.msk.bf16.mxu0 %vm4034_vm0, %v5050_v1  ;;  %v1516_v60 = vrot.slane %v1514_v48, 3  ;;  %v1520_v3 = vshrl.u32 %v4410_v61, 16  ;;  %v1523_v4 = vshll.u32 %v4410_v61, 16  ;;  %v2146_v21 = vrot.slane %v4410_v61, 3 }
  0xf0   : > { %3832 = vmatprep.mubr.msk.bf16.mxu1 %vm4034_vm0, %v5050_v1 }
  0xf1   : > { %v732_v12 = vpop.f32.mrb[0].mxu0  ;;  %v1517_v2 = vor.u32 %v1516_v60, %v1513_v59  ;;  %v4464_v60 = vld [vmem:[%s4100_s4 + $0x48] sm:$0xff]  }
  0xf2   : > { %v1062_v11 = vpop.f32.mrb[0].mxu1  ;;  %v3486_v15 = vpop.f32.mrb[1].mxu0 }
  0xf3   : > { %v3602_v13 = vpop.f32.mrb[1].mxu1  ;;  %v4369_v14 = vadd.f32 %v1062_v11, %v732_v12  ;;  %v735_v18 = vpop.f32.mrb[2].mxu0  ;;  %v2145_v11 = vsel %vm2136_vm3, %v2142_v45, %v2144_v0  ;;  %v1518_v15 = vsel %vm1474_vm4, %v1508_v46, %v1517_v2 }
  0xf4   : > { %v1065_v16 = vpop.f32.mrb[2].mxu1  ;;  %v3487_v25 = vpop.f32.mrb[3].mxu0 }
  0xf5   : > { %v3603_v19 = vpop.f32.mrb[3].mxu1  ;;  %v4376_v24 = vadd.f32 %v1065_v16, %v735_v18  ;;  %v1522_v16 = vrot.slane %v1520_v3, 2  ;;  %v4428_v18 = vld [vmem:[%s4100_s4 + $0x38] sm:$0xff]   ;;  %v1547_v3 = vshrl.u32 %v4464_v60, 16 }
  0xf6   : > { %3717 = vmatmul.mubr.msk.bf16.vlgmr.msra.gmra.mrb[108].mxu0 %vm616_vm2, %v1491_v20  ;;  %v1529_v23 = vshrl.u32 %v4428_v18, 16  ;;  %v1532_v25 = vshll.u32 %v4428_v18, 16  ;;  %v2148_v42 = vrot.slane %v4428_v18, 3 }
  0xf7   : > { %3833 = vmatmul.mubr.msk.bf16.vlgmr.msra.gmra.mrb[108].mxu1 %vm616_vm2, %v2139_v17  ;;  %3720 = vmatprep.mubr.msk.bf16.mxu0 %vm4034_vm0, %v5050_v1  ;;  %v1525_v17 = vrot.slane %v1523_v4, 3  ;;  %v1550_v4 = vshll.u32 %v4464_v60, 16 }
  0xf8   : > { %3836 = vmatprep.mubr.msk.bf16.mxu1 %vm4034_vm0, %v5050_v1 }
  0xf9   : > { %v740_v31 = vpop.f32.mrb[4].mxu0  ;;  %v1526_v22 = vor.u32 %v1525_v17, %v1522_v16  ;;  %v1549_v17 = vrot.slane %v1547_v3, 2  ;;  %v1552_v18 = vrot.slane %v1550_v4, 3  ;;  %v4518_v4 = vld [vmem:[%s4100_s4 + $0x60] sm:$0xff]  }
  0xfa   : > { %v1070_v30 = vpop.f32.mrb[4].mxu1  ;;  %v3490_v34 = vpop.f32.mrb[5].mxu0 }
  0xfb   : > { %v3606_v32 = vpop.f32.mrb[5].mxu1  ;;  %v4387_v33 = vadd.f32 %v1070_v30, %v740_v31  ;;  %v743_v37 = vpop.f32.mrb[6].mxu0 }
  0xfc   : > { %v1073_v35 = vpop.f32.mrb[6].mxu1  ;;  %v3491_v44 = vpop.f32.mrb[7].mxu0  ;;  %v2147_v32 = vsel %vm2136_vm3, %v2144_v0, %v2146_v21 }
  0xfd   : > { %v3607_v38 = vpop.f32.mrb[7].mxu1  ;;  %v4394_v43 = vadd.f32 %v1073_v35, %v743_v37  ;;  %v1531_v37 = vrot.slane %v1529_v23, 2  ;;  %v2152_v23 = vrot.slane %v4464_v60, 3 }
  0xfe   : > { %3721 = vmatmul.mubr.msk.bf16.gmra.mrb[112].mxu0 %vm616_vm2, %v1500_v39  ;;  %v1534_v38 = vrot.slane %v1532_v25, 3  ;;  %v4446_v39 = vld [vmem:[%s4100_s4 + $0x40] sm:$0xff]   ;;  %v1553_v25 = vor.u32 %v1552_v18, %v1549_v17 }
  0xff   : > { %3837 = vmatmul.mubr.msk.bf16.gmra.mrb[112].mxu1 %vm616_vm2, %v2141_v36  ;;  %3724 = vmatprep.mubr.msk.bf16.mxu0 %vm4034_vm0, %v5050_v1  ;;  %v1527_v36 = vsel %vm1474_vm4, %v1517_v2, %v1526_v22  ;;  %v1538_v45 = vshrl.u32 %v4446_v39, 16  ;;  %v1541_v46 = vshll.u32 %v4446_v39, 16  ;;  %v2150_v0 = vrot.slane %v4446_v39, 3 }
 0x100   : > { %3840 = vmatprep.mubr.msk.bf16.mxu1 %vm4034_vm0, %v5050_v1  ;;  %v1535_v44 = vor.u32 %v1534_v38, %v1531_v37 }
 0x101   : > { %v748_v50 = vpop.f32.mrb[8].mxu0  ;;  %v1543_v59 = vrot.slane %v1541_v46, 3 }
 0x102   : > { %v1078_v49 = vpop.f32.mrb[8].mxu1  ;;  %v3494_v53 = vpop.f32.mrb[9].mxu0 }
 0x103   : > { %v3610_v51 = vpop.f32.mrb[9].mxu1  ;;  %v4405_v52 = vadd.f32 %v1078_v49, %v748_v50  ;;  %v751_v56 = vpop.f32.mrb[10].mxu0 }
 0x104   : > { %v1081_v54 = vpop.f32.mrb[10].mxu1  ;;  %v3495_v63 = vpop.f32.mrb[11].mxu0 }
 0x105   : > { %v3611_v57 = vpop.f32.mrb[11].mxu1  ;;  %v4412_v62 = vadd.f32 %v1081_v54, %v751_v56  ;;  %v2149_v54 = vsel %vm2136_vm3, %v2146_v21, %v2148_v42 }
 0x106   : > { %3725 = vmatmul.mubr.msk.bf16.gmra.mrb[116].mxu0 %vm616_vm2, %v1509_v58  ;;  %v1536_v57 = vsel %vm1474_vm4, %v1526_v22, %v1535_v44  ;;  %v1540_v58 = vrot.slane %v1538_v45, 2 }
 0x107   : > { %3841 = vmatmul.mubr.msk.bf16.gmra.mrb[116].mxu1 %vm616_vm2, %v2143_v55  ;;  %3728 = vmatprep.mubr.msk.bf16.mxu0 %vm4034_vm0, %v5050_v1 }
 0x108   : > { %3844 = vmatprep.mubr.msk.bf16.mxu1 %vm4034_vm0, %v5050_v1  ;;  %v1544_v2 = vor.u32 %v1543_v59, %v1540_v58 }
 0x109   : > { %v756_v6 = vpop.f32.mrb[12].mxu0 }
 0x10a   : > { %v1086_v5 = vpop.f32.mrb[12].mxu1  ;;  %v3498_v9 = vpop.f32.mrb[13].mxu0  ;;  %v1545_v16 = vsel %vm1474_vm4, %v1535_v44, %v1544_v2  ;;  %v1554_v39 = vsel %vm1474_vm4, %v1544_v2, %v1553_v25  ;;  %v4500_v44 = vld [vmem:[%s4100_s4 + $0x58] sm:$0xff]  }
 0x10b   : > { %v3614_v7 = vpop.f32.mrb[13].mxu1  ;;  %v4423_v8 = vadd.f32 %v1086_v5, %v756_v6  ;;  %v759_v12 = vpop.f32.mrb[14].mxu0 }
 0x10c   : > { %v1089_v10 = vpop.f32.mrb[14].mxu1  ;;  %v3499_v20 = vpop.f32.mrb[15].mxu0 }
 0x10d   : > { %v3615_v13 = vpop.f32.mrb[15].mxu1  ;;  %v4430_v19 = vadd.f32 %v1089_v10, %v759_v12  ;;  %v2151_v12 = vsel %vm2136_vm3, %v2148_v42, %v2150_v0  ;;  %v4482_v20 = vld [vmem:[%s4100_s4 + $0x50] sm:$0xff]  }
 0x10e   : > { %3729 = vmatmul.mubr.msk.bf16.gmra.mrb[120].mxu0 %vm616_vm2, %v1518_v15 }
 0x10f   : > { %3845 = vmatmul.mubr.msk.bf16.gmra.mrb[120].mxu1 %vm616_vm2, %v2145_v11  ;;  %3732 = vmatprep.mubr.msk.bf16.mxu0 %vm4034_vm0, %v5050_v1 }
 0x110   : > { %3848 = vmatprep.mubr.msk.bf16.mxu1 %vm4034_vm0, %v5050_v1 }
 0x111   : > { %v764_v27 = vpop.f32.mrb[16].mxu0 }
 0x112   : > { %v1094_v26 = vpop.f32.mrb[16].mxu1  ;;  %v3502_v30 = vpop.f32.mrb[17].mxu0 }
 0x113   : > { %v3618_v28 = vpop.f32.mrb[17].mxu1  ;;  %v4441_v29 = vadd.f32 %v1094_v26, %v764_v27  ;;  %v767_v34 = vpop.f32.mrb[18].mxu0  ;;  %v1556_v26 = vshrl.u32 %v4482_v20, 16  ;;  %v1559_v27 = vshll.u32 %v4482_v20, 16 }
 0x114   : > { %v1097_v31 = vpop.f32.mrb[18].mxu1  ;;  %v3503_v41 = vpop.f32.mrb[19].mxu0 }
 0x115   : > { %v3619_v35 = vpop.f32.mrb[19].mxu1  ;;  %v4448_v40 = vadd.f32 %v1097_v31, %v767_v34  ;;  %v1558_v41 = vrot.slane %v1556_v26, 2  ;;  %v1561_v42 = vrot.slane %v1559_v27, 3 }
 0x116   : > { %3733 = vmatmul.mubr.msk.bf16.gmra.mrb[124].mxu0 %vm616_vm2, %v1527_v36  ;;  %v2153_v36 = vsel %vm2136_vm3, %v2150_v0, %v2152_v23 }
 0x117   : > { %3849 = vmatmul.mubr.msk.bf16.gmra.mrb[124].mxu1 %vm616_vm2, %v2147_v32  ;;  %3736 = vmatprep.mubr.msk.bf16.mxu0 %vm4034_vm0, %v5050_v1 }
 0x118   : > { %3852 = vmatprep.mubr.msk.bf16.mxu1 %vm4034_vm0, %v5050_v1 }
 0x119   : > { %v772_v48 = vpop.f32.mrb[20].mxu0 }
 0x11a   : > { %v1102_v47 = vpop.f32.mrb[20].mxu1  ;;  %v3506_v51 = vpop.f32.mrb[21].mxu0 }
 0x11b   : > { %v3622_v49 = vpop.f32.mrb[21].mxu1  ;;  %v4459_v50 = vadd.f32 %v1102_v47, %v772_v48  ;;  %v775_v55 = vpop.f32.mrb[22].mxu0  ;;  %v2154_v47 = vrot.slane %v4482_v20, 3  ;;  %v1562_v48 = vor.u32 %v1561_v42, %v1558_v41  ;;  %v1568_v51 = vshll.u32 %v4500_v44, 16 }
 0x11c   : > { %v1105_v53 = vpop.f32.mrb[22].mxu1  ;;  %v3507_v63 = vpop.f32.mrb[23].mxu0  ;;  %v1565_v49 = vshrl.u32 %v4500_v44, 16 }
 0x11d   : > { %v3623_v56 = vpop.f32.mrb[23].mxu1  ;;  %v4466_v61 = vadd.f32 %v1105_v53, %v775_v55  ;;  %v2155_v59 = vsel %vm2136_vm3, %v2152_v23, %v2154_v47  ;;  %v1563_v0 = vsel %vm1474_vm4, %v1553_v25, %v1562_v48  ;;  %v1570_v3 = vrot.slane %v1568_v51, 3 }
 0x11e   : > { %3737 = vmatmul.mubr.msk.bf16.gmra.mrb[128].mxu0 %vm616_vm2, %v1536_v57  ;;  %v1567_v2 = vrot.slane %v1565_v49, 2 }
 0x11f   : > { %3853 = vmatmul.mubr.msk.bf16.gmra.mrb[128].mxu1 %vm616_vm2, %v2149_v54  ;;  %3740 = vmatprep.mubr.msk.bf16.mxu0 %vm4034_vm0, %v5050_v1 }
 0x120   : > { %3856 = vmatprep.mubr.msk.bf16.mxu1 %vm4034_vm0, %v5050_v1 }
 0x121   : > { %v780_v6 = vpop.f32.mrb[24].mxu0 }
 0x122   : > { %v1110_v5 = vpop.f32.mrb[24].mxu1  ;;  %v3510_v10 = vpop.f32.mrb[25].mxu0 }
 0x123   : > { %v3626_v7 = vpop.f32.mrb[25].mxu1  ;;  %v4477_v9 = vadd.f32 %v1110_v5, %v780_v6  ;;  %v783_v13 = vpop.f32.mrb[26].mxu0  ;;  %v1571_v10 = vor.u32 %v1570_v3, %v1567_v2 }
 0x124   : > { %v1113_v11 = vpop.f32.mrb[26].mxu1  ;;  %v3511_v22 = vpop.f32.mrb[27].mxu0  ;;  %v2156_v7 = vrot.slane %v4500_v44, 3 }
 0x125   : > { %v3627_v15 = vpop.f32.mrb[27].mxu1  ;;  %v4484_v21 = vadd.f32 %v1113_v11, %v783_v13  ;;  %v1574_v11 = vshrl.u32 %v4518_v4, 16  ;;  %v1572_v26 = vsel %vm1474_vm4, %v1562_v48, %v1571_v10 }
 0x126   : > { %3741 = vmatmul.mubr.msk.bf16.gmra.mrb[132].mxu0 %vm616_vm2, %v1545_v16  ;;  %v2157_v22 = vsel %vm2136_vm3, %v2154_v47, %v2156_v7 }
 0x127   : > { %3857 = vmatmul.mubr.msk.bf16.gmra.mrb[132].mxu1 %vm616_vm2, %v2151_v12  ;;  %3744 = vmatprep.mubr.msk.bf16.mxu0 %vm4034_vm0, %v5050_v1  ;;  %v1577_v12 = vshll.u32 %v4518_v4, 16  ;;  %v1576_v27 = vrot.slane %v1574_v11, 2 }
 0x128   : > { %3860 = vmatprep.mubr.msk.bf16.mxu1 %vm4034_vm0, %v5050_v1 }
 0x129   : > { %v788_v30 = vpop.f32.mrb[28].mxu0 }
 0x12a   : > { %v1118_v28 = vpop.f32.mrb[28].mxu1  ;;  %v3514_v34 = vpop.f32.mrb[29].mxu0 }
 0x12b   : > { %v3630_v31 = vpop.f32.mrb[29].mxu1  ;;  %v4495_v32 = vadd.f32 %v1118_v28, %v788_v30  ;;  %v791_v37 = vpop.f32.mrb[30].mxu0  ;;  %v1579_v28 = vrot.slane %v1577_v12, 3  ;;  %v4536_v30 = vld [vmem:[%s4100_s4 + $0x68] sm:$0xff]  }
 0x12c   : > { %v1121_v35 = vpop.f32.mrb[30].mxu1  ;;  %v3515_v46 = vpop.f32.mrb[31].mxu0 }
 0x12d   : > { %v3631_v38 = vpop.f32.mrb[31].mxu1  ;;  %v4502_v45 = vadd.f32 %v1121_v35, %v791_v37  ;;  %v2158_v35 = vrot.slane %v4518_v4, 3  ;;  %v1583_v37 = vshrl.u32 %v4536_v30, 16 }
 0x12e   : > { %3745 = vmatmul.mubr.msk.bf16.gmra.mrb[136].mxu0 %vm616_vm2, %v1554_v39  ;;  %v1586_v38 = vshll.u32 %v4536_v30, 16 }
 0x12f   : > { %3861 = vmatmul.mubr.msk.bf16.gmra.mrb[136].mxu1 %vm616_vm2, %v2153_v36  ;;  %3748 = vmatprep.mubr.msk.bf16.mxu0 %vm4034_vm0, %v5050_v1  ;;  %v1580_v36 = vor.u32 %v1579_v28, %v1576_v27  ;;  %v2159_v48 = vsel %vm2136_vm3, %v2156_v7, %v2158_v35 }
 0x130   : > { %3864 = vmatprep.mubr.msk.bf16.mxu1 %vm4034_vm0, %v5050_v1 }
 0x131   : > { %v796_v54 = vpop.f32.mrb[32].mxu0 }
 0x132   : > { %v1126_v53 = vpop.f32.mrb[32].mxu1  ;;  %v3518_v57 = vpop.f32.mrb[33].mxu0 }
 0x133   : > { %v3634_v55 = vpop.f32.mrb[33].mxu1  ;;  %v4513_v56 = vadd.f32 %v1126_v53, %v796_v54  ;;  %v799_v60 = vpop.f32.mrb[34].mxu0  ;;  %v1581_v53 = vsel %vm1474_vm4, %v1571_v10, %v1580_v36  ;;  %v1585_v54 = vrot.slane %v1583_v37, 2  ;;  %v4554_v57 = vld [vmem:[%s4100_s4 + $0x70] sm:$0xff]  }
 0x134   : > { %v1129_v58 = vpop.f32.mrb[34].mxu1  ;;  %v3519_v6 = vpop.f32.mrb[35].mxu0  ;;  %v1588_v55 = vrot.slane %v1586_v38, 3  ;;  %v1595_v2 = vshll.u32 %v4554_v57, 16 }
 0x135   : > { %v3635_v63 = vpop.f32.mrb[35].mxu1  ;;  %v4520_v5 = vadd.f32 %v1129_v58, %v799_v60  ;;  %v2160_v60 = vrot.slane %v4536_v30, 3 }
 0x136   : > { %3749 = vmatmul.mubr.msk.bf16.gmra.mrb[140].mxu0 %vm616_vm2, %v1563_v0  ;;  %v1589_v63 = vor.u32 %v1588_v55, %v1585_v54  ;;  %v1592_v0 = vshrl.u32 %v4554_v57, 16 }
 0x137   : > { %3865 = vmatmul.mubr.msk.bf16.gmra.mrb[140].mxu1 %vm616_vm2, %v2155_v59  ;;  %3752 = vmatprep.mubr.msk.bf16.mxu0 %vm4034_vm0, %v5050_v1  ;;  %v2161_v12 = vsel %vm2136_vm3, %v2158_v35, %v2160_v60 }
 0x138   : > { %3868 = vmatprep.mubr.msk.bf16.mxu1 %vm4034_vm0, %v5050_v1 }
 0x139   : > { %v804_v15 = vpop.f32.mrb[36].mxu0 }
 0x13a   : > { %v1134_v13 = vpop.f32.mrb[36].mxu1  ;;  %v3522_v18 = vpop.f32.mrb[37].mxu0 }
 0x13b   : > { %v3638_v16 = vpop.f32.mrb[37].mxu1  ;;  %v4531_v17 = vadd.f32 %v1134_v13, %v804_v15  ;;  %v807_v23 = vpop.f32.mrb[38].mxu0  ;;  %v1594_v18 = vrot.slane %v1592_v0, 2 }
 0x13c   : > { %v1137_v20 = vpop.f32.mrb[38].mxu1  ;;  %v3523_v34 = vpop.f32.mrb[39].mxu0  ;;  %v1590_v16 = vsel %vm1474_vm4, %v1580_v36, %v1589_v63 }
 0x13d   : > { %v3639_v25 = vpop.f32.mrb[39].mxu1  ;;  %v4538_v31 = vadd.f32 %v1137_v20, %v807_v23  ;;  %v1597_v20 = vrot.slane %v1595_v2, 3 }
 0x13e   : > { %3753 = vmatmul.mubr.msk.bf16.gmra.mrb[144].mxu0 %vm616_vm2, %v1572_v26  ;;  %v2162_v26 = vrot.slane %v4554_v57, 3 }
 0x13f   : > { %3869 = vmatmul.mubr.msk.bf16.gmra.mrb[144].mxu1 %vm616_vm2, %v2157_v22  ;;  %3756 = vmatprep.mubr.msk.bf16.mxu0 %vm4034_vm0, %v5050_v1  ;;  %v4572_v22 = vld [vmem:[%s4100_s4 + $0x78] sm:$0xff]   ;;  %v1598_v27 = vor.u32 %v1597_v20, %v1594_v18  ;;  %v4608_v18 = vld [vmem:[%s4100_s4 + $0x88] sm:$0xff]  }
 0x140   : > { %3872 = vmatprep.mubr.msk.bf16.mxu1 %vm4034_vm0, %v5050_v1  ;;  %v1601_v28 = vshrl.u32 %v4572_v22, 16  ;;  %v1604_v30 = vshll.u32 %v4572_v22, 16  ;;  %v2164_v55 = vrot.slane %v4572_v22, 3 }
 0x141   : > { %v812_v41 = vpop.f32.mrb[40].mxu0 }
 0x142   : > { %v1142_v39 = vpop.f32.mrb[40].mxu1  ;;  %v3526_v46 = vpop.f32.mrb[41].mxu0 }
 0x143   : > { %v3642_v42 = vpop.f32.mrb[41].mxu1  ;;  %v4549_v44 = vadd.f32 %v1142_v39, %v812_v41  ;;  %v815_v49 = vpop.f32.mrb[42].mxu0  ;;  %v2163_v41 = vsel %vm2136_vm3, %v2160_v60, %v2162_v26 }
 0x144   : > { %v1145_v47 = vpop.f32.mrb[42].mxu1  ;;  %v3527_v59 = vpop.f32.mrb[43].mxu0 }
 0x145   : > { %v3643_v51 = vpop.f32.mrb[43].mxu1  ;;  %v4556_v58 = vadd.f32 %v1145_v47, %v815_v49  ;;  %v1599_v47 = vsel %vm1474_vm4, %v1589_v63, %v1598_v27  ;;  %v1606_v49 = vrot.slane %v1604_v30, 3 }
 0x146   : > { %3757 = vmatmul.mubr.msk.bf16.gmra.mrb[148].mxu0 %vm616_vm2, %v1581_v53  ;;  %v4590_v51 = vld [vmem:[%s4100_s4 + $0x80] sm:$0xff]  }
 0x147   : > { %3873 = vmatmul.mubr.msk.bf16.gmra.mrb[148].mxu1 %vm616_vm2, %v2159_v48  ;;  %3760 = vmatprep.mubr.msk.bf16.mxu0 %vm4034_vm0, %v5050_v1  ;;  %v1603_v48 = vrot.slane %v1601_v28, 2  ;;  %v1610_v59 = vshrl.u32 %v4590_v51, 16  ;;  %v1613_v60 = vshll.u32 %v4590_v51, 16  ;;  %v1622_v28 = vshll.u32 %v4608_v18, 16 }
 0x148   : > { %3876 = vmatprep.mubr.msk.bf16.mxu1 %vm4034_vm0, %v5050_v1 }
 0x149   : > { %v820_v4 = vpop.f32.mrb[44].mxu0  ;;  %v1607_v57 = vor.u32 %v1606_v49, %v1603_v48  ;;  %v1624_v49 = vrot.slane %v1622_v28, 3 }
 0x14a   : > { %v1150_v3 = vpop.f32.mrb[44].mxu1  ;;  %v3530_v10 = vpop.f32.mrb[45].mxu0 }
 0x14b   : > { %v3646_v6 = vpop.f32.mrb[45].mxu1  ;;  %v4567_v7 = vadd.f32 %v1150_v3, %v820_v4  ;;  %v823_v13 = vpop.f32.mrb[46].mxu0  ;;  %v2165_v10 = vsel %vm2136_vm3, %v2162_v26, %v2164_v55 }
 0x14c   : > { %v1153_v11 = vpop.f32.mrb[46].mxu1  ;;  %v3531_v25 = vpop.f32.mrb[47].mxu0 }
 0x14d   : > { %v3647_v15 = vpop.f32.mrb[47].mxu1  ;;  %v4574_v23 = vadd.f32 %v1153_v11, %v823_v13  ;;  %v1608_v13 = vsel %vm1474_vm4, %v1598_v27, %v1607_v57  ;;  %v2166_v25 = vrot.slane %v4590_v51, 3  ;;  %v1619_v27 = vshrl.u32 %v4608_v18, 16  ;;  %v4626_v51 = vld [vmem:[%s4100_s4 + $0x90] sm:$0xff]  }
 0x14e   : > { %3761 = vmatmul.mubr.msk.bf16.gmra.mrb[152].mxu0 %vm616_vm2, %v1590_v16  ;;  %v1612_v15 = vrot.slane %v1610_v59, 2  ;;  %v1615_v16 = vrot.slane %v1613_v60, 3  ;;  %v1628_v60 = vshrl.u32 %v4626_v51, 16 }
 0x14f   : > { %3877 = vmatmul.mubr.msk.bf16.gmra.mrb[152].mxu1 %vm616_vm2, %v2161_v12  ;;  %3764 = vmatprep.mubr.msk.bf16.mxu0 %vm4034_vm0, %v5050_v1  ;;  %v1621_v48 = vrot.slane %v1619_v27, 2  ;;  %v4644_v27 = vld [vmem:[%s4100_s4 + $0x98] sm:$0xff]  }
 0x150   : > { %3880 = vmatprep.mubr.msk.bf16.mxu1 %vm4034_vm0, %v5050_v1  ;;  %v1616_v26 = vor.u32 %v1615_v16, %v1612_v15 }
 0x151   : > { %v828_v35 = vpop.f32.mrb[48].mxu0 }
 0x152   : > { %v1158_v34 = vpop.f32.mrb[48].mxu1  ;;  %v3534_v38 = vpop.f32.mrb[49].mxu0 }
 0x153   : > { %v3650_v36 = vpop.f32.mrb[49].mxu1  ;;  %v4585_v37 = vadd.f32 %v1158_v34, %v828_v35  ;;  %v831_v42 = vpop.f32.mrb[50].mxu0 }
 0x154   : > { %v1161_v39 = vpop.f32.mrb[50].mxu1  ;;  %v3535_v54 = vpop.f32.mrb[51].mxu0 }
 0x155   : > { %v3651_v46 = vpop.f32.mrb[51].mxu1  ;;  %v4592_v53 = vadd.f32 %v1161_v39, %v831_v42 }
 0x156   : > { %3765 = vmatmul.mubr.msk.bf16.gmra.mrb[156].mxu0 %vm616_vm2, %v1599_v47  ;;  %v1617_v47 = vsel %vm1474_vm4, %v1607_v57, %v1616_v26  ;;  %v1625_v57 = vor.u32 %v1624_v49, %v1621_v48 }
 0x157   : > { %3881 = vmatmul.mubr.msk.bf16.gmra.mrb[156].mxu1 %vm616_vm2, %v2163_v41  ;;  %3768 = vmatprep.mubr.msk.bf16.mxu0 %vm4034_vm0, %v5050_v1  ;;  %v2167_v41 = vsel %vm2136_vm3, %v2164_v55, %v2166_v25  ;;  %v2168_v55 = vrot.slane %v4608_v18, 3  ;;  %v1630_v18 = vrot.slane %v1628_v60, 2 }
 0x158   : > { %3884 = vmatprep.mubr.msk.bf16.mxu1 %vm4034_vm0, %v5050_v1  ;;  %v1626_v16 = vsel %vm1474_vm4, %v1616_v26, %v1625_v57 }
 0x159   : > { %v836_v0 = vpop.f32.mrb[52].mxu0 }
 0x15a   : > { %v1166_v63 = vpop.f32.mrb[52].mxu1  ;;  %v3538_v4 = vpop.f32.mrb[53].mxu0 }
 0x15b   : > { %v3654_v2 = vpop.f32.mrb[53].mxu1  ;;  %v4603_v3 = vadd.f32 %v1166_v63, %v836_v0  ;;  %v839_v11 = vpop.f32.mrb[54].mxu0  ;;  %v1631_v63 = vshll.u32 %v4626_v51, 16 }
 0x15c   : > { %v1169_v6 = vpop.f32.mrb[54].mxu1  ;;  %v3539_v22 = vpop.f32.mrb[55].mxu0 }
 0x15d   : > { %v3655_v12 = vpop.f32.mrb[55].mxu1  ;;  %v4610_v20 = vadd.f32 %v1169_v6, %v839_v11  ;;  %v1633_v22 = vrot.slane %v1631_v63, 3 }
 0x15e   : > { %3769 = vmatmul.mubr.msk.bf16.gmra.mrb[160].mxu0 %vm616_vm2, %v1608_v13  ;;  %v2169_v12 = vsel %vm2136_vm3, %v2166_v25, %v2168_v55  ;;  %v2170_v25 = vrot.slane %v4626_v51, 3 }
 0x15f   : > { %3885 = vmatmul.mubr.msk.bf16.gmra.mrb[160].mxu1 %vm616_vm2, %v2165_v10  ;;  %3772 = vmatprep.mubr.msk.bf16.mxu0 %vm4034_vm0, %v5050_v1  ;;  %v1634_v26 = vor.u32 %v1633_v22, %v1630_v18 }
 0x160   : > { %3888 = vmatprep.mubr.msk.bf16.mxu1 %vm4034_vm0, %v5050_v1  ;;  %v2171_v48 = vsel %vm2136_vm3, %v2168_v55, %v2170_v25  ;;  %v2172_v55 = vrot.slane %v4644_v27, 3 }
 0x161   : > { %v844_v34 = vpop.f32.mrb[56].mxu0 }
 0x162   : > { %v1174_v30 = vpop.f32.mrb[56].mxu1  ;;  %v3542_v38 = vpop.f32.mrb[57].mxu0 }
 0x163   : > { %v3658_v35 = vpop.f32.mrb[57].mxu1  ;;  %v4621_v36 = vadd.f32 %v1174_v30, %v844_v34  ;;  %v847_v42 = vpop.f32.mrb[58].mxu0  ;;  %v1637_v34 = vshrl.u32 %v4644_v27, 16 }
 0x164   : > { %v1177_v39 = vpop.f32.mrb[58].mxu1  ;;  %v3543_v59 = vpop.f32.mrb[59].mxu0  ;;  %v1640_v35 = vshll.u32 %v4644_v27, 16 }
 0x165   : > { %v3659_v46 = vpop.f32.mrb[59].mxu1  ;;  %v4628_v54 = vadd.f32 %v1177_v39, %v847_v42  ;;  %v1635_v59 = vsel %vm1474_vm4, %v1625_v57, %v1634_v26  ;;  %v1639_v60 = vrot.slane %v1637_v34, 2 }
 0x166   : > { %3773 = vmatmul.mubr.msk.bf16.gmra.mrb[164].mxu0 %vm616_vm2, %v1617_v47  ;;  %v1642_v63 = vrot.slane %v1640_v35, 3 }
 0x167   : > { %3889 = vmatmul.mubr.msk.bf16.gmra.mrb[164].mxu1 %vm616_vm2, %v2167_v41  ;;  %3776 = vmatprep.mubr.msk.bf16.mxu0 %vm4034_vm0, %v5050_v1 }
 0x168   : > { %3892 = vmatprep.mubr.msk.bf16.mxu1 %vm4034_vm0, %v5050_v1  ;;  %v1643_v57 = vor.u32 %v1642_v63, %v1639_v60 }
 0x169   : > { %v852_v2 = vpop.f32.mrb[60].mxu0 }
 0x16a   : > { %v1182_v0 = vpop.f32.mrb[60].mxu1  ;;  %v3546_v10 = vpop.f32.mrb[61].mxu0  ;;  %v1644_v35 = vsel %vm1474_vm4, %v1634_v26, %v1643_v57 }
 0x16b   : > { %v3662_v4 = vpop.f32.mrb[61].mxu1  ;;  %v4639_v6 = vadd.f32 %v1182_v0, %v852_v2  ;;  %v855_v13 = vpop.f32.mrb[62].mxu0  ;;  %v4662_v0 = vld [vmem:[%s4100_s4 + $0xa0] sm:$0xff]  }
 0x16c   : > { %v1185_v11 = vpop.f32.mrb[62].mxu1  ;;  %v3547_v30 = vpop.f32.mrb[63].mxu0  ;;  %v1646_v10 = vshrl.u32 %v4662_v0, 16 }
 0x16d   : > { %v3663_v15 = vpop.f32.mrb[63].mxu1  ;;  %v4646_v28 = vadd.f32 %v1185_v11, %v855_v13  ;;  %v1649_v11 = vshll.u32 %v4662_v0, 16  ;;  %v2173_v30 = vsel %vm2136_vm3, %v2170_v25, %v2172_v55  ;;  %v2174_v25 = vrot.slane %v4662_v0, 3 }
 0x16e   : > { %3777 = vmatmul.mubr.msk.bf16.gmra.mrb[168].mxu0 %vm616_vm2, %v1626_v16 }
 0x16f   : > { %3893 = vmatmul.mubr.msk.bf16.gmra.mrb[168].mxu1 %vm616_vm2, %v2169_v12  ;;  %3780 = vmatprep.mubr.msk.bf16.mxu0 %vm4034_vm0, %v5050_v1 }
 0x170   : > { %3896 = vmatprep.mubr.msk.bf16.mxu1 %vm4034_vm0, %v5050_v1 }
 0x171   : > { %v860_v39 = vpop.f32.mrb[64].mxu0 }
 0x172   : > { %v1190_v38 = vpop.f32.mrb[64].mxu1  ;;  %v3550_v46 = vpop.f32.mrb[65].mxu0 }
 0x173   : > { %v3666_v41 = vpop.f32.mrb[65].mxu1  ;;  %v4657_v42 = vadd.f32 %v1190_v38, %v860_v39  ;;  %v863_v49 = vpop.f32.mrb[66].mxu0  ;;  %v1648_v38 = vrot.slane %v1646_v10, 2  ;;  %v1651_v39 = vrot.slane %v1649_v11, 3  ;;  %v2175_v11 = vsel %vm2136_vm3, %v2172_v55, %v2174_v25 }
 0x174   : > { %v1193_v47 = vpop.f32.mrb[66].mxu1  ;;  %v3551_v4 = vpop.f32.mrb[67].mxu0  ;;  %v4680_v41 = vld [vmem:[%s4100_s4 + $0xa8] sm:$0xff]  }
 0x175   : > { %v3667_v51 = vpop.f32.mrb[67].mxu1  ;;  %v4664_v2 = vadd.f32 %v1193_v47, %v863_v49  ;;  %v1652_v26 = vor.u32 %v1651_v39, %v1648_v38  ;;  %v1658_v49 = vshll.u32 %v4680_v41, 16  ;;  %v2176_v55 = vrot.slane %v4680_v41, 3 }
 0x176   : > { %3781 = vmatmul.mubr.msk.bf16.gmra.mrb[172].mxu0 %vm616_vm2, %v1635_v59 }
 0x177   : > { %3897 = vmatmul.mubr.msk.bf16.gmra.mrb[172].mxu1 %vm616_vm2, %v2171_v48  ;;  %3784 = vmatprep.mubr.msk.bf16.mxu0 %vm4034_vm0, %v5050_v1  ;;  %v1655_v48 = vshrl.u32 %v4680_v41, 16 }
 0x178   : > { %3900 = vmatprep.mubr.msk.bf16.mxu1 %vm4034_vm0, %v5050_v1 }
 0x179   : > { %v868_v13 = vpop.f32.mrb[68].mxu0 }
 0x17a   : > { %v1198_v12 = vpop.f32.mrb[68].mxu1  ;;  %v3554_v18 = vpop.f32.mrb[69].mxu0 }
 0x17b   : > { %v3670_v15 = vpop.f32.mrb[69].mxu1  ;;  %v4675_v16 = vadd.f32 %v1198_v12, %v868_v13  ;;  %v871_v34 = vpop.f32.mrb[70].mxu0  ;;  %v1653_v13 = vsel %vm1474_vm4, %v1643_v57, %v1652_v26  ;;  %v1660_v18 = vrot.slane %v1658_v49, 3 }
 0x17c   : > { %v1201_v22 = vpop.f32.mrb[70].mxu1  ;;  %v3555_v47 = vpop.f32.mrb[71].mxu0  ;;  %v1657_v15 = vrot.slane %v1655_v48, 2 }
 0x17d   : > { %v3671_v27 = vpop.f32.mrb[71].mxu1  ;;  %v4682_v46 = vadd.f32 %v1201_v22, %v871_v34  ;;  %v4698_v22 = vld [vmem:[%s4100_s4 + $0xb0] sm:$0xff]  }
 0x17e   : > { %3785 = vmatmul.mubr.msk.bf16.gmra.mrb[176].mxu0 %vm616_vm2, %v1644_v35  ;;  %v1661_v57 = vor.u32 %v1660_v18, %v1657_v15  ;;  %v1664_v27 = vshrl.u32 %v4698_v22, 16  ;;  %v1667_v35 = vshll.u32 %v4698_v22, 16 }
 0x17f   : > { %3901 = vmatmul.mubr.msk.bf16.gmra.mrb[176].mxu1 %vm616_vm2, %v2173_v30  ;;  %3788 = vmatprep.mubr.msk.bf16.mxu0 %vm4034_vm0, %v5050_v1 }
 0x180   : > { %3904 = vmatprep.mubr.msk.bf16.mxu1 %vm4034_vm0, %v5050_v1 }
 0x181   : > { %v876_v59 = vpop.f32.mrb[72].mxu0 }
 0x182   : > { %v1206_v51 = vpop.f32.mrb[72].mxu1  ;;  %v3558_v4 = vpop.f32.mrb[73].mxu0 }
 0x183   : > { %v3674_v60 = vpop.f32.mrb[73].mxu1  ;;  %v4693_v63 = vadd.f32 %v1206_v51, %v876_v59  ;;  %v879_v12 = vpop.f32.mrb[74].mxu0  ;;  %v2177_v59 = vsel %vm2136_vm3, %v2174_v25, %v2176_v55  ;;  %v1662_v4 = vsel %vm1474_vm4, %v1652_v26, %v1661_v57  ;;  %v2178_v25 = vrot.slane %v4698_v22, 3 }
 0x184   : > { %v1209_v10 = vpop.f32.mrb[74].mxu1  ;;  %v3559_v34 = vpop.f32.mrb[75].mxu0 }
 0x185   : > { %v3675_v0 = vpop.f32.mrb[75].mxu1  ;;  %v4700_v30 = vadd.f32 %v1209_v10, %v879_v12  ;;  %v1666_v10 = vrot.slane %v1664_v27, 2  ;;  %v4716_v12 = vld [vmem:[%s4100_s4 + $0xb8] sm:$0xff]  }
 0x186   : > { %3789 = vmatmul.mubr.msk.bf16.gmra.mrb[180].mxu0 %vm616_vm2, %v1653_v13  ;;  %v1673_v15 = vshrl.u32 %v4716_v12, 16  ;;  %v1676_v18 = vshll.u32 %v4716_v12, 16 }
 0x187   : > { %3905 = vmatmul.mubr.msk.bf16.gmra.mrb[180].mxu1 %vm616_vm2, %v2175_v11  ;;  %3792 = vmatprep.mubr.msk.bf16.mxu0 %vm4034_vm0, %v5050_v1  ;;  %v1669_v11 = vrot.slane %v1667_v35, 3 }
 0x188   : > { %3908 = vmatprep.mubr.msk.bf16.mxu1 %vm4034_vm0, %v5050_v1 }
 0x189   : > { %v884_v39 = vpop.f32.mrb[76].mxu0  ;;  %v1670_v26 = vor.u32 %v1669_v11, %v1666_v10 }
 0x18a   : > { %v1214_v38 = vpop.f32.mrb[76].mxu1  ;;  %v3562_v49 = vpop.f32.mrb[77].mxu0 }
 0x18b   : > { %v3678_v47 = vpop.f32.mrb[77].mxu1  ;;  %v4711_v48 = vadd.f32 %v1214_v38, %v884_v39  ;;  %v887_v60 = vpop.f32.mrb[78].mxu0  ;;  %v2179_v49 = vsel %vm2136_vm3, %v2176_v55, %v2178_v25  ;;  %v2180_v55 = vrot.slane %v4716_v12, 3 }
 0x18c   : > { %v1217_v51 = vpop.f32.mrb[78].mxu1  ;;  %v3563_v13 = vpop.f32.mrb[79].mxu0 }
 0x18d   : > { %v3679_v41 = vpop.f32.mrb[79].mxu1  ;;  %v4718_v0 = vadd.f32 %v1217_v51, %v887_v60  ;;  %v1675_v60 = vrot.slane %v1673_v15, 2 }
 0x18e   : > { %3793 = vmatmul.mubr.msk.bf16.gmra.mrb[184].mxu0 %vm616_vm2, %v1662_v4  ;;  %v1678_v41 = vrot.slane %v1676_v18, 3  ;;  %v4734_v4 = vld [vmem:[%s4100_s4 + $0xc0] sm:$0xff]  }
 0x18f   : > { %3909 = vmatmul.mubr.msk.bf16.gmra.mrb[184].mxu1 %vm616_vm2, %v2177_v59  ;;  %3796 = vmatprep.mubr.msk.bf16.mxu0 %vm4034_vm0, %v5050_v1  ;;  %v1671_v59 = vsel %vm1474_vm4, %v1661_v57, %v1670_v26  ;;  %v1682_v13 = vshrl.u32 %v4734_v4, 16  ;;  %v1685_v15 = vshll.u32 %v4734_v4, 16 }
 0x190   : > { %3912 = vmatprep.mubr.msk.bf16.mxu1 %vm4034_vm0, %v5050_v1  ;;  %v1679_v57 = vor.u32 %v1678_v41, %v1675_v60  ;;  %v4752_v60 = vld [vmem:[%s4100_s4 + $0xc8] sm:$0xff]  }
 0x191   : > { %v892_v27 = vpop.f32.mrb[80].mxu0 }
 0x192   : > { %v1222_v34 = vpop.f32.mrb[80].mxu1  ;;  %v3566_v39 = vpop.f32.mrb[81].mxu0 }
 0x193   : > { %v3682_v35 = vpop.f32.mrb[81].mxu1  ;;  %v4729_v38 = vadd.f32 %v1222_v34, %v892_v27  ;;  %v895_v51 = vpop.f32.mrb[82].mxu0 }
 0x194   : > { %v1225_v47 = vpop.f32.mrb[82].mxu1  ;;  %v3567_v11 = vpop.f32.mrb[83].mxu0 }
 0x195   : > { %5052 = vst [vmem:[#allocation2_spill] sm:$0xff] %v4729_v38  ;;  %v3683_v22 = vpop.f32.mrb[83].mxu1  ;;  %v4736_v10 = vadd.f32 %v1225_v47, %v895_v51  ;;  %v1687_v11 = vrot.slane %v1685_v15, 3  ;;  %v1694_v15 = vshll.u32 %v4752_v60, 16 }
 0x196   : > { %3797 = vmatmul.mubr.msk.bf16.gmra.mrb[188].mxu0 %vm616_vm2, %v1671_v59  ;;  %v1680_v22 = vsel %vm1474_vm4, %v1670_v26, %v1679_v57  ;;  %v1684_v59 = vrot.slane %v1682_v13, 2  ;;  %v1691_v13 = vshrl.u32 %v4752_v60, 16 }
 0x197   : > { %5053 = vst [vmem:[#allocation3_spill] sm:$0xff] %v4736_v10  ;;  %3913 = vmatmul.mubr.msk.bf16.gmra.mrb[188].mxu1 %vm616_vm2, %v2179_v49  ;;  %3800 = vmatprep.mubr.msk.bf16.mxu0 %vm4034_vm0, %v5050_v1  ;;  %v2181_v49 = vsel %vm2136_vm3, %v2178_v25, %v2180_v55  ;;  %v2182_v25 = vrot.slane %v4734_v4, 3 }
 0x198   : > { %3916 = vmatprep.mubr.msk.bf16.mxu1 %vm4034_vm0, %v5050_v1  ;;  %v1688_v26 = vor.u32 %v1687_v11, %v1684_v59  ;;  %v4022_v59 = vld [vmem:[%s4100_s4 + $0xd0] sm:$0xff]  }
 0x199   : > { %v900_v34 = vpop.f32.mrb[84].mxu0 }
 0x19a   : > { %v1230_v18 = vpop.f32.mrb[84].mxu1  ;;  %v3570_v39 = vpop.f32.mrb[85].mxu0 }
 0x19b   : > { %v3686_v27 = vpop.f32.mrb[85].mxu1  ;;  %v4747_v35 = vadd.f32 %v1230_v18, %v900_v34  ;;  %v903_v51 = vpop.f32.mrb[86].mxu0  ;;  %v5056_v18 = vmov 0.0  }
 0x19c   : > { %v1233_v47 = vpop.f32.mrb[86].mxu1  ;;  %v3571_v1 = vpop.f32.mrb[87].mxu0 }
 0x19d   : > { %5054 = vst [vmem:[#allocation4_spill] sm:$0xff] %v4747_v35  ;;  %v3687_v12 = vpop.f32.mrb[87].mxu1  ;;  %v4754_v41 = vadd.f32 %v1233_v47, %v903_v51  ;;  %v2183_v51 = vsel %vm2136_vm3, %v2180_v55, %v2182_v25  ;;  %v1696_v35 = vrot.slane %v1694_v15, 3 }
 0x19e   : > { %3801 = vmatmul.mubr.msk.bf16.gmra.mrb[192].mxu0 %vm616_vm2, %v1680_v22  ;;  %v1689_v22 = vsel %vm1474_vm4, %v1679_v57, %v1688_v26  ;;  %v1700_v57 = vshrl.u32 %v4022_v59, 16 }
 0x19f   : > { %5055 = vst [vmem:[#allocation5_spill] sm:$0xff] %v4754_v41  ;;  %3917 = vmatmul.mubr.msk.bf16.gmra.mrb[192].mxu1 %vm616_vm2, %v2181_v49  ;;  %3804 = vmatprep.mubr.msk.bf16.mxu0 %vm4034_vm0, %v5056_v18  ;;  %v1693_v41 = vrot.slane %v1691_v13, 2  ;;  %v1703_v13 = vshll.u32 %v4022_v59, 16 }
 0x1a0   : > { %3920 = vmatprep.mubr.msk.bf16.mxu1 %vm4034_vm0, %v5056_v18 }
 0x1a1   : > { %v908_v1 = vpop.f32.mrb[88].mxu0  ;;  %v1697_v55 = vor.u32 %v1696_v35, %v1693_v41  ;;  %v2186_v41 = vrot.slane %v4022_v59, 3 }
 0x1a2   : > { %v1238_v34 = vpop.f32.mrb[88].mxu1  ;;  %v3574_v47 = vpop.f32.mrb[89].mxu0 }
 0x1a3   : > { %v3690_v27 = vpop.f32.mrb[89].mxu1  ;;  %v4765_v39 = vadd.f32 %v1238_v34, %v908_v1  ;;  %v911_v12 = vpop.f32.mrb[90].mxu0  ;;  %v2184_v34 = vrot.slane %v4752_v60, 3  ;;  %v1698_v60 = vsel %vm1474_vm4, %v1688_v26, %v1697_v55 }
 0x1a4   : > { %v1241_v49 = vpop.f32.mrb[90].mxu1  ;;  %v3575_v10 = vpop.f32.mrb[91].mxu0 }
 0x1a5   : > { %5057 = vst [vmem:[#allocation6_spill] sm:$0xff] %v4765_v39  ;;  %v3691_v4 = vpop.f32.mrb[91].mxu1  ;;  %v4770_v11 = vadd.f32 %v1241_v49, %v911_v12  ;;  %v4023_v39 = vld [vmem:[%s4100_s4 + $0xd8] sm:$0x1f]  }
 0x1a6   : > { %3805 = vmatmul.mubr.msk.bf16.gmra.mrb[196].mxu0 %vm616_vm2, %v1689_v22  ;;  %v1702_v22 = vrot.slane %v1700_v57, 2  ;;  %v1712_v26 = vshll.u32 %v4023_v39, 16 }
 0x1a7   : > { %5058 = vst [vmem:[#allocation7_spill] sm:$0xff] %v4770_v11  ;;  %3921 = vmatmul.mubr.msk.bf16.gmra.mrb[196].mxu1 %vm616_vm2, %v2183_v51  ;;  %3808 = vmatprep.mubr.msk.bf16.mxu0 %vm4034_vm0, %v5056_v18  ;;  %v2185_v51 = vsel %vm2136_vm3, %v2182_v25, %v2184_v34  ;;  %v1705_v11 = vrot.slane %v1703_v13, 3 }
 0x1a8   : > { %3924 = vmatprep.mubr.msk.bf16.mxu1 %vm4034_vm0, %v5056_v18 }
 0x1a9   : > { %v916_v1 = vpop.f32.mrb[92].mxu0  ;;  %v1706_v25 = vor.u32 %v1705_v11, %v1702_v22  ;;  %v2188_v22 = vrot.slane %v4023_v39, 3 }
 0x1aa   : > { %v1246_v15 = vpop.f32.mrb[92].mxu1  ;;  %v3578_v47 = vpop.f32.mrb[93].mxu0 }
 0x1ab   : > { %v3694_v27 = vpop.f32.mrb[93].mxu1  ;;  %v4779_v10 = vadd.f32 %v1246_v15, %v916_v1  ;;  %v919_v12 = vpop.f32.mrb[94].mxu0  ;;  %v1709_v15 = vshrl.u32 %v4023_v39, 16 }
 0x1ac   : > { %v1249_v49 = vpop.f32.mrb[94].mxu1  ;;  %v3579_v35 = vpop.f32.mrb[95].mxu0 }
 0x1ad   : > { %v3695_v4 = vpop.f32.mrb[95].mxu1  ;;  %v4784_v38 = vadd.f32 %v1249_v49, %v919_v12  ;;  %v1711_v59 = vrot.slane %v1709_v15, 2  ;;  %v1714_v35 = vrot.slane %v1712_v26, 3 }
 0x1ae   : > { %3809 = vmatmul.mubr.msk.bf16.gmra.mrb[200].mxu0 %vm616_vm2, %v1698_v60  ;;  %v1707_v60 = vsel %vm1474_vm4, %v1697_v55, %v1706_v25 }
 0x1af   : > { %5059 = vst [vmem:[#allocation8_spill] sm:$0xff] %v4784_v38  ;;  %3925 = vmatmul.mubr.msk.bf16.gmra.mrb[200].mxu1 %vm616_vm2, %v2185_v51  ;;  %3812 = vmatprep.mubr.msk.bf16.mxu0 %vm4034_vm0, %v5056_v18  ;;  %v2187_v51 = vsel %vm2136_vm3, %v2184_v34, %v2186_v41  ;;  %v1715_v34 = vor.u32 %v1714_v35, %v1711_v59 }
 0x1b0   : > { %3928 = vmatprep.mubr.msk.bf16.mxu1 %vm4034_vm0, %v5056_v18 }
 0x1b1   : > { %v924_v13 = vpop.f32.mrb[96].mxu0 }
 0x1b2   : > { %v1254_v57 = vpop.f32.mrb[96].mxu1  ;;  %v3582_v47 = vpop.f32.mrb[97].mxu0 }
 0x1b3   : > { %v3698_v1 = vpop.f32.mrb[97].mxu1  ;;  %v4792_v27 = vadd.f32 %v1254_v57, %v924_v13  ;;  %v927_v12 = vpop.f32.mrb[98].mxu0  ;;  %v2189_v47 = vsel %vm2136_vm3, %v2186_v41, %v2188_v22 }
 0x1b4   : > { %v1257_v49 = vpop.f32.mrb[98].mxu1  ;;  %v3583_v11 = vpop.f32.mrb[99].mxu0 }
 0x1b5   : > { %v3699_v4 = vpop.f32.mrb[99].mxu1  ;;  %v4796_v38 = vadd.f32 %v1257_v49, %v927_v12  ;;  %v1716_v12 = vsel %vm1474_vm4, %v1706_v25, %v1715_v34 }
 0x1b6   : > { %3813 = vmatmul.mubr.msk.bf16.gmra.mrb[204].mxu0 %vm616_vm2, %v1707_v60 }
 0x1b7   : > { %3929 = vmatmul.mubr.msk.bf16.gmra.mrb[204].mxu1 %vm616_vm2, %v2187_v51  ;;  %3816 = vmatprep.mubr.msk.bf16.mxu0 %vm4034_vm0, %v5056_v18 }
 0x1b8   : > { %3932 = vmatprep.mubr.msk.bf16.mxu1 %vm4034_vm0, %v5056_v18 }
 0x1b9   : > { %v932_v13 = vpop.f32.mrb[100].mxu0 }
 0x1ba   : > { %v1262_v57 = vpop.f32.mrb[100].mxu1  ;;  %v3586_v26 = vpop.f32.mrb[101].mxu0 }
 0x1bb   : > { %v3702_v55 = vpop.f32.mrb[101].mxu1  ;;  %v4804_v15 = vadd.f32 %v1262_v57, %v932_v13  ;;  %v935_v49 = vpop.f32.mrb[102].mxu0 }
 0x1bc   : > { %v1265_v1 = vpop.f32.mrb[102].mxu1  ;;  %v3587_v39 = vpop.f32.mrb[103].mxu0 }
 0x1bd   : > { %v3703_v51 = vpop.f32.mrb[103].mxu1  ;;  %v4808_v4 = vadd.f32 %v1265_v1, %v935_v49 }
 0x1be   : > { %3817 = vmatmul.mubr.msk.bf16.gmra.mrb[208].mxu0 %vm616_vm2, %v1716_v12  ;;  %v4824_v12 = vld [vmem:[%s5048_s2] ss:$0 sm:$0xff] }
 0x1bf   : > { %3933 = vmatmul.mubr.msk.bf16.gmra.mrb[208].mxu1 %vm616_vm2, %v2189_v47  ;;  %3820 = vmatprep.mubr.msk.bf16.mxu0 %vm4034_vm0, %v5056_v18 }
 0x1c0   : > { %3936 = vmatprep.mubr.msk.bf16.mxu1 %vm4034_vm0, %v5056_v18 }
 0x1c1   : > { %v940_v59 = vpop.f32.mrb[104].mxu0 }
 0x1c2   : > { %v1270_v60 = vpop.f32.mrb[104].mxu1  ;;  %v3590_v11 = vpop.f32.mrb[105].mxu0 }
 0x1c3   : > { %v3706_v41 = vpop.f32.mrb[105].mxu1  ;;  %v4816_v35 = vadd.f32 %v1270_v60, %v940_v59  ;;  %v943_v57 = vpop.f32.mrb[106].mxu0 }
 0x1c4   : > { %v1273_v25 = vpop.f32.mrb[106].mxu1  ;;  %v3591_v55 = vpop.f32.mrb[107].mxu0 }
 0x1c5   : > { %v3707_v13 = vpop.f32.mrb[107].mxu1 }
 0x1c6   : > { %3821 = vmatmul.mubr.msk.bf16.gmra.mrb[212].mxu0 %vm616_vm2, %v1715_v34 }
 0x1c7   : > { %3937 = vmatmul.mubr.msk.bf16.gmra.mrb[212].mxu1 %vm616_vm2, %v2188_v22 }
 0x1c9   : > { %v1856_v1 = vpop.f32.mrb[108].mxu0 }
 0x1ca   : > { %v2329_v26 = vpop.f32.mrb[108].mxu1  ;;  %v2070_v18 = vadd.f32 %v1856_v1, %v4369_v14  ;;  %v3718_v49 = vpop.f32.mrb[109].mxu0 }
 0x1cb   : > { %v3834_v47 = vpop.f32.mrb[109].mxu1  ;;  %v1859_v39 = vpop.f32.mrb[110].mxu0 }
 0x1cc   : > { %v2332_v51 = vpop.f32.mrb[110].mxu1  ;;  %v2543_v59 = vadd.f32 %v2329_v26, %v2070_v18  ;;  %v2071_v41 = vadd.f32 %v1859_v39, %v4376_v24  ;;  %v3719_v22 = vpop.f32.mrb[111].mxu0 }
 0x1cd   : > { %v3835_v60 = vpop.f32.mrb[111].mxu1 }
 0x1ce   : > { %v2603_v34 = vadd.f32 %v4824_v12, %v2543_v59  ;;  %v2544_v11 = vadd.f32 %v2332_v51, %v2071_v41 }
 0x1d0   : > { %v2656_v25 = vmax.f32 %v2603_v34, 0.0  ;;  %v2604_v14 = vadd.f32 %v4824_v12, %v2544_v11 }
 0x1d1   : > { %v1864_v13 = vpop.f32.mrb[112].mxu0 }
 0x1d2   : > { %v2337_v57 = vpop.f32.mrb[112].mxu1  ;;  %v3299_v24 = vpack.c.bf16 %v2656_v25, %v2656_v25  ;;  %v2657_v26 = vmax.f32 %v2604_v14, 0.0  ;;  %v2072_v1 = vadd.f32 %v1864_v13, %v4387_v33  ;;  %v3722_v47 = vpop.f32.mrb[113].mxu0 }
 0x1d3   : > { %v3838_v55 = vpop.f32.mrb[113].mxu1  ;;  %v1867_v49 = vpop.f32.mrb[114].mxu0 }
 0x1d4   : > { %v2340_v18 = vpop.f32.mrb[114].mxu1  ;;  %2923 = vst.msk [vmem:[%s4833_s30] sm:$0xf] %vm2922_vm5, %v3299_v24  ;;  %v3300_v39 = vpack.c.bf16 %v2657_v26, %v2657_v26  ;;  %v2545_v60 = vadd.f32 %v2337_v57, %v2072_v1  ;;  %v2073_v59 = vadd.f32 %v1867_v49, %v4394_v43  ;;  %v3723_v41 = vpop.f32.mrb[115].mxu0 }
 0x1d5   : > { %v3839_v51 = vpop.f32.mrb[115].mxu1 }
 0x1d6   : > { %2924 = vst.msk [vmem:[%s4833_s30 + $0x4] sm:$0xf] %vm2922_vm5, %v3300_v39  ;;  %v2605_v22 = vadd.f32 %v4824_v12, %v2545_v60  ;;  %v2546_v34 = vadd.f32 %v2340_v18, %v2073_v59 }
 0x1d8   : > { %v2658_v11 = vmax.f32 %v2605_v22, 0.0  ;;  %v2606_v33 = vadd.f32 %v4824_v12, %v2546_v34 }
 0x1d9   : > { %v1872_v14 = vpop.f32.mrb[116].mxu0 }
 0x1da   : > { %v2345_v25 = vpop.f32.mrb[116].mxu1  ;;  %v3301_v55 = vpack.c.bf16 %v2658_v11, %v2658_v11  ;;  %v2659_v24 = vmax.f32 %v2606_v33, 0.0  ;;  %v2074_v57 = vadd.f32 %v1872_v14, %v4405_v52  ;;  %v3726_v26 = vpop.f32.mrb[117].mxu0 }
 0x1db   : > { %v3842_v13 = vpop.f32.mrb[117].mxu1  ;;  %v1875_v1 = vpop.f32.mrb[118].mxu0 }
 0x1dc   : > { %v2348_v43 = vpop.f32.mrb[118].mxu1  ;;  %2925 = vst.msk [vmem:[%s4833_s30 + $0x8] sm:$0xf] %vm2922_vm5, %v3301_v55  ;;  %v3302_v49 = vpack.c.bf16 %v2659_v24, %v2659_v24  ;;  %v2547_v51 = vadd.f32 %v2345_v25, %v2074_v57  ;;  %v2075_v18 = vadd.f32 %v1875_v1, %v4412_v62  ;;  %v3727_v39 = vpop.f32.mrb[119].mxu0 }
 0x1dd   : > { %v3843_v47 = vpop.f32.mrb[119].mxu1 }
 0x1de   : > { %2926 = vst.msk [vmem:[%s4833_s30 + $0xc] sm:$0xf] %vm2922_vm5, %v3302_v49  ;;  %v2607_v60 = vadd.f32 %v4824_v12, %v2547_v51  ;;  %v2548_v59 = vadd.f32 %v2348_v43, %v2075_v18 }
 0x1e0   : > { %v2660_v41 = vmax.f32 %v2607_v60, 0.0  ;;  %v2608_v52 = vadd.f32 %v4824_v12, %v2548_v59 }
 0x1e1   : > { %v1880_v34 = vpop.f32.mrb[120].mxu0 }
 0x1e2   : > { %v2353_v22 = vpop.f32.mrb[120].mxu1  ;;  %v3303_v33 = vpack.c.bf16 %v2660_v41, %v2660_v41  ;;  %v2661_v14 = vmax.f32 %v2608_v52, 0.0  ;;  %v2076_v25 = vadd.f32 %v1880_v34, %v4423_v8  ;;  %v3730_v13 = vpop.f32.mrb[121].mxu0 }
 0x1e3   : > { %v3846_v11 = vpop.f32.mrb[121].mxu1  ;;  %v1883_v55 = vpop.f32.mrb[122].mxu0 }
 0x1e4   : > { %v2356_v62 = vpop.f32.mrb[122].mxu1  ;;  %2927 = vst.msk [vmem:[%s4833_s30 + $0x10] sm:$0xf] %vm2922_vm5, %v3303_v33  ;;  %v3304_v57 = vpack.c.bf16 %v2661_v14, %v2661_v14  ;;  %v2549_v26 = vadd.f32 %v2353_v22, %v2076_v25  ;;  %v2077_v43 = vadd.f32 %v1883_v55, %v4430_v19  ;;  %v3731_v1 = vpop.f32.mrb[123].mxu0 }
 0x1e5   : > { %v3847_v24 = vpop.f32.mrb[123].mxu1 }
 0x1e6   : > { %2928 = vst.msk [vmem:[%s4833_s30 + $0x14] sm:$0xf] %vm2922_vm5, %v3304_v57  ;;  %v2609_v47 = vadd.f32 %v4824_v12, %v2549_v26  ;;  %v2550_v49 = vadd.f32 %v2356_v62, %v2077_v43 }
 0x1e8   : > { %v2662_v51 = vmax.f32 %v2609_v47, 0.0  ;;  %v2610_v8 = vadd.f32 %v4824_v12, %v2550_v49 }
 0x1e9   : > { %v1888_v39 = vpop.f32.mrb[124].mxu0 }
 0x1ea   : > { %v2361_v18 = vpop.f32.mrb[124].mxu1  ;;  %v3305_v59 = vpack.c.bf16 %v2662_v51, %v2662_v51  ;;  %v2663_v41 = vmax.f32 %v2610_v8, 0.0  ;;  %v2078_v52 = vadd.f32 %v1888_v39, %v4441_v29  ;;  %v3734_v22 = vpop.f32.mrb[125].mxu0 }
 0x1eb   : > { %v3850_v60 = vpop.f32.mrb[125].mxu1  ;;  %v1891_v34 = vpop.f32.mrb[126].mxu0 }
 0x1ec   : > { %v2364_v19 = vpop.f32.mrb[126].mxu1  ;;  %2929 = vst.msk [vmem:[%s4833_s30 + $0x18] sm:$0xf] %vm2922_vm5, %v3305_v59  ;;  %v3306_v33 = vpack.c.bf16 %v2663_v41, %v2663_v41  ;;  %v2551_v14 = vadd.f32 %v2361_v18, %v2078_v52  ;;  %v2079_v25 = vadd.f32 %v1891_v34, %v4448_v40  ;;  %v3735_v13 = vpop.f32.mrb[127].mxu0 }
 0x1ed   : > { %v3851_v11 = vpop.f32.mrb[127].mxu1 }
 0x1ee   : > { %2930 = vst.msk [vmem:[%s4833_s30 + $0x1c] sm:$0xf] %vm2922_vm5, %v3306_v33  ;;  %v2611_v62 = vadd.f32 %v4824_v12, %v2551_v14  ;;  %v2552_v55 = vadd.f32 %v2364_v19, %v2079_v25 }
 0x1f0   : > { %v2664_v24 = vmax.f32 %v2611_v62, 0.0  ;;  %v2612_v29 = vadd.f32 %v4824_v12, %v2552_v55 }
 0x1f1   : > { %v1896_v26 = vpop.f32.mrb[128].mxu0 }
 0x1f2   : > { %v2369_v57 = vpop.f32.mrb[128].mxu1  ;;  %v3307_v1 = vpack.c.bf16 %v2664_v24, %v2664_v24  ;;  %v2665_v47 = vmax.f32 %v2612_v29, 0.0  ;;  %v2080_v49 = vadd.f32 %v1896_v26, %v4459_v50  ;;  %v3738_v51 = vpop.f32.mrb[129].mxu0 }
 0x1f3   : > { %v3854_v43 = vpop.f32.mrb[129].mxu1  ;;  %v1899_v8 = vpop.f32.mrb[130].mxu0 }
 0x1f4   : > { %v2372_v40 = vpop.f32.mrb[130].mxu1  ;;  %2931 = vst.msk [vmem:[%s4833_s30 + $0x20] sm:$0xf] %vm2922_vm5, %v3307_v1  ;;  %v3308_v39 = vpack.c.bf16 %v2665_v47, %v2665_v47  ;;  %v2553_v60 = vadd.f32 %v2369_v57, %v2080_v49  ;;  %v2081_v59 = vadd.f32 %v1899_v8, %v4466_v61  ;;  %v3739_v41 = vpop.f32.mrb[131].mxu0 }
 0x1f5   : > { %v3855_v18 = vpop.f32.mrb[131].mxu1 }
 0x1f6   : > { %2932 = vst.msk [vmem:[%s4833_s30 + $0x24] sm:$0xf] %vm2922_vm5, %v3308_v39  ;;  %v2613_v52 = vadd.f32 %v4824_v12, %v2553_v60  ;;  %v2554_v22 = vadd.f32 %v2372_v40, %v2081_v59 }
 0x1f8   : > { %v2666_v19 = vmax.f32 %v2613_v52, 0.0  ;;  %v2614_v50 = vadd.f32 %v4824_v12, %v2554_v22 }
 0x1f9   : > { %v1904_v11 = vpop.f32.mrb[132].mxu0 }
 0x1fa   : > { %v2377_v34 = vpop.f32.mrb[132].mxu1  ;;  %v3309_v14 = vpack.c.bf16 %v2666_v19, %v2666_v19  ;;  %v2667_v25 = vmax.f32 %v2614_v50, 0.0  ;;  %v2082_v13 = vadd.f32 %v1904_v11, %v4477_v9  ;;  %v3742_v62 = vpop.f32.mrb[133].mxu0 }
 0x1fb   : > { %v3858_v33 = vpop.f32.mrb[133].mxu1  ;;  %v1907_v55 = vpop.f32.mrb[134].mxu0 }
 0x1fc   : > { %v2380_v61 = vpop.f32.mrb[134].mxu1  ;;  %2933 = vst.msk [vmem:[%s4833_s30 + $0x28] sm:$0xf] %vm2922_vm5, %v3309_v14  ;;  %v3310_v29 = vpack.c.bf16 %v2667_v25, %v2667_v25  ;;  %v2555_v57 = vadd.f32 %v2377_v34, %v2082_v13  ;;  %v2083_v26 = vadd.f32 %v1907_v55, %v4484_v21  ;;  %v3743_v43 = vpop.f32.mrb[135].mxu0 }
 0x1fd   : > { %v3859_v24 = vpop.f32.mrb[135].mxu1 }
 0x1fe   : > { %2934 = vst.msk [vmem:[%s4833_s30 + $0x2c] sm:$0xf] %vm2922_vm5, %v3310_v29  ;;  %v2615_v1 = vadd.f32 %v4824_v12, %v2555_v57  ;;  %v2556_v47 = vadd.f32 %v2380_v61, %v2083_v26 }
 0x200   : > { %v2668_v49 = vmax.f32 %v2615_v1, 0.0  ;;  %v2616_v9 = vadd.f32 %v4824_v12, %v2556_v47 }
 0x201   : > { %v1912_v40 = vpop.f32.mrb[136].mxu0 }
 0x202   : > { %v2385_v51 = vpop.f32.mrb[136].mxu1  ;;  %v3311_v18 = vpack.c.bf16 %v2668_v49, %v2668_v49  ;;  %v2669_v39 = vmax.f32 %v2616_v9, 0.0  ;;  %v2084_v60 = vadd.f32 %v1912_v40, %v4495_v32  ;;  %v3746_v59 = vpop.f32.mrb[137].mxu0 }
 0x203   : > { %v3862_v8 = vpop.f32.mrb[137].mxu1  ;;  %v1915_v41 = vpop.f32.mrb[138].mxu0 }
 0x204   : > { %v2388_v21 = vpop.f32.mrb[138].mxu1  ;;  %2935 = vst.msk [vmem:[%s4833_s30 + $0x30] sm:$0xf] %vm2922_vm5, %v3311_v18  ;;  %v3312_v22 = vpack.c.bf16 %v2669_v39, %v2669_v39  ;;  %v2557_v19 = vadd.f32 %v2385_v51, %v2084_v60  ;;  %v2085_v50 = vadd.f32 %v1915_v41, %v4502_v45  ;;  %v3747_v34 = vpop.f32.mrb[139].mxu0 }
 0x205   : > { %v3863_v52 = vpop.f32.mrb[139].mxu1 }
 0x206   : > { %2936 = vst.msk [vmem:[%s4833_s30 + $0x34] sm:$0xf] %vm2922_vm5, %v3312_v22  ;;  %v2617_v11 = vadd.f32 %v4824_v12, %v2557_v19  ;;  %v2558_v33 = vadd.f32 %v2388_v21, %v2085_v50 }
 0x208   : > { %v2670_v14 = vmax.f32 %v2617_v11, 0.0  ;;  %v2618_v32 = vadd.f32 %v4824_v12, %v2558_v33 }
 0x209   : > { %v1920_v13 = vpop.f32.mrb[140].mxu0 }
 0x20a   : > { %v2393_v25 = vpop.f32.mrb[140].mxu1  ;;  %v3313_v61 = vpack.c.bf16 %v2670_v14, %v2670_v14  ;;  %v2671_v55 = vmax.f32 %v2618_v32, 0.0  ;;  %v2086_v24 = vadd.f32 %v1920_v13, %v4513_v56  ;;  %v3750_v29 = vpop.f32.mrb[141].mxu0 }
 0x20b   : > { %v3866_v62 = vpop.f32.mrb[141].mxu1  ;;  %v1923_v57 = vpop.f32.mrb[142].mxu0 }
 0x20c   : > { %v2396_v45 = vpop.f32.mrb[142].mxu1  ;;  %2937 = vst.msk [vmem:[%s4833_s30 + $0x38] sm:$0xf] %vm2922_vm5, %v3313_v61  ;;  %v3314_v43 = vpack.c.bf16 %v2671_v55, %v2671_v55  ;;  %v2559_v1 = vadd.f32 %v2393_v25, %v2086_v24  ;;  %v2087_v47 = vadd.f32 %v1923_v57, %v4520_v5  ;;  %v3751_v49 = vpop.f32.mrb[143].mxu0 }
 0x20d   : > { %v3867_v26 = vpop.f32.mrb[143].mxu1 }
 0x20e   : > { %2938 = vst.msk [vmem:[%s4833_s30 + $0x3c] sm:$0xf] %vm2922_vm5, %v3314_v43  ;;  %v2619_v9 = vadd.f32 %v4824_v12, %v2559_v1  ;;  %v2560_v51 = vadd.f32 %v2396_v45, %v2087_v47 }
 0x210   : > { %v2672_v40 = vmax.f32 %v2619_v9, 0.0  ;;  %v2620_v56 = vadd.f32 %v4824_v12, %v2560_v51 }
 0x211   : > { %v1928_v18 = vpop.f32.mrb[144].mxu0 }
 0x212   : > { %v2401_v8 = vpop.f32.mrb[144].mxu1  ;;  %v3315_v60 = vpack.c.bf16 %v2672_v40, %v2672_v40  ;;  %v2673_v59 = vmax.f32 %v2620_v56, 0.0  ;;  %v2088_v21 = vadd.f32 %v1928_v18, %v4531_v17  ;;  %v3754_v41 = vpop.f32.mrb[145].mxu0 }
 0x213   : > { %v3870_v39 = vpop.f32.mrb[145].mxu1  ;;  %v1931_v52 = vpop.f32.mrb[146].mxu0 }
 0x214   : > { %v2404_v5 = vpop.f32.mrb[146].mxu1  ;;  %2939 = vst.msk [vmem:[%s4833_s30 + $0x40] sm:$0xf] %vm2922_vm5, %v3315_v60  ;;  %v3316_v19 = vpack.c.bf16 %v2673_v59, %v2673_v59  ;;  %v2561_v50 = vadd.f32 %v2401_v8, %v2088_v21  ;;  %v2089_v34 = vadd.f32 %v1931_v52, %v4538_v31  ;;  %v3755_v11 = vpop.f32.mrb[147].mxu0 }
 0x215   : > { %v3871_v22 = vpop.f32.mrb[147].mxu1 }
 0x216   : > { %2940 = vst.msk [vmem:[%s4833_s30 + $0x44] sm:$0xf] %vm2922_vm5, %v3316_v19  ;;  %v2621_v33 = vadd.f32 %v4824_v12, %v2561_v50  ;;  %v2562_v14 = vadd.f32 %v2404_v5, %v2089_v34 }
 0x218   : > { %v2674_v32 = vmax.f32 %v2621_v33, 0.0  ;;  %v2622_v17 = vadd.f32 %v4824_v12, %v2562_v14 }
 0x219   : > { %v1936_v13 = vpop.f32.mrb[148].mxu0 }
 0x21a   : > { %v2409_v25 = vpop.f32.mrb[148].mxu1  ;;  %v3317_v61 = vpack.c.bf16 %v2674_v32, %v2674_v32  ;;  %v2675_v55 = vmax.f32 %v2622_v17, 0.0  ;;  %v2090_v24 = vadd.f32 %v1936_v13, %v4549_v44  ;;  %v3758_v29 = vpop.f32.mrb[149].mxu0 }
 0x21b   : > { %v3874_v62 = vpop.f32.mrb[149].mxu1  ;;  %v1939_v45 = vpop.f32.mrb[150].mxu0 }
 0x21c   : > { %v2412_v31 = vpop.f32.mrb[150].mxu1  ;;  %2941 = vst.msk [vmem:[%s4833_s30 + $0x48] sm:$0xf] %vm2922_vm5, %v3317_v61  ;;  %v3318_v26 = vpack.c.bf16 %v2675_v55, %v2675_v55  ;;  %v2563_v43 = vadd.f32 %v2409_v25, %v2090_v24  ;;  %v2091_v1 = vadd.f32 %v1939_v45, %v4556_v58  ;;  %v3759_v47 = vpop.f32.mrb[151].mxu0 }
 0x21d   : > { %v3875_v57 = vpop.f32.mrb[151].mxu1 }
 0x21e   : > { %2942 = vst.msk [vmem:[%s4833_s30 + $0x4c] sm:$0xf] %vm2922_vm5, %v3318_v26  ;;  %v2623_v49 = vadd.f32 %v4824_v12, %v2563_v43  ;;  %v2564_v9 = vadd.f32 %v2412_v31, %v2091_v1 }
 0x220   : > { %v2676_v51 = vmax.f32 %v2623_v49, 0.0  ;;  %v2624_v44 = vadd.f32 %v4824_v12, %v2564_v9 }
 0x221   : > { %v1944_v56 = vpop.f32.mrb[152].mxu0 }
 0x222   : > { %v2417_v40 = vpop.f32.mrb[152].mxu1  ;;  %v3319_v18 = vpack.c.bf16 %v2676_v51, %v2676_v51  ;;  %v2677_v39 = vmax.f32 %v2624_v44, 0.0  ;;  %v2092_v60 = vadd.f32 %v1944_v56, %v4567_v7  ;;  %v3762_v59 = vpop.f32.mrb[153].mxu0 }
 0x223   : > { %v3878_v8 = vpop.f32.mrb[153].mxu1  ;;  %v1947_v21 = vpop.f32.mrb[154].mxu0 }
 0x224   : > { %v2420_v58 = vpop.f32.mrb[154].mxu1  ;;  %2943 = vst.msk [vmem:[%s4833_s30 + $0x50] sm:$0xf] %vm2922_vm5, %v3319_v18  ;;  %v3320_v5 = vpack.c.bf16 %v2677_v39, %v2677_v39  ;;  %v2565_v52 = vadd.f32 %v2417_v40, %v2092_v60  ;;  %v2093_v22 = vadd.f32 %v1947_v21, %v4574_v23  ;;  %v3763_v19 = vpop.f32.mrb[155].mxu0 }
 0x225   : > { %v3879_v41 = vpop.f32.mrb[155].mxu1 }
 0x226   : > { %2944 = vst.msk [vmem:[%s4833_s30 + $0x54] sm:$0xf] %vm2922_vm5, %v3320_v5  ;;  %v2625_v50 = vadd.f32 %v4824_v12, %v2565_v52  ;;  %v2566_v34 = vadd.f32 %v2420_v58, %v2093_v22 }
 0x228   : > { %v2678_v11 = vmax.f32 %v2625_v50, 0.0  ;;  %v2626_v7 = vadd.f32 %v4824_v12, %v2566_v34 }
 0x229   : > { %v1952_v14 = vpop.f32.mrb[156].mxu0 }
 0x22a   : > { %v2425_v33 = vpop.f32.mrb[156].mxu1  ;;  %v3321_v17 = vpack.c.bf16 %v2678_v11, %v2678_v11  ;;  %v2679_v25 = vmax.f32 %v2626_v7, 0.0  ;;  %v2094_v13 = vadd.f32 %v1952_v14, %v4585_v37  ;;  %v3766_v62 = vpop.f32.mrb[157].mxu0 }
 0x22b   : > { %v3882_v32 = vpop.f32.mrb[157].mxu1  ;;  %v1955_v61 = vpop.f32.mrb[158].mxu0 }
 0x22c   : > { %v2428_v23 = vpop.f32.mrb[158].mxu1  ;;  %2945 = vst.msk [vmem:[%s4833_s30 + $0x58] sm:$0xf] %vm2922_vm5, %v3321_v17  ;;  %v3322_v24 = vpack.c.bf16 %v2679_v25, %v2679_v25  ;;  %v2567_v29 = vadd.f32 %v2425_v33, %v2094_v13  ;;  %v2095_v31 = vadd.f32 %v1955_v61, %v4592_v53  ;;  %v3767_v45 = vpop.f32.mrb[159].mxu0 }
 0x22d   : > { %v3883_v55 = vpop.f32.mrb[159].mxu1 }
 0x22e   : > { %2946 = vst.msk [vmem:[%s4833_s30 + $0x5c] sm:$0xf] %vm2922_vm5, %v3322_v24  ;;  %v2627_v57 = vadd.f32 %v4824_v12, %v2567_v29  ;;  %v2568_v26 = vadd.f32 %v2428_v23, %v2095_v31 }
 0x230   : > { %v2680_v43 = vmax.f32 %v2627_v57, 0.0  ;;  %v2628_v37 = vadd.f32 %v4824_v12, %v2568_v26 }
 0x231   : > { %v1960_v47 = vpop.f32.mrb[160].mxu0 }
 0x232   : > { %v2433_v1 = vpop.f32.mrb[160].mxu1  ;;  %v3323_v9 = vpack.c.bf16 %v2680_v43, %v2680_v43  ;;  %v2681_v51 = vmax.f32 %v2628_v37, 0.0  ;;  %v2096_v44 = vadd.f32 %v1960_v47, %v4603_v3  ;;  %v3770_v40 = vpop.f32.mrb[161].mxu0 }
 0x233   : > { %v3886_v49 = vpop.f32.mrb[161].mxu1  ;;  %v1963_v56 = vpop.f32.mrb[162].mxu0 }
 0x234   : > { %v2436_v53 = vpop.f32.mrb[162].mxu1  ;;  %2947 = vst.msk [vmem:[%s4833_s30 + $0x60] sm:$0xf] %vm2922_vm5, %v3323_v9  ;;  %v3324_v18 = vpack.c.bf16 %v2681_v51, %v2681_v51  ;;  %v2569_v39 = vadd.f32 %v2433_v1, %v2096_v44  ;;  %v2097_v60 = vadd.f32 %v1963_v56, %v4610_v20  ;;  %v3771_v59 = vpop.f32.mrb[163].mxu0 }
 0x235   : > { %v3887_v8 = vpop.f32.mrb[163].mxu1 }
 0x236   : > { %2948 = vst.msk [vmem:[%s4833_s30 + $0x64] sm:$0xf] %vm2922_vm5, %v3324_v18  ;;  %v2629_v58 = vadd.f32 %v4824_v12, %v2569_v39  ;;  %v2570_v21 = vadd.f32 %v2436_v53, %v2097_v60 }
 0x238   : > { %v2682_v41 = vmax.f32 %v2629_v58, 0.0  ;;  %v2630_v3 = vadd.f32 %v4824_v12, %v2570_v21 }
 0x239   : > { %v1968_v52 = vpop.f32.mrb[164].mxu0 }
 0x23a   : > { %v2441_v5 = vpop.f32.mrb[164].mxu1  ;;  %v3325_v19 = vpack.c.bf16 %v2682_v41, %v2682_v41  ;;  %v2683_v50 = vmax.f32 %v2630_v3, 0.0  ;;  %v2098_v34 = vadd.f32 %v1968_v52, %v4621_v36  ;;  %v3774_v11 = vpop.f32.mrb[165].mxu0 }
 0x23b   : > { %v3890_v22 = vpop.f32.mrb[165].mxu1  ;;  %v1971_v7 = vpop.f32.mrb[166].mxu0 }
 0x23c   : > { %v2444_v20 = vpop.f32.mrb[166].mxu1  ;;  %2949 = vst.msk [vmem:[%s4833_s30 + $0x68] sm:$0xf] %vm2922_vm5, %v3325_v19  ;;  %v3326_v14 = vpack.c.bf16 %v2683_v50, %v2683_v50  ;;  %v2571_v32 = vadd.f32 %v2441_v5, %v2098_v34  ;;  %v2099_v17 = vadd.f32 %v1971_v7, %v4628_v54  ;;  %v3775_v25 = vpop.f32.mrb[167].mxu0 }
 0x23d   : > { %v3891_v33 = vpop.f32.mrb[167].mxu1 }
 0x23e   : > { %2950 = vst.msk [vmem:[%s4833_s30 + $0x6c] sm:$0xf] %vm2922_vm5, %v3326_v14  ;;  %v2631_v13 = vadd.f32 %v4824_v12, %v2571_v32  ;;  %v2572_v62 = vadd.f32 %v2444_v20, %v2099_v17 }
 0x240   : > { %v2684_v23 = vmax.f32 %v2631_v13, 0.0  ;;  %v2632_v36 = vadd.f32 %v4824_v12, %v2572_v62 }
 0x241   : > { %v1976_v55 = vpop.f32.mrb[168].mxu0 }
 0x242   : > { %v2449_v61 = vpop.f32.mrb[168].mxu1  ;;  %v3327_v29 = vpack.c.bf16 %v2684_v23, %v2684_v23  ;;  %v2685_v31 = vmax.f32 %v2632_v36, 0.0  ;;  %v2100_v45 = vadd.f32 %v1976_v55, %v4639_v6  ;;  %v3778_v57 = vpop.f32.mrb[169].mxu0 }
 0x243   : > { %v3894_v24 = vpop.f32.mrb[169].mxu1  ;;  %v1979_v26 = vpop.f32.mrb[170].mxu0 }
 0x244   : > { %v2452_v54 = vpop.f32.mrb[170].mxu1  ;;  %2951 = vst.msk [vmem:[%s4833_s30 + $0x70] sm:$0xf] %vm2922_vm5, %v3327_v29  ;;  %v3328_v37 = vpack.c.bf16 %v2685_v31, %v2685_v31  ;;  %v2573_v1 = vadd.f32 %v2449_v61, %v2100_v45  ;;  %v2101_v47 = vadd.f32 %v1979_v26, %v4646_v28  ;;  %v3779_v49 = vpop.f32.mrb[171].mxu0 }
 0x245   : > { %v3895_v43 = vpop.f32.mrb[171].mxu1 }
 0x246   : > { %2952 = vst.msk [vmem:[%s4833_s30 + $0x74] sm:$0xf] %vm2922_vm5, %v3328_v37  ;;  %v2633_v9 = vadd.f32 %v4824_v12, %v2573_v1  ;;  %v2574_v51 = vadd.f32 %v2452_v54, %v2101_v47 }
 0x248   : > { %v2686_v44 = vmax.f32 %v2633_v9, 0.0  ;;  %v2634_v6 = vadd.f32 %v4824_v12, %v2574_v51 }
 0x249   : > { %v1984_v53 = vpop.f32.mrb[172].mxu0 }
 0x24a   : > { %v2457_v40 = vpop.f32.mrb[172].mxu1  ;;  %v3329_v8 = vpack.c.bf16 %v2686_v44, %v2686_v44  ;;  %v2687_v18 = vmax.f32 %v2634_v6, 0.0  ;;  %v2102_v39 = vadd.f32 %v1984_v53, %v4657_v42  ;;  %v3782_v60 = vpop.f32.mrb[173].mxu0 }
 0x24b   : > { %v3898_v56 = vpop.f32.mrb[173].mxu1  ;;  %v1987_v59 = vpop.f32.mrb[174].mxu0 }
 0x24c   : > { %v2460_v28 = vpop.f32.mrb[174].mxu1  ;;  %2953 = vst.msk [vmem:[%s4833_s30 + $0x78] sm:$0xf] %vm2922_vm5, %v3329_v8  ;;  %v3330_v21 = vpack.c.bf16 %v2687_v18, %v2687_v18  ;;  %v2575_v41 = vadd.f32 %v2457_v40, %v2102_v39  ;;  %v2103_v3 = vadd.f32 %v1987_v59, %v4664_v2  ;;  %v3783_v5 = vpop.f32.mrb[175].mxu0 }
 0x24d   : > { %v3899_v58 = vpop.f32.mrb[175].mxu1 }
 0x24e   : > { %2954 = vst.msk [vmem:[%s4833_s30 + $0x7c] sm:$0xf] %vm2922_vm5, %v3330_v21  ;;  %v2635_v52 = vadd.f32 %v4824_v12, %v2575_v41  ;;  %v2576_v22 = vadd.f32 %v2460_v28, %v2103_v3 }
 0x250   : > { %v2688_v19 = vmax.f32 %v2635_v52, 0.0  ;;  %v2636_v42 = vadd.f32 %v4824_v12, %v2576_v22 }
 0x251   : > { %v1992_v34 = vpop.f32.mrb[176].mxu0 }
 0x252   : > { %v2465_v50 = vpop.f32.mrb[176].mxu1  ;;  %v3331_v20 = vpack.c.bf16 %v2688_v19, %v2688_v19  ;;  %v2689_v7 = vmax.f32 %v2636_v42, 0.0  ;;  %v2104_v33 = vadd.f32 %v1992_v34, %v4675_v16  ;;  %v3786_v14 = vpop.f32.mrb[177].mxu0 }
 0x253   : > { %v3902_v11 = vpop.f32.mrb[177].mxu1  ;;  %v1995_v32 = vpop.f32.mrb[178].mxu0 }
 0x254   : > { %v2468_v2 = vpop.f32.mrb[178].mxu1  ;;  %2955 = vst.msk [vmem:[%s4833_s30 + $0x80] sm:$0xf] %vm2922_vm5, %v3331_v20  ;;  %v3332_v25 = vpack.c.bf16 %v2689_v7, %v2689_v7  ;;  %v2577_v13 = vadd.f32 %v2465_v50, %v2104_v33  ;;  %v2105_v62 = vadd.f32 %v1995_v32, %v4682_v46  ;;  %v3787_v23 = vpop.f32.mrb[179].mxu0  ;;  %v5060_v20 = vld [vmem:[#allocation2_spill] sm:$0xff] }
 0x255   : > { %v3903_v17 = vpop.f32.mrb[179].mxu1 }
 0x256   : > { %2956 = vst.msk [vmem:[%s4833_s30 + $0x84] sm:$0xf] %vm2922_vm5, %v3332_v25  ;;  %v2637_v36 = vadd.f32 %v4824_v12, %v2577_v13  ;;  %v2578_v61 = vadd.f32 %v2468_v2, %v2105_v62  ;;  %v5061_v25 = vld [vmem:[#allocation3_spill] sm:$0xff] }
 0x258   : > { %v2690_v55 = vmax.f32 %v2637_v36, 0.0  ;;  %v2638_v16 = vadd.f32 %v4824_v12, %v2578_v61 }
 0x259   : > { %v2000_v29 = vpop.f32.mrb[180].mxu0 }
 0x25a   : > { %v2473_v24 = vpop.f32.mrb[180].mxu1  ;;  %v3333_v45 = vpack.c.bf16 %v2690_v55, %v2690_v55  ;;  %v2691_v57 = vmax.f32 %v2638_v16, 0.0  ;;  %v2106_v54 = vadd.f32 %v2000_v29, %v4693_v63  ;;  %v3790_v26 = vpop.f32.mrb[181].mxu0 }
 0x25b   : > { %v3906_v31 = vpop.f32.mrb[181].mxu1  ;;  %v2003_v43 = vpop.f32.mrb[182].mxu0 }
 0x25c   : > { %v2476_v46 = vpop.f32.mrb[182].mxu1  ;;  %2957 = vst.msk [vmem:[%s4833_s30 + $0x88] sm:$0xf] %vm2922_vm5, %v3333_v45  ;;  %v3334_v1 = vpack.c.bf16 %v2691_v57, %v2691_v57  ;;  %v2579_v47 = vadd.f32 %v2473_v24, %v2106_v54  ;;  %v2107_v49 = vadd.f32 %v2003_v43, %v4700_v30  ;;  %v3791_v9 = vpop.f32.mrb[183].mxu0  ;;  %v5062_v57 = vld [vmem:[#allocation4_spill] sm:$0xff] }
 0x25d   : > { %v3907_v37 = vpop.f32.mrb[183].mxu1 }
 0x25e   : > { %2958 = vst.msk [vmem:[%s4833_s30 + $0x8c] sm:$0xf] %vm2922_vm5, %v3334_v1  ;;  %v2639_v51 = vadd.f32 %v4824_v12, %v2579_v47  ;;  %v2580_v44 = vadd.f32 %v2476_v46, %v2107_v49  ;;  %v5063_v49 = vld [vmem:[#allocation5_spill] sm:$0xff] }
 0x260   : > { %v2692_v6 = vmax.f32 %v2639_v51, 0.0  ;;  %v2640_v63 = vadd.f32 %v4824_v12, %v2580_v44 }
 0x261   : > { %v2008_v53 = vpop.f32.mrb[184].mxu0 }
 0x262   : > { %v2481_v40 = vpop.f32.mrb[184].mxu1  ;;  %v3335_v8 = vpack.c.bf16 %v2692_v6, %v2692_v6  ;;  %v2693_v18 = vmax.f32 %v2640_v63, 0.0  ;;  %v2108_v39 = vadd.f32 %v2008_v53, %v4711_v48  ;;  %v3794_v60 = vpop.f32.mrb[185].mxu0 }
 0x263   : > { %v3910_v56 = vpop.f32.mrb[185].mxu1  ;;  %v2011_v28 = vpop.f32.mrb[186].mxu0  ;;  %v5064_v60 = vld [vmem:[#allocation6_spill] sm:$0xff] }
 0x264   : > { %v2484_v30 = vpop.f32.mrb[186].mxu1  ;;  %2959 = vst.msk [vmem:[%s4833_s30 + $0x90] sm:$0xf] %vm2922_vm5, %v3335_v8  ;;  %v3336_v58 = vpack.c.bf16 %v2693_v18, %v2693_v18  ;;  %v2581_v21 = vadd.f32 %v2481_v40, %v2108_v39  ;;  %v2109_v41 = vadd.f32 %v2011_v28, %v4718_v0  ;;  %v3795_v3 = vpop.f32.mrb[187].mxu0 }
 0x265   : > { %v3911_v59 = vpop.f32.mrb[187].mxu1 }
 0x266   : > { %2960 = vst.msk [vmem:[%s4833_s30 + $0x94] sm:$0xf] %vm2922_vm5, %v3336_v58  ;;  %v2641_v5 = vadd.f32 %v4824_v12, %v2581_v21  ;;  %v2582_v52 = vadd.f32 %v2484_v30, %v2109_v41 }
 0x268   : > { %v2694_v22 = vmax.f32 %v2641_v5, 0.0  ;;  %v2642_v48 = vadd.f32 %v4824_v12, %v2582_v52  ;;  %v5065_v5 = vld [vmem:[#allocation7_spill] sm:$0xff] }
 0x269   : > { %v2016_v42 = vpop.f32.mrb[188].mxu0 }
 0x26a   : > { %v2489_v19 = vpop.f32.mrb[188].mxu1  ;;  %v3337_v34 = vpack.c.bf16 %v2694_v22, %v2694_v22  ;;  %v2695_v11 = vmax.f32 %v2642_v48, 0.0  ;;  %v2110_v7 = vadd.f32 %v2016_v42, %v5060_v20  ;;  %v3798_v33 = vpop.f32.mrb[189].mxu0 }
 0x26b   : > { %v3914_v50 = vpop.f32.mrb[189].mxu1  ;;  %v2019_v14 = vpop.f32.mrb[190].mxu0 }
 0x26c   : > { %v2492_v0 = vpop.f32.mrb[190].mxu1  ;;  %2961 = vst.msk [vmem:[%s4833_s30 + $0x98] sm:$0xf] %vm2922_vm5, %v3337_v34  ;;  %v3338_v32 = vpack.c.bf16 %v2695_v11, %v2695_v11  ;;  %v2583_v17 = vadd.f32 %v2489_v19, %v2110_v7  ;;  %v2111_v13 = vadd.f32 %v2019_v14, %v5061_v25  ;;  %v3799_v62 = vpop.f32.mrb[191].mxu0 }
 0x26d   : > { %v3915_v2 = vpop.f32.mrb[191].mxu1  ;;  %v5066_v62 = vld [vmem:[#allocation8_spill] sm:$0xff] }
 0x26e   : > { %2962 = vst.msk [vmem:[%s4833_s30 + $0x9c] sm:$0xf] %vm2922_vm5, %v3338_v32  ;;  %v2643_v23 = vadd.f32 %v4824_v12, %v2583_v17  ;;  %v2584_v36 = vadd.f32 %v2492_v0, %v2111_v13 }
 0x270   : > { %v2696_v61 = vmax.f32 %v2643_v23, 0.0  ;;  %v2644_v55 = vadd.f32 %v4824_v12, %v2584_v36 }
 0x271   : > { %v2024_v24 = vpop.f32.mrb[192].mxu0 }
 0x272   : > { %v2497_v16 = vpop.f32.mrb[192].mxu1  ;;  %v3339_v31 = vpack.c.bf16 %v2696_v61, %v2696_v61  ;;  %v2697_v45 = vmax.f32 %v2644_v55, 0.0  ;;  %v2112_v54 = vadd.f32 %v2024_v24, %v5062_v57  ;;  %v3802_v26 = vpop.f32.mrb[193].mxu0 }
 0x273   : > { %v3918_v29 = vpop.f32.mrb[193].mxu1  ;;  %v2027_v43 = vpop.f32.mrb[194].mxu0 }
 0x274   : > { %v2500_v46 = vpop.f32.mrb[194].mxu1  ;;  %2963 = vst.msk [vmem:[%s4833_s30 + $0xa0] sm:$0xf] %vm2922_vm5, %v3339_v31  ;;  %v3340_v1 = vpack.c.bf16 %v2697_v45, %v2697_v45  ;;  %v2585_v47 = vadd.f32 %v2497_v16, %v2112_v54  ;;  %v2113_v9 = vadd.f32 %v2027_v43, %v5063_v49  ;;  %v3803_v51 = vpop.f32.mrb[195].mxu0 }
 0x275   : > { %v3919_v37 = vpop.f32.mrb[195].mxu1 }
 0x276   : > { %2964 = vst.msk [vmem:[%s4833_s30 + $0xa4] sm:$0xf] %vm2922_vm5, %v3340_v1  ;;  %v2645_v44 = vadd.f32 %v4824_v12, %v2585_v47  ;;  %v2586_v6 = vadd.f32 %v2500_v46, %v2113_v9 }
 0x278   : > { %v2698_v63 = vmax.f32 %v2645_v44, 0.0  ;;  %v2646_v40 = vadd.f32 %v4824_v12, %v2586_v6 }
 0x279   : > { %v2032_v56 = vpop.f32.mrb[196].mxu0 }
 0x27a   : > { %v2505_v53 = vpop.f32.mrb[196].mxu1  ;;  %v3341_v18 = vpack.c.bf16 %v2698_v63, %v2698_v63  ;;  %v2699_v39 = vmax.f32 %v2646_v40, 0.0  ;;  %v2114_v30 = vadd.f32 %v2032_v56, %v5064_v60  ;;  %v3806_v28 = vpop.f32.mrb[197].mxu0 }
 0x27b   : > { %v3922_v8 = vpop.f32.mrb[197].mxu1  ;;  %v2035_v58 = vpop.f32.mrb[198].mxu0 }
 0x27c   : > { %v2508_v59 = vpop.f32.mrb[198].mxu1  ;;  %2965 = vst.msk [vmem:[%s4833_s30 + $0xa8] sm:$0xf] %vm2922_vm5, %v3341_v18  ;;  %v3342_v41 = vpack.c.bf16 %v2699_v39, %v2699_v39  ;;  %v2587_v3 = vadd.f32 %v2505_v53, %v2114_v30  ;;  %v2115_v52 = vadd.f32 %v2035_v58, %v5065_v5  ;;  %v3807_v22 = vpop.f32.mrb[199].mxu0 }
 0x27d   : > { %v3923_v21 = vpop.f32.mrb[199].mxu1 }
 0x27e   : > { %2966 = vst.msk [vmem:[%s4833_s30 + $0xac] sm:$0xf] %vm2922_vm5, %v3342_v41  ;;  %v2647_v48 = vadd.f32 %v4824_v12, %v2587_v3  ;;  %v2588_v19 = vadd.f32 %v2508_v59, %v2115_v52 }
 0x280   : > { %v2700_v42 = vmax.f32 %v2647_v48, 0.0  ;;  %v2648_v50 = vadd.f32 %v4824_v12, %v2588_v19 }
 0x281   : > { %v2040_v11 = vpop.f32.mrb[200].mxu0 }
 0x282   : > { %v2513_v34 = vpop.f32.mrb[200].mxu1  ;;  %v3343_v7 = vpack.c.bf16 %v2700_v42, %v2700_v42  ;;  %v2701_v33 = vmax.f32 %v2648_v50, 0.0  ;;  %v2116_v0 = vadd.f32 %v2040_v11, %v4779_v10  ;;  %v3810_v14 = vpop.f32.mrb[201].mxu0 }
 0x283   : > { %v3926_v20 = vpop.f32.mrb[201].mxu1  ;;  %v2043_v32 = vpop.f32.mrb[202].mxu0 }
 0x284   : > { %v2516_v2 = vpop.f32.mrb[202].mxu1  ;;  %2967 = vst.msk [vmem:[%s4833_s30 + $0xb0] sm:$0xf] %vm2922_vm5, %v3343_v7  ;;  %v3344_v25 = vpack.c.bf16 %v2701_v33, %v2701_v33  ;;  %v2589_v13 = vadd.f32 %v2513_v34, %v2116_v0  ;;  %v2117_v23 = vadd.f32 %v2043_v32, %v5066_v62  ;;  %v3811_v36 = vpop.f32.mrb[203].mxu0 }
 0x285   : > { %v3927_v17 = vpop.f32.mrb[203].mxu1 }
 0x286   : > { %2968 = vst.msk [vmem:[%s4833_s30 + $0xb4] sm:$0xf] %vm2922_vm5, %v3344_v25  ;;  %v2649_v61 = vadd.f32 %v4824_v12, %v2589_v13  ;;  %v2590_v55 = vadd.f32 %v2516_v2, %v2117_v23 }
 0x288   : > { %v2702_v16 = vmax.f32 %v2649_v61, 0.0  ;;  %v2650_v10 = vadd.f32 %v4824_v12, %v2590_v55 }
 0x289   : > { %v2048_v29 = vpop.f32.mrb[204].mxu0 }
 0x28a   : > { %v2521_v24 = vpop.f32.mrb[204].mxu1  ;;  %v3345_v45 = vpack.c.bf16 %v2702_v16, %v2702_v16  ;;  %v2703_v57 = vmax.f32 %v2650_v10, 0.0  ;;  %v2118_v54 = vadd.f32 %v2048_v29, %v4792_v27  ;;  %v3814_v26 = vpop.f32.mrb[205].mxu0 }
 0x28b   : > { %v3930_v31 = vpop.f32.mrb[205].mxu1  ;;  %v2051_v43 = vpop.f32.mrb[206].mxu0 }
 0x28c   : > { %v2524_v46 = vpop.f32.mrb[206].mxu1  ;;  %2969 = vst.msk [vmem:[%s4833_s30 + $0xb8] sm:$0xf] %vm2922_vm5, %v3345_v45  ;;  %v3346_v1 = vpack.c.bf16 %v2703_v57, %v2703_v57  ;;  %v2591_v47 = vadd.f32 %v2521_v24, %v2118_v54  ;;  %v2119_v49 = vadd.f32 %v2051_v43, %v4796_v38  ;;  %v3815_v9 = vpop.f32.mrb[207].mxu0 }
 0x28d   : > { %v3931_v37 = vpop.f32.mrb[207].mxu1 }
 0x28e   : > { %2970 = vst.msk [vmem:[%s4833_s30 + $0xbc] sm:$0xf] %vm2922_vm5, %v3346_v1  ;;  %v2651_v51 = vadd.f32 %v4824_v12, %v2591_v47  ;;  %v2592_v44 = vadd.f32 %v2524_v46, %v2119_v49 }
 0x290   : > { %v2704_v6 = vmax.f32 %v2651_v51, 0.0  ;;  %v2652_v27 = vadd.f32 %v4824_v12, %v2592_v44 }
 0x291   : > { %v2056_v40 = vpop.f32.mrb[208].mxu0 }
 0x292   : > { %v2529_v63 = vpop.f32.mrb[208].mxu1  ;;  %v3347_v56 = vpack.c.bf16 %v2704_v6, %v2704_v6  ;;  %v2705_v8 = vmax.f32 %v2652_v27, 0.0  ;;  %v2120_v18 = vadd.f32 %v2056_v40, %v4804_v15  ;;  %v3818_v39 = vpop.f32.mrb[209].mxu0  ;;  %v4024_v15 = vld [vmem:[%s5048_s2] ss:$0 sm:$0xff] }
 0x293   : > { %v3934_v53 = vpop.f32.mrb[209].mxu1  ;;  %v2059_v60 = vpop.f32.mrb[210].mxu0 }
 0x294   : > { %v2532_v38 = vpop.f32.mrb[210].mxu1  ;;  %2971 = vst.msk [vmem:[%s4833_s30 + $0xc0] sm:$0xf] %vm2922_vm5, %v3347_v56  ;;  %v3348_v28 = vpack.c.bf16 %v2705_v8, %v2705_v8  ;;  %v2593_v59 = vadd.f32 %v2529_v63, %v2120_v18  ;;  %v2121_v58 = vadd.f32 %v2059_v60, %v4808_v4  ;;  %v3819_v21 = vpop.f32.mrb[211].mxu0 }
 0x295   : > { %v3935_v30 = vpop.f32.mrb[211].mxu1 }
 0x296   : > { %2972 = vst.msk [vmem:[%s4833_s30 + $0xc4] sm:$0xf] %vm2922_vm5, %v3348_v28  ;;  %v2653_v41 = vadd.f32 %v4824_v12, %v2593_v59  ;;  %v2594_v3 = vadd.f32 %v2532_v38, %v2121_v58 }
 0x298   : > { %v2706_v5 = vmax.f32 %v2653_v41, 0.0  ;;  %v2654_v52 = vadd.f32 %v4024_v15, %v2594_v3 }
 0x299   : > { %v2064_v48 = vpop.f32.mrb[212].mxu0 }
 0x29a   : > { %v2537_v22 = vpop.f32.mrb[212].mxu1  ;;  %v3349_v42 = vpack.c.bf16 %v2706_v5, %v2706_v5  ;;  %v2707_v4 = vmax.f32 %v2654_v52, 0.0  ;;  %v2122_v50 = vadd.f32 %v2064_v48, %v4816_v35  ;;  %v3822_v34 = vpop.f32.mrb[213].mxu0 }
 0x29b   : > { %v3938_v19 = vpop.f32.mrb[213].mxu1  ;;  %v2067_v20 = vpop.f32.mrb[214].mxu0 }
 0x29c   : > { %v2540_v11 = vpop.f32.mrb[214].mxu1  ;;  %2973 = vst.msk [vmem:[%s4833_s30 + $0xc8] sm:$0xf] %vm2922_vm5, %v3349_v42  ;;  %v3350_v7 = vpack.c.bf16 %v2707_v4, %v2707_v4  ;;  %v2595_v33 = vadd.f32 %v2537_v22, %v2122_v50  ;;  %v3823_v0 = vpop.f32.mrb[215].mxu0 }
 0x29d   : > { %v3939_v12 = vpop.f32.mrb[215].mxu1 }
 0x29e   : > { %2974 = vst.msk [vmem:[%s4833_s30 + $0xcc] sm:$0xf] %vm2922_vm5, %v3350_v7  ;;  %v2655_v14 = vadd.f32 %v4024_v15, %v2595_v33 }
 0x2a0   : > { %v2708_v2 = vmax.f32 %v2655_v14, 0.0 }
 0x2a2   : > { %v3351_v32 = vpack.c.bf16 %v2708_v2, %v2708_v2 }
 0x2a4   : > { %2976 = vst.msk [vmem:[%s4833_s30 + $0xd0] sm:$0x3] %vm2975_vm6, %v3351_v32 }
 0x2a5 PF: > { %s13_s12 = sadd.s32 1, %s4031_s12  }
 0x2a6   : > { %p10_p4 = scmp.ge.s32.totalorder %s13_s12, 4  }
 0x2a8   :  { %12 = sbr.rel (!%p10_p4) target bundleno = 1 (0x1), region = 65 }

// kernel: actor_critic_forward.5
= control target key start
LH: loop header
LB: loop body
LE: loop exit
PB: predicated region body
PF: predicated region fallthrough
CT: control target
= control target key end

     0   :  { %s1573_s12 = smov 0   ;;  %s1823_s0 = inlined_call_operand.vmem [shape: bf16[2,101,128], index: 0, kind: input, shape index: {}]   ;;  %s1824_s1 = inlined_call_operand.vmem [shape: bf16[4,128,64], index: 1, kind: input, shape index: {}]   ;;  %s1825_s2 = inlined_call_operand.vmem [shape: f32[1,64], index: 2, kind: input, shape index: {}]   ;;  %s1826_s3 = inlined_call_operand.vmem [shape: bf16[2,90,64], index: 3, kind: output, shape index: {}]  }
   0x1 LB: > { %s1157_s13 = sadd.s32 4294967295, %s1551_s12   ;;  %p1161_p0 = scmp.ge.s32.totalorder %s1551_s12, 1  ;;  %s1551_s12 = sphi %s1573_s12, %s13_s12  }
   0x2   : > { %p137_p1 = scmp.lt.s32.totalorder %s1551_s12, 3 }
   0x4   : > { %p138_p2 = pnand %p1161_p0, %p137_p1 }
   0x5   : > { %v1499_v0 = vld [vmem:[%s1824_s1 + $0x40] sm:$0xff] (!%p138_p2)   ;;  %v1501_v2 = vld [vmem:[%s1824_s1 + $0x48] sm:$0xff] (!%p138_p2)   ;;  %p161_p3 = scmp.lt.s32.totalorder (!%p138_p2), %s1157_s13, 1  ;;  %v1503_v4 = vld [vmem:[%s1824_s1 + $0x50] sm:$0xff] (!%p138_p2)   ;;  %vm628_vm0 = vcmask (!%p138_p2), 1046528   ;;  %vm1088_vm3 = vcmask (!%p138_p2), 519168  }
   0x6   : > { %141 = sbr.rel (%p138_p2) target bundleno = 311 (0x137), region = 32  ;;  %v1500_v1 = vld [vmem:[%s1824_s1 + $0x80] sm:$0xff] (!%p138_p2)   ;;  %1341 = vmatprep.subr.bf16.mxu1 (!%p138_p2), %v1499_v0  ;;  %v1502_v3 = vld [vmem:[%s1824_s1 + $0x88] sm:$0xff] (!%p138_p2)   ;;  %v1504_v5 = vld [vmem:[%s1824_s1 + $0x90] sm:$0xff] (!%p138_p2)   ;;  %vm248_vm1 = vsmask.f32 (!%p138_p2), 7424 }
   0x7   : > { %1397 = vmatprep.subr.bf16.mxu0 (!%p138_p2), %v1500_v1  ;;  %1342 = vmatpush3.bf16.msra.mxu1 (!%p138_p2), %v1499_v0  ;;  %v1505_v6 = vld [vmem:[%s1824_s1 + $0x58] sm:$0xff] (!%p138_p2)   ;;  %v1507_v8 = vld [vmem:[%s1824_s1 + $0x60] sm:$0xff] (!%p138_p2)   ;;  %v1509_v10 = vld [vmem:[%s1824_s1 + $0x68] sm:$0xff] (!%p138_p2)   ;;  %vm808_vm2 = vsmask.f32 (!%p138_p2), 6400  ;;  %vm1100_vm4 = vcmask (!%p138_p2), 516096  }
   0x8   : > { %1398 = vmatpush3.bf16.msra.mxu0 (!%p138_p2), %v1500_v1  ;;  %1343 = vmatprep.subr.bf16.mxu1 (!%p138_p2), %v1501_v2  ;;  %v1506_v7 = vld [vmem:[%s1824_s1 + $0x98] sm:$0xff] (!%p138_p2)   ;;  %v1508_v9 = vld [vmem:[%s1824_s1 + $0xa0] sm:$0xff] (!%p138_p2)   ;;  %v1510_v11 = vld [vmem:[%s1824_s1 + $0xa8] sm:$0xff] (!%p138_p2)  }
   0x9   : > { %1399 = vmatprep.subr.bf16.mxu0 (!%p138_p2), %v1502_v3  ;;  %v1511_v14 = vld [vmem:[%s1824_s1 + $0x70] sm:$0xff] (!%p138_p2)   ;;  %v1513_v24 = vld [vmem:[%s1824_s1 + $0x78] sm:$0xff] (!%p138_p2)   ;;  %v1517_v36 = vld [vmem:[%s1824_s1] sm:$0xff] (!%p138_p2)  }
   0xa   : > { %v1512_v19 = vld [vmem:[%s1824_s1 + $0xb0] sm:$0xff] (!%p138_p2)   ;;  %v1514_v30 = vld [vmem:[%s1824_s1 + $0xb8] sm:$0xff] (!%p138_p2)   ;;  %v1520_v38 = vld [vmem:[%s1824_s1 + $0xc0] sm:$0xff] (!%p138_p2)  }
   0xb   : > { %1344 = vmatpush3.bf16.msra.mxu1 (!%p138_p2), %v1501_v2  ;;  %v1523_v40 = vld [vmem:[%s1824_s1 + $0x8] sm:$0xff] (!%p138_p2)   ;;  %v1525_v50 = vld [vmem:[%s1824_s1 + $0x10] sm:$0xff] (!%p138_p2)  }
   0xc   : > { %1400 = vmatpush3.bf16.msra.mxu0 (!%p138_p2), %v1502_v3  ;;  %1345 = vmatprep.subr.bf16.mxu1 (!%p138_p2), %v1503_v4  ;;  %v1524_v45 = vld [vmem:[%s1824_s1 + $0xc8] sm:$0xff] (!%p138_p2)   ;;  %v1526_v55 = vld [vmem:[%s1824_s1 + $0xd0] sm:$0xff] (!%p138_p2)  }
   0xd   : > { %s1828_s13 = smov (!%p161_p3, %s1157_s13), 1  ;;  %1401 = vmatprep.subr.bf16.mxu0 %v1504_v5 }
   0xe   : > { %s1489_s30 = smul.u32 52, %s1828_s13 }
   0xf   : > { %1346 = vmatpush3.bf16.msra.mxu1 %v1503_v4  ;;  %v1527_v4 = vld [vmem:[%s1824_s1 + $0x18] sm:$0xff]   ;;  %s1490_s8 = smul.u32 48, %s1828_s13 }
  0x10   : > { %1402 = vmatpush3.bf16.msra.mxu0 %v1504_v5  ;;  %1347 = vmatprep.subr.bf16.mxu1 %v1505_v6  ;;  %s1620_s14 = scalar_lea.vmem %s1823_s0, %s1489_s30 }
  0x11   : > { %1403 = vmatprep.subr.bf16.mxu0 %v1506_v7  ;;  %v1626_v12 = vld [vmem:[%s1620_s14] sm:$0xff]   ;;  %v1629_v13 = vld [vmem:[%s1620_s14 + $0x8] sm:$0xff]   ;;  %v1652_v27 = vld [vmem:[%s1620_s14 + $0x10] sm:$0xff]   ;;  %s1786_s10 = scalar_lea.vmem %s1826_s3, %s1490_s8 }
  0x12   : > { %v250_v15 = vshrl.u32 %v1626_v12, 16  ;;  %v252_v16 = vshll.u32 %v1626_v12, 16  ;;  %v257_v17 = vshll.u32 %v1629_v13, 16  ;;  %v1638_v18 = vld [vmem:[%s1620_s14 + $0xc] sm:$0xff]   ;;  %v1644_v22 = vld [vmem:[%s1620_s14 + $0x4] sm:$0xfe]  }
  0x13   : > { %1348 = vmatpush3.bf16.msra.mxu1 %v1505_v6  ;;  %v630_v23 = vrot.slane %v1638_v18, 1  ;;  %v629_v26 = vrot.slane %v1644_v22, 1  ;;  %v261_v28 = vshrl.u32 %v1629_v13, 16  ;;  %v1656_v29 = vld [vmem:[%s1620_s14 + $0x14] sm:$0xff]   ;;  %v265_v33 = vshll.u32 %v1652_v27, 16  ;;  %v1681_v44 = vld [vmem:[%s1620_s14 + $0x1c] sm:$0xff]  }
  0x14   : > { %1404 = vmatpush3.bf16.msra.mxu0 %v1506_v7  ;;  %1349 = vmatprep.subr.bf16.mxu1 %v1507_v8  ;;  %v254_v20 = vrot.slane %v252_v16, 1  ;;  %v259_v21 = vrot.slane %v257_v17, 1  ;;  %v632_v37 = vrot.slane %v1656_v29, 1  ;;  %v269_v39 = vshrl.u32 %v1652_v27, 16  ;;  %v1677_v42 = vld [vmem:[%s1620_s14 + $0x18] sm:$0xff]   ;;  %v1688_v48 = vld [vmem:[%s1620_s14 + $0x20] sm:$0xff]  }
  0x15   : > { %1405 = vmatprep.subr.bf16.mxu0 %v1508_v9  ;;  %v631_v32 = vsel %vm628_vm0, %v629_v26, %v630_v23  ;;  %v267_v35 = vrot.slane %v265_v33, 1  ;;  %v273_v47 = vshll.u32 %v1677_v42, 16  ;;  %v277_v49 = vshrl.u32 %v1677_v42, 16  ;;  %v1696_v52 = vld [vmem:[%s1620_s14 + $0x24] sm:$0xff]   ;;  %v200_v2 = vld [vmem:[%s1620_s14 + $0x2c] sm:$0x3] }
  0x16   : > { %v255_v25 = vor.u32 %v254_v20, %v250_v15  ;;  %1413 = vmatprep.mubr.bf16.mxu0 %v631_v32  ;;  %v263_v34 = vor.u32 %v261_v28, %v259_v21  ;;  %v633_v43 = vsel %vm628_vm0, %v630_v23, %v632_v37  ;;  %v634_v51 = vrot.slane %v1681_v44, 1  ;;  %v1710_v1 = vld [vmem:[%s1620_s14 + $0x28] sm:$0xf]  ;;  %v1714_v3 = vld [vmem:[%s1620_s14 + $0x2c] sm:$0xf]  ;;  %v1532_v20 = vld [vmem:[%s1824_s1 + $0x20] sm:$0xff]  }
  0x17   : > { %1350 = vmatpush3.bf16.msra.mxu1 %v1507_v8  ;;  %v271_v46 = vor.u32 %v269_v39, %v267_v35  ;;  %v275_v53 = vrot.slane %v273_v47, 1  ;;  %v281_v54 = vshll.u32 %v1688_v48, 16  ;;  %v636_v57 = vrot.slane %v1696_v52, 1  ;;  %v580_v7 = vld [vmem:[%s1620_s14 + $0x30] sm:$0x3]  ;;  %v1528_v8 = vld [vmem:[%s1824_s1 + $0xd8] sm:$0xff]  }
  0x18   : > { %1406 = vmatpush3.bf16.msra.mxu0 %v1508_v9  ;;  %1351 = vmatprep.subr.bf16.mxu1 %v1509_v10  ;;  %v260_v31 = vsel %vm248_vm1, %v255_v25, %v259_v21  ;;  %v268_v41 = vsel %vm248_vm1, %v263_v34, %v267_v35  ;;  %v635_v56 = vsel %vm628_vm0, %v632_v37, %v634_v51  ;;  %v810_v61 = vshrl.u32 %v1644_v22, 16  ;;  %v1535_v32 = vld [vmem:[%s1824_s1 + $0x28] sm:$0xff]   ;;  %v1540_v35 = vld [vmem:[%s1824_s1 + $0x30] sm:$0xff]  }
  0x19   : > { %1407 = vmatprep.subr.bf16.mxu0 %v1510_v11  ;;  %1357 = vmatprep.mubr.bf16.mxu1 %v260_v31  ;;  %v276_v58 = vsel %vm248_vm1, %v271_v46, %v275_v53  ;;  %v279_v59 = vor.u32 %v277_v49, %v275_v53  ;;  %v283_v60 = vrot.slane %v281_v54, 1  ;;  %v285_v62 = vshrl.u32 %v1688_v48, 16 }
  0x1a   : > { %v813_v63 = vshll.u32 %v1644_v22, 16  ;;  %v637_v5 = vsel %vm628_vm0, %v634_v51, %v636_v57  ;;  %v1185_v6 = vcombine.low %v1710_v1, %v200_v2  ;;  %v1224_v9 = vcombine.low %v1714_v3, %v580_v7  ;;  %v1534_v22 = vld [vmem:[%s1824_s1 + $0xe0] sm:$0xff]   ;;  %v183_v2 = vld [vmem:[%s1620_s14 + $0x2c] sm:$0x1] }
  0x1b   : > { %1352 = vmatpush3.bf16.msra.mxu1 %v1509_v10  ;;  %v284_v0 = vsel %vm248_vm1, %v279_v59, %v283_v60  ;;  %v818_v10 = vshrl.u32 %v1638_v18, 16  ;;  %v812_v16 = vrot.slane %v810_v61, 1  ;;  %v821_v25 = vshll.u32 %v1638_v18, 16  ;;  %v1536_v18 = vld [vmem:[%s1824_s1 + $0xe8] sm:$0xff]  }
  0x1c   : > { %1408 = vmatpush3.bf16.msra.mxu0 %v1510_v11  ;;  %1353 = vmatprep.subr.bf16.mxu1 %v1511_v14  ;;  %v287_v11 = vor.u32 %v285_v62, %v283_v60  ;;  %v293_v15 = vshrl.u32 %v1185_v6, 16  ;;  %v638_v17 = vrot.slane %v1224_v9, 1  ;;  %v830_v37 = vshll.u32 %v1656_v29, 16 }
  0x1d   : > { %1409 = vmatprep.subr.bf16.mxu0 %v1512_v19  ;;  %v823_v31 = vrot.slane %v821_v25, 2  ;;  %v836_v39 = vshrl.u32 %v1681_v44, 16  ;;  %v848_v51 = vshll.u32 %v1696_v52, 16 }
  0x1e   : > { %v639_v23 = vsel %vm628_vm0, %v636_v57, %v638_v17 }
  0x1f   : > { %1354 = vmatpush3.bf16.msra.mxu1 %v1511_v14  ;;  %v289_v14 = vshll.u32 %v1185_v6, 16  ;;  %v838_v47 = vrot.slane %v836_v39, 1 }
  0x20   : > { %1410 = vmatpush3.bf16.msra.mxu0 %v1512_v19  ;;  %1355 = vmatprep.subr.bf16.mxu1 %v1513_v24  ;;  %v815_v19 = vrot.slane %v813_v63, 2 }
  0x21   : > { %1411 = vmatprep.subr.bf16.mxu0 %v1514_v30  ;;  %v291_v21 = vrot.slane %v289_v14, 1 }
  0x23   : > { %1356 = vmatpush3.bf16.msra.mxu1 %v1513_v24  ;;  %v820_v24 = vrot.slane %v818_v10, 1  ;;  %v292_v26 = vsel %vm248_vm1, %v287_v11, %v291_v21  ;;  %v295_v28 = vor.u32 %v293_v15, %v291_v21 }
  0x24   : > { %1412 = vmatpush3.bf16.msra.mxu0 %v1514_v30  ;;  %1369 = vmatprep.subr.bf16.mxu1 %v1517_v36  ;;  %v816_v30 = vor.u32 %v815_v19, %v812_v16 }
  0x25   : > { %1425 = vmatprep.subr.bf16.mxu0 %v1520_v38  ;;  %v824_v33 = vor.u32 %v823_v31, %v820_v24 }
  0x26   : > { %1358 = vmatmul.mubr.bf16.vlgmr.msra.gmra.mrb[0].mxu1 %v268_v41  ;;  %v787_v41 = vld [vmem:[%s1620_s14 + $0x30] sm:$0x7] }
  0x27   : > { %1370 = vmatpush3.bf16.msra.mxu1 %v1517_v36  ;;  %1414 = vmatmul.mubr.bf16.vlgmr.msra.gmra.mrb[0].mxu0 %v633_v43  ;;  %v825_v34 = vsel %vm808_vm2, %v816_v30, %v824_v33  ;;  %v827_v36 = vshrl.u32 %v1656_v29, 16  ;;  %v1542_v29 = vld [vmem:[%s1824_s1 + $0x38] sm:$0xff]   ;;  %v1249_v46 = vcombine.low %v1714_v3, %v787_v41 }
  0x28   : > { %1426 = vmatpush3.bf16.msra.mxu0 %v1520_v38  ;;  %1371 = vmatprep.subr.bf16.mxu1 %v1523_v40  ;;  %v1541_v38 = vld [vmem:[%s1824_s1 + $0xf0] sm:$0xff]  }
  0x29   : > { %1427 = vmatprep.subr.bf16.mxu0 %v1524_v45  ;;  %1417 = vmatprep.mubr.bf16.mxu0 %v635_v56  ;;  %v829_v43 = vrot.slane %v827_v36, 1  ;;  %v854_v54 = vshrl.u32 %v1249_v46, 16 }
  0x2a   : > { %1361 = vmatprep.mubr.bf16.mxu1 %v276_v58  ;;  %v850_v58 = vrot.slane %v848_v51, 2 }
  0x2b   : > { %1372 = vmatpush3.bf16.msra.mxu1 %v1523_v40  ;;  %v839_v40 = vshll.u32 %v1681_v44, 16  ;;  %v856_v60 = vrot.slane %v854_v54, 1 }
  0x2c   : > { %1428 = vmatpush3.bf16.msra.mxu0 %v1524_v45  ;;  %1373 = vmatprep.subr.bf16.mxu1 %v1525_v50  ;;  %v832_v45 = vrot.slane %v830_v37, 2 }
  0x2d   : > { %1429 = vmatprep.subr.bf16.mxu0 %v1526_v55  ;;  %v841_v44 = vrot.slane %v839_v40, 2 }
  0x2e   : > { %1362 = vmatmul.mubr.bf16.gmra.mrb[4].mxu1 %v284_v0  ;;  %v833_v49 = vor.u32 %v832_v45, %v829_v43 }
  0x2f   : > { %1374 = vmatpush3.bf16.msra.mxu1 %v1525_v50  ;;  %1418 = vmatmul.mubr.bf16.gmra.mrb[4].mxu0 %v637_v5  ;;  %v845_v50 = vshrl.u32 %v1696_v52, 16  ;;  %v842_v53 = vor.u32 %v841_v44, %v838_v47 }
  0x30   : > { %1430 = vmatpush3.bf16.msra.mxu0 %v1526_v55  ;;  %1375 = vmatprep.subr.bf16.mxu1 %v1527_v4  ;;  %v857_v55 = vshll.u32 %v1249_v46, 16  ;;  %v834_v56 = vsel %vm808_vm2, %v824_v33, %v833_v49 }
  0x31   : > { %1431 = vmatprep.subr.bf16.mxu0 %v1528_v8  ;;  %1421 = vmatprep.mubr.bf16.mxu0 %v639_v23  ;;  %v847_v57 = vrot.slane %v845_v50, 1  ;;  %v843_v59 = vsel %vm808_vm2, %v833_v49, %v842_v53 }
  0x32   : > { %1365 = vmatprep.mubr.bf16.mxu1 %v292_v26  ;;  %v859_v61 = vrot.slane %v857_v55, 2 }
  0x33   : > { %1376 = vmatpush3.bf16.msra.mxu1 %v1527_v4  ;;  %v851_v52 = vor.u32 %v850_v58, %v847_v57  ;;  %v1777_v4 = vld [vmem:[%s1825_s2] ss:$0 sm:$0xff] }
  0x34   : > { %1432 = vmatpush3.bf16.msra.mxu0 %v1528_v8  ;;  %1377 = vmatprep.subr.bf16.mxu1 %v1532_v20  ;;  %v860_v62 = vor.u32 %v859_v61, %v856_v60 }
  0x35   : > { %1433 = vmatprep.subr.bf16.mxu0 %v1534_v22  ;;  %v852_v63 = vsel %vm808_vm2, %v842_v53, %v851_v52 }
  0x36   : > { %1366 = vmatmul.mubr.bf16.gmra.mrb[8].mxu1 %v295_v28  ;;  %v861_v0 = vsel %vm808_vm2, %v851_v52, %v860_v62 }
  0x37   : > { %1378 = vmatpush3.bf16.msra.mxu1 %v1532_v20  ;;  %1422 = vmatmul.mubr.bf16.gmra.mrb[8].mxu0 %v638_v17 }
  0x38   : > { %1434 = vmatpush3.bf16.msra.mxu0 %v1534_v22  ;;  %1379 = vmatprep.subr.bf16.mxu1 %v1535_v32 }
  0x39   : > { %1435 = vmatprep.subr.bf16.mxu0 %v1536_v18  ;;  %1385 = vmatprep.mubr.bf16.mxu1 %v1626_v12  ;;  %v1543_v12 = vld [vmem:[%s1824_s1 + $0xf8] sm:$0xff]  }
  0x3a   : > { %1441 = vmatprep.mubr.bf16.mxu0 %v825_v34 }
  0x3b   : > { %1380 = vmatpush3.bf16.msra.mxu1 %v1535_v32 }
  0x3c   : > { %1436 = vmatpush3.bf16.msra.mxu0 %v1536_v18  ;;  %1381 = vmatprep.subr.bf16.mxu1 %v1540_v35 }
  0x3d   : > { %1437 = vmatprep.subr.bf16.mxu0 %v1541_v38 }
  0x3f   : > { %1382 = vmatpush3.bf16.msra.mxu1 %v1540_v35 }
  0x40   : > { %1438 = vmatpush3.bf16.msra.mxu0 %v1541_v38  ;;  %1383 = vmatprep.subr.bf16.mxu1 %v1542_v29 }
  0x41   : > { %1439 = vmatprep.subr.bf16.mxu0 %v1543_v12 }
  0x43   : > { %1384 = vmatpush3.bf16.msra.mxu1 %v1542_v29 }
  0x44   : > { %1440 = vmatpush3.bf16.msra.mxu0 %v1543_v12 }
  0x46   : > { %1386 = vmatmul.mubr.bf16.vlgmr.msra.gmra.mrb[0].mxu1 %v1629_v13  ;;  %v1194_v13 = vcombine.low %v1710_v1, %v183_v2 }
  0x47   : > { %1442 = vmatmul.mubr.bf16.vlgmr.msra.gmra.mrb[0].mxu0 %v834_v56  ;;  %1389 = vmatprep.mubr.bf16.mxu1 %v1652_v27 }
  0x48   : > { %1445 = vmatprep.mubr.bf16.mxu0 %v843_v59 }
  0x4e   : > { %1390 = vmatmul.mubr.bf16.gmra.mrb[4].mxu1 %v1677_v42 }
  0x4f   : > { %1446 = vmatmul.mubr.bf16.gmra.mrb[4].mxu0 %v852_v63  ;;  %1393 = vmatprep.mubr.bf16.mxu1 %v1688_v48 }
  0x50   : > { %1449 = vmatprep.mubr.bf16.mxu0 %v861_v0 }
  0x56   : > { %1394 = vmatmul.mubr.bf16.gmra.mrb[8].mxu1 %v1194_v13 }
  0x57   : > { %1450 = vmatmul.mubr.bf16.gmra.mrb[8].mxu0 %v860_v62 }
 0x119   : > { %v1387_v27 = vpop.f32.mrb[0].mxu1 }
 0x11a   : > { %v1443_v3 = vpop.f32.mrb[0].mxu0  ;;  %v522_v5 = vpop.f32.mrb[1].mxu1 }
 0x11b   : > { %v1453_v6 = vadd.f32 %v1443_v3, %v1387_v27  ;;  %v950_v7 = vpop.f32.mrb[1].mxu0  ;;  %v1388_v42 = vpop.f32.mrb[2].mxu1 }
 0x11c   : > { %v1454_v8 = vadd.f32 %v950_v7, %v522_v5  ;;  %v1444_v48 = vpop.f32.mrb[2].mxu0  ;;  %v525_v9 = vpop.f32.mrb[3].mxu1 }
 0x11d   : > { %v1018_v10 = vadd.f32 %v1453_v6, %v1777_v4  ;;  %v1455_v1 = vadd.f32 %v1444_v48, %v1388_v42  ;;  %v953_v11 = vpop.f32.mrb[3].mxu0 }
 0x11e   : > { %v1016_v14 = vadd.f32 %v1454_v8, %v1777_v4  ;;  %v1456_v15 = vadd.f32 %v953_v11, %v525_v9 }
 0x11f   : > { %v1030_v16 = vmax.f32 %v1018_v10, 0.0  ;;  %v1019_v17 = vadd.f32 %v1455_v1, %v1777_v4 }
 0x120   : > { %v1028_v19 = vmax.f32 %v1016_v14, 0.0  ;;  %v1017_v20 = vadd.f32 %v1456_v15, %v1777_v4 }
 0x121   : > { %v1275_v21 = vpack.c.bf16 %v1030_v16, %v1030_v16  ;;  %v1031_v22 = vmax.f32 %v1019_v17, 0.0  ;;  %v1391_v23 = vpop.f32.mrb[4].mxu1 }
 0x122   : > { %v1273_v24 = vpack.c.bf16 %v1028_v19, %v1028_v19  ;;  %v1029_v25 = vmax.f32 %v1017_v20, 0.0  ;;  %v1447_v26 = vpop.f32.mrb[4].mxu0  ;;  %v538_v28 = vpop.f32.mrb[5].mxu1 }
 0x123   : > { %1091 = vst.msk [vmem:[%s1786_s10 + $0x8] sm:$0xf] %vm1088_vm3, %v1275_v21  ;;  %v1276_v30 = vpack.c.bf16 %v1031_v22, %v1031_v22  ;;  %v1457_v31 = vadd.f32 %v1447_v26, %v1391_v23  ;;  %v966_v32 = vpop.f32.mrb[5].mxu0  ;;  %v1392_v18 = vpop.f32.mrb[6].mxu1 }
 0x124   : > { %1089 = vst.msk [vmem:[%s1786_s10] sm:$0xf] %vm1088_vm3, %v1273_v24  ;;  %v1274_v33 = vpack.c.bf16 %v1029_v25, %v1029_v25  ;;  %v1458_v34 = vadd.f32 %v966_v32, %v538_v28  ;;  %v1448_v35 = vpop.f32.mrb[6].mxu0  ;;  %v541_v36 = vpop.f32.mrb[7].mxu1 }
 0x125   : > { %1092 = vst.msk [vmem:[%s1786_s10 + $0xc] sm:$0xf] %vm1088_vm3, %v1276_v30  ;;  %v1022_v37 = vadd.f32 %v1457_v31, %v1777_v4  ;;  %v1459_v38 = vadd.f32 %v1448_v35, %v1392_v18  ;;  %v969_v39 = vpop.f32.mrb[7].mxu0 }
 0x126   : > { %1090 = vst.msk [vmem:[%s1786_s10 + $0x4] sm:$0xf] %vm1088_vm3, %v1274_v33  ;;  %v1020_v40 = vadd.f32 %v1458_v34, %v1777_v4  ;;  %v1460_v41 = vadd.f32 %v969_v39, %v541_v36 }
 0x127   : > { %v1034_v29 = vmax.f32 %v1022_v37, 0.0  ;;  %v1023_v43 = vadd.f32 %v1459_v38, %v1777_v4 }
 0x128   : > { %v1032_v45 = vmax.f32 %v1020_v40, 0.0  ;;  %v1021_v46 = vadd.f32 %v1460_v41, %v1777_v4 }
 0x129   : > { %v1279_v12 = vpack.c.bf16 %v1034_v29, %v1034_v29  ;;  %v1035_v47 = vmax.f32 %v1023_v43, 0.0  ;;  %v1395_v44 = vpop.f32.mrb[8].mxu1 }
 0x12a   : > { %v1277_v49 = vpack.c.bf16 %v1032_v45, %v1032_v45  ;;  %v1033_v50 = vmax.f32 %v1021_v46, 0.0  ;;  %v1451_v51 = vpop.f32.mrb[8].mxu0  ;;  %v554_v53 = vpop.f32.mrb[9].mxu1 }
 0x12b   : > { %1095 = vst.msk [vmem:[%s1786_s10 + $0x18] sm:$0xf] %vm1088_vm3, %v1279_v12  ;;  %v1280_v54 = vpack.c.bf16 %v1035_v47, %v1035_v47  ;;  %v1461_v55 = vadd.f32 %v1451_v51, %v1395_v44  ;;  %v982_v56 = vpop.f32.mrb[9].mxu0  ;;  %v1396_v57 = vpop.f32.mrb[10].mxu1 }
 0x12c   : > { %1093 = vst.msk [vmem:[%s1786_s10 + $0x10] sm:$0xf] %vm1088_vm3, %v1277_v49  ;;  %v1278_v58 = vpack.c.bf16 %v1033_v50, %v1033_v50  ;;  %v1462_v59 = vadd.f32 %v982_v56, %v554_v53  ;;  %v1452_v60 = vpop.f32.mrb[10].mxu0  ;;  %v557_v61 = vpop.f32.mrb[11].mxu1 }
 0x12d   : > { %1096 = vst.msk [vmem:[%s1786_s10 + $0x1c] sm:$0xf] %vm1088_vm3, %v1280_v54  ;;  %v1026_v52 = vadd.f32 %v1461_v55, %v1777_v4  ;;  %v1463_v62 = vadd.f32 %v1452_v60, %v1396_v57  ;;  %v985_v63 = vpop.f32.mrb[11].mxu0 }
 0x12e   : > { %1094 = vst.msk [vmem:[%s1786_s10 + $0x14] sm:$0xf] %vm1088_vm3, %v1278_v58  ;;  %v1024_v0 = vadd.f32 %v1462_v59, %v1777_v4  ;;  %v1464_v2 = vadd.f32 %v985_v63, %v557_v61 }
 0x12f   : > { %v1038_v13 = vmax.f32 %v1026_v52, 0.0  ;;  %v1027_v27 = vadd.f32 %v1463_v62, %v1777_v4 }
 0x130   : > { %v1036_v3 = vmax.f32 %v1024_v0, 0.0  ;;  %v1025_v5 = vadd.f32 %v1464_v2, %v1777_v4 }
 0x131   : > { %v1283_v6 = vpack.c.bf16 %v1038_v13, %v1038_v13  ;;  %v1039_v7 = vmax.f32 %v1027_v27, 0.0 }
 0x132   : > { %v1281_v42 = vpack.c.bf16 %v1036_v3, %v1036_v3  ;;  %v1037_v8 = vmax.f32 %v1025_v5, 0.0 }
 0x133   : > { %1099 = vst.msk [vmem:[%s1786_s10 + $0x28] sm:$0xf] %vm1088_vm3, %v1283_v6  ;;  %v1284_v48 = vpack.c.bf16 %v1039_v7, %v1039_v7 }
 0x134   : > { %1097 = vst.msk [vmem:[%s1786_s10 + $0x20] sm:$0xf] %vm1088_vm3, %v1281_v42  ;;  %v1282_v9 = vpack.c.bf16 %v1037_v8, %v1037_v8 }
 0x135   : > { %1101 = vst.msk [vmem:[%s1786_s10 + $0x2c] sm:$0x1] %vm1100_vm4, %v1284_v48 }
 0x136   : > { %1098 = vst.msk [vmem:[%s1786_s10 + $0x24] sm:$0xf] %vm1088_vm3, %v1282_v9 }
 0x137 PF: > { %s13_s12 = sadd.s32 1, %s1551_s12  }
 0x138   : > { %p10_p4 = scmp.ge.s32.totalorder %s13_s12, 4  }
 0x13a   :  { %12 = sbr.rel (!%p10_p4) target bundleno = 1 (0x1), region = 65 }

// kernel: actor_critic_forward.6
= control target key start
LH: loop header
LB: loop body
LE: loop exit
PB: predicated region body
PF: predicated region fallthrough
CT: control target
= control target key end

     0   :  { %s2413_s12 = smov 0   ;;  %s2934_s0 = inlined_call_operand.vmem [shape: bf16[2,92,64], index: 0, kind: input, shape index: {}]   ;;  %s2935_s1 = inlined_call_operand.vmem [shape: bf16[9,64,64], index: 1, kind: input, shape index: {}]   ;;  %s2936_s2 = inlined_call_operand.vmem [shape: f32[1,64], index: 2, kind: input, shape index: {}]   ;;  %s2937_s3 = inlined_call_operand.vmem [shape: bf16[2,70,64], index: 3, kind: output, shape index: {}]  }
   0x1 LB: > { %s1771_s13 = sadd.s32 4294967295, %s2389_s12   ;;  %p1775_p0 = scmp.ge.s32.totalorder %s2389_s12, 1  ;;  %s2389_s12 = sphi %s2413_s12, %s13_s12  }
   0x2   : > { %p137_p1 = scmp.lt.s32.totalorder %s2389_s12, 3 }
   0x4   : > { %p138_p2 = pnand %p1775_p0, %p137_p1 }
   0x5   : > { %v2322_v0 = vld [vmem:[%s2935_s1 + $0x20] sm:$0xff] (!%p138_p2)   ;;  %v2391_v1 = vmov (!%p138_p2), 0.0   ;;  %v2323_v2 = vld [vmem:[%s2935_s1 + $0x28] sm:$0xff] (!%p138_p2)   ;;  %p161_p3 = scmp.lt.s32.totalorder (!%p138_p2), %s1771_s13, 1  ;;  %vm2392_vm0 = vmmov (!%p138_p2), 0   ;;  %v2324_v3 = vld [vmem:[%s2935_s1 + $0x30] sm:$0xff] (!%p138_p2)  }
   0x6   : > { %141 = sbr.rel (%p138_p2) target bundleno = 424 (0x1a8), region = 32  ;;  %2302 = vmatprep.subr.bf16.mxu1 (!%p138_p2), %v2391_v1  ;;  %2050 = vmatprep.subr.bf16.mxu0 (!%p138_p2), %v2391_v1  ;;  %v2325_v4 = vld [vmem:[%s2935_s1 + $0x38] sm:$0xff] (!%p138_p2)   ;;  %vm222_vm1 = vsmask.f32 (!%p138_p2), 7424  ;;  %vm286_vm2 = vcmask (!%p138_p2), 523264   ;;  %v2328_v19 = vld [vmem:[%s2935_s1] sm:$0xff] (!%p138_p2)  }
   0x7   : > { %2306 = vmatpush3.bf16.msra.mxu1 (!%p138_p2), %v2322_v0  ;;  %2051 = vmatpush3.bf16.msra.mxu0 (!%p138_p2), %v2322_v0  ;;  %v2333_v28 = vld [vmem:[%s2935_s1 + $0x40] sm:$0xff] (!%p138_p2)   ;;  %v2329_v30 = vld [vmem:[%s2935_s1 + $0x8] sm:$0xff] (!%p138_p2)   ;;  %v2334_v38 = vld [vmem:[%s2935_s1 + $0x10] sm:$0xff] (!%p138_p2)   ;;  %vm497_vm3 = vcmask (!%p138_p2), 1046528   ;;  %vm841_vm4 = vsmask.f32 (!%p138_p2), 6400 }
   0x8   : > { %2303 = vmatprep.subr.bf16.mxu1 (!%p138_p2), %v2391_v1  ;;  %2052 = vmatprep.subr.bf16.mxu0 (!%p138_p2), %v2391_v1  ;;  %v2335_v34 = vld [vmem:[%s2935_s1 + $0x48] sm:$0xff] (!%p138_p2)   ;;  %v2336_v41 = vld [vmem:[%s2935_s1 + $0x50] sm:$0xff] (!%p138_p2)   ;;  %v2337_v43 = vld [vmem:[%s2935_s1 + $0x18] sm:$0xff] (!%p138_p2)   ;;  %vm1019_vm5 = vcmask (!%p138_p2), 1045504   ;;  %vm1513_vm6 = vcmask (!%p138_p2), 1044480   ;;  %vm1705_vm8 = vcmask (!%p138_p2), 519168  }
   0x9   : > { %2066 = vmatprep.mubr.msk.bf16.mxu1 (!%p138_p2), %vm2392_vm0, %v2391_v1  ;;  %2058 = vmatprep.mubr.msk.bf16.mxu0 (!%p138_p2), %vm2392_vm0, %v2391_v1  ;;  %v2338_v44 = vld [vmem:[%s2935_s1 + $0x58] sm:$0xff] (!%p138_p2)   ;;  %v2341_v49 = vld [vmem:[%s2935_s1 + $0x80] sm:$0xff] (!%p138_p2)   ;;  %v2343_v51 = vld [vmem:[%s2935_s1 + $0x88] sm:$0xff] (!%p138_p2)   ;;  %vm1335_vm7 = vsmask.f32 (!%p138_p2), 5376  ;;  %vm1714_vm9 = vcmask (!%p138_p2), 518144  }
   0xa   : > { %v2340_v52 = vld [vmem:[%s2935_s1 + $0x60] sm:$0xff] (!%p138_p2)   ;;  %v2345_v55 = vld [vmem:[%s2935_s1 + $0x90] sm:$0xff] (!%p138_p2)   ;;  %v2342_v57 = vld [vmem:[%s2935_s1 + $0x68] sm:$0xff] (!%p138_p2)  }
   0xb   : > { %2307 = vmatpush3.bf16.msra.mxu1 (!%p138_p2), %v2323_v2  ;;  %2053 = vmatpush3.bf16.msra.mxu0 (!%p138_p2), %v2323_v2  ;;  %v2348_v61 = vld [vmem:[%s2935_s1 + $0x98] sm:$0xff] (!%p138_p2)   ;;  %v2344_v63 = vld [vmem:[%s2935_s1 + $0x70] sm:$0xff] (!%p138_p2)  }
   0xc   : > { %2304 = vmatprep.subr.bf16.mxu1 (!%p138_p2), %v2391_v1  ;;  %2054 = vmatprep.subr.bf16.mxu0 (!%p138_p2), %v2391_v1  ;;  %v2346_v2 = vld [vmem:[%s2935_s1 + $0x78] sm:$0xff] (!%p138_p2)  }
   0xd   : > { %s2939_s13 = smov (!%p161_p3, %s1771_s13), 1 }
   0xe   : > { %s2310_s20 = smul.u32 48, %s2939_s13 }
   0xf   : > { %2308 = vmatpush3.bf16.msra.mxu1 %v2324_v3  ;;  %2055 = vmatpush3.bf16.msra.mxu0 %v2324_v3  ;;  %s2311_s18 = smul.u32 36, %s2939_s13 }
  0x10   : > { %s2449_s25 = scalar_lea.vmem %s2934_s0, %s2310_s20  ;;  %2305 = vmatprep.subr.bf16.mxu1 %v2391_v1  ;;  %2056 = vmatprep.subr.bf16.mxu0 %v2391_v1 }
  0x11   : > { %v2452_v5 = vld [vmem:[%s2449_s25 + $0x10] sm:$0xff]   ;;  %v2455_v6 = vld [vmem:[%s2449_s25 + $0x18] sm:$0xff]   ;;  %v172_v7 = vld [vmem:[%s2449_s25] sm:$0xf]  ;;  %s2898_s21 = scalar_lea.vmem %s2937_s3, %s2311_s18 }
  0x12   : > { %v173_v8 = vld [vmem:[%s2449_s25 + $0x4] sm:$0xf]  ;;  %v239_v9 = vshll.u32 %v2452_v5, 16  ;;  %v243_v10 = vshrl.u32 %v2452_v5, 16  ;;  %v247_v11 = vshll.u32 %v2455_v6, 16  ;;  %v2467_v13 = vld [vmem:[%s2449_s25 + $0x8] sm:$0xff]  }
  0x13   : > { %v2464_v12 = vcombine.low %v172_v7, %v173_v8  ;;  %v2470_v14 = vld [vmem:[%s2449_s25 + $0x20] ss:$0 sps:$4 sm:$0xff]   ;;  %2309 = vmatpush3.bf16.msra.mxu1 %v2325_v4  ;;  %2057 = vmatpush3.bf16.msra.mxu0 %v2325_v4  ;;  %v231_v20 = vshll.u32 %v2467_v13, 16  ;;  %v251_v21 = vshrl.u32 %v2455_v6, 16  ;;  %v235_v29 = vshrl.u32 %v2467_v13, 16 }
  0x14   : > { %v241_v15 = vrot.slane %v239_v9, 1  ;;  %v249_v16 = vrot.slane %v247_v11, 1  ;;  %2078 = vmatprep.subr.bf16.mxu1 %v2391_v1  ;;  %2106 = vmatprep.subr.bf16.mxu0 %v2391_v1  ;;  %v255_v24 = vshll.u32 %v2470_v14, 16  ;;  %v484_v36 = vld [vmem:[%s2449_s25] sm:$0xe]  ;;  %v259_v40 = vshrl.u32 %v2470_v14, 16 }
  0x15   : > { %v224_v17 = vshrl.u32 %v2464_v12, 16  ;;  %v226_v18 = vshll.u32 %v2464_v12, 16  ;;  %v233_v25 = vrot.slane %v231_v20, 1  ;;  %v1818_v42 = vcombine.low %v484_v36, %v173_v8  ;;  %v2550_v53 = vld [vmem:[%s2449_s25 + $0x1c] sm:$0xff]   ;;  %v2560_v56 = vld [vmem:[%s2449_s25 + $0x24] ss:$0 sps:$4 sm:$0xff]  }
  0x16   : > { %v245_v22 = vor.u32 %v243_v10, %v241_v15  ;;  %v253_v32 = vor.u32 %v251_v21, %v249_v16  ;;  %v257_v33 = vrot.slane %v255_v24, 1  ;;  %v499_v46 = vrot.slane %v2467_v13, 1  ;;  %v797_v4 = vld [vmem:[%s2449_s25 + $0x4] sm:$0xe]  ;;  %v2605_v7 = vld [vmem:[%s2449_s25 + $0x8] sm:$0xf] }
  0x17   : > { %v228_v23 = vrot.slane %v226_v18, 1  ;;  %v237_v35 = vor.u32 %v235_v29, %v233_v25  ;;  %v498_v45 = vrot.slane %v1818_v42, 1  ;;  %v501_v50 = vrot.slane %v2452_v5, 1  ;;  %v2611_v10 = vld [vmem:[%s2449_s25 + $0xc] sm:$0xff]   ;;  %v2623_v18 = vld [vmem:[%s2449_s25 + $0x14] sm:$0xff]   ;;  %v2642_v29 = vld [vmem:[%s2449_s25 + $0x1c] sm:$0xff]  }
  0x18   : > { %v250_v26 = vsel %vm222_vm1, %v245_v22, %v249_v16  ;;  %v258_v37 = vsel %vm222_vm1, %v253_v32, %v257_v33  ;;  %v261_v47 = vor.u32 %v259_v40, %v257_v33  ;;  %v673_v58 = vrot.slane %v2550_v53, 1  ;;  %v2349_v24 = vld [vmem:[%s2449_s25 + $0x4] sm:$0xfe]   ;;  %v2362_v42 = vld [vmem:[%s2935_s1 + $0xd0] sm:$0xff]  }
  0x19   : > { %v229_v27 = vor.u32 %v228_v23, %v224_v17  ;;  %2067 = vmatmul.mubr.msk.bf16.vlgmr.msra.gmra.mrb[0].mxu1 %vm286_vm2, %v250_v26  ;;  %v242_v39 = vsel %vm222_vm1, %v237_v35, %v241_v15  ;;  %v500_v48 = vsel %vm497_vm3, %v498_v45, %v499_v46  ;;  %v502_v54 = vsel %vm497_vm3, %v499_v46, %v501_v50  ;;  %v2347_v23 = vld [vmem:[%s2449_s25 + $0x20] ss:$0 sps:$4 sm:$0x77]   ;;  %v2358_v33 = vld [vmem:[%s2935_s1 + $0xc8] sm:$0xff]  }
  0x1a   : > { %2079 = vmatpush3.bf16.msra.mxu1 %v2328_v19  ;;  %2070 = vmatprep.mubr.msk.bf16.mxu1 %vm2392_vm0, %v2391_v1  ;;  %v675_v59 = vrot.slane %v2560_v56, 1  ;;  %v503_v60 = vrot.slane %v2455_v6, 1  ;;  %v505_v3 = vrot.slane %v2470_v14, 1  ;;  %v1858_v9 = vcombine.low %v797_v4, %v2605_v7  ;;  %v2354_v26 = vld [vmem:[%s2935_s1 + $0xc0] sm:$0xff]   ;;  %v2357_v45 = vld [vmem:[%s2935_s1 + $0xa8] sm:$0xff]  }
  0x1b   : > { %v234_v31 = vsel %vm222_vm1, %v229_v27, %v233_v25  ;;  %2080 = vmatprep.subr.bf16.mxu1 %v2391_v1  ;;  %v854_v14 = vshll.u32 %v2611_v10, 16  ;;  %v860_v21 = vshrl.u32 %v2623_v18, 16  ;;  %v863_v22 = vshll.u32 %v2623_v18, 16  ;;  %v2350_v25 = vld [vmem:[%s2449_s25 + $0xc] sm:$0xff]   ;;  %v1149_v53 = vld [vmem:[%s2449_s25 + $0x8] sm:$0xc] }
  0x1c   : > { %2059 = vmatmul.mubr.msk.bf16.vlgmr.msra.gmra.mrb[0].mxu0 %vm286_vm2, %v234_v31  ;;  %v2583_v62 = vsel %vm497_vm3, %v673_v58, %v675_v59  ;;  %v504_v0 = vsel %vm497_vm3, %v501_v50, %v503_v60  ;;  %v506_v8 = vsel %vm497_vm3, %v503_v60, %v505_v3  ;;  %v843_v11 = vshrl.u32 %v1858_v9, 16  ;;  %v2374_v56 = vld [vmem:[%s2935_s1 + $0x108] sm:$0xff]  }
  0x1d   : > { %2107 = vmatpush3.bf16.msra.mxu0 %v2333_v28  ;;  %2062 = vmatprep.mubr.msk.bf16.mxu0 %vm2392_vm0, %v2391_v1  ;;  %v856_v17 = vrot.slane %v854_v14, 2  ;;  %v862_v27 = vrot.slane %v860_v21, 1  ;;  %v865_v28 = vrot.slane %v863_v22, 2  ;;  %v669_v31 = vrot.slane %v2350_v25, 1  ;;  %v2381_v21 = vld [vmem:[%s2935_s1 + $0x118] sm:$0xff]  }
  0x1e   : > { %2108 = vmatprep.subr.bf16.mxu0 %v2391_v1  ;;  %2081 = vmatpush3.bf16.msra.mxu1 %v2329_v30  ;;  %v845_v15 = vrot.slane %v843_v11, 1  ;;  %v668_v30 = vrot.slane %v2349_v24, 1  ;;  %v872_v35 = vshll.u32 %v2642_v29, 16  ;;  %v1021_v14 = vrot.slane %v2611_v10, 2  ;;  %v2783_v22 = vld [vmem:[%s2449_s25 + $0x28] sm:$0xf] }
  0x1f   : > { %2082 = vmatprep.subr.bf16.mxu1 %v2391_v1  ;;  %v866_v32 = vor.u32 %v865_v28, %v862_v27  ;;  %v2376_v24 = vld [vmem:[%s2935_s1 + $0xf0] sm:$0xff]   ;;  %v2380_v27 = vld [vmem:[%s2935_s1 + $0xf8] sm:$0xff]  }
  0x20   : > { %v670_v36 = vsel %vm497_vm3, %v668_v30, %v669_v31 }
  0x21   : > { %2109 = vmatpush3.bf16.msra.mxu0 %v2335_v34  ;;  %2071 = vmatmul.mubr.msk.bf16.gmra.mrb[4].mxu1 %vm286_vm2, %v258_v37  ;;  %v869_v34 = vshrl.u32 %v2642_v29, 16  ;;  %v2353_v37 = vld [vmem:[%s2935_s1 + $0xa0] sm:$0xff]  }
  0x22   : > { %2110 = vmatprep.subr.bf16.mxu0 %v2391_v1  ;;  %2083 = vmatpush3.bf16.msra.mxu1 %v2334_v38  ;;  %v2355_v38 = vld [vmem:[%s2449_s25 + $0x14] sm:$0xff]  }
  0x23   : > { %2074 = vmatprep.mubr.msk.bf16.mxu1 %vm2392_vm0, %v2391_v1  ;;  %2084 = vmatprep.subr.bf16.mxu1 %v2391_v1  ;;  %v871_v40 = vrot.slane %v869_v34, 1 }
  0x24   : > { %2063 = vmatmul.mubr.msk.bf16.gmra.mrb[4].mxu0 %vm286_vm2, %v242_v39 }
  0x25   : > { %2111 = vmatpush3.bf16.msra.mxu0 %v2336_v41  ;;  %2114 = vmatprep.mubr.msk.bf16.mxu0 %vm2392_vm0, %v2391_v1  ;;  %v874_v41 = vrot.slane %v872_v35, 2 }
  0x26   : > { %2112 = vmatprep.subr.bf16.mxu0 %v2391_v1  ;;  %2085 = vmatpush3.bf16.msra.mxu1 %v2337_v43  ;;  %v2666_v43 = vld [vmem:[%s2449_s25 + $0x24] sm:$0x1f]  }
  0x27   : > { %2134 = vmatprep.subr.bf16.mxu1 %v2391_v1  ;;  %v875_v46 = vor.u32 %v874_v41, %v871_v40 }
  0x29   : > { %2113 = vmatpush3.bf16.msra.mxu0 %v2338_v44  ;;  %2075 = vmatmul.mubr.msk.bf16.gmra.mrb[8].mxu1 %vm286_vm2, %v261_v47  ;;  %v671_v44 = vrot.slane %v2355_v38, 1  ;;  %v878_v47 = vshrl.u32 %v2666_v43, 16 }
  0x2a   : > { %2162 = vmatprep.subr.bf16.mxu0 %v2391_v1  ;;  %2086 = vmatprep.mubr.msk.bf16.mxu1 %vm2392_vm0, %v2391_v1 }
  0x2b   : > { %v672_v50 = vsel %vm497_vm3, %v669_v31, %v671_v44 }
  0x2c   : > { %2115 = vmatmul.mubr.msk.bf16.vlgmr.msra.gmra.mrb[8].mxu0 %vm286_vm2, %v500_v48  ;;  %v881_v48 = vshll.u32 %v2666_v43, 16 }
  0x2d   : > { %2163 = vmatpush3.bf16.msra.mxu0 %v2341_v49  ;;  %2118 = vmatprep.mubr.msk.bf16.mxu0 %vm2392_vm0, %v2391_v1  ;;  %v2366_v49 = vld [vmem:[%s2935_s1 + $0xd8] sm:$0xff]  }
  0x2e   : > { %2164 = vmatprep.subr.bf16.mxu0 %v2391_v1 }
  0x31   : > { %2165 = vmatpush3.bf16.msra.mxu0 %v2343_v51  ;;  %2087 = vmatmul.mubr.msk.bf16.vlgmr.msra.gmra.mrb[12].mxu1 %vm286_vm2, %v2464_v12  ;;  %v846_v12 = vshll.u32 %v1858_v9, 16  ;;  %v2361_v51 = vld [vmem:[%s2935_s1 + $0xb0] sm:$0xff]  }
  0x32   : > { %2166 = vmatprep.subr.bf16.mxu0 %v2391_v1  ;;  %2135 = vmatpush3.bf16.msra.mxu1 %v2340_v52  ;;  %v876_v52 = vsel %vm841_vm4, %v866_v32, %v875_v46 }
  0x33   : > { %2090 = vmatprep.mubr.msk.bf16.mxu1 %vm2392_vm0, %v2391_v1  ;;  %2136 = vmatprep.subr.bf16.mxu1 %v2391_v1  ;;  %v848_v16 = vrot.slane %v846_v12, 2  ;;  %v2739_v12 = vld [vmem:[%s2449_s25 + $0x18] sm:$0xff]  }
  0x34   : > { %2119 = vmatmul.mubr.msk.bf16.gmra.mrb[12].mxu0 %vm286_vm2, %v502_v54  ;;  %v880_v54 = vrot.slane %v878_v47, 1 }
  0x35   : > { %2122 = vmatprep.mubr.msk.bf16.mxu0 %vm2392_vm0, %v2391_v1  ;;  %2167 = vmatpush3.bf16.msra.mxu0 %v2345_v55  ;;  %v849_v19 = vor.u32 %v848_v16, %v845_v15  ;;  %v883_v55 = vrot.slane %v881_v48, 2  ;;  %v2761_v16 = vld [vmem:[%s2449_s25 + $0x20] sm:$0xff]   ;;  %v1354_v48 = vshrl.u32 %v2739_v12, 16 }
  0x36   : > { %2168 = vmatprep.subr.bf16.mxu0 %v2391_v1  ;;  %2137 = vmatpush3.bf16.msra.mxu1 %v2342_v57  ;;  %v2365_v57 = vld [vmem:[%s2935_s1 + $0xb8] sm:$0xff]  }
  0x37   : > { %2138 = vmatprep.subr.bf16.mxu1 %v2391_v1  ;;  %v884_v60 = vor.u32 %v883_v55, %v880_v54 }
  0x39   : > { %2169 = vmatpush3.bf16.msra.mxu0 %v2348_v61  ;;  %2091 = vmatmul.mubr.msk.bf16.gmra.mrb[16].mxu1 %vm286_vm2, %v2467_v13  ;;  %v851_v13 = vshrl.u32 %v2611_v10, 16  ;;  %v674_v61 = vsel %vm497_vm3, %v671_v44, %v673_v58  ;;  %v2370_v10 = vld [vmem:[%s2935_s1 + $0xe0] sm:$0xff]  }
  0x3a   : > { %2218 = vmatprep.subr.bf16.mxu0 %v2391_v1  ;;  %2094 = vmatprep.mubr.msk.bf16.mxu1 %vm2392_vm0, %v2391_v1 }
  0x3b   : > { %2139 = vmatpush3.bf16.msra.mxu1 %v2344_v63  ;;  %v885_v63 = vsel %vm841_vm4, %v875_v46, %v884_v60 }
  0x3c   : > { %2123 = vmatmul.mubr.msk.bf16.gmra.mrb[16].mxu0 %vm286_vm2, %v504_v0  ;;  %2140 = vmatprep.subr.bf16.mxu1 %v2391_v1  ;;  %v2715_v0 = vld [vmem:[%s2449_s25 + $0xc] sm:$0xf] }
  0x3d   : > { %2126 = vmatprep.mubr.msk.bf16.mxu0 %vm2392_vm0, %v2391_v1  ;;  %v2718_v58 = vcombine.low %v1149_v53, %v2715_v0  ;;  %v1519_v53 = vrot.slane %v2761_v16, 3 }
  0x3f   : > { %2141 = vmatpush3.bf16.msra.mxu1 %v2346_v2  ;;  %v2721_v2 = vld [vmem:[%s2449_s25 + $0x10] sm:$0xff]   ;;  %v1193_v4 = vrot.slane %v2718_v58, 2  ;;  %v1337_v35 = vshrl.u32 %v2718_v58, 16 }
  0x40   : > { %2190 = vmatprep.subr.bf16.mxu1 %v2391_v1  ;;  %v1348_v38 = vshll.u32 %v2721_v2, 16  ;;  %v1515_v40 = vrot.slane %v2721_v2, 3 }
  0x41   : > { %2095 = vmatmul.mubr.msk.bf16.gmra.mrb[20].mxu1 %vm286_vm2, %v2452_v5  ;;  %v853_v5 = vrot.slane %v851_v13, 1  ;;  %v1339_v41 = vrot.slane %v1337_v35, 2 }
  0x42   : > { %2098 = vmatprep.mubr.msk.bf16.mxu1 %vm2392_vm0, %v2391_v1  ;;  %v1350_v44 = vrot.slane %v1348_v38, 3 }
  0x43   : > { %v857_v20 = vor.u32 %v856_v17, %v853_v5  ;;  %v2377_v5 = vld [vmem:[%s2935_s1 + $0x110] sm:$0xff]   ;;  %v1023_v17 = vrot.slane %v2623_v18, 2  ;;  %v1158_v18 = vld [vmem:[%s2449_s25 + $0x2c] sm:$0x1] }
  0x44   : > { %2127 = vmatmul.mubr.msk.bf16.gmra.mrb[20].mxu0 %vm286_vm2, %v506_v8  ;;  %v1194_v8 = vrot.slane %v2721_v2, 2 }
  0x45   : > { %2130 = vmatprep.mubr.msk.bf16.mxu0 %vm2392_vm0, %v2391_v1  ;;  %v867_v39 = vsel %vm841_vm4, %v857_v20, %v866_v32  ;;  %v1500_v32 = vld [vmem:[%s2449_s25 + $0x8] sm:$0x8] }
  0x46   : > { %v1195_v11 = vsel %vm1019_vm5, %v1193_v4, %v1194_v8  ;;  %v1938_v34 = vcombine.low %v1500_v32, %v2715_v0 }
  0x49   : > { %2099 = vmatmul.mubr.msk.bf16.gmra.mrb[24].mxu1 %vm286_vm2, %v2455_v6  ;;  %v858_v6 = vsel %vm841_vm4, %v849_v19, %v857_v20  ;;  %v2373_v19 = vld [vmem:[%s2935_s1 + $0xe8] sm:$0xff]   ;;  %v1198_v20 = vrot.slane %v2761_v16, 2 }
  0x4a   : > { %2102 = vmatprep.mubr.msk.bf16.mxu1 %vm2392_vm0, %v2391_v1 }
  0x4c   : > { %2131 = vmatmul.mubr.msk.bf16.gmra.mrb[24].mxu0 %vm286_vm2, %v505_v3  ;;  %v1006_v3 = vld [vmem:[%s2449_s25 + $0x4] sm:$0xc] }
  0x4d   : > { %2170 = vmatprep.mubr.msk.bf16.mxu0 %vm2392_vm0, %v2391_v1  ;;  %v1880_v9 = vcombine.low %v1006_v3, %v2605_v7  ;;  %v1196_v7 = vrot.slane %v2739_v12, 2 }
  0x4f   : > { %v1020_v13 = vrot.slane %v1880_v9, 2  ;;  %v1197_v15 = vsel %vm1019_vm5, %v1194_v8, %v1196_v7  ;;  %v1199_v25 = vsel %vm1019_vm5, %v1196_v7, %v1198_v20 }
  0x51   : > { %2103 = vmatmul.mubr.msk.bf16.gmra.mrb[28].mxu1 %vm286_vm2, %v2347_v23  ;;  %v1024_v23 = vsel %vm1019_vm5, %v1021_v14, %v1023_v17 }
  0x52   : > { %2142 = vmatprep.mubr.msk.bf16.mxu1 %vm2392_vm0, %v2391_v1 }
  0x54   : > { %2171 = vmatmul.mubr.msk.bf16.vlgmr.msra.gmra.mrb[28].mxu0 %vm286_vm2, %v858_v6  ;;  %v1902_v6 = vcombine.low %v2783_v22, %v1158_v18 }
  0x55   : > { %2219 = vmatpush3.bf16.msra.mxu0 %v2354_v26  ;;  %2174 = vmatprep.mubr.msk.bf16.mxu0 %vm2392_vm0, %v2391_v1  ;;  %v1025_v26 = vrot.slane %v2642_v29, 2  ;;  %v1027_v29 = vrot.slane %v2666_v43, 2 }
  0x56   : > { %2220 = vmatprep.subr.bf16.mxu0 %v2391_v1  ;;  %v1200_v28 = vrot.slane %v1902_v6, 2 }
  0x57   : > { %v1026_v30 = vsel %vm1019_vm5, %v1023_v17, %v1025_v26 }
  0x58   : > { %v1201_v31 = vsel %vm1019_vm5, %v1198_v20, %v1200_v28 }
  0x59   : > { %2221 = vmatpush3.bf16.msra.mxu0 %v2358_v33  ;;  %2143 = vmatmul.mubr.msk.bf16.vlgmr.msra.gmra.mrb[32].mxu1 %vm286_vm2, %v670_v36  ;;  %v1028_v33 = vsel %vm1019_vm5, %v1025_v26, %v1027_v29  ;;  %v1340_v36 = vshll.u32 %v2718_v58, 16 }
  0x5a   : > { %2222 = vmatprep.subr.bf16.mxu0 %v2391_v1  ;;  %2191 = vmatpush3.bf16.msra.mxu1 %v2353_v37  ;;  %v1345_v37 = vshrl.u32 %v2721_v2, 16 }
  0x5b   : > { %2146 = vmatprep.mubr.msk.bf16.mxu1 %vm2392_vm0, %v2391_v1  ;;  %2192 = vmatprep.subr.bf16.mxu1 %v2391_v1 }
  0x5c   : > { %2175 = vmatmul.mubr.msk.bf16.gmra.mrb[32].mxu0 %vm286_vm2, %v867_v39  ;;  %v1514_v39 = vrot.slane %v1938_v34, 3  ;;  %v1347_v43 = vrot.slane %v1345_v37, 2 }
  0x5d   : > { %2178 = vmatprep.mubr.msk.bf16.mxu0 %vm2392_vm0, %v2391_v1  ;;  %2223 = vmatpush3.bf16.msra.mxu0 %v2362_v42  ;;  %v1342_v42 = vrot.slane %v1340_v36, 3 }
  0x5e   : > { %2224 = vmatprep.subr.bf16.mxu0 %v2391_v1  ;;  %2193 = vmatpush3.bf16.msra.mxu1 %v2357_v45  ;;  %v1516_v45 = vsel %vm1513_vm6, %v1514_v39, %v1515_v40  ;;  %v1351_v47 = vor.u32 %v1350_v44, %v1347_v43 }
  0x5f   : > { %2194 = vmatprep.subr.bf16.mxu1 %v2391_v1  ;;  %v1343_v46 = vor.u32 %v1342_v42, %v1339_v41 }
  0x61   : > { %2225 = vmatpush3.bf16.msra.mxu0 %v2366_v49  ;;  %2147 = vmatmul.mubr.msk.bf16.gmra.mrb[36].mxu1 %vm286_vm2, %v672_v50  ;;  %v1357_v49 = vshll.u32 %v2739_v12, 16  ;;  %v1517_v50 = vrot.slane %v2739_v12, 3 }
  0x62   : > { %2274 = vmatprep.subr.bf16.mxu0 %v2391_v1  ;;  %2150 = vmatprep.mubr.msk.bf16.mxu1 %vm2392_vm0, %v2391_v1 }
  0x63   : > { %2195 = vmatpush3.bf16.msra.mxu1 %v2361_v51  ;;  %v1352_v51 = vsel %vm1335_vm7, %v1343_v46, %v1351_v47  ;;  %v1359_v54 = vrot.slane %v1357_v49, 3  ;;  %v1518_v55 = vsel %vm1513_vm6, %v1515_v40, %v1517_v50  ;;  %v1520_v4 = vsel %vm1513_vm6, %v1517_v50, %v1519_v53 }
  0x64   : > { %2179 = vmatmul.mubr.msk.bf16.gmra.mrb[36].mxu0 %vm286_vm2, %v876_v52  ;;  %2196 = vmatprep.subr.bf16.mxu1 %v2391_v1  ;;  %v1356_v52 = vrot.slane %v1354_v48, 2 }
  0x65   : > { %2182 = vmatprep.mubr.msk.bf16.mxu0 %vm2392_vm0, %v2391_v1 }
  0x67   : > { %2197 = vmatpush3.bf16.msra.mxu1 %v2365_v57  ;;  %v1360_v57 = vor.u32 %v1359_v54, %v1356_v52 }
  0x68   : > { %2246 = vmatprep.subr.bf16.mxu1 %v2391_v1 }
  0x69   : > { %2151 = vmatmul.mubr.msk.bf16.gmra.mrb[40].mxu1 %vm286_vm2, %v674_v61  ;;  %v1366_v61 = vshll.u32 %v2761_v16, 16  ;;  %v1361_v58 = vsel %vm1335_vm7, %v1351_v47, %v1360_v57 }
  0x6a   : > { %2154 = vmatprep.mubr.msk.bf16.mxu1 %vm2392_vm0, %v2391_v1 }
  0x6b   : > { %v1368_v3 = vrot.slane %v1366_v61, 3 }
  0x6c   : > { %2183 = vmatmul.mubr.msk.bf16.gmra.mrb[40].mxu0 %vm286_vm2, %v885_v63  ;;  %v1322_v63 = vld [vmem:[%s2449_s25 + $0x2c] sm:$0x3] }
  0x6d   : > { %2186 = vmatprep.mubr.msk.bf16.mxu0 %vm2392_vm0, %v2391_v1  ;;  %v1920_v0 = vcombine.low %v2783_v22, %v1322_v63 }
  0x6f   : > { %v1372_v9 = vshrl.u32 %v1920_v0, 16 }
  0x71   : > { %2155 = vmatmul.mubr.msk.bf16.gmra.mrb[44].mxu1 %vm286_vm2, %v2583_v62  ;;  %v2371_v62 = vld [vmem:[%s2935_s1 + $0x100] sm:$0xff]  }
  0x72   : > { %2158 = vmatprep.mubr.msk.bf16.mxu1 %vm2392_vm0, %v2391_v1 }
  0x74   : > { %2187 = vmatmul.mubr.msk.bf16.gmra.mrb[44].mxu0 %vm286_vm2, %v884_v60  ;;  %v1363_v60 = vshrl.u32 %v2761_v16, 16 }
  0x75   : > { %2226 = vmatprep.mubr.msk.bf16.mxu0 %vm2392_vm0, %v2391_v1 }
  0x76   : > { %v1365_v2 = vrot.slane %v1363_v60, 2 }
  0x78   : > { %v1369_v8 = vor.u32 %v1368_v3, %v1365_v2 }
  0x79   : > { %2159 = vmatmul.mubr.msk.bf16.gmra.mrb[48].mxu1 %vm286_vm2, %v675_v59  ;;  %v1022_v59 = vsel %vm1019_vm5, %v1020_v13, %v1021_v14  ;;  %v1374_v13 = vrot.slane %v1372_v9, 2 }
  0x7a   : > { %2198 = vmatprep.mubr.msk.bf16.mxu1 %vm2392_vm0, %v2391_v1  ;;  %v1370_v12 = vsel %vm1335_vm7, %v1360_v57, %v1369_v8 }
  0x7c   : > { %2227 = vmatmul.mubr.msk.bf16.vlgmr.msra.gmra.mrb[48].mxu0 %vm286_vm2, %v1195_v11  ;;  %v1375_v11 = vshll.u32 %v1920_v0, 16 }
  0x7d   : > { %2275 = vmatpush3.bf16.msra.mxu0 %v2371_v62  ;;  %2230 = vmatprep.mubr.msk.bf16.mxu0 %vm2392_vm0, %v2391_v1  ;;  %v1521_v62 = vrot.slane %v1920_v0, 3 }
  0x7e   : > { %2276 = vmatprep.subr.bf16.mxu0 %v2391_v1  ;;  %v1377_v14 = vrot.slane %v1375_v11, 3 }
  0x7f   : > { %v1522_v7 = vsel %vm1513_vm6, %v1519_v53, %v1521_v62 }
  0x81   : > { %2277 = vmatpush3.bf16.msra.mxu0 %v2374_v56  ;;  %2199 = vmatmul.mubr.msk.bf16.vlgmr.msra.gmra.mrb[52].mxu1 %vm286_vm2, %v1022_v59  ;;  %v1378_v56 = vor.u32 %v1377_v14, %v1374_v13 }
  0x82   : > { %2278 = vmatprep.subr.bf16.mxu0 %v2391_v1  ;;  %2247 = vmatpush3.bf16.msra.mxu1 %v2370_v10 }
  0x83   : > { %2202 = vmatprep.mubr.msk.bf16.mxu1 %vm2392_vm0, %v2391_v1  ;;  %2248 = vmatprep.subr.bf16.mxu1 %v2391_v1  ;;  %v1379_v59 = vsel %vm1335_vm7, %v1369_v8, %v1378_v56 }
  0x84   : > { %2231 = vmatmul.mubr.msk.bf16.gmra.mrb[52].mxu0 %vm286_vm2, %v1197_v15 }
  0x85   : > { %2234 = vmatprep.mubr.msk.bf16.mxu0 %vm2392_vm0, %v2391_v1  ;;  %2279 = vmatpush3.bf16.msra.mxu0 %v2377_v5 }
  0x86   : > { %2280 = vmatprep.subr.bf16.mxu0 %v2391_v1  ;;  %2249 = vmatpush3.bf16.msra.mxu1 %v2373_v19 }
  0x87   : > { %2250 = vmatprep.subr.bf16.mxu1 %v2391_v1 }
  0x89   : > { %2281 = vmatpush3.bf16.msra.mxu0 %v2381_v21  ;;  %2203 = vmatmul.mubr.msk.bf16.gmra.mrb[56].mxu1 %vm286_vm2, %v1024_v23 }
  0x8a   : > { %2206 = vmatprep.mubr.msk.bf16.mxu1 %vm2392_vm0, %v2391_v1  ;;  %2251 = vmatpush3.bf16.msra.mxu1 %v2376_v24 }
  0x8b   : > { %2252 = vmatprep.subr.bf16.mxu1 %v2391_v1 }
  0x8c   : > { %2235 = vmatmul.mubr.msk.bf16.gmra.mrb[56].mxu0 %vm286_vm2, %v1199_v25 }
  0x8d   : > { %2238 = vmatprep.mubr.msk.bf16.mxu0 %vm2392_vm0, %v2391_v1 }
  0x8e   : > { %2253 = vmatpush3.bf16.msra.mxu1 %v2380_v27 }
  0x91   : > { %2207 = vmatmul.mubr.msk.bf16.gmra.mrb[60].mxu1 %vm286_vm2, %v1026_v30 }
  0x92   : > { %2210 = vmatprep.mubr.msk.bf16.mxu1 %vm2392_vm0, %v2391_v1 }
  0x94   : > { %2239 = vmatmul.mubr.msk.bf16.gmra.mrb[60].mxu0 %vm286_vm2, %v1201_v31 }
  0x95   : > { %2242 = vmatprep.mubr.msk.bf16.mxu0 %vm2392_vm0, %v2391_v1 }
  0x99   : > { %2211 = vmatmul.mubr.msk.bf16.gmra.mrb[64].mxu1 %vm286_vm2, %v1028_v33 }
  0x9a   : > { %2214 = vmatprep.mubr.msk.bf16.mxu1 %vm2392_vm0, %v2391_v1 }
  0x9c   : > { %2243 = vmatmul.mubr.msk.bf16.gmra.mrb[64].mxu0 %vm286_vm2, %v1200_v28 }
  0x9d   : > { %2282 = vmatprep.mubr.msk.bf16.mxu0 %vm2392_vm0, %v2391_v1 }
  0xa1   : > { %2215 = vmatmul.mubr.msk.bf16.gmra.mrb[68].mxu1 %vm286_vm2, %v1027_v29 }
  0xa2   : > { %2254 = vmatprep.mubr.msk.bf16.mxu1 %vm2392_vm0, %v2391_v1 }
  0xa4   : > { %2283 = vmatmul.mubr.msk.bf16.vlgmr.msra.gmra.mrb[68].mxu0 %vm286_vm2, %v1516_v45 }
  0xa5   : > { %2286 = vmatprep.mubr.msk.bf16.mxu0 %vm2392_vm0, %v2391_v1 }
  0xa9   : > { %2255 = vmatmul.mubr.msk.bf16.vlgmr.msra.gmra.mrb[72].mxu1 %vm286_vm2, %v1352_v51 }
  0xaa   : > { %2258 = vmatprep.mubr.msk.bf16.mxu1 %vm2392_vm0, %v2391_v1 }
  0xac   : > { %2287 = vmatmul.mubr.msk.bf16.gmra.mrb[72].mxu0 %vm286_vm2, %v1518_v55 }
  0xad   : > { %2290 = vmatprep.mubr.msk.bf16.mxu0 %vm2392_vm0, %v2391_v1 }
  0xb1   : > { %2259 = vmatmul.mubr.msk.bf16.gmra.mrb[76].mxu1 %vm286_vm2, %v1361_v58 }
  0xb2   : > { %2262 = vmatprep.mubr.msk.bf16.mxu1 %vm2392_vm0, %v2391_v1 }
  0xb4   : > { %2291 = vmatmul.mubr.msk.bf16.gmra.mrb[76].mxu0 %vm286_vm2, %v1520_v4 }
  0xb5   : > { %2294 = vmatprep.mubr.msk.bf16.mxu0 %vm2392_vm0, %v2391_v1 }
  0xb9   : > { %2263 = vmatmul.mubr.msk.bf16.gmra.mrb[80].mxu1 %vm286_vm2, %v1370_v12 }
  0xba   : > { %2266 = vmatprep.mubr.msk.bf16.mxu1 %vm2392_vm0, %v2391_v1 }
  0xbc   : > { %2295 = vmatmul.mubr.msk.bf16.gmra.mrb[80].mxu0 %vm286_vm2, %v1522_v7 }
  0xbd   : > { %2298 = vmatprep.mubr.msk.bf16.mxu0 %vm2392_vm0, %v2391_v1 }
  0xc1   : > { %2267 = vmatmul.mubr.msk.bf16.gmra.mrb[84].mxu1 %vm286_vm2, %v1379_v59 }
  0xc2   : > { %2270 = vmatprep.mubr.msk.bf16.mxu1 %vm2392_vm0, %v2391_v1 }
  0xc4   : > { %2299 = vmatmul.mubr.msk.bf16.gmra.mrb[84].mxu0 %vm286_vm2, %v1521_v62 }
  0xc9   : > { %2271 = vmatmul.mubr.msk.bf16.gmra.mrb[88].mxu1 %vm286_vm2, %v1378_v56 }
  0xec   : > { %v352_v10 = vpop.f32.mrb[0].mxu1 }
  0xed   : > { %v2068_v15 = vpop.f32.mrb[1].mxu1 }
  0xee   : > { %v355_v16 = vpop.f32.mrb[2].mxu1 }
  0xef   : > { %v336_v5 = vpop.f32.mrb[0].mxu0  ;;  %v2069_v17 = vpop.f32.mrb[3].mxu1 }
  0xf0   : > { %v2060_v19 = vpop.f32.mrb[1].mxu0 }
  0xf1   : > { %v339_v20 = vpop.f32.mrb[2].mxu0 }
  0xf2   : > { %v2061_v21 = vpop.f32.mrb[3].mxu0 }
  0xf4   : > { %v360_v22 = vpop.f32.mrb[4].mxu1 }
  0xf5   : > { %v2072_v18 = vpop.f32.mrb[5].mxu1 }
  0xf6   : > { %v363_v23 = vpop.f32.mrb[6].mxu1 }
  0xf7   : > { %v344_v24 = vpop.f32.mrb[4].mxu0  ;;  %v2073_v25 = vpop.f32.mrb[7].mxu1 }
  0xf8   : > { %v2064_v6 = vpop.f32.mrb[5].mxu0 }
  0xf9   : > { %v347_v26 = vpop.f32.mrb[6].mxu0 }
  0xfa   : > { %v2065_v1 = vpop.f32.mrb[7].mxu0 }
  0xfc   : > { %v368_v27 = vpop.f32.mrb[8].mxu1 }
  0xfd   : > { %v2076_v28 = vpop.f32.mrb[9].mxu1 }
  0xfe   : > { %v371_v30 = vpop.f32.mrb[10].mxu1 }
  0xff   : > { %v580_v31 = vpop.f32.mrb[8].mxu0  ;;  %v2077_v29 = vpop.f32.mrb[11].mxu1 }
 0x100   : > { %v2116_v32 = vpop.f32.mrb[9].mxu0 }
 0x101   : > { %v583_v33 = vpop.f32.mrb[10].mxu0 }
 0x102   : > { %v2117_v34 = vpop.f32.mrb[11].mxu0 }
 0x104   : > { %v446_v35 = vpop.f32.mrb[12].mxu1 }
 0x105   : > { %v447_v36 = vadd.f32 %v446_v35, %v336_v5  ;;  %v2088_v37 = vpop.f32.mrb[13].mxu1 }
 0x106   : > { %v449_v38 = vpop.f32.mrb[14].mxu1 }
 0x107   : > { %v588_v39 = vpop.f32.mrb[12].mxu0  ;;  %v618_v40 = vadd.f32 %v580_v31, %v447_v36  ;;  %v450_v41 = vadd.f32 %v449_v38, %v339_v20  ;;  %v2089_v42 = vpop.f32.mrb[15].mxu1 }
 0x108   : > { %v2120_v43 = vpop.f32.mrb[13].mxu0 }
 0x109   : > { %v591_v44 = vpop.f32.mrb[14].mxu0  ;;  %v619_v45 = vadd.f32 %v583_v33, %v450_v41 }
 0x10a   : > { %v2121_v46 = vpop.f32.mrb[15].mxu0 }
 0x10c   : > { %v454_v47 = vpop.f32.mrb[16].mxu1 }
 0x10d   : > { %v455_v48 = vadd.f32 %v454_v47, %v344_v24  ;;  %v2092_v49 = vpop.f32.mrb[17].mxu1 }
 0x10e   : > { %v457_v50 = vpop.f32.mrb[18].mxu1 }
 0x10f   : > { %v596_v51 = vpop.f32.mrb[16].mxu0  ;;  %v620_v52 = vadd.f32 %v588_v39, %v455_v48  ;;  %v458_v54 = vadd.f32 %v457_v50, %v347_v26  ;;  %v2093_v55 = vpop.f32.mrb[19].mxu1 }
 0x110   : > { %v2124_v57 = vpop.f32.mrb[17].mxu0 }
 0x111   : > { %v599_v60 = vpop.f32.mrb[18].mxu0  ;;  %v621_v61 = vadd.f32 %v591_v44, %v458_v54 }
 0x112   : > { %v2125_v63 = vpop.f32.mrb[19].mxu0 }
 0x114   : > { %v462_v53 = vpop.f32.mrb[20].mxu1 }
 0x115   : > { %v463_v0 = vadd.f32 %v462_v53, %v352_v10  ;;  %v2096_v58 = vpop.f32.mrb[21].mxu1 }
 0x116   : > { %v465_v2 = vpop.f32.mrb[22].mxu1 }
 0x117   : > { %v604_v3 = vpop.f32.mrb[20].mxu0  ;;  %v622_v4 = vadd.f32 %v596_v51, %v463_v0  ;;  %v466_v8 = vadd.f32 %v465_v2, %v355_v16  ;;  %v2097_v9 = vpop.f32.mrb[23].mxu1 }
 0x118   : > { %v2128_v11 = vpop.f32.mrb[21].mxu0 }
 0x119   : > { %v607_v62 = vpop.f32.mrb[22].mxu0  ;;  %v623_v12 = vadd.f32 %v599_v60, %v466_v8 }
 0x11a   : > { %v2129_v13 = vpop.f32.mrb[23].mxu0 }
 0x11c   : > { %v470_v14 = vpop.f32.mrb[24].mxu1 }
 0x11d   : > { %v471_v7 = vadd.f32 %v470_v14, %v360_v22  ;;  %v2100_v56 = vpop.f32.mrb[25].mxu1 }
 0x11e   : > { %v473_v59 = vpop.f32.mrb[26].mxu1 }
 0x11f   : > { %v612_v15 = vpop.f32.mrb[24].mxu0  ;;  %v624_v5 = vadd.f32 %v604_v3, %v471_v7  ;;  %v474_v17 = vadd.f32 %v473_v59, %v363_v23  ;;  %v2101_v19 = vpop.f32.mrb[27].mxu1 }
 0x120   : > { %v2132_v20 = vpop.f32.mrb[25].mxu0 }
 0x121   : > { %v615_v10 = vpop.f32.mrb[26].mxu0  ;;  %v625_v21 = vadd.f32 %v607_v62, %v474_v17 }
 0x122   : > { %v2133_v18 = vpop.f32.mrb[27].mxu0 }
 0x124   : > { %v478_v24 = vpop.f32.mrb[28].mxu1 }
 0x125   : > { %v479_v25 = vadd.f32 %v478_v24, %v368_v27  ;;  %v2104_v16 = vpop.f32.mrb[29].mxu1 }
 0x126   : > { %v481_v6 = vpop.f32.mrb[30].mxu1 }
 0x127   : > { %v959_v26 = vpop.f32.mrb[28].mxu0  ;;  %v626_v1 = vadd.f32 %v612_v15, %v479_v25  ;;  %v2105_v28 = vpop.f32.mrb[31].mxu1 }
 0x128   : > { %v2172_v30 = vpop.f32.mrb[29].mxu0 }
 0x129   : > { %v962_v31 = vpop.f32.mrb[30].mxu0 }
 0x12a   : > { %v2173_v22 = vpop.f32.mrb[31].mxu0 }
 0x12c   : > { %v750_v29 = vpop.f32.mrb[32].mxu1 }
 0x12d   : > { %v788_v32 = vadd.f32 %v750_v29, %v618_v40  ;;  %v2144_v33 = vpop.f32.mrb[33].mxu1 }
 0x12e   : > { %v753_v34 = vpop.f32.mrb[34].mxu1 }
 0x12f   : > { %v967_v23 = vpop.f32.mrb[32].mxu0  ;;  %v997_v35 = vadd.f32 %v959_v26, %v788_v32  ;;  %v789_v36 = vadd.f32 %v753_v34, %v619_v45  ;;  %v2145_v37 = vpop.f32.mrb[35].mxu1 }
 0x130   : > { %v2176_v38 = vpop.f32.mrb[33].mxu0 }
 0x131   : > { %v970_v39 = vpop.f32.mrb[34].mxu0  ;;  %v998_v41 = vadd.f32 %v962_v31, %v789_v36 }
 0x132   : > { %v2177_v27 = vpop.f32.mrb[35].mxu0 }
 0x134   : > { %v758_v42 = vpop.f32.mrb[36].mxu1 }
 0x135   : > { %v790_v43 = vadd.f32 %v758_v42, %v620_v52  ;;  %v2148_v44 = vpop.f32.mrb[37].mxu1 }
 0x136   : > { %v761_v46 = vpop.f32.mrb[38].mxu1 }
 0x137   : > { %v975_v47 = vpop.f32.mrb[36].mxu0  ;;  %v999_v48 = vadd.f32 %v967_v23, %v790_v43  ;;  %v791_v49 = vadd.f32 %v761_v46, %v621_v61  ;;  %v2149_v50 = vpop.f32.mrb[39].mxu1 }
 0x138   : > { %v2180_v51 = vpop.f32.mrb[37].mxu0 }
 0x139   : > { %v978_v40 = vpop.f32.mrb[38].mxu0  ;;  %v1000_v54 = vadd.f32 %v970_v39, %v791_v49 }
 0x13a   : > { %v2181_v55 = vpop.f32.mrb[39].mxu0 }
 0x13c   : > { %v766_v57 = vpop.f32.mrb[40].mxu1 }
 0x13d   : > { %v792_v60 = vadd.f32 %v766_v57, %v622_v4  ;;  %v2152_v45 = vpop.f32.mrb[41].mxu1 }
 0x13e   : > { %v769_v63 = vpop.f32.mrb[42].mxu1 }
 0x13f   : > { %v983_v53 = vpop.f32.mrb[40].mxu0  ;;  %v1001_v0 = vadd.f32 %v975_v47, %v792_v60  ;;  %v793_v58 = vadd.f32 %v769_v63, %v623_v12  ;;  %v2153_v2 = vpop.f32.mrb[43].mxu1 }
 0x140   : > { %v2184_v3 = vpop.f32.mrb[41].mxu0 }
 0x141   : > { %v986_v52 = vpop.f32.mrb[42].mxu0  ;;  %v1002_v8 = vadd.f32 %v978_v40, %v793_v58 }
 0x142   : > { %v2185_v9 = vpop.f32.mrb[43].mxu0 }
 0x144   : > { %v774_v11 = vpop.f32.mrb[44].mxu1 }
 0x145   : > { %v794_v62 = vadd.f32 %v774_v11, %v624_v5  ;;  %v2156_v61 = vpop.f32.mrb[45].mxu1 }
 0x146   : > { %v777_v13 = vpop.f32.mrb[46].mxu1 }
 0x147   : > { %v991_v14 = vpop.f32.mrb[44].mxu0  ;;  %v1003_v7 = vadd.f32 %v983_v53, %v794_v62  ;;  %v795_v56 = vadd.f32 %v777_v13, %v625_v21  ;;  %v2157_v59 = vpop.f32.mrb[47].mxu1 }
 0x148   : > { %v2188_v15 = vpop.f32.mrb[45].mxu0 }
 0x149   : > { %v994_v4 = vpop.f32.mrb[46].mxu0  ;;  %v1004_v17 = vadd.f32 %v986_v52, %v795_v56 }
 0x14a   : > { %v2189_v19 = vpop.f32.mrb[47].mxu0 }
 0x14c   : > { %v782_v20 = vpop.f32.mrb[48].mxu1 }
 0x14d   : > { %v796_v10 = vadd.f32 %v782_v20, %v626_v1  ;;  %v2160_v12 = vpop.f32.mrb[49].mxu1 }
 0x14e   : > { %v785_v18 = vpop.f32.mrb[50].mxu1 }
 0x14f   : > { %v1275_v24 = vpop.f32.mrb[48].mxu0  ;;  %v1005_v25 = vadd.f32 %v991_v14, %v796_v10  ;;  %v2161_v16 = vpop.f32.mrb[51].mxu1 }
 0x150   : > { %v2228_v6 = vpop.f32.mrb[49].mxu0 }
 0x151   : > { %v1278_v26 = vpop.f32.mrb[50].mxu0 }
 0x152   : > { %v2229_v5 = vpop.f32.mrb[51].mxu0 }
 0x154   : > { %v1102_v28 = vpop.f32.mrb[52].mxu1 }
 0x155   : > { %v1140_v30 = vadd.f32 %v1102_v28, %v997_v35  ;;  %v2200_v31 = vpop.f32.mrb[53].mxu1 }
 0x156   : > { %v1105_v22 = vpop.f32.mrb[54].mxu1 }
 0x157   : > { %v1283_v21 = vpop.f32.mrb[52].mxu0  ;;  %v1313_v29 = vadd.f32 %v1275_v24, %v1140_v30  ;;  %v1141_v32 = vadd.f32 %v1105_v22, %v998_v41  ;;  %v2201_v33 = vpop.f32.mrb[55].mxu1 }
 0x158   : > { %v2232_v34 = vpop.f32.mrb[53].mxu0 }
 0x159   : > { %v1286_v23 = vpop.f32.mrb[54].mxu0  ;;  %v1314_v36 = vadd.f32 %v1278_v26, %v1141_v32  ;;  %v2890_v26 = vld [vmem:[%s2936_s2] ss:$0 sm:$0xff] }
 0x15a   : > { %v2233_v1 = vpop.f32.mrb[55].mxu0 }
 0x15c   : > { %v1110_v37 = vpop.f32.mrb[56].mxu1 }
 0x15d   : > { %v1142_v38 = vadd.f32 %v1110_v37, %v999_v48  ;;  %v2204_v39 = vpop.f32.mrb[57].mxu1 }
 0x15e   : > { %v1113_v27 = vpop.f32.mrb[58].mxu1 }
 0x15f   : > { %v1291_v42 = vpop.f32.mrb[56].mxu0  ;;  %v2873_v43 = vadd.f32 %v1283_v21, %v1142_v38  ;;  %v1143_v44 = vadd.f32 %v1113_v27, %v1000_v54  ;;  %v2205_v46 = vpop.f32.mrb[59].mxu1 }
 0x160   : > { %v2236_v35 = vpop.f32.mrb[57].mxu0 }
 0x161   : > { %v1294_v47 = vpop.f32.mrb[58].mxu0  ;;  %v2875_v49 = vadd.f32 %v1286_v23, %v1143_v44 }
 0x162   : > { %v2237_v50 = vpop.f32.mrb[59].mxu0 }
 0x164   : > { %v1118_v41 = vpop.f32.mrb[60].mxu1 }
 0x165   : > { %v1144_v51 = vadd.f32 %v1118_v41, %v1001_v0  ;;  %v2208_v40 = vpop.f32.mrb[61].mxu1 }
 0x166   : > { %v1121_v55 = vpop.f32.mrb[62].mxu1 }
 0x167   : > { %v1299_v57 = vpop.f32.mrb[60].mxu0  ;;  %v2877_v60 = vadd.f32 %v1291_v42, %v1144_v51  ;;  %v1145_v48 = vadd.f32 %v1121_v55, %v1002_v8  ;;  %v2209_v45 = vpop.f32.mrb[63].mxu1 }
 0x168   : > { %v2240_v63 = vpop.f32.mrb[61].mxu0 }
 0x169   : > { %v1302_v53 = vpop.f32.mrb[62].mxu0  ;;  %v2879_v58 = vadd.f32 %v1294_v47, %v1145_v48 }
 0x16a   : > { %v2241_v54 = vpop.f32.mrb[63].mxu0 }
 0x16c   : > { %v1126_v2 = vpop.f32.mrb[64].mxu1 }
 0x16d   : > { %v1146_v3 = vadd.f32 %v1126_v2, %v1003_v7  ;;  %v2212_v52 = vpop.f32.mrb[65].mxu1 }
 0x16e   : > { %v1129_v9 = vpop.f32.mrb[66].mxu1 }
 0x16f   : > { %v1307_v11 = vpop.f32.mrb[64].mxu0  ;;  %v2881_v62 = vadd.f32 %v1299_v57, %v1146_v3  ;;  %v1147_v0 = vadd.f32 %v1129_v9, %v1004_v17  ;;  %v2213_v61 = vpop.f32.mrb[67].mxu1 }
 0x170   : > { %v2244_v13 = vpop.f32.mrb[65].mxu0 }
 0x171   : > { %v1310_v14 = vpop.f32.mrb[66].mxu0  ;;  %v2883_v56 = vadd.f32 %v1302_v53, %v1147_v0 }
 0x172   : > { %v2245_v8 = vpop.f32.mrb[67].mxu0 }
 0x174   : > { %v1134_v59 = vpop.f32.mrb[68].mxu1 }
 0x175   : > { %v1148_v15 = vadd.f32 %v1134_v59, %v1005_v25  ;;  %v2216_v4 = vpop.f32.mrb[69].mxu1 }
 0x176   : > { %v1137_v19 = vpop.f32.mrb[70].mxu1 }
 0x177   : > { %v1596_v20 = vpop.f32.mrb[68].mxu0  ;;  %v2885_v10 = vadd.f32 %v1307_v11, %v1148_v15  ;;  %v2217_v7 = vpop.f32.mrb[71].mxu1 }
 0x178   : > { %v2284_v12 = vpop.f32.mrb[69].mxu0 }
 0x179   : > { %v1599_v18 = vpop.f32.mrb[70].mxu0 }
 0x17a   : > { %v2285_v24 = vpop.f32.mrb[71].mxu0 }
 0x17c   : > { %v1453_v16 = vpop.f32.mrb[72].mxu1 }
 0x17d   : > { %v1491_v17 = vadd.f32 %v1453_v16, %v1313_v29  ;;  %v2256_v6 = vpop.f32.mrb[73].mxu1 }
 0x17e   : > { %v1456_v5 = vpop.f32.mrb[74].mxu1 }
 0x17f   : > { %v1604_v25 = vpop.f32.mrb[72].mxu0  ;;  %v1634_v28 = vadd.f32 %v1596_v20, %v1491_v17  ;;  %v1492_v30 = vadd.f32 %v1456_v5, %v1314_v36  ;;  %v2257_v31 = vpop.f32.mrb[75].mxu1 }
 0x180   : > { %v2288_v22 = vpop.f32.mrb[73].mxu0 }
 0x181   : > { %v1607_v21 = vpop.f32.mrb[74].mxu0  ;;  %v1650_v32 = vadd.f32 %v2890_v26, %v1634_v28  ;;  %v1635_v33 = vadd.f32 %v1599_v18, %v1492_v30 }
 0x182   : > { %v2289_v34 = vpop.f32.mrb[75].mxu0 }
 0x183   : > { %v1659_v23 = vmax.f32 %v1650_v32, 0.0  ;;  %v1651_v29 = vadd.f32 %v2890_v26, %v1635_v33 }
 0x184   : > { %v1461_v36 = vpop.f32.mrb[76].mxu1 }
 0x185   : > { %v1960_v1 = vpack.c.bf16 %v1659_v23, %v1659_v23  ;;  %v1660_v37 = vmax.f32 %v1651_v29, 0.0  ;;  %v1493_v38 = vadd.f32 %v1461_v36, %v2873_v43  ;;  %v2260_v39 = vpop.f32.mrb[77].mxu1 }
 0x186   : > { %v1464_v27 = vpop.f32.mrb[78].mxu1 }
 0x187   : > { %v1612_v42 = vpop.f32.mrb[76].mxu0  ;;  %1706 = vst.msk [vmem:[%s2898_s21] sm:$0xf] %vm1705_vm8, %v1960_v1  ;;  %v1961_v44 = vpack.c.bf16 %v1660_v37, %v1660_v37  ;;  %v1636_v46 = vadd.f32 %v1604_v25, %v1493_v38  ;;  %v1494_v35 = vadd.f32 %v1464_v27, %v2875_v49  ;;  %v2261_v47 = vpop.f32.mrb[79].mxu1 }
 0x188   : > { %v2292_v50 = vpop.f32.mrb[77].mxu0 }
 0x189   : > { %v1615_v41 = vpop.f32.mrb[78].mxu0  ;;  %1707 = vst.msk [vmem:[%s2898_s21 + $0x4] sm:$0xf] %vm1705_vm8, %v1961_v44  ;;  %v1652_v51 = vadd.f32 %v2890_v26, %v1636_v46  ;;  %v1637_v40 = vadd.f32 %v1607_v21, %v1494_v35 }
 0x18a   : > { %v2293_v55 = vpop.f32.mrb[79].mxu0 }
 0x18b   : > { %v1661_v43 = vmax.f32 %v1652_v51, 0.0  ;;  %v1653_v57 = vadd.f32 %v2890_v26, %v1637_v40 }
 0x18c   : > { %v1469_v48 = vpop.f32.mrb[80].mxu1 }
 0x18d   : > { %v1962_v45 = vpack.c.bf16 %v1661_v43, %v1661_v43  ;;  %v1662_v63 = vmax.f32 %v1653_v57, 0.0  ;;  %v1495_v53 = vadd.f32 %v1469_v48, %v2877_v60  ;;  %v2264_v49 = vpop.f32.mrb[81].mxu1 }
 0x18e   : > { %v1472_v54 = vpop.f32.mrb[82].mxu1 }
 0x18f   : > { %v1620_v2 = vpop.f32.mrb[80].mxu0  ;;  %1708 = vst.msk [vmem:[%s2898_s21 + $0x8] sm:$0xf] %vm1705_vm8, %v1962_v45  ;;  %v1963_v3 = vpack.c.bf16 %v1662_v63, %v1662_v63  ;;  %v1638_v52 = vadd.f32 %v1612_v42, %v1495_v53  ;;  %v1496_v9 = vadd.f32 %v1472_v54, %v2879_v58  ;;  %v2265_v11 = vpop.f32.mrb[83].mxu1 }
 0x190   : > { %v2296_v0 = vpop.f32.mrb[81].mxu0 }
 0x191   : > { %v1623_v61 = vpop.f32.mrb[82].mxu0  ;;  %1709 = vst.msk [vmem:[%s2898_s21 + $0xc] sm:$0xf] %vm1705_vm8, %v1963_v3  ;;  %v1654_v13 = vadd.f32 %v2890_v26, %v1638_v52  ;;  %v1639_v14 = vadd.f32 %v1615_v41, %v1496_v9 }
 0x192   : > { %v2297_v8 = vpop.f32.mrb[83].mxu0 }
 0x193   : > { %v1663_v60 = vmax.f32 %v1654_v13, 0.0  ;;  %v1655_v59 = vadd.f32 %v2890_v26, %v1639_v14 }
 0x194   : > { %v1477_v15 = vpop.f32.mrb[84].mxu1 }
 0x195   : > { %v1964_v4 = vpack.c.bf16 %v1663_v60, %v1663_v60  ;;  %v1664_v19 = vmax.f32 %v1655_v59, 0.0  ;;  %v1497_v20 = vadd.f32 %v1477_v15, %v2881_v62  ;;  %v2268_v58 = vpop.f32.mrb[85].mxu1 }
 0x196   : > { %v1480_v7 = vpop.f32.mrb[86].mxu1 }
 0x197   : > { %v1628_v12 = vpop.f32.mrb[84].mxu0  ;;  %1710 = vst.msk [vmem:[%s2898_s21 + $0x10] sm:$0xf] %vm1705_vm8, %v1964_v4  ;;  %v1965_v18 = vpack.c.bf16 %v1664_v19, %v1664_v19  ;;  %v1640_v24 = vadd.f32 %v1620_v2, %v1497_v20  ;;  %v1498_v16 = vadd.f32 %v1480_v7, %v2883_v56  ;;  %v2269_v17 = vpop.f32.mrb[87].mxu1 }
 0x198   : > { %v2300_v6 = vpop.f32.mrb[85].mxu0 }
 0x199   : > { %v1631_v5 = vpop.f32.mrb[86].mxu0  ;;  %1711 = vst.msk [vmem:[%s2898_s21 + $0x14] sm:$0xf] %vm1705_vm8, %v1965_v18  ;;  %v1656_v25 = vadd.f32 %v2890_v26, %v1640_v24  ;;  %v1641_v28 = vadd.f32 %v1623_v61, %v1498_v16 }
 0x19a   : > { %v2301_v62 = vpop.f32.mrb[87].mxu0 }
 0x19b   : > { %v1665_v30 = vmax.f32 %v1656_v25, 0.0  ;;  %v1657_v31 = vadd.f32 %v2890_v26, %v1641_v28 }
 0x19c   : > { %v1485_v22 = vpop.f32.mrb[88].mxu1 }
 0x19d   : > { %v1966_v21 = vpack.c.bf16 %v1665_v30, %v1665_v30  ;;  %v1666_v32 = vmax.f32 %v1657_v31, 0.0  ;;  %v1499_v56 = vadd.f32 %v1485_v22, %v2885_v10  ;;  %v2272_v33 = vpop.f32.mrb[89].mxu1 }
 0x19e   : > { %v1488_v34 = vpop.f32.mrb[90].mxu1 }
 0x19f   : > { %1712 = vst.msk [vmem:[%s2898_s21 + $0x18] sm:$0xf] %vm1705_vm8, %v1966_v21  ;;  %v1967_v23 = vpack.c.bf16 %v1666_v32, %v1666_v32  ;;  %v1642_v29 = vadd.f32 %v1628_v12, %v1499_v56  ;;  %v2273_v36 = vpop.f32.mrb[91].mxu1 }
 0x1a1   : > { %1713 = vst.msk [vmem:[%s2898_s21 + $0x1c] sm:$0xf] %vm1705_vm8, %v1967_v23  ;;  %v1658_v1 = vadd.f32 %v2890_v26, %v1642_v29 }
 0x1a3   : > { %v1667_v37 = vmax.f32 %v1658_v1, 0.0 }
 0x1a5   : > { %v1968_v38 = vpack.c.bf16 %v1667_v37, %v1667_v37 }
 0x1a7   : > { %1715 = vst.msk [vmem:[%s2898_s21 + $0x20] sm:$0x7] %vm1714_vm9, %v1968_v38 }
 0x1a8 PF: > { %s13_s12 = sadd.s32 1, %s2389_s12  }
 0x1a9   : > { %p10_p4 = scmp.ge.s32.totalorder %s13_s12, 4  }
 0x1ab   :  { %12 = sbr.rel (!%p10_p4) target bundleno = 1 (0x1), region = 70 }

// kernel: actor_critic_forward.7
= control target key start
LH: loop header
LB: loop body
LE: loop exit
PB: predicated region body
PF: predicated region fallthrough
CT: control target
= control target key end

     0   :  { %s15631_s1 = inlined_call_operand.vmem [shape: bf16[4480,512], index: 1, kind: input, shape index: {}]   ;;  %s15632_s0 = inlined_call_operand.vmem [shape: bf16[16,4480], index: 0, kind: input, shape index: {}]   ;;  %s15633_s3 = inlined_call_operand.vmem [shape: bf16[512,128], index: 3, kind: input, shape index: {}]   ;;  %s15634_s2 = inlined_call_operand.vmem [shape: f32[1,512], index: 2, kind: input, shape index: {}]   ;;  %s15635_s4 = inlined_call_operand.vmem [shape: f32[1,128], index: 4, kind: input, shape index: {}]   ;;  %s15636_s5 = inlined_call_operand.vmem [shape: f32[16,128], index: 5, kind: output, shape index: {}]  }
   0x1   :  { %v10263_v0 = vld [vmem:[%s15631_s1 + $0x4] ss:$16 sps:$4 sm:$0xff]   ;;  %v10265_v1 = vld [vmem:[%s15631_s1 + $0xc] ss:$16 sps:$4 sm:$0xff]   ;;  %v10267_v2 = vld [vmem:[%s15631_s1] ss:$16 sps:$4 sm:$0xff]  }
   0x2   :  { %6975 = vmatprep.subr.bf16.mxu0 %v10263_v0  ;;  %v10268_v3 = vld [vmem:[%s15631_s1 + $0x8] ss:$16 sps:$4 sm:$0xff]   ;;  %7749 = vmatprep.subr.bf16.mxu1 %v10265_v1  ;;  %v10269_v4 = vld [vmem:[%s15631_s1 + $0x24] ss:$16 sps:$4 sm:$0xff]   ;;  %v10271_v5 = vld [vmem:[%s15631_s1 + $0x2c] ss:$16 sps:$4 sm:$0xff]  }
   0x3   :  { %6976 = vmatpush1.bf16.msra.mxu0 %v10267_v2  ;;  %7750 = vmatpush1.bf16.msra.mxu1 %v10268_v3  ;;  %v10273_v6 = vld [vmem:[%s15631_s1 + $0x20] ss:$16 sps:$4 sm:$0xff]   ;;  %v10274_v7 = vld [vmem:[%s15631_s1 + $0x28] ss:$16 sps:$4 sm:$0xff]   ;;  %v10275_v8 = vld [vmem:[%s15631_s1 + $0x44] ss:$16 sps:$4 sm:$0xff]  }
   0x4   :  { %6977 = vmatprep.subr.bf16.mxu0 %v10269_v4  ;;  %7751 = vmatprep.subr.bf16.mxu1 %v10271_v5  ;;  %v10277_v9 = vld [vmem:[%s15631_s1 + $0x4c] ss:$16 sps:$4 sm:$0xff]   ;;  %v10279_v10 = vld [vmem:[%s15631_s1 + $0x40] ss:$16 sps:$4 sm:$0xff]   ;;  %v10280_v11 = vld [vmem:[%s15631_s1 + $0x48] ss:$16 sps:$4 sm:$0xff]  }
   0x5   :  { %v10281_v12 = vld [vmem:[%s15631_s1 + $0x64] ss:$16 sps:$4 sm:$0xff]   ;;  %v10283_v13 = vld [vmem:[%s15631_s1 + $0x6c] ss:$16 sps:$4 sm:$0xff]   ;;  %v10285_v14 = vld [vmem:[%s15631_s1 + $0x60] ss:$16 sps:$4 sm:$0xff]  }
   0x6   :  { %v10286_v15 = vld [vmem:[%s15631_s1 + $0x68] ss:$16 sps:$4 sm:$0xff]   ;;  %v10287_v16 = vld [vmem:[%s15631_s1 + $0x84] ss:$16 sps:$4 sm:$0xff]   ;;  %v10289_v17 = vld [vmem:[%s15631_s1 + $0x8c] ss:$16 sps:$4 sm:$0xff]  }
   0x7   :  { %6978 = vmatpush1.bf16.msra.mxu0 %v10273_v6  ;;  %7752 = vmatpush1.bf16.msra.mxu1 %v10274_v7  ;;  %v10291_v18 = vld [vmem:[%s15631_s1 + $0x80] ss:$16 sps:$4 sm:$0xff]   ;;  %v10292_v19 = vld [vmem:[%s15631_s1 + $0x88] ss:$16 sps:$4 sm:$0xff]   ;;  %v10293_v20 = vld [vmem:[%s15631_s1 + $0xa4] ss:$16 sps:$4 sm:$0xff]  }
   0x8   :  { %6979 = vmatprep.subr.bf16.mxu0 %v10275_v8  ;;  %7753 = vmatprep.subr.bf16.mxu1 %v10277_v9  ;;  %v10295_v21 = vld [vmem:[%s15631_s1 + $0xac] ss:$16 sps:$4 sm:$0xff]   ;;  %v10297_v22 = vld [vmem:[%s15631_s1 + $0xa0] ss:$16 sps:$4 sm:$0xff]   ;;  %v10298_v23 = vld [vmem:[%s15631_s1 + $0xa8] ss:$16 sps:$4 sm:$0xff]  }
   0x9   :  { %v10299_v24 = vld [vmem:[%s15631_s1 + $0xc4] ss:$16 sps:$4 sm:$0xff]   ;;  %v10301_v25 = vld [vmem:[%s15631_s1 + $0xcc] ss:$16 sps:$4 sm:$0xff]   ;;  %v10303_v26 = vld [vmem:[%s15631_s1 + $0xc0] ss:$16 sps:$4 sm:$0xff]  }
   0xa   :  { %v10304_v27 = vld [vmem:[%s15631_s1 + $0xc8] ss:$16 sps:$4 sm:$0xff]   ;;  %v10305_v28 = vld [vmem:[%s15631_s1 + $0xe4] ss:$16 sps:$4 sm:$0xff]   ;;  %v10307_v29 = vld [vmem:[%s15631_s1 + $0xec] ss:$16 sps:$4 sm:$0xff]  }
   0xb   :  { %6980 = vmatpush1.bf16.msra.mxu0 %v10279_v10  ;;  %7754 = vmatpush1.bf16.msra.mxu1 %v10280_v11  ;;  %v10309_v30 = vld [vmem:[%s15631_s1 + $0xe0] ss:$16 sps:$4 sm:$0xff]   ;;  %v10310_v31 = vld [vmem:[%s15631_s1 + $0xe8] ss:$16 sps:$4 sm:$0xff]   ;;  %v10311_v32 = vld [vmem:[%s15631_s1 + $0x104] ss:$16 sps:$4 sm:$0xff]  }
   0xc   :  { %6981 = vmatprep.subr.bf16.mxu0 %v10281_v12  ;;  %7755 = vmatprep.subr.bf16.mxu1 %v10283_v13  ;;  %v10313_v33 = vld [vmem:[%s15631_s1 + $0x10c] ss:$16 sps:$4 sm:$0xff]   ;;  %v10315_v34 = vld [vmem:[%s15631_s1 + $0x100] ss:$16 sps:$4 sm:$0xff]   ;;  %v10316_v35 = vld [vmem:[%s15631_s1 + $0x108] ss:$16 sps:$4 sm:$0xff]  }
   0xd   :  { %v10317_v36 = vld [vmem:[%s15631_s1 + $0x124] ss:$16 sps:$4 sm:$0xff]   ;;  %v10319_v37 = vld [vmem:[%s15631_s1 + $0x12c] ss:$16 sps:$4 sm:$0xff]   ;;  %v10321_v38 = vld [vmem:[%s15631_s1 + $0x120] ss:$16 sps:$4 sm:$0xff]  }
   0xe   :  { %v10322_v39 = vld [vmem:[%s15631_s1 + $0x128] ss:$16 sps:$4 sm:$0xff]   ;;  %v10323_v40 = vld [vmem:[%s15631_s1 + $0x144] ss:$16 sps:$4 sm:$0xff]   ;;  %v10325_v41 = vld [vmem:[%s15631_s1 + $0x14c] ss:$16 sps:$4 sm:$0xff]  }
   0xf   :  { %6982 = vmatpush1.bf16.msra.mxu0 %v10285_v14  ;;  %7756 = vmatpush1.bf16.msra.mxu1 %v10286_v15  ;;  %v10327_v42 = vld [vmem:[%s15631_s1 + $0x140] ss:$16 sps:$4 sm:$0xff]   ;;  %v10328_v43 = vld [vmem:[%s15631_s1 + $0x148] ss:$16 sps:$4 sm:$0xff]   ;;  %v10329_v44 = vld [vmem:[%s15631_s1 + $0x164] ss:$16 sps:$4 sm:$0xff]  }
  0x10   :  { %6983 = vmatprep.subr.bf16.mxu0 %v10287_v16  ;;  %7757 = vmatprep.subr.bf16.mxu1 %v10289_v17  ;;  %v10331_v45 = vld [vmem:[%s15631_s1 + $0x16c] ss:$16 sps:$4 sm:$0xff]   ;;  %v10333_v46 = vld [vmem:[%s15631_s1 + $0x160] ss:$16 sps:$4 sm:$0xff]   ;;  %v10334_v47 = vld [vmem:[%s15631_s1 + $0x168] ss:$16 sps:$4 sm:$0xff]  }
  0x11   :  { %v10361_v48 = vld [vmem:[%s15632_s0 + $0x4] ss:$140 sps:$4 sm:$0xff]   ;;  %v10337_v50 = vld [vmem:[%s15631_s1 + $0x18c] ss:$16 sps:$4 sm:$0xff]   ;;  %v10340_v52 = vld [vmem:[%s15631_s1 + $0x188] ss:$16 sps:$4 sm:$0xff]  }
  0x12   :  { %v10335_v49 = vld [vmem:[%s15631_s1 + $0x184] ss:$16 sps:$4 sm:$0xff]   ;;  %7007 = vmatprep.mubr.bf16.mxu0 %v10361_v48  ;;  %7781 = vmatprep.mubr.bf16.mxu1 %v10361_v48  ;;  %v10339_v51 = vld [vmem:[%s15631_s1 + $0x180] ss:$16 sps:$4 sm:$0xff]   ;;  %v10343_v54 = vld [vmem:[%s15631_s1 + $0x1ac] ss:$16 sps:$4 sm:$0xff]  }
  0x13   :  { %6984 = vmatpush1.bf16.msra.mxu0 %v10291_v18  ;;  %7758 = vmatpush1.bf16.msra.mxu1 %v10292_v19  ;;  %v10341_v53 = vld [vmem:[%s15631_s1 + $0x1a4] ss:$16 sps:$4 sm:$0xff]   ;;  %v10345_v55 = vld [vmem:[%s15631_s1 + $0x1a0] ss:$16 sps:$4 sm:$0xff]   ;;  %v10346_v56 = vld [vmem:[%s15631_s1 + $0x1a8] ss:$16 sps:$4 sm:$0xff]  }
  0x14   :  { %6985 = vmatprep.subr.bf16.mxu0 %v10293_v20  ;;  %7759 = vmatprep.subr.bf16.mxu1 %v10295_v21  ;;  %v10347_v57 = vld [vmem:[%s15631_s1 + $0x1c4] ss:$16 sps:$4 sm:$0xff]   ;;  %v10349_v58 = vld [vmem:[%s15631_s1 + $0x1cc] ss:$16 sps:$4 sm:$0xff]   ;;  %v10351_v59 = vld [vmem:[%s15631_s1 + $0x1c0] ss:$16 sps:$4 sm:$0xff]  }
  0x15   :  { %v10352_v60 = vld [vmem:[%s15631_s1 + $0x1c8] ss:$16 sps:$4 sm:$0xff]   ;;  %v10353_v61 = vld [vmem:[%s15631_s1 + $0x1e4] ss:$16 sps:$4 sm:$0xff]   ;;  %v10355_v62 = vld [vmem:[%s15631_s1 + $0x1ec] ss:$16 sps:$4 sm:$0xff]  }
  0x16   :  { %v10357_v63 = vld [vmem:[%s15631_s1 + $0x1e0] ss:$16 sps:$4 sm:$0xff]   ;;  %v10358_v0 = vld [vmem:[%s15631_s1 + $0x1e8] ss:$16 sps:$4 sm:$0xff]   ;;  %v10364_v1 = vld [vmem:[%s15631_s1 + $0x204] ss:$16 sps:$4 sm:$0xff]  }
  0x17   :  { %6986 = vmatpush1.bf16.msra.mxu0 %v10297_v22  ;;  %7760 = vmatpush1.bf16.msra.mxu1 %v10298_v23  ;;  %v10367_v2 = vld [vmem:[%s15631_s1 + $0x20c] ss:$16 sps:$4 sm:$0xff]   ;;  %v10362_v4 = vld [vmem:[%s15631_s1 + $0x200] ss:$16 sps:$4 sm:$0xff]   ;;  %v10365_v5 = vld [vmem:[%s15631_s1 + $0x208] ss:$16 sps:$4 sm:$0xff]  }
  0x18   :  { %6987 = vmatprep.subr.bf16.mxu0 %v10299_v24  ;;  %7761 = vmatprep.subr.bf16.mxu1 %v10301_v25  ;;  %v10359_v3 = vld [vmem:[%s15632_s0] ss:$140 sps:$4 sm:$0xff]   ;;  %v10370_v6 = vld [vmem:[%s15631_s1 + $0x224] ss:$16 sps:$4 sm:$0xff]   ;;  %v10371_v9 = vld [vmem:[%s15631_s1 + $0x228] ss:$16 sps:$4 sm:$0xff]  }
  0x19   :  { %v10373_v7 = vld [vmem:[%s15631_s1 + $0x22c] ss:$16 sps:$4 sm:$0xff]   ;;  %v10368_v8 = vld [vmem:[%s15631_s1 + $0x220] ss:$16 sps:$4 sm:$0xff]   ;;  %v10376_v10 = vld [vmem:[%s15631_s1 + $0x244] ss:$16 sps:$4 sm:$0xff]  }
  0x1a   :  { %v10379_v11 = vld [vmem:[%s15631_s1 + $0x24c] ss:$16 sps:$4 sm:$0xff]   ;;  %v10374_v12 = vld [vmem:[%s15631_s1 + $0x240] ss:$16 sps:$4 sm:$0xff]   ;;  %v10377_v13 = vld [vmem:[%s15631_s1 + $0x248] ss:$16 sps:$4 sm:$0xff]  }
  0x1b   :  { %6988 = vmatpush1.bf16.msra.mxu0 %v10303_v26  ;;  %7762 = vmatpush1.bf16.msra.mxu1 %v10304_v27  ;;  %v10382_v14 = vld [vmem:[%s15631_s1 + $0x264] ss:$16 sps:$4 sm:$0xff]   ;;  %v10385_v15 = vld [vmem:[%s15631_s1 + $0x26c] ss:$16 sps:$4 sm:$0xff]   ;;  %v10380_v16 = vld [vmem:[%s15631_s1 + $0x260] ss:$16 sps:$4 sm:$0xff]  }
  0x1c   :  { %6989 = vmatprep.subr.bf16.mxu0 %v10305_v28  ;;  %7763 = vmatprep.subr.bf16.mxu1 %v10307_v29  ;;  %v10383_v17 = vld [vmem:[%s15631_s1 + $0x268] ss:$16 sps:$4 sm:$0xff]   ;;  %v10388_v18 = vld [vmem:[%s15631_s1 + $0x284] ss:$16 sps:$4 sm:$0xff]   ;;  %v10391_v19 = vld [vmem:[%s15631_s1 + $0x28c] ss:$16 sps:$4 sm:$0xff]  }
  0x1d   :  { %v10386_v20 = vld [vmem:[%s15631_s1 + $0x280] ss:$16 sps:$4 sm:$0xff]   ;;  %v10389_v21 = vld [vmem:[%s15631_s1 + $0x288] ss:$16 sps:$4 sm:$0xff]   ;;  %v10394_v22 = vld [vmem:[%s15631_s1 + $0x2a4] ss:$16 sps:$4 sm:$0xff]  }
  0x1e   :  { %v10397_v23 = vld [vmem:[%s15631_s1 + $0x2ac] ss:$16 sps:$4 sm:$0xff]   ;;  %v10392_v24 = vld [vmem:[%s15631_s1 + $0x2a0] ss:$16 sps:$4 sm:$0xff]   ;;  %v10395_v25 = vld [vmem:[%s15631_s1 + $0x2a8] ss:$16 sps:$4 sm:$0xff]  }
  0x1f   :  { %6990 = vmatpush1.bf16.msra.mxu0 %v10309_v30  ;;  %7764 = vmatpush1.bf16.msra.mxu1 %v10310_v31  ;;  %v10400_v26 = vld [vmem:[%s15631_s1 + $0x2c4] ss:$16 sps:$4 sm:$0xff]   ;;  %v10403_v27 = vld [vmem:[%s15631_s1 + $0x2cc] ss:$16 sps:$4 sm:$0xff]   ;;  %v10398_v28 = vld [vmem:[%s15631_s1 + $0x2c0] ss:$16 sps:$4 sm:$0xff]  }
  0x20   :  { %6991 = vmatprep.subr.bf16.mxu0 %v10311_v32  ;;  %7765 = vmatprep.subr.bf16.mxu1 %v10313_v33  ;;  %v10401_v29 = vld [vmem:[%s15631_s1 + $0x2c8] ss:$16 sps:$4 sm:$0xff]   ;;  %v10406_v31 = vld [vmem:[%s15631_s1 + $0x2e4] ss:$16 sps:$4 sm:$0xff]   ;;  %v10409_v32 = vld [vmem:[%s15631_s1 + $0x2ec] ss:$16 sps:$4 sm:$0xff]  }
  0x21   :  { %v10460_v30 = vld [vmem:[%s15632_s0 + $0xc] ss:$140 sps:$4 sm:$0xff]   ;;  %v10404_v33 = vld [vmem:[%s15631_s1 + $0x2e0] ss:$16 sps:$4 sm:$0xff]  }
  0x22   :  { %v10433_v48 = vld [vmem:[%s15631_s1 + $0x36c] ss:$16 sps:$4 sm:$0xff]  }
  0x23   :  { %6992 = vmatpush1.bf16.msra.mxu0 %v10315_v34  ;;  %7766 = vmatpush1.bf16.msra.mxu1 %v10316_v35  ;;  %v10407_v34 = vld [vmem:[%s15631_s1 + $0x2e8] ss:$16 sps:$4 sm:$0xff]   ;;  %v10412_v35 = vld [vmem:[%s15631_s1 + $0x304] ss:$16 sps:$4 sm:$0xff]  }
  0x24   :  { %6993 = vmatprep.subr.bf16.mxu0 %v10317_v36  ;;  %7767 = vmatprep.subr.bf16.mxu1 %v10319_v37  ;;  %v10415_v36 = vld [vmem:[%s15631_s1 + $0x30c] ss:$16 sps:$4 sm:$0xff]   ;;  %v10410_v37 = vld [vmem:[%s15631_s1 + $0x300] ss:$16 sps:$4 sm:$0xff]  }
  0x27   :  { %6994 = vmatpush1.bf16.msra.mxu0 %v10321_v38  ;;  %7768 = vmatpush1.bf16.msra.mxu1 %v10322_v39  ;;  %v10413_v38 = vld [vmem:[%s15631_s1 + $0x308] ss:$16 sps:$4 sm:$0xff]   ;;  %v10418_v39 = vld [vmem:[%s15631_s1 + $0x324] ss:$16 sps:$4 sm:$0xff]  }
  0x28   :  { %6995 = vmatprep.subr.bf16.mxu0 %v10323_v40  ;;  %7769 = vmatprep.subr.bf16.mxu1 %v10325_v41  ;;  %v10421_v40 = vld [vmem:[%s15631_s1 + $0x32c] ss:$16 sps:$4 sm:$0xff]   ;;  %v10416_v41 = vld [vmem:[%s15631_s1 + $0x320] ss:$16 sps:$4 sm:$0xff]  }
  0x2b   :  { %6996 = vmatpush1.bf16.msra.mxu0 %v10327_v42  ;;  %7770 = vmatpush1.bf16.msra.mxu1 %v10328_v43  ;;  %v10419_v42 = vld [vmem:[%s15631_s1 + $0x328] ss:$16 sps:$4 sm:$0xff]   ;;  %v10424_v43 = vld [vmem:[%s15631_s1 + $0x344] ss:$16 sps:$4 sm:$0xff]  }
  0x2c   :  { %6997 = vmatprep.subr.bf16.mxu0 %v10329_v44  ;;  %7771 = vmatprep.subr.bf16.mxu1 %v10331_v45  ;;  %v10427_v44 = vld [vmem:[%s15631_s1 + $0x34c] ss:$16 sps:$4 sm:$0xff]   ;;  %v10422_v45 = vld [vmem:[%s15631_s1 + $0x340] ss:$16 sps:$4 sm:$0xff]  }
  0x2f   :  { %6998 = vmatpush1.bf16.msra.mxu0 %v10333_v46  ;;  %7772 = vmatpush1.bf16.msra.mxu1 %v10334_v47  ;;  %v10425_v46 = vld [vmem:[%s15631_s1 + $0x348] ss:$16 sps:$4 sm:$0xff]   ;;  %v10430_v47 = vld [vmem:[%s15631_s1 + $0x364] ss:$16 sps:$4 sm:$0xff]  }
  0x30   :  { %6999 = vmatprep.subr.bf16.mxu0 %v10335_v49  ;;  %7773 = vmatprep.subr.bf16.mxu1 %v10337_v50  ;;  %v10428_v49 = vld [vmem:[%s15631_s1 + $0x360] ss:$16 sps:$4 sm:$0xff]   ;;  %v10431_v50 = vld [vmem:[%s15631_s1 + $0x368] ss:$16 sps:$4 sm:$0xff]  }
  0x33   :  { %7000 = vmatpush1.bf16.msra.mxu0 %v10339_v51  ;;  %7774 = vmatpush1.bf16.msra.mxu1 %v10340_v52  ;;  %v10436_v51 = vld [vmem:[%s15631_s1 + $0x384] ss:$16 sps:$4 sm:$0xff]   ;;  %v10439_v52 = vld [vmem:[%s15631_s1 + $0x38c] ss:$16 sps:$4 sm:$0xff]  }
  0x34   :  { %7001 = vmatprep.subr.bf16.mxu0 %v10341_v53  ;;  %7775 = vmatprep.subr.bf16.mxu1 %v10343_v54  ;;  %v10434_v53 = vld [vmem:[%s15631_s1 + $0x380] ss:$16 sps:$4 sm:$0xff]   ;;  %v10437_v54 = vld [vmem:[%s15631_s1 + $0x388] ss:$16 sps:$4 sm:$0xff]  }
  0x37   :  { %7002 = vmatpush1.bf16.msra.mxu0 %v10345_v55  ;;  %7776 = vmatpush1.bf16.msra.mxu1 %v10346_v56  ;;  %v10442_v55 = vld [vmem:[%s15631_s1 + $0x3a4] ss:$16 sps:$4 sm:$0xff]   ;;  %v10445_v56 = vld [vmem:[%s15631_s1 + $0x3ac] ss:$16 sps:$4 sm:$0xff]  }
  0x38   :  { %7003 = vmatprep.subr.bf16.mxu0 %v10347_v57  ;;  %7777 = vmatprep.subr.bf16.mxu1 %v10349_v58  ;;  %v10440_v57 = vld [vmem:[%s15631_s1 + $0x3a0] ss:$16 sps:$4 sm:$0xff]   ;;  %v10443_v58 = vld [vmem:[%s15631_s1 + $0x3a8] ss:$16 sps:$4 sm:$0xff]  }
  0x3b   :  { %7004 = vmatpush1.bf16.msra.mxu0 %v10351_v59  ;;  %7778 = vmatpush1.bf16.msra.mxu1 %v10352_v60  ;;  %v10448_v59 = vld [vmem:[%s15631_s1 + $0x3c4] ss:$16 sps:$4 sm:$0xff]   ;;  %v10451_v60 = vld [vmem:[%s15631_s1 + $0x3cc] ss:$16 sps:$4 sm:$0xff]  }
  0x3c   :  { %7005 = vmatprep.subr.bf16.mxu0 %v10353_v61  ;;  %7779 = vmatprep.subr.bf16.mxu1 %v10355_v62  ;;  %v10446_v61 = vld [vmem:[%s15631_s1 + $0x3c0] ss:$16 sps:$4 sm:$0xff]   ;;  %v10449_v62 = vld [vmem:[%s15631_s1 + $0x3c8] ss:$16 sps:$4 sm:$0xff]  }
  0x3f   :  { %7006 = vmatpush1.bf16.msra.mxu0 %v10357_v63  ;;  %7780 = vmatpush1.bf16.msra.mxu1 %v10358_v0  ;;  %v10454_v63 = vld [vmem:[%s15631_s1 + $0x3e4] ss:$16 sps:$4 sm:$0xff]   ;;  %v10457_v0 = vld [vmem:[%s15631_s1 + $0x3ec] ss:$16 sps:$4 sm:$0xff]  }
  0x40   :  { %7018 = vmatprep.subr.bf16.mxu0 %v10364_v1  ;;  %7792 = vmatprep.subr.bf16.mxu1 %v10367_v2  ;;  %v10452_v1 = vld [vmem:[%s15631_s1 + $0x3e0] ss:$16 sps:$4 sm:$0xff]   ;;  %v10455_v2 = vld [vmem:[%s15631_s1 + $0x3e8] ss:$16 sps:$4 sm:$0xff]  }
  0x42   :  { %7008 = vmatmul.mubr.bf16.vlgmr.msra.gmra.mrb[0].mxu0 %v10359_v3  ;;  %7782 = vmatmul.mubr.bf16.vlgmr.msra.gmra.mrb[0].mxu1 %v10359_v3  ;;  %v10463_v3 = vld [vmem:[%s15631_s1 + $0x404] ss:$16 sps:$4 sm:$0xff]  }
  0x43   :  { %7019 = vmatpush1.bf16.msra.mxu0 %v10362_v4  ;;  %7793 = vmatpush1.bf16.msra.mxu1 %v10365_v5  ;;  %v10466_v4 = vld [vmem:[%s15631_s1 + $0x40c] ss:$16 sps:$4 sm:$0xff]   ;;  %v10458_v5 = vld [vmem:[%s15632_s0 + $0x8] ss:$140 sps:$4 sm:$0xff]  }
  0x44   :  { %7020 = vmatprep.subr.bf16.mxu0 %v10370_v6  ;;  %7794 = vmatprep.subr.bf16.mxu1 %v10373_v7  ;;  %v10461_v6 = vld [vmem:[%s15631_s1 + $0x400] ss:$16 sps:$4 sm:$0xff]   ;;  %v10464_v7 = vld [vmem:[%s15631_s1 + $0x408] ss:$16 sps:$4 sm:$0xff]  }
  0x45   :  { %7050 = vmatprep.mubr.bf16.mxu0 %v10460_v30  ;;  %7824 = vmatprep.mubr.bf16.mxu1 %v10460_v30  ;;  %v10502_v30 = vld [vmem:[%s15631_s1 + $0x4cc] ss:$16 sps:$4 sm:$0xff]  }
  0x47   :  { %7021 = vmatpush1.bf16.msra.mxu0 %v10368_v8  ;;  %7795 = vmatpush1.bf16.msra.mxu1 %v10371_v9  ;;  %v10469_v8 = vld [vmem:[%s15631_s1 + $0x424] ss:$16 sps:$4 sm:$0xff]   ;;  %v10472_v9 = vld [vmem:[%s15631_s1 + $0x42c] ss:$16 sps:$4 sm:$0xff]  }
  0x48   :  { %7022 = vmatprep.subr.bf16.mxu0 %v10376_v10  ;;  %7796 = vmatprep.subr.bf16.mxu1 %v10379_v11  ;;  %v10467_v10 = vld [vmem:[%s15631_s1 + $0x420] ss:$16 sps:$4 sm:$0xff]   ;;  %v10470_v11 = vld [vmem:[%s15631_s1 + $0x428] ss:$16 sps:$4 sm:$0xff]  }
  0x4b   :  { %7023 = vmatpush1.bf16.msra.mxu0 %v10374_v12  ;;  %7797 = vmatpush1.bf16.msra.mxu1 %v10377_v13  ;;  %v10559_v12 = vld [vmem:[%s15632_s0 + $0x14] ss:$140 sps:$4 sm:$0xff]  }
  0x4c   :  { %7024 = vmatprep.subr.bf16.mxu0 %v10382_v14  ;;  %7798 = vmatprep.subr.bf16.mxu1 %v10385_v15  ;;  %v10475_v13 = vld [vmem:[%s15631_s1 + $0x444] ss:$16 sps:$4 sm:$0xff]   ;;  %v10478_v14 = vld [vmem:[%s15631_s1 + $0x44c] ss:$16 sps:$4 sm:$0xff]   ;;  %v10473_v15 = vld [vmem:[%s15631_s1 + $0x440] ss:$16 sps:$4 sm:$0xff]  }
  0x4f   :  { %7025 = vmatpush1.bf16.msra.mxu0 %v10380_v16  ;;  %7799 = vmatpush1.bf16.msra.mxu1 %v10383_v17  ;;  %v10476_v16 = vld [vmem:[%s15631_s1 + $0x448] ss:$16 sps:$4 sm:$0xff]   ;;  %v10481_v17 = vld [vmem:[%s15631_s1 + $0x464] ss:$16 sps:$4 sm:$0xff]  }
  0x50   :  { %7026 = vmatprep.subr.bf16.mxu0 %v10388_v18  ;;  %7800 = vmatprep.subr.bf16.mxu1 %v10391_v19  ;;  %v10484_v18 = vld [vmem:[%s15631_s1 + $0x46c] ss:$16 sps:$4 sm:$0xff]   ;;  %v10479_v19 = vld [vmem:[%s15631_s1 + $0x460] ss:$16 sps:$4 sm:$0xff]  }
  0x53   :  { %7027 = vmatpush1.bf16.msra.mxu0 %v10386_v20  ;;  %7801 = vmatpush1.bf16.msra.mxu1 %v10389_v21  ;;  %v10482_v20 = vld [vmem:[%s15631_s1 + $0x468] ss:$16 sps:$4 sm:$0xff]   ;;  %v10487_v21 = vld [vmem:[%s15631_s1 + $0x484] ss:$16 sps:$4 sm:$0xff]  }
  0x54   :  { %7028 = vmatprep.subr.bf16.mxu0 %v10394_v22  ;;  %7802 = vmatprep.subr.bf16.mxu1 %v10397_v23  ;;  %v10490_v22 = vld [vmem:[%s15631_s1 + $0x48c] ss:$16 sps:$4 sm:$0xff]   ;;  %v10485_v23 = vld [vmem:[%s15631_s1 + $0x480] ss:$16 sps:$4 sm:$0xff]  }
  0x57   :  { %7029 = vmatpush1.bf16.msra.mxu0 %v10392_v24  ;;  %7803 = vmatpush1.bf16.msra.mxu1 %v10395_v25  ;;  %v10488_v24 = vld [vmem:[%s15631_s1 + $0x488] ss:$16 sps:$4 sm:$0xff]   ;;  %v10493_v25 = vld [vmem:[%s15631_s1 + $0x4a4] ss:$16 sps:$4 sm:$0xff]  }
  0x58   :  { %7030 = vmatprep.subr.bf16.mxu0 %v10400_v26  ;;  %7804 = vmatprep.subr.bf16.mxu1 %v10403_v27  ;;  %v10496_v26 = vld [vmem:[%s15631_s1 + $0x4ac] ss:$16 sps:$4 sm:$0xff]   ;;  %v10491_v27 = vld [vmem:[%s15631_s1 + $0x4a0] ss:$16 sps:$4 sm:$0xff]  }
  0x5b   :  { %7031 = vmatpush1.bf16.msra.mxu0 %v10398_v28  ;;  %7805 = vmatpush1.bf16.msra.mxu1 %v10401_v29  ;;  %v10494_v28 = vld [vmem:[%s15631_s1 + $0x4a8] ss:$16 sps:$4 sm:$0xff]   ;;  %v10499_v29 = vld [vmem:[%s15631_s1 + $0x4c4] ss:$16 sps:$4 sm:$0xff]  }
  0x5c   :  { %7032 = vmatprep.subr.bf16.mxu0 %v10406_v31  ;;  %7806 = vmatprep.subr.bf16.mxu1 %v10409_v32  ;;  %v10497_v31 = vld [vmem:[%s15631_s1 + $0x4c0] ss:$16 sps:$4 sm:$0xff]   ;;  %v10500_v32 = vld [vmem:[%s15631_s1 + $0x4c8] ss:$16 sps:$4 sm:$0xff]  }
  0x5f   :  { %7033 = vmatpush1.bf16.msra.mxu0 %v10404_v33  ;;  %7807 = vmatpush1.bf16.msra.mxu1 %v10407_v34  ;;  %v10505_v33 = vld [vmem:[%s15631_s1 + $0x4e4] ss:$16 sps:$4 sm:$0xff]   ;;  %v10508_v34 = vld [vmem:[%s15631_s1 + $0x4ec] ss:$16 sps:$4 sm:$0xff]  }
  0x60   :  { %7034 = vmatprep.subr.bf16.mxu0 %v10412_v35  ;;  %7808 = vmatprep.subr.bf16.mxu1 %v10415_v36  ;;  %v10503_v35 = vld [vmem:[%s15631_s1 + $0x4e0] ss:$16 sps:$4 sm:$0xff]   ;;  %v10506_v36 = vld [vmem:[%s15631_s1 + $0x4e8] ss:$16 sps:$4 sm:$0xff]  }
  0x63   :  { %7035 = vmatpush1.bf16.msra.mxu0 %v10410_v37  ;;  %7809 = vmatpush1.bf16.msra.mxu1 %v10413_v38  ;;  %v10511_v37 = vld [vmem:[%s15631_s1 + $0x504] ss:$16 sps:$4 sm:$0xff]   ;;  %v10514_v38 = vld [vmem:[%s15631_s1 + $0x50c] ss:$16 sps:$4 sm:$0xff]  }
  0x64   :  { %7036 = vmatprep.subr.bf16.mxu0 %v10418_v39  ;;  %7810 = vmatprep.subr.bf16.mxu1 %v10421_v40  ;;  %v10509_v39 = vld [vmem:[%s15631_s1 + $0x500] ss:$16 sps:$4 sm:$0xff]   ;;  %v10512_v40 = vld [vmem:[%s15631_s1 + $0x508] ss:$16 sps:$4 sm:$0xff]  }
  0x67   :  { %7037 = vmatpush1.bf16.msra.mxu0 %v10416_v41  ;;  %7811 = vmatpush1.bf16.msra.mxu1 %v10419_v42  ;;  %v10517_v41 = vld [vmem:[%s15631_s1 + $0x524] ss:$16 sps:$4 sm:$0xff]   ;;  %v10520_v42 = vld [vmem:[%s15631_s1 + $0x52c] ss:$16 sps:$4 sm:$0xff]  }
  0x68   :  { %7038 = vmatprep.subr.bf16.mxu0 %v10424_v43  ;;  %7812 = vmatprep.subr.bf16.mxu1 %v10427_v44  ;;  %v10515_v43 = vld [vmem:[%s15631_s1 + $0x520] ss:$16 sps:$4 sm:$0xff]   ;;  %v10518_v44 = vld [vmem:[%s15631_s1 + $0x528] ss:$16 sps:$4 sm:$0xff]  }
  0x6b   :  { %7039 = vmatpush1.bf16.msra.mxu0 %v10422_v45  ;;  %7813 = vmatpush1.bf16.msra.mxu1 %v10425_v46  ;;  %v10523_v45 = vld [vmem:[%s15631_s1 + $0x544] ss:$16 sps:$4 sm:$0xff]   ;;  %v10526_v46 = vld [vmem:[%s15631_s1 + $0x54c] ss:$16 sps:$4 sm:$0xff]  }
  0x6c   :  { %7040 = vmatprep.subr.bf16.mxu0 %v10430_v47  ;;  %7814 = vmatprep.subr.bf16.mxu1 %v10433_v48  ;;  %v10521_v47 = vld [vmem:[%s15631_s1 + $0x540] ss:$16 sps:$4 sm:$0xff]   ;;  %v10524_v48 = vld [vmem:[%s15631_s1 + $0x548] ss:$16 sps:$4 sm:$0xff]  }
  0x6f   :  { %7041 = vmatpush1.bf16.msra.mxu0 %v10428_v49  ;;  %7815 = vmatpush1.bf16.msra.mxu1 %v10431_v50  ;;  %v10529_v49 = vld [vmem:[%s15631_s1 + $0x564] ss:$16 sps:$4 sm:$0xff]   ;;  %v10532_v50 = vld [vmem:[%s15631_s1 + $0x56c] ss:$16 sps:$4 sm:$0xff]  }
  0x70   :  { %7042 = vmatprep.subr.bf16.mxu0 %v10436_v51  ;;  %7816 = vmatprep.subr.bf16.mxu1 %v10439_v52  ;;  %v10527_v51 = vld [vmem:[%s15631_s1 + $0x560] ss:$16 sps:$4 sm:$0xff]   ;;  %v10530_v52 = vld [vmem:[%s15631_s1 + $0x568] ss:$16 sps:$4 sm:$0xff]  }
  0x73   :  { %7043 = vmatpush1.bf16.msra.mxu0 %v10434_v53  ;;  %7817 = vmatpush1.bf16.msra.mxu1 %v10437_v54  ;;  %v10535_v53 = vld [vmem:[%s15631_s1 + $0x584] ss:$16 sps:$4 sm:$0xff]   ;;  %v10538_v54 = vld [vmem:[%s15631_s1 + $0x58c] ss:$16 sps:$4 sm:$0xff]  }
  0x74   :  { %7044 = vmatprep.subr.bf16.mxu0 %v10442_v55  ;;  %7818 = vmatprep.subr.bf16.mxu1 %v10445_v56  ;;  %v10533_v55 = vld [vmem:[%s15631_s1 + $0x580] ss:$16 sps:$4 sm:$0xff]   ;;  %v10536_v56 = vld [vmem:[%s15631_s1 + $0x588] ss:$16 sps:$4 sm:$0xff]  }
  0x77   :  { %7045 = vmatpush1.bf16.msra.mxu0 %v10440_v57  ;;  %7819 = vmatpush1.bf16.msra.mxu1 %v10443_v58  ;;  %v10541_v57 = vld [vmem:[%s15631_s1 + $0x5a4] ss:$16 sps:$4 sm:$0xff]   ;;  %v10544_v58 = vld [vmem:[%s15631_s1 + $0x5ac] ss:$16 sps:$4 sm:$0xff]  }
  0x78   :  { %7046 = vmatprep.subr.bf16.mxu0 %v10448_v59  ;;  %7820 = vmatprep.subr.bf16.mxu1 %v10451_v60  ;;  %v10539_v59 = vld [vmem:[%s15631_s1 + $0x5a0] ss:$16 sps:$4 sm:$0xff]   ;;  %v10542_v60 = vld [vmem:[%s15631_s1 + $0x5a8] ss:$16 sps:$4 sm:$0xff]  }
  0x7b   :  { %7047 = vmatpush1.bf16.msra.mxu0 %v10446_v61  ;;  %7821 = vmatpush1.bf16.msra.mxu1 %v10449_v62  ;;  %v10547_v61 = vld [vmem:[%s15631_s1 + $0x5c4] ss:$16 sps:$4 sm:$0xff]   ;;  %v10550_v62 = vld [vmem:[%s15631_s1 + $0x5cc] ss:$16 sps:$4 sm:$0xff]  }
  0x7c   :  { %7048 = vmatprep.subr.bf16.mxu0 %v10454_v63  ;;  %7822 = vmatprep.subr.bf16.mxu1 %v10457_v0  ;;  %v10545_v63 = vld [vmem:[%s15631_s1 + $0x5c0] ss:$16 sps:$4 sm:$0xff]   ;;  %v10548_v0 = vld [vmem:[%s15631_s1 + $0x5c8] ss:$16 sps:$4 sm:$0xff]  }
  0x7f   :  { %7049 = vmatpush1.bf16.msra.mxu0 %v10452_v1  ;;  %7823 = vmatpush1.bf16.msra.mxu1 %v10455_v2  ;;  %v10553_v1 = vld [vmem:[%s15631_s1 + $0x5e4] ss:$16 sps:$4 sm:$0xff]   ;;  %v10556_v2 = vld [vmem:[%s15631_s1 + $0x5ec] ss:$16 sps:$4 sm:$0xff]  }
  0x80   :  { %7061 = vmatprep.subr.bf16.mxu0 %v10463_v3  ;;  %7835 = vmatprep.subr.bf16.mxu1 %v10466_v4  ;;  %v10551_v3 = vld [vmem:[%s15631_s1 + $0x5e0] ss:$16 sps:$4 sm:$0xff]   ;;  %v10554_v4 = vld [vmem:[%s15631_s1 + $0x5e8] ss:$16 sps:$4 sm:$0xff]  }
  0x82   :  { %7051 = vmatmul.mubr.bf16.vlgmr.msra.gmra.mrb[0].mxu0 %v10458_v5  ;;  %7825 = vmatmul.mubr.bf16.vlgmr.msra.gmra.mrb[0].mxu1 %v10458_v5  ;;  %v10562_v5 = vld [vmem:[%s15631_s1 + $0x604] ss:$16 sps:$4 sm:$0xff]  }
  0x83   :  { %7062 = vmatpush1.bf16.msra.mxu0 %v10461_v6  ;;  %7836 = vmatpush1.bf16.msra.mxu1 %v10464_v7  ;;  %v10565_v6 = vld [vmem:[%s15631_s1 + $0x60c] ss:$16 sps:$4 sm:$0xff]  }
  0x84   :  { %7063 = vmatprep.subr.bf16.mxu0 %v10469_v8  ;;  %7837 = vmatprep.subr.bf16.mxu1 %v10472_v9  ;;  %v10557_v7 = vld [vmem:[%s15632_s0 + $0x10] ss:$140 sps:$4 sm:$0xff]   ;;  %v10563_v9 = vld [vmem:[%s15631_s1 + $0x608] ss:$16 sps:$4 sm:$0xff]  }
  0x85   :  { %7093 = vmatprep.mubr.bf16.mxu0 %v10559_v12  ;;  %7867 = vmatprep.mubr.bf16.mxu1 %v10559_v12  ;;  %v10560_v8 = vld [vmem:[%s15631_s1 + $0x600] ss:$16 sps:$4 sm:$0xff]   ;;  %v10658_v12 = vld [vmem:[%s15632_s0 + $0x1c] ss:$140 sps:$4 sm:$0xff]  }
  0x87   :  { %7064 = vmatpush1.bf16.msra.mxu0 %v10467_v10  ;;  %7838 = vmatpush1.bf16.msra.mxu1 %v10470_v11  ;;  %v10568_v10 = vld [vmem:[%s15631_s1 + $0x624] ss:$16 sps:$4 sm:$0xff]   ;;  %v10571_v11 = vld [vmem:[%s15631_s1 + $0x62c] ss:$16 sps:$4 sm:$0xff]  }
  0x88   :  { %7065 = vmatprep.subr.bf16.mxu0 %v10475_v13  ;;  %7839 = vmatprep.subr.bf16.mxu1 %v10478_v14  ;;  %v10566_v13 = vld [vmem:[%s15631_s1 + $0x620] ss:$16 sps:$4 sm:$0xff]   ;;  %v10569_v14 = vld [vmem:[%s15631_s1 + $0x628] ss:$16 sps:$4 sm:$0xff]  }
  0x8b   :  { %7066 = vmatpush1.bf16.msra.mxu0 %v10473_v15  ;;  %7840 = vmatpush1.bf16.msra.mxu1 %v10476_v16  ;;  %v10574_v15 = vld [vmem:[%s15631_s1 + $0x644] ss:$16 sps:$4 sm:$0xff]   ;;  %v10577_v16 = vld [vmem:[%s15631_s1 + $0x64c] ss:$16 sps:$4 sm:$0xff]  }
  0x8c   :  { %7067 = vmatprep.subr.bf16.mxu0 %v10481_v17  ;;  %7841 = vmatprep.subr.bf16.mxu1 %v10484_v18  ;;  %v10572_v17 = vld [vmem:[%s15631_s1 + $0x640] ss:$16 sps:$4 sm:$0xff]   ;;  %v10575_v18 = vld [vmem:[%s15631_s1 + $0x648] ss:$16 sps:$4 sm:$0xff]  }
  0x8f   :  { %7068 = vmatpush1.bf16.msra.mxu0 %v10479_v19  ;;  %7842 = vmatpush1.bf16.msra.mxu1 %v10482_v20  ;;  %v10580_v19 = vld [vmem:[%s15631_s1 + $0x664] ss:$16 sps:$4 sm:$0xff]   ;;  %v10583_v20 = vld [vmem:[%s15631_s1 + $0x66c] ss:$16 sps:$4 sm:$0xff]  }
  0x90   :  { %7069 = vmatprep.subr.bf16.mxu0 %v10487_v21  ;;  %7843 = vmatprep.subr.bf16.mxu1 %v10490_v22  ;;  %v10578_v21 = vld [vmem:[%s15631_s1 + $0x660] ss:$16 sps:$4 sm:$0xff]   ;;  %v10581_v22 = vld [vmem:[%s15631_s1 + $0x668] ss:$16 sps:$4 sm:$0xff]  }
  0x93   :  { %7070 = vmatpush1.bf16.msra.mxu0 %v10485_v23  ;;  %7844 = vmatpush1.bf16.msra.mxu1 %v10488_v24  ;;  %v10586_v23 = vld [vmem:[%s15631_s1 + $0x684] ss:$16 sps:$4 sm:$0xff]   ;;  %v10589_v24 = vld [vmem:[%s15631_s1 + $0x68c] ss:$16 sps:$4 sm:$0xff]  }
  0x94   :  { %7071 = vmatprep.subr.bf16.mxu0 %v10493_v25  ;;  %7845 = vmatprep.subr.bf16.mxu1 %v10496_v26  ;;  %v10584_v25 = vld [vmem:[%s15631_s1 + $0x680] ss:$16 sps:$4 sm:$0xff]   ;;  %v10587_v26 = vld [vmem:[%s15631_s1 + $0x688] ss:$16 sps:$4 sm:$0xff]  }
  0x97   :  { %7072 = vmatpush1.bf16.msra.mxu0 %v10491_v27  ;;  %7846 = vmatpush1.bf16.msra.mxu1 %v10494_v28  ;;  %v10592_v27 = vld [vmem:[%s15631_s1 + $0x6a4] ss:$16 sps:$4 sm:$0xff]   ;;  %v10595_v28 = vld [vmem:[%s15631_s1 + $0x6ac] ss:$16 sps:$4 sm:$0xff]  }
  0x98   :  { %7073 = vmatprep.subr.bf16.mxu0 %v10499_v29  ;;  %7847 = vmatprep.subr.bf16.mxu1 %v10502_v30  ;;  %v10590_v29 = vld [vmem:[%s15631_s1 + $0x6a0] ss:$16 sps:$4 sm:$0xff]   ;;  %v10593_v30 = vld [vmem:[%s15631_s1 + $0x6a8] ss:$16 sps:$4 sm:$0xff]  }
  0x9b   :  { %7074 = vmatpush1.bf16.msra.mxu0 %v10497_v31  ;;  %7848 = vmatpush1.bf16.msra.mxu1 %v10500_v32  ;;  %v10598_v31 = vld [vmem:[%s15631_s1 + $0x6c4] ss:$16 sps:$4 sm:$0xff]   ;;  %v10601_v32 = vld [vmem:[%s15631_s1 + $0x6cc] ss:$16 sps:$4 sm:$0xff]  }
  0x9c   :  { %7075 = vmatprep.subr.bf16.mxu0 %v10505_v33  ;;  %7849 = vmatprep.subr.bf16.mxu1 %v10508_v34  ;;  %v10596_v33 = vld [vmem:[%s15631_s1 + $0x6c0] ss:$16 sps:$4 sm:$0xff]   ;;  %v10599_v34 = vld [vmem:[%s15631_s1 + $0x6c8] ss:$16 sps:$4 sm:$0xff]  }
  0x9f   :  { %7076 = vmatpush1.bf16.msra.mxu0 %v10503_v35  ;;  %7850 = vmatpush1.bf16.msra.mxu1 %v10506_v36  ;;  %v10604_v35 = vld [vmem:[%s15631_s1 + $0x6e4] ss:$16 sps:$4 sm:$0xff]   ;;  %v10607_v36 = vld [vmem:[%s15631_s1 + $0x6ec] ss:$16 sps:$4 sm:$0xff]  }
  0xa0   :  { %7077 = vmatprep.subr.bf16.mxu0 %v10511_v37  ;;  %7851 = vmatprep.subr.bf16.mxu1 %v10514_v38  ;;  %v10602_v37 = vld [vmem:[%s15631_s1 + $0x6e0] ss:$16 sps:$4 sm:$0xff]   ;;  %v10605_v38 = vld [vmem:[%s15631_s1 + $0x6e8] ss:$16 sps:$4 sm:$0xff]  }
  0xa3   :  { %7078 = vmatpush1.bf16.msra.mxu0 %v10509_v39  ;;  %7852 = vmatpush1.bf16.msra.mxu1 %v10512_v40  ;;  %v10610_v39 = vld [vmem:[%s15631_s1 + $0x704] ss:$16 sps:$4 sm:$0xff]   ;;  %v10613_v40 = vld [vmem:[%s15631_s1 + $0x70c] ss:$16 sps:$4 sm:$0xff]  }
  0xa4   :  { %7079 = vmatprep.subr.bf16.mxu0 %v10517_v41  ;;  %7853 = vmatprep.subr.bf16.mxu1 %v10520_v42  ;;  %v10608_v41 = vld [vmem:[%s15631_s1 + $0x700] ss:$16 sps:$4 sm:$0xff]   ;;  %v10611_v42 = vld [vmem:[%s15631_s1 + $0x708] ss:$16 sps:$4 sm:$0xff]  }
  0xa7   :  { %7080 = vmatpush1.bf16.msra.mxu0 %v10515_v43  ;;  %7854 = vmatpush1.bf16.msra.mxu1 %v10518_v44  ;;  %v10616_v43 = vld [vmem:[%s15631_s1 + $0x724] ss:$16 sps:$4 sm:$0xff]   ;;  %v10619_v44 = vld [vmem:[%s15631_s1 + $0x72c] ss:$16 sps:$4 sm:$0xff]  }
  0xa8   :  { %7081 = vmatprep.subr.bf16.mxu0 %v10523_v45  ;;  %7855 = vmatprep.subr.bf16.mxu1 %v10526_v46  ;;  %v10614_v45 = vld [vmem:[%s15631_s1 + $0x720] ss:$16 sps:$4 sm:$0xff]   ;;  %v10617_v46 = vld [vmem:[%s15631_s1 + $0x728] ss:$16 sps:$4 sm:$0xff]  }
  0xab   :  { %7082 = vmatpush1.bf16.msra.mxu0 %v10521_v47  ;;  %7856 = vmatpush1.bf16.msra.mxu1 %v10524_v48  ;;  %v10622_v47 = vld [vmem:[%s15631_s1 + $0x744] ss:$16 sps:$4 sm:$0xff]   ;;  %v10625_v48 = vld [vmem:[%s15631_s1 + $0x74c] ss:$16 sps:$4 sm:$0xff]  }
  0xac   :  { %7083 = vmatprep.subr.bf16.mxu0 %v10529_v49  ;;  %7857 = vmatprep.subr.bf16.mxu1 %v10532_v50  ;;  %v10620_v49 = vld [vmem:[%s15631_s1 + $0x740] ss:$16 sps:$4 sm:$0xff]   ;;  %v10623_v50 = vld [vmem:[%s15631_s1 + $0x748] ss:$16 sps:$4 sm:$0xff]  }
  0xaf   :  { %7084 = vmatpush1.bf16.msra.mxu0 %v10527_v51  ;;  %7858 = vmatpush1.bf16.msra.mxu1 %v10530_v52  ;;  %v10628_v51 = vld [vmem:[%s15631_s1 + $0x764] ss:$16 sps:$4 sm:$0xff]   ;;  %v10631_v52 = vld [vmem:[%s15631_s1 + $0x76c] ss:$16 sps:$4 sm:$0xff]  }
  0xb0   :  { %7085 = vmatprep.subr.bf16.mxu0 %v10535_v53  ;;  %7859 = vmatprep.subr.bf16.mxu1 %v10538_v54  ;;  %v10626_v53 = vld [vmem:[%s15631_s1 + $0x760] ss:$16 sps:$4 sm:$0xff]   ;;  %v10629_v54 = vld [vmem:[%s15631_s1 + $0x768] ss:$16 sps:$4 sm:$0xff]  }
  0xb3   :  { %7086 = vmatpush1.bf16.msra.mxu0 %v10533_v55  ;;  %7860 = vmatpush1.bf16.msra.mxu1 %v10536_v56  ;;  %v10634_v55 = vld [vmem:[%s15631_s1 + $0x784] ss:$16 sps:$4 sm:$0xff]   ;;  %v10637_v56 = vld [vmem:[%s15631_s1 + $0x78c] ss:$16 sps:$4 sm:$0xff]  }
  0xb4   :  { %7087 = vmatprep.subr.bf16.mxu0 %v10541_v57  ;;  %7861 = vmatprep.subr.bf16.mxu1 %v10544_v58  ;;  %v10632_v57 = vld [vmem:[%s15631_s1 + $0x780] ss:$16 sps:$4 sm:$0xff]   ;;  %v10635_v58 = vld [vmem:[%s15631_s1 + $0x788] ss:$16 sps:$4 sm:$0xff]  }
  0xb7   :  { %7088 = vmatpush1.bf16.msra.mxu0 %v10539_v59  ;;  %7862 = vmatpush1.bf16.msra.mxu1 %v10542_v60  ;;  %v10640_v59 = vld [vmem:[%s15631_s1 + $0x7a4] ss:$16 sps:$4 sm:$0xff]   ;;  %v10643_v60 = vld [vmem:[%s15631_s1 + $0x7ac] ss:$16 sps:$4 sm:$0xff]  }
  0xb8   :  { %7089 = vmatprep.subr.bf16.mxu0 %v10547_v61  ;;  %7863 = vmatprep.subr.bf16.mxu1 %v10550_v62  ;;  %v10638_v61 = vld [vmem:[%s15631_s1 + $0x7a0] ss:$16 sps:$4 sm:$0xff]   ;;  %v10641_v62 = vld [vmem:[%s15631_s1 + $0x7a8] ss:$16 sps:$4 sm:$0xff]  }
  0xbb   :  { %7090 = vmatpush1.bf16.msra.mxu0 %v10545_v63  ;;  %7864 = vmatpush1.bf16.msra.mxu1 %v10548_v0  ;;  %v10646_v63 = vld [vmem:[%s15631_s1 + $0x7c4] ss:$16 sps:$4 sm:$0xff]   ;;  %v10649_v0 = vld [vmem:[%s15631_s1 + $0x7cc] ss:$16 sps:$4 sm:$0xff]  }
  0xbc   :  { %7091 = vmatprep.subr.bf16.mxu0 %v10553_v1  ;;  %7865 = vmatprep.subr.bf16.mxu1 %v10556_v2  ;;  %v10644_v1 = vld [vmem:[%s15631_s1 + $0x7c0] ss:$16 sps:$4 sm:$0xff]   ;;  %v10647_v2 = vld [vmem:[%s15631_s1 + $0x7c8] ss:$16 sps:$4 sm:$0xff]  }
  0xbf   :  { %7092 = vmatpush1.bf16.msra.mxu0 %v10551_v3  ;;  %7866 = vmatpush1.bf16.msra.mxu1 %v10554_v4  ;;  %v10652_v3 = vld [vmem:[%s15631_s1 + $0x7e4] ss:$16 sps:$4 sm:$0xff]   ;;  %v10655_v4 = vld [vmem:[%s15631_s1 + $0x7ec] ss:$16 sps:$4 sm:$0xff]  }
  0xc0   :  { %7104 = vmatprep.subr.bf16.mxu0 %v10562_v5  ;;  %7878 = vmatprep.subr.bf16.mxu1 %v10565_v6  ;;  %v10650_v5 = vld [vmem:[%s15631_s1 + $0x7e0] ss:$16 sps:$4 sm:$0xff]   ;;  %v10653_v6 = vld [vmem:[%s15631_s1 + $0x7e8] ss:$16 sps:$4 sm:$0xff]  }
  0xc2   :  { %7094 = vmatmul.mubr.bf16.vlgmr.msra.gmra.mrb[0].mxu0 %v10557_v7  ;;  %7868 = vmatmul.mubr.bf16.vlgmr.msra.gmra.mrb[0].mxu1 %v10557_v7  ;;  %v10661_v7 = vld [vmem:[%s15631_s1 + $0x804] ss:$16 sps:$4 sm:$0xff]  }
  0xc3   :  { %7105 = vmatpush1.bf16.msra.mxu0 %v10560_v8  ;;  %7879 = vmatpush1.bf16.msra.mxu1 %v10563_v9  ;;  %v10664_v8 = vld [vmem:[%s15631_s1 + $0x80c] ss:$16 sps:$4 sm:$0xff]   ;;  %v10656_v9 = vld [vmem:[%s15632_s0 + $0x18] ss:$140 sps:$4 sm:$0xff]  }
  0xc4   :  { %7106 = vmatprep.subr.bf16.mxu0 %v10568_v10  ;;  %7880 = vmatprep.subr.bf16.mxu1 %v10571_v11  ;;  %v10659_v10 = vld [vmem:[%s15631_s1 + $0x800] ss:$16 sps:$4 sm:$0xff]   ;;  %v10662_v11 = vld [vmem:[%s15631_s1 + $0x808] ss:$16 sps:$4 sm:$0xff]  }
  0xc5   :  { %7136 = vmatprep.mubr.bf16.mxu0 %v10658_v12  ;;  %7910 = vmatprep.mubr.bf16.mxu1 %v10658_v12  ;;  %v10667_v12 = vld [vmem:[%s15631_s1 + $0x824] ss:$16 sps:$4 sm:$0xff]  }
  0xc7   :  { %7107 = vmatpush1.bf16.msra.mxu0 %v10566_v13  ;;  %7881 = vmatpush1.bf16.msra.mxu1 %v10569_v14  ;;  %v10670_v13 = vld [vmem:[%s15631_s1 + $0x82c] ss:$16 sps:$4 sm:$0xff]   ;;  %v10757_v14 = vld [vmem:[%s15632_s0 + $0x24] ss:$140 sps:$4 sm:$0xff]  }
  0xc8   :  { %7108 = vmatprep.subr.bf16.mxu0 %v10574_v15  ;;  %7882 = vmatprep.subr.bf16.mxu1 %v10577_v16  ;;  %v10665_v15 = vld [vmem:[%s15631_s1 + $0x820] ss:$16 sps:$4 sm:$0xff]   ;;  %v10668_v16 = vld [vmem:[%s15631_s1 + $0x828] ss:$16 sps:$4 sm:$0xff]  }
  0xcb   :  { %7109 = vmatpush1.bf16.msra.mxu0 %v10572_v17  ;;  %7883 = vmatpush1.bf16.msra.mxu1 %v10575_v18  ;;  %v10673_v17 = vld [vmem:[%s15631_s1 + $0x844] ss:$16 sps:$4 sm:$0xff]   ;;  %v10676_v18 = vld [vmem:[%s15631_s1 + $0x84c] ss:$16 sps:$4 sm:$0xff]  }
  0xcc   :  { %7110 = vmatprep.subr.bf16.mxu0 %v10580_v19  ;;  %7884 = vmatprep.subr.bf16.mxu1 %v10583_v20  ;;  %v10671_v19 = vld [vmem:[%s15631_s1 + $0x840] ss:$16 sps:$4 sm:$0xff]   ;;  %v10674_v20 = vld [vmem:[%s15631_s1 + $0x848] ss:$16 sps:$4 sm:$0xff]  }
  0xcf   :  { %7111 = vmatpush1.bf16.msra.mxu0 %v10578_v21  ;;  %7885 = vmatpush1.bf16.msra.mxu1 %v10581_v22  ;;  %v10679_v21 = vld [vmem:[%s15631_s1 + $0x864] ss:$16 sps:$4 sm:$0xff]   ;;  %v10682_v22 = vld [vmem:[%s15631_s1 + $0x86c] ss:$16 sps:$4 sm:$0xff]  }
  0xd0   :  { %7112 = vmatprep.subr.bf16.mxu0 %v10586_v23  ;;  %7886 = vmatprep.subr.bf16.mxu1 %v10589_v24  ;;  %v10677_v23 = vld [vmem:[%s15631_s1 + $0x860] ss:$16 sps:$4 sm:$0xff]   ;;  %v10680_v24 = vld [vmem:[%s15631_s1 + $0x868] ss:$16 sps:$4 sm:$0xff]  }
  0xd3   :  { %7113 = vmatpush1.bf16.msra.mxu0 %v10584_v25  ;;  %7887 = vmatpush1.bf16.msra.mxu1 %v10587_v26  ;;  %v10685_v25 = vld [vmem:[%s15631_s1 + $0x884] ss:$16 sps:$4 sm:$0xff]   ;;  %v10688_v26 = vld [vmem:[%s15631_s1 + $0x88c] ss:$16 sps:$4 sm:$0xff]  }
  0xd4   :  { %7114 = vmatprep.subr.bf16.mxu0 %v10592_v27  ;;  %7888 = vmatprep.subr.bf16.mxu1 %v10595_v28  ;;  %v10683_v27 = vld [vmem:[%s15631_s1 + $0x880] ss:$16 sps:$4 sm:$0xff]   ;;  %v10686_v28 = vld [vmem:[%s15631_s1 + $0x888] ss:$16 sps:$4 sm:$0xff]  }
  0xd7   :  { %7115 = vmatpush1.bf16.msra.mxu0 %v10590_v29  ;;  %7889 = vmatpush1.bf16.msra.mxu1 %v10593_v30  ;;  %v10691_v29 = vld [vmem:[%s15631_s1 + $0x8a4] ss:$16 sps:$4 sm:$0xff]   ;;  %v10694_v30 = vld [vmem:[%s15631_s1 + $0x8ac] ss:$16 sps:$4 sm:$0xff]  }
  0xd8   :  { %7116 = vmatprep.subr.bf16.mxu0 %v10598_v31  ;;  %7890 = vmatprep.subr.bf16.mxu1 %v10601_v32  ;;  %v10689_v31 = vld [vmem:[%s15631_s1 + $0x8a0] ss:$16 sps:$4 sm:$0xff]   ;;  %v10692_v32 = vld [vmem:[%s15631_s1 + $0x8a8] ss:$16 sps:$4 sm:$0xff]  }
  0xdb   :  { %7117 = vmatpush1.bf16.msra.mxu0 %v10596_v33  ;;  %7891 = vmatpush1.bf16.msra.mxu1 %v10599_v34  ;;  %v10697_v33 = vld [vmem:[%s15631_s1 + $0x8c4] ss:$16 sps:$4 sm:$0xff]   ;;  %v10700_v34 = vld [vmem:[%s15631_s1 + $0x8cc] ss:$16 sps:$4 sm:$0xff]  }
  0xdc   :  { %7118 = vmatprep.subr.bf16.mxu0 %v10604_v35  ;;  %7892 = vmatprep.subr.bf16.mxu1 %v10607_v36  ;;  %v10695_v35 = vld [vmem:[%s15631_s1 + $0x8c0] ss:$16 sps:$4 sm:$0xff]   ;;  %v10698_v36 = vld [vmem:[%s15631_s1 + $0x8c8] ss:$16 sps:$4 sm:$0xff]  }
  0xdf   :  { %7119 = vmatpush1.bf16.msra.mxu0 %v10602_v37  ;;  %7893 = vmatpush1.bf16.msra.mxu1 %v10605_v38  ;;  %v10703_v37 = vld [vmem:[%s15631_s1 + $0x8e4] ss:$16 sps:$4 sm:$0xff]   ;;  %v10706_v38 = vld [vmem:[%s15631_s1 + $0x8ec] ss:$16 sps:$4 sm:$0xff]  }
  0xe0   :  { %7120 = vmatprep.subr.bf16.mxu0 %v10610_v39  ;;  %7894 = vmatprep.subr.bf16.mxu1 %v10613_v40  ;;  %v10701_v39 = vld [vmem:[%s15631_s1 + $0x8e0] ss:$16 sps:$4 sm:$0xff]   ;;  %v10704_v40 = vld [vmem:[%s15631_s1 + $0x8e8] ss:$16 sps:$4 sm:$0xff]  }
  0xe3   :  { %7121 = vmatpush1.bf16.msra.mxu0 %v10608_v41  ;;  %7895 = vmatpush1.bf16.msra.mxu1 %v10611_v42  ;;  %v10709_v41 = vld [vmem:[%s15631_s1 + $0x904] ss:$16 sps:$4 sm:$0xff]   ;;  %v10712_v42 = vld [vmem:[%s15631_s1 + $0x90c] ss:$16 sps:$4 sm:$0xff]  }
  0xe4   :  { %7122 = vmatprep.subr.bf16.mxu0 %v10616_v43  ;;  %7896 = vmatprep.subr.bf16.mxu1 %v10619_v44  ;;  %v10707_v43 = vld [vmem:[%s15631_s1 + $0x900] ss:$16 sps:$4 sm:$0xff]   ;;  %v10710_v44 = vld [vmem:[%s15631_s1 + $0x908] ss:$16 sps:$4 sm:$0xff]  }
  0xe7   :  { %7123 = vmatpush1.bf16.msra.mxu0 %v10614_v45  ;;  %7897 = vmatpush1.bf16.msra.mxu1 %v10617_v46  ;;  %v10715_v45 = vld [vmem:[%s15631_s1 + $0x924] ss:$16 sps:$4 sm:$0xff]   ;;  %v10718_v46 = vld [vmem:[%s15631_s1 + $0x92c] ss:$16 sps:$4 sm:$0xff]  }
  0xe8   :  { %7124 = vmatprep.subr.bf16.mxu0 %v10622_v47  ;;  %7898 = vmatprep.subr.bf16.mxu1 %v10625_v48  ;;  %v10713_v47 = vld [vmem:[%s15631_s1 + $0x920] ss:$16 sps:$4 sm:$0xff]   ;;  %v10716_v48 = vld [vmem:[%s15631_s1 + $0x928] ss:$16 sps:$4 sm:$0xff]  }
  0xeb   :  { %7125 = vmatpush1.bf16.msra.mxu0 %v10620_v49  ;;  %7899 = vmatpush1.bf16.msra.mxu1 %v10623_v50  ;;  %v10721_v49 = vld [vmem:[%s15631_s1 + $0x944] ss:$16 sps:$4 sm:$0xff]   ;;  %v10724_v50 = vld [vmem:[%s15631_s1 + $0x94c] ss:$16 sps:$4 sm:$0xff]  }
  0xec   :  { %7126 = vmatprep.subr.bf16.mxu0 %v10628_v51  ;;  %7900 = vmatprep.subr.bf16.mxu1 %v10631_v52  ;;  %v10719_v51 = vld [vmem:[%s15631_s1 + $0x940] ss:$16 sps:$4 sm:$0xff]   ;;  %v10722_v52 = vld [vmem:[%s15631_s1 + $0x948] ss:$16 sps:$4 sm:$0xff]  }
  0xef   :  { %7127 = vmatpush1.bf16.msra.mxu0 %v10626_v53  ;;  %7901 = vmatpush1.bf16.msra.mxu1 %v10629_v54  ;;  %v10727_v53 = vld [vmem:[%s15631_s1 + $0x964] ss:$16 sps:$4 sm:$0xff]   ;;  %v10730_v54 = vld [vmem:[%s15631_s1 + $0x96c] ss:$16 sps:$4 sm:$0xff]  }
  0xf0   :  { %7128 = vmatprep.subr.bf16.mxu0 %v10634_v55  ;;  %7902 = vmatprep.subr.bf16.mxu1 %v10637_v56  ;;  %v10725_v55 = vld [vmem:[%s15631_s1 + $0x960] ss:$16 sps:$4 sm:$0xff]   ;;  %v10728_v56 = vld [vmem:[%s15631_s1 + $0x968] ss:$16 sps:$4 sm:$0xff]  }
  0xf3   :  { %7129 = vmatpush1.bf16.msra.mxu0 %v10632_v57  ;;  %7903 = vmatpush1.bf16.msra.mxu1 %v10635_v58  ;;  %v10733_v57 = vld [vmem:[%s15631_s1 + $0x984] ss:$16 sps:$4 sm:$0xff]   ;;  %v10736_v58 = vld [vmem:[%s15631_s1 + $0x98c] ss:$16 sps:$4 sm:$0xff]  }
  0xf4   :  { %7130 = vmatprep.subr.bf16.mxu0 %v10640_v59  ;;  %7904 = vmatprep.subr.bf16.mxu1 %v10643_v60  ;;  %v10731_v59 = vld [vmem:[%s15631_s1 + $0x980] ss:$16 sps:$4 sm:$0xff]   ;;  %v10734_v60 = vld [vmem:[%s15631_s1 + $0x988] ss:$16 sps:$4 sm:$0xff]  }
  0xf7   :  { %7131 = vmatpush1.bf16.msra.mxu0 %v10638_v61  ;;  %7905 = vmatpush1.bf16.msra.mxu1 %v10641_v62  ;;  %v10739_v61 = vld [vmem:[%s15631_s1 + $0x9a4] ss:$16 sps:$4 sm:$0xff]   ;;  %v10742_v62 = vld [vmem:[%s15631_s1 + $0x9ac] ss:$16 sps:$4 sm:$0xff]  }
  0xf8   :  { %7132 = vmatprep.subr.bf16.mxu0 %v10646_v63  ;;  %7906 = vmatprep.subr.bf16.mxu1 %v10649_v0  ;;  %v10737_v63 = vld [vmem:[%s15631_s1 + $0x9a0] ss:$16 sps:$4 sm:$0xff]   ;;  %v10740_v0 = vld [vmem:[%s15631_s1 + $0x9a8] ss:$16 sps:$4 sm:$0xff]  }
  0xfb   :  { %7133 = vmatpush1.bf16.msra.mxu0 %v10644_v1  ;;  %7907 = vmatpush1.bf16.msra.mxu1 %v10647_v2  ;;  %v10745_v1 = vld [vmem:[%s15631_s1 + $0x9c4] ss:$16 sps:$4 sm:$0xff]   ;;  %v10748_v2 = vld [vmem:[%s15631_s1 + $0x9cc] ss:$16 sps:$4 sm:$0xff]  }
  0xfc   :  { %7134 = vmatprep.subr.bf16.mxu0 %v10652_v3  ;;  %7908 = vmatprep.subr.bf16.mxu1 %v10655_v4  ;;  %v10743_v3 = vld [vmem:[%s15631_s1 + $0x9c0] ss:$16 sps:$4 sm:$0xff]   ;;  %v10746_v4 = vld [vmem:[%s15631_s1 + $0x9c8] ss:$16 sps:$4 sm:$0xff]  }
  0xff   :  { %7135 = vmatpush1.bf16.msra.mxu0 %v10650_v5  ;;  %7909 = vmatpush1.bf16.msra.mxu1 %v10653_v6  ;;  %v10751_v5 = vld [vmem:[%s15631_s1 + $0x9e4] ss:$16 sps:$4 sm:$0xff]   ;;  %v10754_v6 = vld [vmem:[%s15631_s1 + $0x9ec] ss:$16 sps:$4 sm:$0xff]  }
 0x100   :  { %7147 = vmatprep.subr.bf16.mxu0 %v10661_v7  ;;  %7921 = vmatprep.subr.bf16.mxu1 %v10664_v8  ;;  %v10749_v7 = vld [vmem:[%s15631_s1 + $0x9e0] ss:$16 sps:$4 sm:$0xff]   ;;  %v10752_v8 = vld [vmem:[%s15631_s1 + $0x9e8] ss:$16 sps:$4 sm:$0xff]  }
 0x102   :  { %7137 = vmatmul.mubr.bf16.vlgmr.msra.gmra.mrb[0].mxu0 %v10656_v9  ;;  %7911 = vmatmul.mubr.bf16.vlgmr.msra.gmra.mrb[0].mxu1 %v10656_v9  ;;  %v10755_v9 = vld [vmem:[%s15632_s0 + $0x20] ss:$140 sps:$4 sm:$0xff]  }
 0x103   :  { %7148 = vmatpush1.bf16.msra.mxu0 %v10659_v10  ;;  %7922 = vmatpush1.bf16.msra.mxu1 %v10662_v11  ;;  %v10760_v10 = vld [vmem:[%s15631_s1 + $0xa04] ss:$16 sps:$4 sm:$0xff]   ;;  %v10763_v11 = vld [vmem:[%s15631_s1 + $0xa0c] ss:$16 sps:$4 sm:$0xff]  }
 0x104   :  { %7149 = vmatprep.subr.bf16.mxu0 %v10667_v12  ;;  %7923 = vmatprep.subr.bf16.mxu1 %v10670_v13  ;;  %v10758_v12 = vld [vmem:[%s15631_s1 + $0xa00] ss:$16 sps:$4 sm:$0xff]   ;;  %v10761_v13 = vld [vmem:[%s15631_s1 + $0xa08] ss:$16 sps:$4 sm:$0xff]  }
 0x105   :  { %7179 = vmatprep.mubr.bf16.mxu0 %v10757_v14  ;;  %7953 = vmatprep.mubr.bf16.mxu1 %v10757_v14  ;;  %v10766_v14 = vld [vmem:[%s15631_s1 + $0xa24] ss:$16 sps:$4 sm:$0xff]  }
 0x107   :  { %7150 = vmatpush1.bf16.msra.mxu0 %v10665_v15  ;;  %7924 = vmatpush1.bf16.msra.mxu1 %v10668_v16  ;;  %v10769_v15 = vld [vmem:[%s15631_s1 + $0xa2c] ss:$16 sps:$4 sm:$0xff]  }
 0x108   :  { %7151 = vmatprep.subr.bf16.mxu0 %v10673_v17  ;;  %7925 = vmatprep.subr.bf16.mxu1 %v10676_v18  ;;  %v10856_v16 = vld [vmem:[%s15632_s0 + $0x2c] ss:$140 sps:$4 sm:$0xff]   ;;  %v10764_v17 = vld [vmem:[%s15631_s1 + $0xa20] ss:$16 sps:$4 sm:$0xff]  }
 0x109   :  { %v10767_v18 = vld [vmem:[%s15631_s1 + $0xa28] ss:$16 sps:$4 sm:$0xff]  }
 0x10b   :  { %7152 = vmatpush1.bf16.msra.mxu0 %v10671_v19  ;;  %7926 = vmatpush1.bf16.msra.mxu1 %v10674_v20  ;;  %v10772_v19 = vld [vmem:[%s15631_s1 + $0xa44] ss:$16 sps:$4 sm:$0xff]   ;;  %v10775_v20 = vld [vmem:[%s15631_s1 + $0xa4c] ss:$16 sps:$4 sm:$0xff]  }
 0x10c   :  { %7153 = vmatprep.subr.bf16.mxu0 %v10679_v21  ;;  %7927 = vmatprep.subr.bf16.mxu1 %v10682_v22  ;;  %v10770_v21 = vld [vmem:[%s15631_s1 + $0xa40] ss:$16 sps:$4 sm:$0xff]   ;;  %v10773_v22 = vld [vmem:[%s15631_s1 + $0xa48] ss:$16 sps:$4 sm:$0xff]  }
 0x10f   :  { %7154 = vmatpush1.bf16.msra.mxu0 %v10677_v23  ;;  %7928 = vmatpush1.bf16.msra.mxu1 %v10680_v24  ;;  %v10778_v23 = vld [vmem:[%s15631_s1 + $0xa64] ss:$16 sps:$4 sm:$0xff]   ;;  %v10781_v24 = vld [vmem:[%s15631_s1 + $0xa6c] ss:$16 sps:$4 sm:$0xff]  }
 0x110   :  { %7155 = vmatprep.subr.bf16.mxu0 %v10685_v25  ;;  %7929 = vmatprep.subr.bf16.mxu1 %v10688_v26  ;;  %v10776_v25 = vld [vmem:[%s15631_s1 + $0xa60] ss:$16 sps:$4 sm:$0xff]   ;;  %v10779_v26 = vld [vmem:[%s15631_s1 + $0xa68] ss:$16 sps:$4 sm:$0xff]  }
 0x113   :  { %7156 = vmatpush1.bf16.msra.mxu0 %v10683_v27  ;;  %7930 = vmatpush1.bf16.msra.mxu1 %v10686_v28  ;;  %v10784_v27 = vld [vmem:[%s15631_s1 + $0xa84] ss:$16 sps:$4 sm:$0xff]   ;;  %v10787_v28 = vld [vmem:[%s15631_s1 + $0xa8c] ss:$16 sps:$4 sm:$0xff]  }
 0x114   :  { %7157 = vmatprep.subr.bf16.mxu0 %v10691_v29  ;;  %7931 = vmatprep.subr.bf16.mxu1 %v10694_v30  ;;  %v10782_v29 = vld [vmem:[%s15631_s1 + $0xa80] ss:$16 sps:$4 sm:$0xff]   ;;  %v10785_v30 = vld [vmem:[%s15631_s1 + $0xa88] ss:$16 sps:$4 sm:$0xff]  }
 0x117   :  { %7158 = vmatpush1.bf16.msra.mxu0 %v10689_v31  ;;  %7932 = vmatpush1.bf16.msra.mxu1 %v10692_v32  ;;  %v10790_v31 = vld [vmem:[%s15631_s1 + $0xaa4] ss:$16 sps:$4 sm:$0xff]   ;;  %v10793_v32 = vld [vmem:[%s15631_s1 + $0xaac] ss:$16 sps:$4 sm:$0xff]  }
 0x118   :  { %7159 = vmatprep.subr.bf16.mxu0 %v10697_v33  ;;  %7933 = vmatprep.subr.bf16.mxu1 %v10700_v34  ;;  %v10788_v33 = vld [vmem:[%s15631_s1 + $0xaa0] ss:$16 sps:$4 sm:$0xff]   ;;  %v10791_v34 = vld [vmem:[%s15631_s1 + $0xaa8] ss:$16 sps:$4 sm:$0xff]  }
 0x11b   :  { %7160 = vmatpush1.bf16.msra.mxu0 %v10695_v35  ;;  %7934 = vmatpush1.bf16.msra.mxu1 %v10698_v36  ;;  %v10796_v35 = vld [vmem:[%s15631_s1 + $0xac4] ss:$16 sps:$4 sm:$0xff]   ;;  %v10799_v36 = vld [vmem:[%s15631_s1 + $0xacc] ss:$16 sps:$4 sm:$0xff]  }
 0x11c   :  { %7161 = vmatprep.subr.bf16.mxu0 %v10703_v37  ;;  %7935 = vmatprep.subr.bf16.mxu1 %v10706_v38  ;;  %v10794_v37 = vld [vmem:[%s15631_s1 + $0xac0] ss:$16 sps:$4 sm:$0xff]   ;;  %v10797_v38 = vld [vmem:[%s15631_s1 + $0xac8] ss:$16 sps:$4 sm:$0xff]  }
 0x11f   :  { %7162 = vmatpush1.bf16.msra.mxu0 %v10701_v39  ;;  %7936 = vmatpush1.bf16.msra.mxu1 %v10704_v40  ;;  %v10802_v39 = vld [vmem:[%s15631_s1 + $0xae4] ss:$16 sps:$4 sm:$0xff]   ;;  %v10805_v40 = vld [vmem:[%s15631_s1 + $0xaec] ss:$16 sps:$4 sm:$0xff]  }
 0x120   :  { %7163 = vmatprep.subr.bf16.mxu0 %v10709_v41  ;;  %7937 = vmatprep.subr.bf16.mxu1 %v10712_v42  ;;  %v10800_v41 = vld [vmem:[%s15631_s1 + $0xae0] ss:$16 sps:$4 sm:$0xff]   ;;  %v10803_v42 = vld [vmem:[%s15631_s1 + $0xae8] ss:$16 sps:$4 sm:$0xff]  }
 0x123   :  { %7164 = vmatpush1.bf16.msra.mxu0 %v10707_v43  ;;  %7938 = vmatpush1.bf16.msra.mxu1 %v10710_v44  ;;  %v10808_v43 = vld [vmem:[%s15631_s1 + $0xb04] ss:$16 sps:$4 sm:$0xff]   ;;  %v10811_v44 = vld [vmem:[%s15631_s1 + $0xb0c] ss:$16 sps:$4 sm:$0xff]  }
 0x124   :  { %7165 = vmatprep.subr.bf16.mxu0 %v10715_v45  ;;  %7939 = vmatprep.subr.bf16.mxu1 %v10718_v46  ;;  %v10806_v45 = vld [vmem:[%s15631_s1 + $0xb00] ss:$16 sps:$4 sm:$0xff]   ;;  %v10809_v46 = vld [vmem:[%s15631_s1 + $0xb08] ss:$16 sps:$4 sm:$0xff]  }
 0x127   :  { %7166 = vmatpush1.bf16.msra.mxu0 %v10713_v47  ;;  %7940 = vmatpush1.bf16.msra.mxu1 %v10716_v48  ;;  %v10814_v47 = vld [vmem:[%s15631_s1 + $0xb24] ss:$16 sps:$4 sm:$0xff]   ;;  %v10817_v48 = vld [vmem:[%s15631_s1 + $0xb2c] ss:$16 sps:$4 sm:$0xff]  }
 0x128   :  { %7167 = vmatprep.subr.bf16.mxu0 %v10721_v49  ;;  %7941 = vmatprep.subr.bf16.mxu1 %v10724_v50  ;;  %v10812_v49 = vld [vmem:[%s15631_s1 + $0xb20] ss:$16 sps:$4 sm:$0xff]   ;;  %v10815_v50 = vld [vmem:[%s15631_s1 + $0xb28] ss:$16 sps:$4 sm:$0xff]  }
 0x12b   :  { %7168 = vmatpush1.bf16.msra.mxu0 %v10719_v51  ;;  %7942 = vmatpush1.bf16.msra.mxu1 %v10722_v52  ;;  %v10820_v51 = vld [vmem:[%s15631_s1 + $0xb44] ss:$16 sps:$4 sm:$0xff]   ;;  %v10823_v52 = vld [vmem:[%s15631_s1 + $0xb4c] ss:$16 sps:$4 sm:$0xff]  }
 0x12c   :  { %7169 = vmatprep.subr.bf16.mxu0 %v10727_v53  ;;  %7943 = vmatprep.subr.bf16.mxu1 %v10730_v54  ;;  %v10818_v53 = vld [vmem:[%s15631_s1 + $0xb40] ss:$16 sps:$4 sm:$0xff]   ;;  %v10821_v54 = vld [vmem:[%s15631_s1 + $0xb48] ss:$16 sps:$4 sm:$0xff]  }
 0x12f   :  { %7170 = vmatpush1.bf16.msra.mxu0 %v10725_v55  ;;  %7944 = vmatpush1.bf16.msra.mxu1 %v10728_v56  ;;  %v10826_v55 = vld [vmem:[%s15631_s1 + $0xb64] ss:$16 sps:$4 sm:$0xff]   ;;  %v10829_v56 = vld [vmem:[%s15631_s1 + $0xb6c] ss:$16 sps:$4 sm:$0xff]  }
 0x130   :  { %7171 = vmatprep.subr.bf16.mxu0 %v10733_v57  ;;  %7945 = vmatprep.subr.bf16.mxu1 %v10736_v58  ;;  %v10824_v57 = vld [vmem:[%s15631_s1 + $0xb60] ss:$16 sps:$4 sm:$0xff]   ;;  %v10827_v58 = vld [vmem:[%s15631_s1 + $0xb68] ss:$16 sps:$4 sm:$0xff]  }
 0x133   :  { %7172 = vmatpush1.bf16.msra.mxu0 %v10731_v59  ;;  %7946 = vmatpush1.bf16.msra.mxu1 %v10734_v60  ;;  %v10832_v59 = vld [vmem:[%s15631_s1 + $0xb84] ss:$16 sps:$4 sm:$0xff]   ;;  %v10835_v60 = vld [vmem:[%s15631_s1 + $0xb8c] ss:$16 sps:$4 sm:$0xff]  }
 0x134   :  { %7173 = vmatprep.subr.bf16.mxu0 %v10739_v61  ;;  %7947 = vmatprep.subr.bf16.mxu1 %v10742_v62  ;;  %v10830_v61 = vld [vmem:[%s15631_s1 + $0xb80] ss:$16 sps:$4 sm:$0xff]   ;;  %v10833_v62 = vld [vmem:[%s15631_s1 + $0xb88] ss:$16 sps:$4 sm:$0xff]  }
 0x137   :  { %7174 = vmatpush1.bf16.msra.mxu0 %v10737_v63  ;;  %7948 = vmatpush1.bf16.msra.mxu1 %v10740_v0  ;;  %v10838_v63 = vld [vmem:[%s15631_s1 + $0xba4] ss:$16 sps:$4 sm:$0xff]   ;;  %v10841_v0 = vld [vmem:[%s15631_s1 + $0xbac] ss:$16 sps:$4 sm:$0xff]  }
 0x138   :  { %7175 = vmatprep.subr.bf16.mxu0 %v10745_v1  ;;  %7949 = vmatprep.subr.bf16.mxu1 %v10748_v2  ;;  %v10836_v1 = vld [vmem:[%s15631_s1 + $0xba0] ss:$16 sps:$4 sm:$0xff]   ;;  %v10839_v2 = vld [vmem:[%s15631_s1 + $0xba8] ss:$16 sps:$4 sm:$0xff]  }
 0x13b   :  { %7176 = vmatpush1.bf16.msra.mxu0 %v10743_v3  ;;  %7950 = vmatpush1.bf16.msra.mxu1 %v10746_v4  ;;  %v10844_v3 = vld [vmem:[%s15631_s1 + $0xbc4] ss:$16 sps:$4 sm:$0xff]   ;;  %v10847_v4 = vld [vmem:[%s15631_s1 + $0xbcc] ss:$16 sps:$4 sm:$0xff]  }
 0x13c   :  { %7177 = vmatprep.subr.bf16.mxu0 %v10751_v5  ;;  %7951 = vmatprep.subr.bf16.mxu1 %v10754_v6  ;;  %v10842_v5 = vld [vmem:[%s15631_s1 + $0xbc0] ss:$16 sps:$4 sm:$0xff]   ;;  %v10845_v6 = vld [vmem:[%s15631_s1 + $0xbc8] ss:$16 sps:$4 sm:$0xff]  }
 0x13f   :  { %7178 = vmatpush1.bf16.msra.mxu0 %v10749_v7  ;;  %7952 = vmatpush1.bf16.msra.mxu1 %v10752_v8  ;;  %v10850_v7 = vld [vmem:[%s15631_s1 + $0xbe4] ss:$16 sps:$4 sm:$0xff]   ;;  %v10853_v8 = vld [vmem:[%s15631_s1 + $0xbec] ss:$16 sps:$4 sm:$0xff]  }
 0x140   :  { %7190 = vmatprep.subr.bf16.mxu0 %v10760_v10  ;;  %7964 = vmatprep.subr.bf16.mxu1 %v10763_v11  ;;  %v10851_v10 = vld [vmem:[%s15631_s1 + $0xbe8] ss:$16 sps:$4 sm:$0xff]  }
 0x141   :  { %v10854_v11 = vld [vmem:[%s15632_s0 + $0x28] ss:$140 sps:$4 sm:$0xff]  }
 0x142   :  { %7180 = vmatmul.mubr.bf16.vlgmr.msra.gmra.mrb[0].mxu0 %v10755_v9  ;;  %7954 = vmatmul.mubr.bf16.vlgmr.msra.gmra.mrb[0].mxu1 %v10755_v9  ;;  %v10848_v9 = vld [vmem:[%s15631_s1 + $0xbe0] ss:$16 sps:$4 sm:$0xff]  }
 0x143   :  { %7191 = vmatpush1.bf16.msra.mxu0 %v10758_v12  ;;  %7965 = vmatpush1.bf16.msra.mxu1 %v10761_v13  ;;  %v10859_v12 = vld [vmem:[%s15631_s1 + $0xc04] ss:$16 sps:$4 sm:$0xff]   ;;  %v10862_v13 = vld [vmem:[%s15631_s1 + $0xc0c] ss:$16 sps:$4 sm:$0xff]  }
 0x144   :  { %7192 = vmatprep.subr.bf16.mxu0 %v10766_v14  ;;  %7966 = vmatprep.subr.bf16.mxu1 %v10769_v15  ;;  %v10857_v14 = vld [vmem:[%s15631_s1 + $0xc00] ss:$16 sps:$4 sm:$0xff]   ;;  %v10860_v15 = vld [vmem:[%s15631_s1 + $0xc08] ss:$16 sps:$4 sm:$0xff]  }
 0x145   :  { %7222 = vmatprep.mubr.bf16.mxu0 %v10856_v16  ;;  %7996 = vmatprep.mubr.bf16.mxu1 %v10856_v16  ;;  %v10865_v16 = vld [vmem:[%s15631_s1 + $0xc24] ss:$16 sps:$4 sm:$0xff]  }
 0x147   :  { %7193 = vmatpush1.bf16.msra.mxu0 %v10764_v17  ;;  %7967 = vmatpush1.bf16.msra.mxu1 %v10767_v18  ;;  %v10868_v17 = vld [vmem:[%s15631_s1 + $0xc2c] ss:$16 sps:$4 sm:$0xff]   ;;  %v10955_v18 = vld [vmem:[%s15632_s0 + $0x34] ss:$140 sps:$4 sm:$0xff]  }
 0x148   :  { %7194 = vmatprep.subr.bf16.mxu0 %v10772_v19  ;;  %7968 = vmatprep.subr.bf16.mxu1 %v10775_v20  ;;  %v10863_v19 = vld [vmem:[%s15631_s1 + $0xc20] ss:$16 sps:$4 sm:$0xff]   ;;  %v10866_v20 = vld [vmem:[%s15631_s1 + $0xc28] ss:$16 sps:$4 sm:$0xff]  }
 0x14b   :  { %7195 = vmatpush1.bf16.msra.mxu0 %v10770_v21  ;;  %7969 = vmatpush1.bf16.msra.mxu1 %v10773_v22  ;;  %v10871_v21 = vld [vmem:[%s15631_s1 + $0xc44] ss:$16 sps:$4 sm:$0xff]   ;;  %v10874_v22 = vld [vmem:[%s15631_s1 + $0xc4c] ss:$16 sps:$4 sm:$0xff]  }
 0x14c   :  { %7196 = vmatprep.subr.bf16.mxu0 %v10778_v23  ;;  %7970 = vmatprep.subr.bf16.mxu1 %v10781_v24  ;;  %v10869_v23 = vld [vmem:[%s15631_s1 + $0xc40] ss:$16 sps:$4 sm:$0xff]   ;;  %v10872_v24 = vld [vmem:[%s15631_s1 + $0xc48] ss:$16 sps:$4 sm:$0xff]  }
 0x14f   :  { %7197 = vmatpush1.bf16.msra.mxu0 %v10776_v25  ;;  %7971 = vmatpush1.bf16.msra.mxu1 %v10779_v26  ;;  %v10877_v25 = vld [vmem:[%s15631_s1 + $0xc64] ss:$16 sps:$4 sm:$0xff]   ;;  %v10880_v26 = vld [vmem:[%s15631_s1 + $0xc6c] ss:$16 sps:$4 sm:$0xff]  }
 0x150   :  { %7198 = vmatprep.subr.bf16.mxu0 %v10784_v27  ;;  %7972 = vmatprep.subr.bf16.mxu1 %v10787_v28  ;;  %v10875_v27 = vld [vmem:[%s15631_s1 + $0xc60] ss:$16 sps:$4 sm:$0xff]   ;;  %v10878_v28 = vld [vmem:[%s15631_s1 + $0xc68] ss:$16 sps:$4 sm:$0xff]  }
 0x153   :  { %7199 = vmatpush1.bf16.msra.mxu0 %v10782_v29  ;;  %7973 = vmatpush1.bf16.msra.mxu1 %v10785_v30  ;;  %v10883_v29 = vld [vmem:[%s15631_s1 + $0xc84] ss:$16 sps:$4 sm:$0xff]   ;;  %v10886_v30 = vld [vmem:[%s15631_s1 + $0xc8c] ss:$16 sps:$4 sm:$0xff]  }
 0x154   :  { %7200 = vmatprep.subr.bf16.mxu0 %v10790_v31  ;;  %7974 = vmatprep.subr.bf16.mxu1 %v10793_v32  ;;  %v10881_v31 = vld [vmem:[%s15631_s1 + $0xc80] ss:$16 sps:$4 sm:$0xff]   ;;  %v10884_v32 = vld [vmem:[%s15631_s1 + $0xc88] ss:$16 sps:$4 sm:$0xff]  }
 0x157   :  { %7201 = vmatpush1.bf16.msra.mxu0 %v10788_v33  ;;  %7975 = vmatpush1.bf16.msra.mxu1 %v10791_v34  ;;  %v10889_v33 = vld [vmem:[%s15631_s1 + $0xca4] ss:$16 sps:$4 sm:$0xff]   ;;  %v10892_v34 = vld [vmem:[%s15631_s1 + $0xcac] ss:$16 sps:$4 sm:$0xff]  }
 0x158   :  { %7202 = vmatprep.subr.bf16.mxu0 %v10796_v35  ;;  %7976 = vmatprep.subr.bf16.mxu1 %v10799_v36  ;;  %v10887_v35 = vld [vmem:[%s15631_s1 + $0xca0] ss:$16 sps:$4 sm:$0xff]   ;;  %v10890_v36 = vld [vmem:[%s15631_s1 + $0xca8] ss:$16 sps:$4 sm:$0xff]  }
 0x15b   :  { %7203 = vmatpush1.bf16.msra.mxu0 %v10794_v37  ;;  %7977 = vmatpush1.bf16.msra.mxu1 %v10797_v38  ;;  %v10895_v37 = vld [vmem:[%s15631_s1 + $0xcc4] ss:$16 sps:$4 sm:$0xff]   ;;  %v10898_v38 = vld [vmem:[%s15631_s1 + $0xccc] ss:$16 sps:$4 sm:$0xff]  }
 0x15c   :  { %7204 = vmatprep.subr.bf16.mxu0 %v10802_v39  ;;  %7978 = vmatprep.subr.bf16.mxu1 %v10805_v40  ;;  %v10893_v39 = vld [vmem:[%s15631_s1 + $0xcc0] ss:$16 sps:$4 sm:$0xff]   ;;  %v10896_v40 = vld [vmem:[%s15631_s1 + $0xcc8] ss:$16 sps:$4 sm:$0xff]  }
 0x15f   :  { %7205 = vmatpush1.bf16.msra.mxu0 %v10800_v41  ;;  %7979 = vmatpush1.bf16.msra.mxu1 %v10803_v42  ;;  %v10901_v41 = vld [vmem:[%s15631_s1 + $0xce4] ss:$16 sps:$4 sm:$0xff]   ;;  %v10904_v42 = vld [vmem:[%s15631_s1 + $0xcec] ss:$16 sps:$4 sm:$0xff]  }
 0x160   :  { %7206 = vmatprep.subr.bf16.mxu0 %v10808_v43  ;;  %7980 = vmatprep.subr.bf16.mxu1 %v10811_v44  ;;  %v10899_v43 = vld [vmem:[%s15631_s1 + $0xce0] ss:$16 sps:$4 sm:$0xff]   ;;  %v10902_v44 = vld [vmem:[%s15631_s1 + $0xce8] ss:$16 sps:$4 sm:$0xff]  }
 0x163   :  { %7207 = vmatpush1.bf16.msra.mxu0 %v10806_v45  ;;  %7981 = vmatpush1.bf16.msra.mxu1 %v10809_v46  ;;  %v10907_v45 = vld [vmem:[%s15631_s1 + $0xd04] ss:$16 sps:$4 sm:$0xff]   ;;  %v10910_v46 = vld [vmem:[%s15631_s1 + $0xd0c] ss:$16 sps:$4 sm:$0xff]  }
 0x164   :  { %7208 = vmatprep.subr.bf16.mxu0 %v10814_v47  ;;  %7982 = vmatprep.subr.bf16.mxu1 %v10817_v48  ;;  %v10905_v47 = vld [vmem:[%s15631_s1 + $0xd00] ss:$16 sps:$4 sm:$0xff]   ;;  %v10908_v48 = vld [vmem:[%s15631_s1 + $0xd08] ss:$16 sps:$4 sm:$0xff]  }
 0x167   :  { %7209 = vmatpush1.bf16.msra.mxu0 %v10812_v49  ;;  %7983 = vmatpush1.bf16.msra.mxu1 %v10815_v50  ;;  %v10913_v49 = vld [vmem:[%s15631_s1 + $0xd24] ss:$16 sps:$4 sm:$0xff]   ;;  %v10916_v50 = vld [vmem:[%s15631_s1 + $0xd2c] ss:$16 sps:$4 sm:$0xff]  }
 0x168   :  { %7210 = vmatprep.subr.bf16.mxu0 %v10820_v51  ;;  %7984 = vmatprep.subr.bf16.mxu1 %v10823_v52  ;;  %v10911_v51 = vld [vmem:[%s15631_s1 + $0xd20] ss:$16 sps:$4 sm:$0xff]   ;;  %v10914_v52 = vld [vmem:[%s15631_s1 + $0xd28] ss:$16 sps:$4 sm:$0xff]  }
 0x16b   :  { %7211 = vmatpush1.bf16.msra.mxu0 %v10818_v53  ;;  %7985 = vmatpush1.bf16.msra.mxu1 %v10821_v54  ;;  %v10919_v53 = vld [vmem:[%s15631_s1 + $0xd44] ss:$16 sps:$4 sm:$0xff]   ;;  %v10922_v54 = vld [vmem:[%s15631_s1 + $0xd4c] ss:$16 sps:$4 sm:$0xff]  }
 0x16c   :  { %7212 = vmatprep.subr.bf16.mxu0 %v10826_v55  ;;  %7986 = vmatprep.subr.bf16.mxu1 %v10829_v56  ;;  %v10917_v55 = vld [vmem:[%s15631_s1 + $0xd40] ss:$16 sps:$4 sm:$0xff]   ;;  %v10920_v56 = vld [vmem:[%s15631_s1 + $0xd48] ss:$16 sps:$4 sm:$0xff]  }
 0x16f   :  { %7213 = vmatpush1.bf16.msra.mxu0 %v10824_v57  ;;  %7987 = vmatpush1.bf16.msra.mxu1 %v10827_v58  ;;  %v10925_v57 = vld [vmem:[%s15631_s1 + $0xd64] ss:$16 sps:$4 sm:$0xff]   ;;  %v10928_v58 = vld [vmem:[%s15631_s1 + $0xd6c] ss:$16 sps:$4 sm:$0xff]  }
 0x170   :  { %7214 = vmatprep.subr.bf16.mxu0 %v10832_v59  ;;  %7988 = vmatprep.subr.bf16.mxu1 %v10835_v60  ;;  %v10923_v59 = vld [vmem:[%s15631_s1 + $0xd60] ss:$16 sps:$4 sm:$0xff]   ;;  %v10926_v60 = vld [vmem:[%s15631_s1 + $0xd68] ss:$16 sps:$4 sm:$0xff]  }
 0x173   :  { %7215 = vmatpush1.bf16.msra.mxu0 %v10830_v61  ;;  %7989 = vmatpush1.bf16.msra.mxu1 %v10833_v62  ;;  %v10931_v61 = vld [vmem:[%s15631_s1 + $0xd84] ss:$16 sps:$4 sm:$0xff]   ;;  %v10934_v62 = vld [vmem:[%s15631_s1 + $0xd8c] ss:$16 sps:$4 sm:$0xff]  }
 0x174   :  { %7216 = vmatprep.subr.bf16.mxu0 %v10838_v63  ;;  %7990 = vmatprep.subr.bf16.mxu1 %v10841_v0  ;;  %v10929_v63 = vld [vmem:[%s15631_s1 + $0xd80] ss:$16 sps:$4 sm:$0xff]   ;;  %v10932_v0 = vld [vmem:[%s15631_s1 + $0xd88] ss:$16 sps:$4 sm:$0xff]  }
 0x177   :  { %7217 = vmatpush1.bf16.msra.mxu0 %v10836_v1  ;;  %7991 = vmatpush1.bf16.msra.mxu1 %v10839_v2  ;;  %v10937_v1 = vld [vmem:[%s15631_s1 + $0xda4] ss:$16 sps:$4 sm:$0xff]   ;;  %v10940_v2 = vld [vmem:[%s15631_s1 + $0xdac] ss:$16 sps:$4 sm:$0xff]  }
 0x178   :  { %7218 = vmatprep.subr.bf16.mxu0 %v10844_v3  ;;  %7992 = vmatprep.subr.bf16.mxu1 %v10847_v4  ;;  %v10935_v3 = vld [vmem:[%s15631_s1 + $0xda0] ss:$16 sps:$4 sm:$0xff]   ;;  %v10938_v4 = vld [vmem:[%s15631_s1 + $0xda8] ss:$16 sps:$4 sm:$0xff]  }
 0x17b   :  { %7219 = vmatpush1.bf16.msra.mxu0 %v10842_v5  ;;  %7993 = vmatpush1.bf16.msra.mxu1 %v10845_v6  ;;  %v10943_v5 = vld [vmem:[%s15631_s1 + $0xdc4] ss:$16 sps:$4 sm:$0xff]   ;;  %v10946_v6 = vld [vmem:[%s15631_s1 + $0xdcc] ss:$16 sps:$4 sm:$0xff]  }
 0x17c   :  { %7220 = vmatprep.subr.bf16.mxu0 %v10850_v7  ;;  %7994 = vmatprep.subr.bf16.mxu1 %v10853_v8  ;;  %v10941_v7 = vld [vmem:[%s15631_s1 + $0xdc0] ss:$16 sps:$4 sm:$0xff]   ;;  %v10944_v8 = vld [vmem:[%s15631_s1 + $0xdc8] ss:$16 sps:$4 sm:$0xff]  }
 0x17f   :  { %7221 = vmatpush1.bf16.msra.mxu0 %v10848_v9  ;;  %7995 = vmatpush1.bf16.msra.mxu1 %v10851_v10  ;;  %v10949_v9 = vld [vmem:[%s15631_s1 + $0xde4] ss:$16 sps:$4 sm:$0xff]   ;;  %v10952_v10 = vld [vmem:[%s15631_s1 + $0xdec] ss:$16 sps:$4 sm:$0xff]  }
 0x180   :  { %7233 = vmatprep.subr.bf16.mxu0 %v10859_v12  ;;  %8007 = vmatprep.subr.bf16.mxu1 %v10862_v13  ;;  %v10950_v12 = vld [vmem:[%s15631_s1 + $0xde8] ss:$16 sps:$4 sm:$0xff]   ;;  %v10953_v13 = vld [vmem:[%s15632_s0 + $0x30] ss:$140 sps:$4 sm:$0xff]  }
 0x182   :  { %7223 = vmatmul.mubr.bf16.vlgmr.msra.gmra.mrb[0].mxu0 %v10854_v11  ;;  %7997 = vmatmul.mubr.bf16.vlgmr.msra.gmra.mrb[0].mxu1 %v10854_v11  ;;  %v10947_v11 = vld [vmem:[%s15631_s1 + $0xde0] ss:$16 sps:$4 sm:$0xff]  }
 0x183   :  { %7234 = vmatpush1.bf16.msra.mxu0 %v10857_v14  ;;  %8008 = vmatpush1.bf16.msra.mxu1 %v10860_v15  ;;  %v10958_v14 = vld [vmem:[%s15631_s1 + $0xe04] ss:$16 sps:$4 sm:$0xff]   ;;  %v10961_v15 = vld [vmem:[%s15631_s1 + $0xe0c] ss:$16 sps:$4 sm:$0xff]  }
 0x184   :  { %7235 = vmatprep.subr.bf16.mxu0 %v10865_v16  ;;  %8009 = vmatprep.subr.bf16.mxu1 %v10868_v17  ;;  %v10956_v16 = vld [vmem:[%s15631_s1 + $0xe00] ss:$16 sps:$4 sm:$0xff]   ;;  %v10959_v17 = vld [vmem:[%s15631_s1 + $0xe08] ss:$16 sps:$4 sm:$0xff]  }
 0x185   :  { %7265 = vmatprep.mubr.bf16.mxu0 %v10955_v18  ;;  %8039 = vmatprep.mubr.bf16.mxu1 %v10955_v18  ;;  %v10964_v18 = vld [vmem:[%s15631_s1 + $0xe24] ss:$16 sps:$4 sm:$0xff]  }
 0x187   :  { %7236 = vmatpush1.bf16.msra.mxu0 %v10863_v19  ;;  %8010 = vmatpush1.bf16.msra.mxu1 %v10866_v20  ;;  %v10967_v19 = vld [vmem:[%s15631_s1 + $0xe2c] ss:$16 sps:$4 sm:$0xff]  }
 0x188   :  { %7237 = vmatprep.subr.bf16.mxu0 %v10871_v21  ;;  %8011 = vmatprep.subr.bf16.mxu1 %v10874_v22  ;;  %v11054_v20 = vld [vmem:[%s15632_s0 + $0x3c] ss:$140 sps:$4 sm:$0xff]   ;;  %v10962_v21 = vld [vmem:[%s15631_s1 + $0xe20] ss:$16 sps:$4 sm:$0xff]  }
 0x189   :  { %v10965_v22 = vld [vmem:[%s15631_s1 + $0xe28] ss:$16 sps:$4 sm:$0xff]  }
 0x18b   :  { %7238 = vmatpush1.bf16.msra.mxu0 %v10869_v23  ;;  %8012 = vmatpush1.bf16.msra.mxu1 %v10872_v24  ;;  %v10970_v23 = vld [vmem:[%s15631_s1 + $0xe44] ss:$16 sps:$4 sm:$0xff]   ;;  %v10973_v24 = vld [vmem:[%s15631_s1 + $0xe4c] ss:$16 sps:$4 sm:$0xff]  }
 0x18c   :  { %7239 = vmatprep.subr.bf16.mxu0 %v10877_v25  ;;  %8013 = vmatprep.subr.bf16.mxu1 %v10880_v26  ;;  %v10968_v25 = vld [vmem:[%s15631_s1 + $0xe40] ss:$16 sps:$4 sm:$0xff]   ;;  %v10971_v26 = vld [vmem:[%s15631_s1 + $0xe48] ss:$16 sps:$4 sm:$0xff]  }
 0x18f   :  { %7240 = vmatpush1.bf16.msra.mxu0 %v10875_v27  ;;  %8014 = vmatpush1.bf16.msra.mxu1 %v10878_v28  ;;  %v10976_v27 = vld [vmem:[%s15631_s1 + $0xe64] ss:$16 sps:$4 sm:$0xff]   ;;  %v10979_v28 = vld [vmem:[%s15631_s1 + $0xe6c] ss:$16 sps:$4 sm:$0xff]  }
 0x190   :  { %7241 = vmatprep.subr.bf16.mxu0 %v10883_v29  ;;  %8015 = vmatprep.subr.bf16.mxu1 %v10886_v30  ;;  %v10974_v29 = vld [vmem:[%s15631_s1 + $0xe60] ss:$16 sps:$4 sm:$0xff]   ;;  %v10977_v30 = vld [vmem:[%s15631_s1 + $0xe68] ss:$16 sps:$4 sm:$0xff]  }
 0x193   :  { %7242 = vmatpush1.bf16.msra.mxu0 %v10881_v31  ;;  %8016 = vmatpush1.bf16.msra.mxu1 %v10884_v32  ;;  %v10982_v31 = vld [vmem:[%s15631_s1 + $0xe84] ss:$16 sps:$4 sm:$0xff]   ;;  %v10985_v32 = vld [vmem:[%s15631_s1 + $0xe8c] ss:$16 sps:$4 sm:$0xff]  }
 0x194   :  { %7243 = vmatprep.subr.bf16.mxu0 %v10889_v33  ;;  %8017 = vmatprep.subr.bf16.mxu1 %v10892_v34  ;;  %v10980_v33 = vld [vmem:[%s15631_s1 + $0xe80] ss:$16 sps:$4 sm:$0xff]   ;;  %v10983_v34 = vld [vmem:[%s15631_s1 + $0xe88] ss:$16 sps:$4 sm:$0xff]  }
 0x197   :  { %7244 = vmatpush1.bf16.msra.mxu0 %v10887_v35  ;;  %8018 = vmatpush1.bf16.msra.mxu1 %v10890_v36  ;;  %v10988_v35 = vld [vmem:[%s15631_s1 + $0xea4] ss:$16 sps:$4 sm:$0xff]   ;;  %v10991_v36 = vld [vmem:[%s15631_s1 + $0xeac] ss:$16 sps:$4 sm:$0xff]  }
 0x198   :  { %7245 = vmatprep.subr.bf16.mxu0 %v10895_v37  ;;  %8019 = vmatprep.subr.bf16.mxu1 %v10898_v38  ;;  %v10986_v37 = vld [vmem:[%s15631_s1 + $0xea0] ss:$16 sps:$4 sm:$0xff]   ;;  %v10989_v38 = vld [vmem:[%s15631_s1 + $0xea8] ss:$16 sps:$4 sm:$0xff]  }
 0x19b   :  { %7246 = vmatpush1.bf16.msra.mxu0 %v10893_v39  ;;  %8020 = vmatpush1.bf16.msra.mxu1 %v10896_v40  ;;  %v10994_v39 = vld [vmem:[%s15631_s1 + $0xec4] ss:$16 sps:$4 sm:$0xff]   ;;  %v10997_v40 = vld [vmem:[%s15631_s1 + $0xecc] ss:$16 sps:$4 sm:$0xff]  }
 0x19c   :  { %7247 = vmatprep.subr.bf16.mxu0 %v10901_v41  ;;  %8021 = vmatprep.subr.bf16.mxu1 %v10904_v42  ;;  %v10992_v41 = vld [vmem:[%s15631_s1 + $0xec0] ss:$16 sps:$4 sm:$0xff]   ;;  %v10995_v42 = vld [vmem:[%s15631_s1 + $0xec8] ss:$16 sps:$4 sm:$0xff]  }
 0x19f   :  { %7248 = vmatpush1.bf16.msra.mxu0 %v10899_v43  ;;  %8022 = vmatpush1.bf16.msra.mxu1 %v10902_v44  ;;  %v11000_v43 = vld [vmem:[%s15631_s1 + $0xee4] ss:$16 sps:$4 sm:$0xff]   ;;  %v11003_v44 = vld [vmem:[%s15631_s1 + $0xeec] ss:$16 sps:$4 sm:$0xff]  }
 0x1a0   :  { %7249 = vmatprep.subr.bf16.mxu0 %v10907_v45  ;;  %8023 = vmatprep.subr.bf16.mxu1 %v10910_v46  ;;  %v10998_v45 = vld [vmem:[%s15631_s1 + $0xee0] ss:$16 sps:$4 sm:$0xff]   ;;  %v11001_v46 = vld [vmem:[%s15631_s1 + $0xee8] ss:$16 sps:$4 sm:$0xff]  }
 0x1a3   :  { %7250 = vmatpush1.bf16.msra.mxu0 %v10905_v47  ;;  %8024 = vmatpush1.bf16.msra.mxu1 %v10908_v48  ;;  %v11006_v47 = vld [vmem:[%s15631_s1 + $0xf04] ss:$16 sps:$4 sm:$0xff]   ;;  %v11009_v48 = vld [vmem:[%s15631_s1 + $0xf0c] ss:$16 sps:$4 sm:$0xff]  }
 0x1a4   :  { %7251 = vmatprep.subr.bf16.mxu0 %v10913_v49  ;;  %8025 = vmatprep.subr.bf16.mxu1 %v10916_v50  ;;  %v11004_v49 = vld [vmem:[%s15631_s1 + $0xf00] ss:$16 sps:$4 sm:$0xff]   ;;  %v11007_v50 = vld [vmem:[%s15631_s1 + $0xf08] ss:$16 sps:$4 sm:$0xff]  }
 0x1a7   :  { %7252 = vmatpush1.bf16.msra.mxu0 %v10911_v51  ;;  %8026 = vmatpush1.bf16.msra.mxu1 %v10914_v52  ;;  %v11012_v51 = vld [vmem:[%s15631_s1 + $0xf24] ss:$16 sps:$4 sm:$0xff]   ;;  %v11015_v52 = vld [vmem:[%s15631_s1 + $0xf2c] ss:$16 sps:$4 sm:$0xff]  }
 0x1a8   :  { %7253 = vmatprep.subr.bf16.mxu0 %v10919_v53  ;;  %8027 = vmatprep.subr.bf16.mxu1 %v10922_v54  ;;  %v11010_v53 = vld [vmem:[%s15631_s1 + $0xf20] ss:$16 sps:$4 sm:$0xff]   ;;  %v11013_v54 = vld [vmem:[%s15631_s1 + $0xf28] ss:$16 sps:$4 sm:$0xff]  }
 0x1ab   :  { %7254 = vmatpush1.bf16.msra.mxu0 %v10917_v55  ;;  %8028 = vmatpush1.bf16.msra.mxu1 %v10920_v56  ;;  %v11018_v55 = vld [vmem:[%s15631_s1 + $0xf44] ss:$16 sps:$4 sm:$0xff]   ;;  %v11021_v56 = vld [vmem:[%s15631_s1 + $0xf4c] ss:$16 sps:$4 sm:$0xff]  }
 0x1ac   :  { %7255 = vmatprep.subr.bf16.mxu0 %v10925_v57  ;;  %8029 = vmatprep.subr.bf16.mxu1 %v10928_v58  ;;  %v11016_v57 = vld [vmem:[%s15631_s1 + $0xf40] ss:$16 sps:$4 sm:$0xff]   ;;  %v11019_v58 = vld [vmem:[%s15631_s1 + $0xf48] ss:$16 sps:$4 sm:$0xff]  }
 0x1af   :  { %7256 = vmatpush1.bf16.msra.mxu0 %v10923_v59  ;;  %8030 = vmatpush1.bf16.msra.mxu1 %v10926_v60  ;;  %v11024_v59 = vld [vmem:[%s15631_s1 + $0xf64] ss:$16 sps:$4 sm:$0xff]   ;;  %v11027_v60 = vld [vmem:[%s15631_s1 + $0xf6c] ss:$16 sps:$4 sm:$0xff]  }
 0x1b0   :  { %7257 = vmatprep.subr.bf16.mxu0 %v10931_v61  ;;  %8031 = vmatprep.subr.bf16.mxu1 %v10934_v62  ;;  %v11022_v61 = vld [vmem:[%s15631_s1 + $0xf60] ss:$16 sps:$4 sm:$0xff]   ;;  %v11025_v62 = vld [vmem:[%s15631_s1 + $0xf68] ss:$16 sps:$4 sm:$0xff]  }
 0x1b3   :  { %7258 = vmatpush1.bf16.msra.mxu0 %v10929_v63  ;;  %8032 = vmatpush1.bf16.msra.mxu1 %v10932_v0  ;;  %v11030_v63 = vld [vmem:[%s15631_s1 + $0xf84] ss:$16 sps:$4 sm:$0xff]   ;;  %v11033_v0 = vld [vmem:[%s15631_s1 + $0xf8c] ss:$16 sps:$4 sm:$0xff]  }
 0x1b4   :  { %7259 = vmatprep.subr.bf16.mxu0 %v10937_v1  ;;  %8033 = vmatprep.subr.bf16.mxu1 %v10940_v2  ;;  %v11028_v1 = vld [vmem:[%s15631_s1 + $0xf80] ss:$16 sps:$4 sm:$0xff]   ;;  %v11031_v2 = vld [vmem:[%s15631_s1 + $0xf88] ss:$16 sps:$4 sm:$0xff]  }
 0x1b7   :  { %7260 = vmatpush1.bf16.msra.mxu0 %v10935_v3  ;;  %8034 = vmatpush1.bf16.msra.mxu1 %v10938_v4  ;;  %v11036_v3 = vld [vmem:[%s15631_s1 + $0xfa4] ss:$16 sps:$4 sm:$0xff]   ;;  %v11039_v4 = vld [vmem:[%s15631_s1 + $0xfac] ss:$16 sps:$4 sm:$0xff]  }
 0x1b8   :  { %7261 = vmatprep.subr.bf16.mxu0 %v10943_v5  ;;  %8035 = vmatprep.subr.bf16.mxu1 %v10946_v6  ;;  %v11034_v5 = vld [vmem:[%s15631_s1 + $0xfa0] ss:$16 sps:$4 sm:$0xff]   ;;  %v11037_v6 = vld [vmem:[%s15631_s1 + $0xfa8] ss:$16 sps:$4 sm:$0xff]  }
 0x1bb   :  { %7262 = vmatpush1.bf16.msra.mxu0 %v10941_v7  ;;  %8036 = vmatpush1.bf16.msra.mxu1 %v10944_v8  ;;  %v11042_v7 = vld [vmem:[%s15631_s1 + $0xfc4] ss:$16 sps:$4 sm:$0xff]   ;;  %v11045_v8 = vld [vmem:[%s15631_s1 + $0xfcc] ss:$16 sps:$4 sm:$0xff]  }
 0x1bc   :  { %7263 = vmatprep.subr.bf16.mxu0 %v10949_v9  ;;  %8037 = vmatprep.subr.bf16.mxu1 %v10952_v10  ;;  %v11040_v9 = vld [vmem:[%s15631_s1 + $0xfc0] ss:$16 sps:$4 sm:$0xff]   ;;  %v11043_v10 = vld [vmem:[%s15631_s1 + $0xfc8] ss:$16 sps:$4 sm:$0xff]  }
 0x1bf   :  { %7264 = vmatpush1.bf16.msra.mxu0 %v10947_v11  ;;  %8038 = vmatpush1.bf16.msra.mxu1 %v10950_v12  ;;  %v11048_v11 = vld [vmem:[%s15631_s1 + $0xfe4] ss:$16 sps:$4 sm:$0xff]   ;;  %v11051_v12 = vld [vmem:[%s15631_s1 + $0xfec] ss:$16 sps:$4 sm:$0xff]  }
 0x1c0   :  { %7276 = vmatprep.subr.bf16.mxu0 %v10958_v14  ;;  %8050 = vmatprep.subr.bf16.mxu1 %v10961_v15  ;;  %v11049_v14 = vld [vmem:[%s15631_s1 + $0xfe8] ss:$16 sps:$4 sm:$0xff]  }
 0x1c1   :  { %v11052_v15 = vld [vmem:[%s15632_s0 + $0x38] ss:$140 sps:$4 sm:$0xff]  }
 0x1c2   :  { %7266 = vmatmul.mubr.bf16.vlgmr.msra.gmra.mrb[0].mxu0 %v10953_v13  ;;  %8040 = vmatmul.mubr.bf16.vlgmr.msra.gmra.mrb[0].mxu1 %v10953_v13  ;;  %v11046_v13 = vld [vmem:[%s15631_s1 + $0xfe0] ss:$16 sps:$4 sm:$0xff]  }
 0x1c3   :  { %7277 = vmatpush1.bf16.msra.mxu0 %v10956_v16  ;;  %8051 = vmatpush1.bf16.msra.mxu1 %v10959_v17  ;;  %v11057_v16 = vld [vmem:[%s15631_s1 + $0x1004] ss:$16 sps:$4 sm:$0xff]   ;;  %v11060_v17 = vld [vmem:[%s15631_s1 + $0x100c] ss:$16 sps:$4 sm:$0xff]  }
 0x1c4   :  { %7278 = vmatprep.subr.bf16.mxu0 %v10964_v18  ;;  %8052 = vmatprep.subr.bf16.mxu1 %v10967_v19  ;;  %v11055_v18 = vld [vmem:[%s15631_s1 + $0x1000] ss:$16 sps:$4 sm:$0xff]   ;;  %v11058_v19 = vld [vmem:[%s15631_s1 + $0x1008] ss:$16 sps:$4 sm:$0xff]  }
 0x1c5   :  { %7308 = vmatprep.mubr.bf16.mxu0 %v11054_v20  ;;  %8082 = vmatprep.mubr.bf16.mxu1 %v11054_v20  ;;  %v11063_v20 = vld [vmem:[%s15631_s1 + $0x1024] ss:$16 sps:$4 sm:$0xff]  }
 0x1c7   :  { %7279 = vmatpush1.bf16.msra.mxu0 %v10962_v21  ;;  %8053 = vmatpush1.bf16.msra.mxu1 %v10965_v22  ;;  %v11066_v21 = vld [vmem:[%s15631_s1 + $0x102c] ss:$16 sps:$4 sm:$0xff]   ;;  %v11153_v22 = vld [vmem:[%s15632_s0 + $0x44] ss:$140 sps:$4 sm:$0xff]  }
 0x1c8   :  { %7280 = vmatprep.subr.bf16.mxu0 %v10970_v23  ;;  %8054 = vmatprep.subr.bf16.mxu1 %v10973_v24  ;;  %v11061_v23 = vld [vmem:[%s15631_s1 + $0x1020] ss:$16 sps:$4 sm:$0xff]   ;;  %v11064_v24 = vld [vmem:[%s15631_s1 + $0x1028] ss:$16 sps:$4 sm:$0xff]  }
 0x1cb   :  { %7281 = vmatpush1.bf16.msra.mxu0 %v10968_v25  ;;  %8055 = vmatpush1.bf16.msra.mxu1 %v10971_v26  ;;  %v11069_v25 = vld [vmem:[%s15631_s1 + $0x1044] ss:$16 sps:$4 sm:$0xff]   ;;  %v11072_v26 = vld [vmem:[%s15631_s1 + $0x104c] ss:$16 sps:$4 sm:$0xff]  }
 0x1cc   :  { %7282 = vmatprep.subr.bf16.mxu0 %v10976_v27  ;;  %8056 = vmatprep.subr.bf16.mxu1 %v10979_v28  ;;  %v11067_v27 = vld [vmem:[%s15631_s1 + $0x1040] ss:$16 sps:$4 sm:$0xff]   ;;  %v11070_v28 = vld [vmem:[%s15631_s1 + $0x1048] ss:$16 sps:$4 sm:$0xff]  }
 0x1cf   :  { %7283 = vmatpush1.bf16.msra.mxu0 %v10974_v29  ;;  %8057 = vmatpush1.bf16.msra.mxu1 %v10977_v30  ;;  %v11075_v29 = vld [vmem:[%s15631_s1 + $0x1064] ss:$16 sps:$4 sm:$0xff]   ;;  %v11078_v30 = vld [vmem:[%s15631_s1 + $0x106c] ss:$16 sps:$4 sm:$0xff]  }
 0x1d0   :  { %7284 = vmatprep.subr.bf16.mxu0 %v10982_v31  ;;  %8058 = vmatprep.subr.bf16.mxu1 %v10985_v32  ;;  %v11073_v31 = vld [vmem:[%s15631_s1 + $0x1060] ss:$16 sps:$4 sm:$0xff]   ;;  %v11076_v32 = vld [vmem:[%s15631_s1 + $0x1068] ss:$16 sps:$4 sm:$0xff]  }
 0x1d3   :  { %7285 = vmatpush1.bf16.msra.mxu0 %v10980_v33  ;;  %8059 = vmatpush1.bf16.msra.mxu1 %v10983_v34  ;;  %v11081_v33 = vld [vmem:[%s15631_s1 + $0x1084] ss:$16 sps:$4 sm:$0xff]   ;;  %v11084_v34 = vld [vmem:[%s15631_s1 + $0x108c] ss:$16 sps:$4 sm:$0xff]  }
 0x1d4   :  { %7286 = vmatprep.subr.bf16.mxu0 %v10988_v35  ;;  %8060 = vmatprep.subr.bf16.mxu1 %v10991_v36  ;;  %v11079_v35 = vld [vmem:[%s15631_s1 + $0x1080] ss:$16 sps:$4 sm:$0xff]   ;;  %v11082_v36 = vld [vmem:[%s15631_s1 + $0x1088] ss:$16 sps:$4 sm:$0xff]  }
 0x1d7   :  { %7287 = vmatpush1.bf16.msra.mxu0 %v10986_v37  ;;  %8061 = vmatpush1.bf16.msra.mxu1 %v10989_v38  ;;  %v11087_v37 = vld [vmem:[%s15631_s1 + $0x10a4] ss:$16 sps:$4 sm:$0xff]   ;;  %v11090_v38 = vld [vmem:[%s15631_s1 + $0x10ac] ss:$16 sps:$4 sm:$0xff]  }
 0x1d8   :  { %7288 = vmatprep.subr.bf16.mxu0 %v10994_v39  ;;  %8062 = vmatprep.subr.bf16.mxu1 %v10997_v40  ;;  %v11085_v39 = vld [vmem:[%s15631_s1 + $0x10a0] ss:$16 sps:$4 sm:$0xff]   ;;  %v11088_v40 = vld [vmem:[%s15631_s1 + $0x10a8] ss:$16 sps:$4 sm:$0xff]  }
 0x1db   :  { %7289 = vmatpush1.bf16.msra.mxu0 %v10992_v41  ;;  %8063 = vmatpush1.bf16.msra.mxu1 %v10995_v42  ;;  %v11093_v41 = vld [vmem:[%s15631_s1 + $0x10c4] ss:$16 sps:$4 sm:$0xff]   ;;  %v11096_v42 = vld [vmem:[%s15631_s1 + $0x10cc] ss:$16 sps:$4 sm:$0xff]  }
 0x1dc   :  { %7290 = vmatprep.subr.bf16.mxu0 %v11000_v43  ;;  %8064 = vmatprep.subr.bf16.mxu1 %v11003_v44  ;;  %v11091_v43 = vld [vmem:[%s15631_s1 + $0x10c0] ss:$16 sps:$4 sm:$0xff]   ;;  %v11094_v44 = vld [vmem:[%s15631_s1 + $0x10c8] ss:$16 sps:$4 sm:$0xff]  }
 0x1df   :  { %7291 = vmatpush1.bf16.msra.mxu0 %v10998_v45  ;;  %8065 = vmatpush1.bf16.msra.mxu1 %v11001_v46  ;;  %v11099_v45 = vld [vmem:[%s15631_s1 + $0x10e4] ss:$16 sps:$4 sm:$0xff]   ;;  %v11102_v46 = vld [vmem:[%s15631_s1 + $0x10ec] ss:$16 sps:$4 sm:$0xff]  }
 0x1e0   :  { %7292 = vmatprep.subr.bf16.mxu0 %v11006_v47  ;;  %8066 = vmatprep.subr.bf16.mxu1 %v11009_v48  ;;  %v11097_v47 = vld [vmem:[%s15631_s1 + $0x10e0] ss:$16 sps:$4 sm:$0xff]   ;;  %v11100_v48 = vld [vmem:[%s15631_s1 + $0x10e8] ss:$16 sps:$4 sm:$0xff]  }
 0x1e3   :  { %7293 = vmatpush1.bf16.msra.mxu0 %v11004_v49  ;;  %8067 = vmatpush1.bf16.msra.mxu1 %v11007_v50  ;;  %v11105_v49 = vld [vmem:[%s15631_s1 + $0x1104] ss:$16 sps:$4 sm:$0xff]   ;;  %v11108_v50 = vld [vmem:[%s15631_s1 + $0x110c] ss:$16 sps:$4 sm:$0xff]  }
 0x1e4   :  { %7294 = vmatprep.subr.bf16.mxu0 %v11012_v51  ;;  %8068 = vmatprep.subr.bf16.mxu1 %v11015_v52  ;;  %v11103_v51 = vld [vmem:[%s15631_s1 + $0x1100] ss:$16 sps:$4 sm:$0xff]   ;;  %v11106_v52 = vld [vmem:[%s15631_s1 + $0x1108] ss:$16 sps:$4 sm:$0xff]  }
 0x1e7   :  { %7295 = vmatpush1.bf16.msra.mxu0 %v11010_v53  ;;  %8069 = vmatpush1.bf16.msra.mxu1 %v11013_v54  ;;  %v11111_v53 = vld [vmem:[%s15631_s1 + $0x1124] ss:$16 sps:$4 sm:$0xff]   ;;  %v11114_v54 = vld [vmem:[%s15631_s1 + $0x112c] ss:$16 sps:$4 sm:$0xff]  }
 0x1e8   :  { %7296 = vmatprep.subr.bf16.mxu0 %v11018_v55  ;;  %8070 = vmatprep.subr.bf16.mxu1 %v11021_v56  ;;  %v11109_v55 = vld [vmem:[%s15631_s1 + $0x1120] ss:$16 sps:$4 sm:$0xff]   ;;  %v11112_v56 = vld [vmem:[%s15631_s1 + $0x1128] ss:$16 sps:$4 sm:$0xff]  }
 0x1eb   :  { %7297 = vmatpush1.bf16.msra.mxu0 %v11016_v57  ;;  %8071 = vmatpush1.bf16.msra.mxu1 %v11019_v58  ;;  %v11117_v57 = vld [vmem:[%s15631_s1 + $0x1144] ss:$16 sps:$4 sm:$0xff]   ;;  %v11120_v58 = vld [vmem:[%s15631_s1 + $0x114c] ss:$16 sps:$4 sm:$0xff]  }
 0x1ec   :  { %7298 = vmatprep.subr.bf16.mxu0 %v11024_v59  ;;  %8072 = vmatprep.subr.bf16.mxu1 %v11027_v60  ;;  %v11115_v59 = vld [vmem:[%s15631_s1 + $0x1140] ss:$16 sps:$4 sm:$0xff]   ;;  %v11118_v60 = vld [vmem:[%s15631_s1 + $0x1148] ss:$16 sps:$4 sm:$0xff]  }
 0x1ef   :  { %7299 = vmatpush1.bf16.msra.mxu0 %v11022_v61  ;;  %8073 = vmatpush1.bf16.msra.mxu1 %v11025_v62  ;;  %v11123_v61 = vld [vmem:[%s15631_s1 + $0x1164] ss:$16 sps:$4 sm:$0xff]   ;;  %v11126_v62 = vld [vmem:[%s15631_s1 + $0x116c] ss:$16 sps:$4 sm:$0xff]  }
 0x1f0   :  { %7300 = vmatprep.subr.bf16.mxu0 %v11030_v63  ;;  %8074 = vmatprep.subr.bf16.mxu1 %v11033_v0  ;;  %v11121_v63 = vld [vmem:[%s15631_s1 + $0x1160] ss:$16 sps:$4 sm:$0xff]   ;;  %v11124_v0 = vld [vmem:[%s15631_s1 + $0x1168] ss:$16 sps:$4 sm:$0xff]  }
 0x1f3   :  { %7301 = vmatpush1.bf16.msra.mxu0 %v11028_v1  ;;  %8075 = vmatpush1.bf16.msra.mxu1 %v11031_v2  ;;  %v11129_v1 = vld [vmem:[%s15631_s1 + $0x1184] ss:$16 sps:$4 sm:$0xff]   ;;  %v11132_v2 = vld [vmem:[%s15631_s1 + $0x118c] ss:$16 sps:$4 sm:$0xff]  }
 0x1f4   :  { %7302 = vmatprep.subr.bf16.mxu0 %v11036_v3  ;;  %8076 = vmatprep.subr.bf16.mxu1 %v11039_v4  ;;  %v11127_v3 = vld [vmem:[%s15631_s1 + $0x1180] ss:$16 sps:$4 sm:$0xff]   ;;  %v11130_v4 = vld [vmem:[%s15631_s1 + $0x1188] ss:$16 sps:$4 sm:$0xff]  }
 0x1f7   :  { %7303 = vmatpush1.bf16.msra.mxu0 %v11034_v5  ;;  %8077 = vmatpush1.bf16.msra.mxu1 %v11037_v6  ;;  %v11135_v5 = vld [vmem:[%s15631_s1 + $0x11a4] ss:$16 sps:$4 sm:$0xff]   ;;  %v11138_v6 = vld [vmem:[%s15631_s1 + $0x11ac] ss:$16 sps:$4 sm:$0xff]  }
 0x1f8   :  { %7304 = vmatprep.subr.bf16.mxu0 %v11042_v7  ;;  %8078 = vmatprep.subr.bf16.mxu1 %v11045_v8  ;;  %v11133_v7 = vld [vmem:[%s15631_s1 + $0x11a0] ss:$16 sps:$4 sm:$0xff]   ;;  %v11136_v8 = vld [vmem:[%s15631_s1 + $0x11a8] ss:$16 sps:$4 sm:$0xff]  }
 0x1fb   :  { %7305 = vmatpush1.bf16.msra.mxu0 %v11040_v9  ;;  %8079 = vmatpush1.bf16.msra.mxu1 %v11043_v10  ;;  %v11141_v9 = vld [vmem:[%s15631_s1 + $0x11c4] ss:$16 sps:$4 sm:$0xff]   ;;  %v11144_v10 = vld [vmem:[%s15631_s1 + $0x11cc] ss:$16 sps:$4 sm:$0xff]  }
 0x1fc   :  { %7306 = vmatprep.subr.bf16.mxu0 %v11048_v11  ;;  %8080 = vmatprep.subr.bf16.mxu1 %v11051_v12  ;;  %v11139_v11 = vld [vmem:[%s15631_s1 + $0x11c0] ss:$16 sps:$4 sm:$0xff]   ;;  %v11142_v12 = vld [vmem:[%s15631_s1 + $0x11c8] ss:$16 sps:$4 sm:$0xff]  }
 0x1ff   :  { %7307 = vmatpush1.bf16.msra.mxu0 %v11046_v13  ;;  %8081 = vmatpush1.bf16.msra.mxu1 %v11049_v14  ;;  %v11147_v13 = vld [vmem:[%s15631_s1 + $0x11e4] ss:$16 sps:$4 sm:$0xff]   ;;  %v11150_v14 = vld [vmem:[%s15631_s1 + $0x11ec] ss:$16 sps:$4 sm:$0xff]  }
 0x200   :  { %7319 = vmatprep.subr.bf16.mxu0 %v11057_v16  ;;  %8093 = vmatprep.subr.bf16.mxu1 %v11060_v17  ;;  %v11148_v16 = vld [vmem:[%s15631_s1 + $0x11e8] ss:$16 sps:$4 sm:$0xff]   ;;  %v11151_v17 = vld [vmem:[%s15632_s0 + $0x40] ss:$140 sps:$4 sm:$0xff]  }
 0x202   :  { %7309 = vmatmul.mubr.bf16.vlgmr.msra.gmra.mrb[0].mxu0 %v11052_v15  ;;  %8083 = vmatmul.mubr.bf16.vlgmr.msra.gmra.mrb[0].mxu1 %v11052_v15  ;;  %v11145_v15 = vld [vmem:[%s15631_s1 + $0x11e0] ss:$16 sps:$4 sm:$0xff]  }
 0x203   :  { %7320 = vmatpush1.bf16.msra.mxu0 %v11055_v18  ;;  %8094 = vmatpush1.bf16.msra.mxu1 %v11058_v19  ;;  %v11156_v18 = vld [vmem:[%s15631_s1 + $0x1204] ss:$16 sps:$4 sm:$0xff]   ;;  %v11159_v19 = vld [vmem:[%s15631_s1 + $0x120c] ss:$16 sps:$4 sm:$0xff]  }
 0x204   :  { %7321 = vmatprep.subr.bf16.mxu0 %v11063_v20  ;;  %8095 = vmatprep.subr.bf16.mxu1 %v11066_v21  ;;  %v11154_v20 = vld [vmem:[%s15631_s1 + $0x1200] ss:$16 sps:$4 sm:$0xff]   ;;  %v11157_v21 = vld [vmem:[%s15631_s1 + $0x1208] ss:$16 sps:$4 sm:$0xff]  }
 0x205   :  { %7351 = vmatprep.mubr.bf16.mxu0 %v11153_v22  ;;  %8125 = vmatprep.mubr.bf16.mxu1 %v11153_v22  ;;  %v11162_v22 = vld [vmem:[%s15631_s1 + $0x1224] ss:$16 sps:$4 sm:$0xff]  }
 0x207   :  { %7322 = vmatpush1.bf16.msra.mxu0 %v11061_v23  ;;  %8096 = vmatpush1.bf16.msra.mxu1 %v11064_v24  ;;  %v11165_v23 = vld [vmem:[%s15631_s1 + $0x122c] ss:$16 sps:$4 sm:$0xff]  }
 0x208   :  { %7323 = vmatprep.subr.bf16.mxu0 %v11069_v25  ;;  %8097 = vmatprep.subr.bf16.mxu1 %v11072_v26  ;;  %v11252_v24 = vld [vmem:[%s15632_s0 + $0x4c] ss:$140 sps:$4 sm:$0xff]   ;;  %v11160_v25 = vld [vmem:[%s15631_s1 + $0x1220] ss:$16 sps:$4 sm:$0xff]  }
 0x209   :  { %v11163_v26 = vld [vmem:[%s15631_s1 + $0x1228] ss:$16 sps:$4 sm:$0xff]  }
 0x20b   :  { %7324 = vmatpush1.bf16.msra.mxu0 %v11067_v27  ;;  %8098 = vmatpush1.bf16.msra.mxu1 %v11070_v28  ;;  %v11168_v27 = vld [vmem:[%s15631_s1 + $0x1244] ss:$16 sps:$4 sm:$0xff]   ;;  %v11171_v28 = vld [vmem:[%s15631_s1 + $0x124c] ss:$16 sps:$4 sm:$0xff]  }
 0x20c   :  { %7325 = vmatprep.subr.bf16.mxu0 %v11075_v29  ;;  %8099 = vmatprep.subr.bf16.mxu1 %v11078_v30  ;;  %v11166_v29 = vld [vmem:[%s15631_s1 + $0x1240] ss:$16 sps:$4 sm:$0xff]   ;;  %v11169_v30 = vld [vmem:[%s15631_s1 + $0x1248] ss:$16 sps:$4 sm:$0xff]  }
 0x20f   :  { %7326 = vmatpush1.bf16.msra.mxu0 %v11073_v31  ;;  %8100 = vmatpush1.bf16.msra.mxu1 %v11076_v32  ;;  %v11174_v31 = vld [vmem:[%s15631_s1 + $0x1264] ss:$16 sps:$4 sm:$0xff]   ;;  %v11177_v32 = vld [vmem:[%s15631_s1 + $0x126c] ss:$16 sps:$4 sm:$0xff]  }
 0x210   :  { %7327 = vmatprep.subr.bf16.mxu0 %v11081_v33  ;;  %8101 = vmatprep.subr.bf16.mxu1 %v11084_v34  ;;  %v11172_v33 = vld [vmem:[%s15631_s1 + $0x1260] ss:$16 sps:$4 sm:$0xff]   ;;  %v11175_v34 = vld [vmem:[%s15631_s1 + $0x1268] ss:$16 sps:$4 sm:$0xff]  }
 0x213   :  { %7328 = vmatpush1.bf16.msra.mxu0 %v11079_v35  ;;  %8102 = vmatpush1.bf16.msra.mxu1 %v11082_v36  ;;  %v11180_v35 = vld [vmem:[%s15631_s1 + $0x1284] ss:$16 sps:$4 sm:$0xff]   ;;  %v11183_v36 = vld [vmem:[%s15631_s1 + $0x128c] ss:$16 sps:$4 sm:$0xff]  }
 0x214   :  { %7329 = vmatprep.subr.bf16.mxu0 %v11087_v37  ;;  %8103 = vmatprep.subr.bf16.mxu1 %v11090_v38  ;;  %v11178_v37 = vld [vmem:[%s15631_s1 + $0x1280] ss:$16 sps:$4 sm:$0xff]   ;;  %v11181_v38 = vld [vmem:[%s15631_s1 + $0x1288] ss:$16 sps:$4 sm:$0xff]  }
 0x217   :  { %7330 = vmatpush1.bf16.msra.mxu0 %v11085_v39  ;;  %8104 = vmatpush1.bf16.msra.mxu1 %v11088_v40  ;;  %v11186_v39 = vld [vmem:[%s15631_s1 + $0x12a4] ss:$16 sps:$4 sm:$0xff]   ;;  %v11189_v40 = vld [vmem:[%s15631_s1 + $0x12ac] ss:$16 sps:$4 sm:$0xff]  }
 0x218   :  { %7331 = vmatprep.subr.bf16.mxu0 %v11093_v41  ;;  %8105 = vmatprep.subr.bf16.mxu1 %v11096_v42  ;;  %v11184_v41 = vld [vmem:[%s15631_s1 + $0x12a0] ss:$16 sps:$4 sm:$0xff]   ;;  %v11187_v42 = vld [vmem:[%s15631_s1 + $0x12a8] ss:$16 sps:$4 sm:$0xff]  }
 0x21b   :  { %7332 = vmatpush1.bf16.msra.mxu0 %v11091_v43  ;;  %8106 = vmatpush1.bf16.msra.mxu1 %v11094_v44  ;;  %v11192_v43 = vld [vmem:[%s15631_s1 + $0x12c4] ss:$16 sps:$4 sm:$0xff]   ;;  %v11195_v44 = vld [vmem:[%s15631_s1 + $0x12cc] ss:$16 sps:$4 sm:$0xff]  }
 0x21c   :  { %7333 = vmatprep.subr.bf16.mxu0 %v11099_v45  ;;  %8107 = vmatprep.subr.bf16.mxu1 %v11102_v46  ;;  %v11190_v45 = vld [vmem:[%s15631_s1 + $0x12c0] ss:$16 sps:$4 sm:$0xff]   ;;  %v11193_v46 = vld [vmem:[%s15631_s1 + $0x12c8] ss:$16 sps:$4 sm:$0xff]  }
 0x21f   :  { %7334 = vmatpush1.bf16.msra.mxu0 %v11097_v47  ;;  %8108 = vmatpush1.bf16.msra.mxu1 %v11100_v48  ;;  %v11198_v47 = vld [vmem:[%s15631_s1 + $0x12e4] ss:$16 sps:$4 sm:$0xff]   ;;  %v11201_v48 = vld [vmem:[%s15631_s1 + $0x12ec] ss:$16 sps:$4 sm:$0xff]  }
 0x220   :  { %7335 = vmatprep.subr.bf16.mxu0 %v11105_v49  ;;  %8109 = vmatprep.subr.bf16.mxu1 %v11108_v50  ;;  %v11196_v49 = vld [vmem:[%s15631_s1 + $0x12e0] ss:$16 sps:$4 sm:$0xff]   ;;  %v11199_v50 = vld [vmem:[%s15631_s1 + $0x12e8] ss:$16 sps:$4 sm:$0xff]  }
 0x223   :  { %7336 = vmatpush1.bf16.msra.mxu0 %v11103_v51  ;;  %8110 = vmatpush1.bf16.msra.mxu1 %v11106_v52  ;;  %v11204_v51 = vld [vmem:[%s15631_s1 + $0x1304] ss:$16 sps:$4 sm:$0xff]   ;;  %v11207_v52 = vld [vmem:[%s15631_s1 + $0x130c] ss:$16 sps:$4 sm:$0xff]  }
 0x224   :  { %7337 = vmatprep.subr.bf16.mxu0 %v11111_v53  ;;  %8111 = vmatprep.subr.bf16.mxu1 %v11114_v54  ;;  %v11202_v53 = vld [vmem:[%s15631_s1 + $0x1300] ss:$16 sps:$4 sm:$0xff]   ;;  %v11205_v54 = vld [vmem:[%s15631_s1 + $0x1308] ss:$16 sps:$4 sm:$0xff]  }
 0x227   :  { %7338 = vmatpush1.bf16.msra.mxu0 %v11109_v55  ;;  %8112 = vmatpush1.bf16.msra.mxu1 %v11112_v56  ;;  %v11210_v55 = vld [vmem:[%s15631_s1 + $0x1324] ss:$16 sps:$4 sm:$0xff]   ;;  %v11213_v56 = vld [vmem:[%s15631_s1 + $0x132c] ss:$16 sps:$4 sm:$0xff]  }
 0x228   :  { %7339 = vmatprep.subr.bf16.mxu0 %v11117_v57  ;;  %8113 = vmatprep.subr.bf16.mxu1 %v11120_v58  ;;  %v11208_v57 = vld [vmem:[%s15631_s1 + $0x1320] ss:$16 sps:$4 sm:$0xff]   ;;  %v11211_v58 = vld [vmem:[%s15631_s1 + $0x1328] ss:$16 sps:$4 sm:$0xff]  }
 0x22b   :  { %7340 = vmatpush1.bf16.msra.mxu0 %v11115_v59  ;;  %8114 = vmatpush1.bf16.msra.mxu1 %v11118_v60  ;;  %v11216_v59 = vld [vmem:[%s15631_s1 + $0x1344] ss:$16 sps:$4 sm:$0xff]   ;;  %v11219_v60 = vld [vmem:[%s15631_s1 + $0x134c] ss:$16 sps:$4 sm:$0xff]  }
 0x22c   :  { %7341 = vmatprep.subr.bf16.mxu0 %v11123_v61  ;;  %8115 = vmatprep.subr.bf16.mxu1 %v11126_v62  ;;  %v11214_v61 = vld [vmem:[%s15631_s1 + $0x1340] ss:$16 sps:$4 sm:$0xff]   ;;  %v11217_v62 = vld [vmem:[%s15631_s1 + $0x1348] ss:$16 sps:$4 sm:$0xff]  }
 0x22f   :  { %7342 = vmatpush1.bf16.msra.mxu0 %v11121_v63  ;;  %8116 = vmatpush1.bf16.msra.mxu1 %v11124_v0  ;;  %v11222_v63 = vld [vmem:[%s15631_s1 + $0x1364] ss:$16 sps:$4 sm:$0xff]   ;;  %v11225_v0 = vld [vmem:[%s15631_s1 + $0x136c] ss:$16 sps:$4 sm:$0xff]  }
 0x230   :  { %7343 = vmatprep.subr.bf16.mxu0 %v11129_v1  ;;  %8117 = vmatprep.subr.bf16.mxu1 %v11132_v2  ;;  %v11220_v1 = vld [vmem:[%s15631_s1 + $0x1360] ss:$16 sps:$4 sm:$0xff]   ;;  %v11223_v2 = vld [vmem:[%s15631_s1 + $0x1368] ss:$16 sps:$4 sm:$0xff]  }
 0x233   :  { %7344 = vmatpush1.bf16.msra.mxu0 %v11127_v3  ;;  %8118 = vmatpush1.bf16.msra.mxu1 %v11130_v4  ;;  %v11228_v3 = vld [vmem:[%s15631_s1 + $0x1384] ss:$16 sps:$4 sm:$0xff]   ;;  %v11231_v4 = vld [vmem:[%s15631_s1 + $0x138c] ss:$16 sps:$4 sm:$0xff]  }
 0x234   :  { %7345 = vmatprep.subr.bf16.mxu0 %v11135_v5  ;;  %8119 = vmatprep.subr.bf16.mxu1 %v11138_v6  ;;  %v11226_v5 = vld [vmem:[%s15631_s1 + $0x1380] ss:$16 sps:$4 sm:$0xff]   ;;  %v11229_v6 = vld [vmem:[%s15631_s1 + $0x1388] ss:$16 sps:$4 sm:$0xff]  }
 0x237   :  { %7346 = vmatpush1.bf16.msra.mxu0 %v11133_v7  ;;  %8120 = vmatpush1.bf16.msra.mxu1 %v11136_v8  ;;  %v11234_v7 = vld [vmem:[%s15631_s1 + $0x13a4] ss:$16 sps:$4 sm:$0xff]   ;;  %v11237_v8 = vld [vmem:[%s15631_s1 + $0x13ac] ss:$16 sps:$4 sm:$0xff]  }
 0x238   :  { %7347 = vmatprep.subr.bf16.mxu0 %v11141_v9  ;;  %8121 = vmatprep.subr.bf16.mxu1 %v11144_v10  ;;  %v11232_v9 = vld [vmem:[%s15631_s1 + $0x13a0] ss:$16 sps:$4 sm:$0xff]   ;;  %v11235_v10 = vld [vmem:[%s15631_s1 + $0x13a8] ss:$16 sps:$4 sm:$0xff]  }
 0x23b   :  { %7348 = vmatpush1.bf16.msra.mxu0 %v11139_v11  ;;  %8122 = vmatpush1.bf16.msra.mxu1 %v11142_v12  ;;  %v11240_v11 = vld [vmem:[%s15631_s1 + $0x13c4] ss:$16 sps:$4 sm:$0xff]   ;;  %v11243_v12 = vld [vmem:[%s15631_s1 + $0x13cc] ss:$16 sps:$4 sm:$0xff]  }
 0x23c   :  { %7349 = vmatprep.subr.bf16.mxu0 %v11147_v13  ;;  %8123 = vmatprep.subr.bf16.mxu1 %v11150_v14  ;;  %v11238_v13 = vld [vmem:[%s15631_s1 + $0x13c0] ss:$16 sps:$4 sm:$0xff]   ;;  %v11241_v14 = vld [vmem:[%s15631_s1 + $0x13c8] ss:$16 sps:$4 sm:$0xff]  }
 0x23f   :  { %7350 = vmatpush1.bf16.msra.mxu0 %v11145_v15  ;;  %8124 = vmatpush1.bf16.msra.mxu1 %v11148_v16  ;;  %v11246_v15 = vld [vmem:[%s15631_s1 + $0x13e4] ss:$16 sps:$4 sm:$0xff]   ;;  %v11249_v16 = vld [vmem:[%s15631_s1 + $0x13ec] ss:$16 sps:$4 sm:$0xff]  }
 0x240   :  { %7362 = vmatprep.subr.bf16.mxu0 %v11156_v18  ;;  %8136 = vmatprep.subr.bf16.mxu1 %v11159_v19  ;;  %v11247_v18 = vld [vmem:[%s15631_s1 + $0x13e8] ss:$16 sps:$4 sm:$0xff]  }
 0x241   :  { %v11250_v19 = vld [vmem:[%s15632_s0 + $0x48] ss:$140 sps:$4 sm:$0xff]  }
 0x242   :  { %7352 = vmatmul.mubr.bf16.vlgmr.msra.gmra.mrb[0].mxu0 %v11151_v17  ;;  %8126 = vmatmul.mubr.bf16.vlgmr.msra.gmra.mrb[0].mxu1 %v11151_v17  ;;  %v11244_v17 = vld [vmem:[%s15631_s1 + $0x13e0] ss:$16 sps:$4 sm:$0xff]  }
 0x243   :  { %7363 = vmatpush1.bf16.msra.mxu0 %v11154_v20  ;;  %8137 = vmatpush1.bf16.msra.mxu1 %v11157_v21  ;;  %v11255_v20 = vld [vmem:[%s15631_s1 + $0x1404] ss:$16 sps:$4 sm:$0xff]   ;;  %v11258_v21 = vld [vmem:[%s15631_s1 + $0x140c] ss:$16 sps:$4 sm:$0xff]  }
 0x244   :  { %7364 = vmatprep.subr.bf16.mxu0 %v11162_v22  ;;  %8138 = vmatprep.subr.bf16.mxu1 %v11165_v23  ;;  %v11253_v22 = vld [vmem:[%s15631_s1 + $0x1400] ss:$16 sps:$4 sm:$0xff]   ;;  %v11256_v23 = vld [vmem:[%s15631_s1 + $0x1408] ss:$16 sps:$4 sm:$0xff]  }
 0x245   :  { %7394 = vmatprep.mubr.bf16.mxu0 %v11252_v24  ;;  %8168 = vmatprep.mubr.bf16.mxu1 %v11252_v24  ;;  %v11261_v24 = vld [vmem:[%s15631_s1 + $0x1424] ss:$16 sps:$4 sm:$0xff]  }
 0x247   :  { %7365 = vmatpush1.bf16.msra.mxu0 %v11160_v25  ;;  %8139 = vmatpush1.bf16.msra.mxu1 %v11163_v26  ;;  %v11264_v25 = vld [vmem:[%s15631_s1 + $0x142c] ss:$16 sps:$4 sm:$0xff]   ;;  %v11351_v26 = vld [vmem:[%s15632_s0 + $0x54] ss:$140 sps:$4 sm:$0xff]  }
 0x248   :  { %7366 = vmatprep.subr.bf16.mxu0 %v11168_v27  ;;  %8140 = vmatprep.subr.bf16.mxu1 %v11171_v28  ;;  %v11259_v27 = vld [vmem:[%s15631_s1 + $0x1420] ss:$16 sps:$4 sm:$0xff]   ;;  %v11262_v28 = vld [vmem:[%s15631_s1 + $0x1428] ss:$16 sps:$4 sm:$0xff]  }
 0x24b   :  { %7367 = vmatpush1.bf16.msra.mxu0 %v11166_v29  ;;  %8141 = vmatpush1.bf16.msra.mxu1 %v11169_v30  ;;  %v11267_v29 = vld [vmem:[%s15631_s1 + $0x1444] ss:$16 sps:$4 sm:$0xff]   ;;  %v11270_v30 = vld [vmem:[%s15631_s1 + $0x144c] ss:$16 sps:$4 sm:$0xff]  }
 0x24c   :  { %7368 = vmatprep.subr.bf16.mxu0 %v11174_v31  ;;  %8142 = vmatprep.subr.bf16.mxu1 %v11177_v32  ;;  %v11265_v31 = vld [vmem:[%s15631_s1 + $0x1440] ss:$16 sps:$4 sm:$0xff]   ;;  %v11268_v32 = vld [vmem:[%s15631_s1 + $0x1448] ss:$16 sps:$4 sm:$0xff]  }
 0x24f   :  { %7369 = vmatpush1.bf16.msra.mxu0 %v11172_v33  ;;  %8143 = vmatpush1.bf16.msra.mxu1 %v11175_v34  ;;  %v11273_v33 = vld [vmem:[%s15631_s1 + $0x1464] ss:$16 sps:$4 sm:$0xff]   ;;  %v11276_v34 = vld [vmem:[%s15631_s1 + $0x146c] ss:$16 sps:$4 sm:$0xff]  }
 0x250   :  { %7370 = vmatprep.subr.bf16.mxu0 %v11180_v35  ;;  %8144 = vmatprep.subr.bf16.mxu1 %v11183_v36  ;;  %v11271_v35 = vld [vmem:[%s15631_s1 + $0x1460] ss:$16 sps:$4 sm:$0xff]   ;;  %v11274_v36 = vld [vmem:[%s15631_s1 + $0x1468] ss:$16 sps:$4 sm:$0xff]  }
 0x253   :  { %7371 = vmatpush1.bf16.msra.mxu0 %v11178_v37  ;;  %8145 = vmatpush1.bf16.msra.mxu1 %v11181_v38  ;;  %v11279_v37 = vld [vmem:[%s15631_s1 + $0x1484] ss:$16 sps:$4 sm:$0xff]   ;;  %v11282_v38 = vld [vmem:[%s15631_s1 + $0x148c] ss:$16 sps:$4 sm:$0xff]  }
 0x254   :  { %7372 = vmatprep.subr.bf16.mxu0 %v11186_v39  ;;  %8146 = vmatprep.subr.bf16.mxu1 %v11189_v40  ;;  %v11277_v39 = vld [vmem:[%s15631_s1 + $0x1480] ss:$16 sps:$4 sm:$0xff]   ;;  %v11280_v40 = vld [vmem:[%s15631_s1 + $0x1488] ss:$16 sps:$4 sm:$0xff]  }
 0x257   :  { %7373 = vmatpush1.bf16.msra.mxu0 %v11184_v41  ;;  %8147 = vmatpush1.bf16.msra.mxu1 %v11187_v42  ;;  %v11285_v41 = vld [vmem:[%s15631_s1 + $0x14a4] ss:$16 sps:$4 sm:$0xff]   ;;  %v11288_v42 = vld [vmem:[%s15631_s1 + $0x14ac] ss:$16 sps:$4 sm:$0xff]  }
 0x258   :  { %7374 = vmatprep.subr.bf16.mxu0 %v11192_v43  ;;  %8148 = vmatprep.subr.bf16.mxu1 %v11195_v44  ;;  %v11283_v43 = vld [vmem:[%s15631_s1 + $0x14a0] ss:$16 sps:$4 sm:$0xff]   ;;  %v11286_v44 = vld [vmem:[%s15631_s1 + $0x14a8] ss:$16 sps:$4 sm:$0xff]  }
 0x25b   :  { %7375 = vmatpush1.bf16.msra.mxu0 %v11190_v45  ;;  %8149 = vmatpush1.bf16.msra.mxu1 %v11193_v46  ;;  %v11291_v45 = vld [vmem:[%s15631_s1 + $0x14c4] ss:$16 sps:$4 sm:$0xff]   ;;  %v11294_v46 = vld [vmem:[%s15631_s1 + $0x14cc] ss:$16 sps:$4 sm:$0xff]  }
 0x25c   :  { %7376 = vmatprep.subr.bf16.mxu0 %v11198_v47  ;;  %8150 = vmatprep.subr.bf16.mxu1 %v11201_v48  ;;  %v11289_v47 = vld [vmem:[%s15631_s1 + $0x14c0] ss:$16 sps:$4 sm:$0xff]   ;;  %v11292_v48 = vld [vmem:[%s15631_s1 + $0x14c8] ss:$16 sps:$4 sm:$0xff]  }
 0x25f   :  { %7377 = vmatpush1.bf16.msra.mxu0 %v11196_v49  ;;  %8151 = vmatpush1.bf16.msra.mxu1 %v11199_v50  ;;  %v11297_v49 = vld [vmem:[%s15631_s1 + $0x14e4] ss:$16 sps:$4 sm:$0xff]   ;;  %v11300_v50 = vld [vmem:[%s15631_s1 + $0x14ec] ss:$16 sps:$4 sm:$0xff]  }
 0x260   :  { %7378 = vmatprep.subr.bf16.mxu0 %v11204_v51  ;;  %8152 = vmatprep.subr.bf16.mxu1 %v11207_v52  ;;  %v11295_v51 = vld [vmem:[%s15631_s1 + $0x14e0] ss:$16 sps:$4 sm:$0xff]   ;;  %v11298_v52 = vld [vmem:[%s15631_s1 + $0x14e8] ss:$16 sps:$4 sm:$0xff]  }
 0x263   :  { %7379 = vmatpush1.bf16.msra.mxu0 %v11202_v53  ;;  %8153 = vmatpush1.bf16.msra.mxu1 %v11205_v54  ;;  %v11303_v53 = vld [vmem:[%s15631_s1 + $0x1504] ss:$16 sps:$4 sm:$0xff]   ;;  %v11306_v54 = vld [vmem:[%s15631_s1 + $0x150c] ss:$16 sps:$4 sm:$0xff]  }
 0x264   :  { %7380 = vmatprep.subr.bf16.mxu0 %v11210_v55  ;;  %8154 = vmatprep.subr.bf16.mxu1 %v11213_v56  ;;  %v11301_v55 = vld [vmem:[%s15631_s1 + $0x1500] ss:$16 sps:$4 sm:$0xff]   ;;  %v11304_v56 = vld [vmem:[%s15631_s1 + $0x1508] ss:$16 sps:$4 sm:$0xff]  }
 0x267   :  { %7381 = vmatpush1.bf16.msra.mxu0 %v11208_v57  ;;  %8155 = vmatpush1.bf16.msra.mxu1 %v11211_v58  ;;  %v11309_v57 = vld [vmem:[%s15631_s1 + $0x1524] ss:$16 sps:$4 sm:$0xff]   ;;  %v11312_v58 = vld [vmem:[%s15631_s1 + $0x152c] ss:$16 sps:$4 sm:$0xff]  }
 0x268   :  { %7382 = vmatprep.subr.bf16.mxu0 %v11216_v59  ;;  %8156 = vmatprep.subr.bf16.mxu1 %v11219_v60  ;;  %v11307_v59 = vld [vmem:[%s15631_s1 + $0x1520] ss:$16 sps:$4 sm:$0xff]   ;;  %v11310_v60 = vld [vmem:[%s15631_s1 + $0x1528] ss:$16 sps:$4 sm:$0xff]  }
 0x26b   :  { %7383 = vmatpush1.bf16.msra.mxu0 %v11214_v61  ;;  %8157 = vmatpush1.bf16.msra.mxu1 %v11217_v62  ;;  %v11315_v61 = vld [vmem:[%s15631_s1 + $0x1544] ss:$16 sps:$4 sm:$0xff]   ;;  %v11318_v62 = vld [vmem:[%s15631_s1 + $0x154c] ss:$16 sps:$4 sm:$0xff]  }
 0x26c   :  { %7384 = vmatprep.subr.bf16.mxu0 %v11222_v63  ;;  %8158 = vmatprep.subr.bf16.mxu1 %v11225_v0  ;;  %v11313_v63 = vld [vmem:[%s15631_s1 + $0x1540] ss:$16 sps:$4 sm:$0xff]   ;;  %v11316_v0 = vld [vmem:[%s15631_s1 + $0x1548] ss:$16 sps:$4 sm:$0xff]  }
 0x26f   :  { %7385 = vmatpush1.bf16.msra.mxu0 %v11220_v1  ;;  %8159 = vmatpush1.bf16.msra.mxu1 %v11223_v2  ;;  %v11321_v1 = vld [vmem:[%s15631_s1 + $0x1564] ss:$16 sps:$4 sm:$0xff]   ;;  %v11324_v2 = vld [vmem:[%s15631_s1 + $0x156c] ss:$16 sps:$4 sm:$0xff]  }
 0x270   :  { %7386 = vmatprep.subr.bf16.mxu0 %v11228_v3  ;;  %8160 = vmatprep.subr.bf16.mxu1 %v11231_v4  ;;  %v11319_v3 = vld [vmem:[%s15631_s1 + $0x1560] ss:$16 sps:$4 sm:$0xff]   ;;  %v11322_v4 = vld [vmem:[%s15631_s1 + $0x1568] ss:$16 sps:$4 sm:$0xff]  }
 0x273   :  { %7387 = vmatpush1.bf16.msra.mxu0 %v11226_v5  ;;  %8161 = vmatpush1.bf16.msra.mxu1 %v11229_v6  ;;  %v11327_v5 = vld [vmem:[%s15631_s1 + $0x1584] ss:$16 sps:$4 sm:$0xff]   ;;  %v11330_v6 = vld [vmem:[%s15631_s1 + $0x158c] ss:$16 sps:$4 sm:$0xff]  }
 0x274   :  { %7388 = vmatprep.subr.bf16.mxu0 %v11234_v7  ;;  %8162 = vmatprep.subr.bf16.mxu1 %v11237_v8  ;;  %v11325_v7 = vld [vmem:[%s15631_s1 + $0x1580] ss:$16 sps:$4 sm:$0xff]   ;;  %v11328_v8 = vld [vmem:[%s15631_s1 + $0x1588] ss:$16 sps:$4 sm:$0xff]  }
 0x277   :  { %7389 = vmatpush1.bf16.msra.mxu0 %v11232_v9  ;;  %8163 = vmatpush1.bf16.msra.mxu1 %v11235_v10  ;;  %v11333_v9 = vld [vmem:[%s15631_s1 + $0x15a4] ss:$16 sps:$4 sm:$0xff]   ;;  %v11336_v10 = vld [vmem:[%s15631_s1 + $0x15ac] ss:$16 sps:$4 sm:$0xff]  }
 0x278   :  { %7390 = vmatprep.subr.bf16.mxu0 %v11240_v11  ;;  %8164 = vmatprep.subr.bf16.mxu1 %v11243_v12  ;;  %v11331_v11 = vld [vmem:[%s15631_s1 + $0x15a0] ss:$16 sps:$4 sm:$0xff]   ;;  %v11334_v12 = vld [vmem:[%s15631_s1 + $0x15a8] ss:$16 sps:$4 sm:$0xff]  }
 0x27b   :  { %7391 = vmatpush1.bf16.msra.mxu0 %v11238_v13  ;;  %8165 = vmatpush1.bf16.msra.mxu1 %v11241_v14  ;;  %v11339_v13 = vld [vmem:[%s15631_s1 + $0x15c4] ss:$16 sps:$4 sm:$0xff]   ;;  %v11342_v14 = vld [vmem:[%s15631_s1 + $0x15cc] ss:$16 sps:$4 sm:$0xff]  }
 0x27c   :  { %7392 = vmatprep.subr.bf16.mxu0 %v11246_v15  ;;  %8166 = vmatprep.subr.bf16.mxu1 %v11249_v16  ;;  %v11337_v15 = vld [vmem:[%s15631_s1 + $0x15c0] ss:$16 sps:$4 sm:$0xff]   ;;  %v11340_v16 = vld [vmem:[%s15631_s1 + $0x15c8] ss:$16 sps:$4 sm:$0xff]  }
 0x27f   :  { %7393 = vmatpush1.bf16.msra.mxu0 %v11244_v17  ;;  %8167 = vmatpush1.bf16.msra.mxu1 %v11247_v18  ;;  %v11345_v17 = vld [vmem:[%s15631_s1 + $0x15e4] ss:$16 sps:$4 sm:$0xff]   ;;  %v11348_v18 = vld [vmem:[%s15631_s1 + $0x15ec] ss:$16 sps:$4 sm:$0xff]  }
 0x280   :  { %7405 = vmatprep.subr.bf16.mxu0 %v11255_v20  ;;  %8179 = vmatprep.subr.bf16.mxu1 %v11258_v21  ;;  %v11346_v20 = vld [vmem:[%s15631_s1 + $0x15e8] ss:$16 sps:$4 sm:$0xff]   ;;  %v11354_v21 = vld [vmem:[%s15631_s1 + $0x1604] ss:$16 sps:$4 sm:$0xff]  }
 0x282   :  { %7395 = vmatmul.mubr.bf16.vlgmr.msra.gmra.mrb[0].mxu0 %v11250_v19  ;;  %8169 = vmatmul.mubr.bf16.vlgmr.msra.gmra.mrb[0].mxu1 %v11250_v19  ;;  %v11343_v19 = vld [vmem:[%s15631_s1 + $0x15e0] ss:$16 sps:$4 sm:$0xff]  }
 0x283   :  { %7406 = vmatpush1.bf16.msra.mxu0 %v11253_v22  ;;  %8180 = vmatpush1.bf16.msra.mxu1 %v11256_v23  ;;  %v11357_v22 = vld [vmem:[%s15631_s1 + $0x160c] ss:$16 sps:$4 sm:$0xff]  }
 0x284   :  { %7407 = vmatprep.subr.bf16.mxu0 %v11261_v24  ;;  %8181 = vmatprep.subr.bf16.mxu1 %v11264_v25  ;;  %v11349_v23 = vld [vmem:[%s15632_s0 + $0x50] ss:$140 sps:$4 sm:$0xff]   ;;  %v11355_v25 = vld [vmem:[%s15631_s1 + $0x1608] ss:$16 sps:$4 sm:$0xff]  }
 0x285   :  { %7437 = vmatprep.mubr.bf16.mxu0 %v11351_v26  ;;  %8211 = vmatprep.mubr.bf16.mxu1 %v11351_v26  ;;  %v11352_v24 = vld [vmem:[%s15631_s1 + $0x1600] ss:$16 sps:$4 sm:$0xff]   ;;  %v11360_v26 = vld [vmem:[%s15631_s1 + $0x1624] ss:$16 sps:$4 sm:$0xff]  }
 0x287   :  { %7408 = vmatpush1.bf16.msra.mxu0 %v11259_v27  ;;  %8182 = vmatpush1.bf16.msra.mxu1 %v11262_v28  ;;  %v11363_v27 = vld [vmem:[%s15631_s1 + $0x162c] ss:$16 sps:$4 sm:$0xff]  }
 0x288   :  { %7409 = vmatprep.subr.bf16.mxu0 %v11267_v29  ;;  %8183 = vmatprep.subr.bf16.mxu1 %v11270_v30  ;;  %v11450_v28 = vld [vmem:[%s15632_s0 + $0x5c] ss:$140 sps:$4 sm:$0xff]   ;;  %v11358_v29 = vld [vmem:[%s15631_s1 + $0x1620] ss:$16 sps:$4 sm:$0xff]  }
 0x289   :  { %v11361_v30 = vld [vmem:[%s15631_s1 + $0x1628] ss:$16 sps:$4 sm:$0xff]  }
 0x28b   :  { %7410 = vmatpush1.bf16.msra.mxu0 %v11265_v31  ;;  %8184 = vmatpush1.bf16.msra.mxu1 %v11268_v32  ;;  %v11366_v31 = vld [vmem:[%s15631_s1 + $0x1644] ss:$16 sps:$4 sm:$0xff]   ;;  %v11369_v32 = vld [vmem:[%s15631_s1 + $0x164c] ss:$16 sps:$4 sm:$0xff]  }
 0x28c   :  { %7411 = vmatprep.subr.bf16.mxu0 %v11273_v33  ;;  %8185 = vmatprep.subr.bf16.mxu1 %v11276_v34  ;;  %v11364_v33 = vld [vmem:[%s15631_s1 + $0x1640] ss:$16 sps:$4 sm:$0xff]   ;;  %v11367_v34 = vld [vmem:[%s15631_s1 + $0x1648] ss:$16 sps:$4 sm:$0xff]  }
 0x28f   :  { %7412 = vmatpush1.bf16.msra.mxu0 %v11271_v35  ;;  %8186 = vmatpush1.bf16.msra.mxu1 %v11274_v36  ;;  %v11372_v35 = vld [vmem:[%s15631_s1 + $0x1664] ss:$16 sps:$4 sm:$0xff]   ;;  %v11375_v36 = vld [vmem:[%s15631_s1 + $0x166c] ss:$16 sps:$4 sm:$0xff]  }
 0x290   :  { %7413 = vmatprep.subr.bf16.mxu0 %v11279_v37  ;;  %8187 = vmatprep.subr.bf16.mxu1 %v11282_v38  ;;  %v11370_v37 = vld [vmem:[%s15631_s1 + $0x1660] ss:$16 sps:$4 sm:$0xff]   ;;  %v11373_v38 = vld [vmem:[%s15631_s1 + $0x1668] ss:$16 sps:$4 sm:$0xff]  }
 0x293   :  { %7414 = vmatpush1.bf16.msra.mxu0 %v11277_v39  ;;  %8188 = vmatpush1.bf16.msra.mxu1 %v11280_v40  ;;  %v11378_v39 = vld [vmem:[%s15631_s1 + $0x1684] ss:$16 sps:$4 sm:$0xff]   ;;  %v11381_v40 = vld [vmem:[%s15631_s1 + $0x168c] ss:$16 sps:$4 sm:$0xff]  }
 0x294   :  { %7415 = vmatprep.subr.bf16.mxu0 %v11285_v41  ;;  %8189 = vmatprep.subr.bf16.mxu1 %v11288_v42  ;;  %v11376_v41 = vld [vmem:[%s15631_s1 + $0x1680] ss:$16 sps:$4 sm:$0xff]   ;;  %v11379_v42 = vld [vmem:[%s15631_s1 + $0x1688] ss:$16 sps:$4 sm:$0xff]  }
 0x297   :  { %7416 = vmatpush1.bf16.msra.mxu0 %v11283_v43  ;;  %8190 = vmatpush1.bf16.msra.mxu1 %v11286_v44  ;;  %v11384_v43 = vld [vmem:[%s15631_s1 + $0x16a4] ss:$16 sps:$4 sm:$0xff]   ;;  %v11387_v44 = vld [vmem:[%s15631_s1 + $0x16ac] ss:$16 sps:$4 sm:$0xff]  }
 0x298   :  { %7417 = vmatprep.subr.bf16.mxu0 %v11291_v45  ;;  %8191 = vmatprep.subr.bf16.mxu1 %v11294_v46  ;;  %v11382_v45 = vld [vmem:[%s15631_s1 + $0x16a0] ss:$16 sps:$4 sm:$0xff]   ;;  %v11385_v46 = vld [vmem:[%s15631_s1 + $0x16a8] ss:$16 sps:$4 sm:$0xff]  }
 0x29b   :  { %7418 = vmatpush1.bf16.msra.mxu0 %v11289_v47  ;;  %8192 = vmatpush1.bf16.msra.mxu1 %v11292_v48  ;;  %v11390_v47 = vld [vmem:[%s15631_s1 + $0x16c4] ss:$16 sps:$4 sm:$0xff]   ;;  %v11393_v48 = vld [vmem:[%s15631_s1 + $0x16cc] ss:$16 sps:$4 sm:$0xff]  }
 0x29c   :  { %7419 = vmatprep.subr.bf16.mxu0 %v11297_v49  ;;  %8193 = vmatprep.subr.bf16.mxu1 %v11300_v50  ;;  %v11388_v49 = vld [vmem:[%s15631_s1 + $0x16c0] ss:$16 sps:$4 sm:$0xff]   ;;  %v11391_v50 = vld [vmem:[%s15631_s1 + $0x16c8] ss:$16 sps:$4 sm:$0xff]  }
 0x29f   :  { %7420 = vmatpush1.bf16.msra.mxu0 %v11295_v51  ;;  %8194 = vmatpush1.bf16.msra.mxu1 %v11298_v52  ;;  %v11396_v51 = vld [vmem:[%s15631_s1 + $0x16e4] ss:$16 sps:$4 sm:$0xff]   ;;  %v11399_v52 = vld [vmem:[%s15631_s1 + $0x16ec] ss:$16 sps:$4 sm:$0xff]  }
 0x2a0   :  { %7421 = vmatprep.subr.bf16.mxu0 %v11303_v53  ;;  %8195 = vmatprep.subr.bf16.mxu1 %v11306_v54  ;;  %v11394_v53 = vld [vmem:[%s15631_s1 + $0x16e0] ss:$16 sps:$4 sm:$0xff]   ;;  %v11397_v54 = vld [vmem:[%s15631_s1 + $0x16e8] ss:$16 sps:$4 sm:$0xff]  }
 0x2a3   :  { %7422 = vmatpush1.bf16.msra.mxu0 %v11301_v55  ;;  %8196 = vmatpush1.bf16.msra.mxu1 %v11304_v56  ;;  %v11402_v55 = vld [vmem:[%s15631_s1 + $0x1704] ss:$16 sps:$4 sm:$0xff]   ;;  %v11405_v56 = vld [vmem:[%s15631_s1 + $0x170c] ss:$16 sps:$4 sm:$0xff]  }
 0x2a4   :  { %7423 = vmatprep.subr.bf16.mxu0 %v11309_v57  ;;  %8197 = vmatprep.subr.bf16.mxu1 %v11312_v58  ;;  %v11400_v57 = vld [vmem:[%s15631_s1 + $0x1700] ss:$16 sps:$4 sm:$0xff]   ;;  %v11403_v58 = vld [vmem:[%s15631_s1 + $0x1708] ss:$16 sps:$4 sm:$0xff]  }
 0x2a7   :  { %7424 = vmatpush1.bf16.msra.mxu0 %v11307_v59  ;;  %8198 = vmatpush1.bf16.msra.mxu1 %v11310_v60  ;;  %v11408_v59 = vld [vmem:[%s15631_s1 + $0x1724] ss:$16 sps:$4 sm:$0xff]   ;;  %v11411_v60 = vld [vmem:[%s15631_s1 + $0x172c] ss:$16 sps:$4 sm:$0xff]  }
 0x2a8   :  { %7425 = vmatprep.subr.bf16.mxu0 %v11315_v61  ;;  %8199 = vmatprep.subr.bf16.mxu1 %v11318_v62  ;;  %v11406_v61 = vld [vmem:[%s15631_s1 + $0x1720] ss:$16 sps:$4 sm:$0xff]   ;;  %v11409_v62 = vld [vmem:[%s15631_s1 + $0x1728] ss:$16 sps:$4 sm:$0xff]  }
 0x2ab   :  { %7426 = vmatpush1.bf16.msra.mxu0 %v11313_v63  ;;  %8200 = vmatpush1.bf16.msra.mxu1 %v11316_v0  ;;  %v11414_v63 = vld [vmem:[%s15631_s1 + $0x1744] ss:$16 sps:$4 sm:$0xff]   ;;  %v11417_v0 = vld [vmem:[%s15631_s1 + $0x174c] ss:$16 sps:$4 sm:$0xff]  }
 0x2ac   :  { %7427 = vmatprep.subr.bf16.mxu0 %v11321_v1  ;;  %8201 = vmatprep.subr.bf16.mxu1 %v11324_v2  ;;  %v11412_v1 = vld [vmem:[%s15631_s1 + $0x1740] ss:$16 sps:$4 sm:$0xff]   ;;  %v11415_v2 = vld [vmem:[%s15631_s1 + $0x1748] ss:$16 sps:$4 sm:$0xff]  }
 0x2af   :  { %7428 = vmatpush1.bf16.msra.mxu0 %v11319_v3  ;;  %8202 = vmatpush1.bf16.msra.mxu1 %v11322_v4  ;;  %v11420_v3 = vld [vmem:[%s15631_s1 + $0x1764] ss:$16 sps:$4 sm:$0xff]   ;;  %v11423_v4 = vld [vmem:[%s15631_s1 + $0x176c] ss:$16 sps:$4 sm:$0xff]  }
 0x2b0   :  { %7429 = vmatprep.subr.bf16.mxu0 %v11327_v5  ;;  %8203 = vmatprep.subr.bf16.mxu1 %v11330_v6  ;;  %v11418_v5 = vld [vmem:[%s15631_s1 + $0x1760] ss:$16 sps:$4 sm:$0xff]   ;;  %v11421_v6 = vld [vmem:[%s15631_s1 + $0x1768] ss:$16 sps:$4 sm:$0xff]  }
 0x2b3   :  { %7430 = vmatpush1.bf16.msra.mxu0 %v11325_v7  ;;  %8204 = vmatpush1.bf16.msra.mxu1 %v11328_v8  ;;  %v11426_v7 = vld [vmem:[%s15631_s1 + $0x1784] ss:$16 sps:$4 sm:$0xff]   ;;  %v11429_v8 = vld [vmem:[%s15631_s1 + $0x178c] ss:$16 sps:$4 sm:$0xff]  }
 0x2b4   :  { %7431 = vmatprep.subr.bf16.mxu0 %v11333_v9  ;;  %8205 = vmatprep.subr.bf16.mxu1 %v11336_v10  ;;  %v11424_v9 = vld [vmem:[%s15631_s1 + $0x1780] ss:$16 sps:$4 sm:$0xff]   ;;  %v11427_v10 = vld [vmem:[%s15631_s1 + $0x1788] ss:$16 sps:$4 sm:$0xff]  }
 0x2b7   :  { %7432 = vmatpush1.bf16.msra.mxu0 %v11331_v11  ;;  %8206 = vmatpush1.bf16.msra.mxu1 %v11334_v12  ;;  %v11432_v11 = vld [vmem:[%s15631_s1 + $0x17a4] ss:$16 sps:$4 sm:$0xff]   ;;  %v11435_v12 = vld [vmem:[%s15631_s1 + $0x17ac] ss:$16 sps:$4 sm:$0xff]  }
 0x2b8   :  { %7433 = vmatprep.subr.bf16.mxu0 %v11339_v13  ;;  %8207 = vmatprep.subr.bf16.mxu1 %v11342_v14  ;;  %v11430_v13 = vld [vmem:[%s15631_s1 + $0x17a0] ss:$16 sps:$4 sm:$0xff]   ;;  %v11433_v14 = vld [vmem:[%s15631_s1 + $0x17a8] ss:$16 sps:$4 sm:$0xff]  }
 0x2bb   :  { %7434 = vmatpush1.bf16.msra.mxu0 %v11337_v15  ;;  %8208 = vmatpush1.bf16.msra.mxu1 %v11340_v16  ;;  %v11438_v15 = vld [vmem:[%s15631_s1 + $0x17c4] ss:$16 sps:$4 sm:$0xff]   ;;  %v11441_v16 = vld [vmem:[%s15631_s1 + $0x17cc] ss:$16 sps:$4 sm:$0xff]  }
 0x2bc   :  { %7435 = vmatprep.subr.bf16.mxu0 %v11345_v17  ;;  %8209 = vmatprep.subr.bf16.mxu1 %v11348_v18  ;;  %v11436_v17 = vld [vmem:[%s15631_s1 + $0x17c0] ss:$16 sps:$4 sm:$0xff]   ;;  %v11439_v18 = vld [vmem:[%s15631_s1 + $0x17c8] ss:$16 sps:$4 sm:$0xff]  }
 0x2bf   :  { %7436 = vmatpush1.bf16.msra.mxu0 %v11343_v19  ;;  %8210 = vmatpush1.bf16.msra.mxu1 %v11346_v20  ;;  %v11444_v19 = vld [vmem:[%s15631_s1 + $0x17e4] ss:$16 sps:$4 sm:$0xff]   ;;  %v11447_v20 = vld [vmem:[%s15631_s1 + $0x17ec] ss:$16 sps:$4 sm:$0xff]  }
 0x2c0   :  { %7448 = vmatprep.subr.bf16.mxu0 %v11354_v21  ;;  %8222 = vmatprep.subr.bf16.mxu1 %v11357_v22  ;;  %v11442_v21 = vld [vmem:[%s15631_s1 + $0x17e0] ss:$16 sps:$4 sm:$0xff]   ;;  %v11445_v22 = vld [vmem:[%s15631_s1 + $0x17e8] ss:$16 sps:$4 sm:$0xff]  }
 0x2c2   :  { %7438 = vmatmul.mubr.bf16.vlgmr.msra.gmra.mrb[0].mxu0 %v11349_v23  ;;  %8212 = vmatmul.mubr.bf16.vlgmr.msra.gmra.mrb[0].mxu1 %v11349_v23  ;;  %v11453_v23 = vld [vmem:[%s15631_s1 + $0x1804] ss:$16 sps:$4 sm:$0xff]  }
 0x2c3   :  { %7449 = vmatpush1.bf16.msra.mxu0 %v11352_v24  ;;  %8223 = vmatpush1.bf16.msra.mxu1 %v11355_v25  ;;  %v11456_v24 = vld [vmem:[%s15631_s1 + $0x180c] ss:$16 sps:$4 sm:$0xff]   ;;  %v11448_v25 = vld [vmem:[%s15632_s0 + $0x58] ss:$140 sps:$4 sm:$0xff]  }
 0x2c4   :  { %7450 = vmatprep.subr.bf16.mxu0 %v11360_v26  ;;  %8224 = vmatprep.subr.bf16.mxu1 %v11363_v27  ;;  %v11451_v26 = vld [vmem:[%s15631_s1 + $0x1800] ss:$16 sps:$4 sm:$0xff]   ;;  %v11454_v27 = vld [vmem:[%s15631_s1 + $0x1808] ss:$16 sps:$4 sm:$0xff]  }
 0x2c5   :  { %7480 = vmatprep.mubr.bf16.mxu0 %v11450_v28  ;;  %8254 = vmatprep.mubr.bf16.mxu1 %v11450_v28  ;;  %v11459_v28 = vld [vmem:[%s15631_s1 + $0x1824] ss:$16 sps:$4 sm:$0xff]  }
 0x2c7   :  { %7451 = vmatpush1.bf16.msra.mxu0 %v11358_v29  ;;  %8225 = vmatpush1.bf16.msra.mxu1 %v11361_v30  ;;  %v11462_v29 = vld [vmem:[%s15631_s1 + $0x182c] ss:$16 sps:$4 sm:$0xff]   ;;  %v11549_v30 = vld [vmem:[%s15632_s0 + $0x64] ss:$140 sps:$4 sm:$0xff]  }
 0x2c8   :  { %7452 = vmatprep.subr.bf16.mxu0 %v11366_v31  ;;  %8226 = vmatprep.subr.bf16.mxu1 %v11369_v32  ;;  %v11457_v31 = vld [vmem:[%s15631_s1 + $0x1820] ss:$16 sps:$4 sm:$0xff]   ;;  %v11460_v32 = vld [vmem:[%s15631_s1 + $0x1828] ss:$16 sps:$4 sm:$0xff]  }
 0x2cb   :  { %7453 = vmatpush1.bf16.msra.mxu0 %v11364_v33  ;;  %8227 = vmatpush1.bf16.msra.mxu1 %v11367_v34  ;;  %v11465_v33 = vld [vmem:[%s15631_s1 + $0x1844] ss:$16 sps:$4 sm:$0xff]   ;;  %v11468_v34 = vld [vmem:[%s15631_s1 + $0x184c] ss:$16 sps:$4 sm:$0xff]  }
 0x2cc   :  { %7454 = vmatprep.subr.bf16.mxu0 %v11372_v35  ;;  %8228 = vmatprep.subr.bf16.mxu1 %v11375_v36  ;;  %v11463_v35 = vld [vmem:[%s15631_s1 + $0x1840] ss:$16 sps:$4 sm:$0xff]   ;;  %v11466_v36 = vld [vmem:[%s15631_s1 + $0x1848] ss:$16 sps:$4 sm:$0xff]  }
 0x2cf   :  { %7455 = vmatpush1.bf16.msra.mxu0 %v11370_v37  ;;  %8229 = vmatpush1.bf16.msra.mxu1 %v11373_v38  ;;  %v11471_v37 = vld [vmem:[%s15631_s1 + $0x1864] ss:$16 sps:$4 sm:$0xff]   ;;  %v11474_v38 = vld [vmem:[%s15631_s1 + $0x186c] ss:$16 sps:$4 sm:$0xff]  }
 0x2d0   :  { %7456 = vmatprep.subr.bf16.mxu0 %v11378_v39  ;;  %8230 = vmatprep.subr.bf16.mxu1 %v11381_v40  ;;  %v11469_v39 = vld [vmem:[%s15631_s1 + $0x1860] ss:$16 sps:$4 sm:$0xff]   ;;  %v11472_v40 = vld [vmem:[%s15631_s1 + $0x1868] ss:$16 sps:$4 sm:$0xff]  }
 0x2d3   :  { %7457 = vmatpush1.bf16.msra.mxu0 %v11376_v41  ;;  %8231 = vmatpush1.bf16.msra.mxu1 %v11379_v42  ;;  %v11477_v41 = vld [vmem:[%s15631_s1 + $0x1884] ss:$16 sps:$4 sm:$0xff]   ;;  %v11480_v42 = vld [vmem:[%s15631_s1 + $0x188c] ss:$16 sps:$4 sm:$0xff]  }
 0x2d4   :  { %7458 = vmatprep.subr.bf16.mxu0 %v11384_v43  ;;  %8232 = vmatprep.subr.bf16.mxu1 %v11387_v44  ;;  %v11475_v43 = vld [vmem:[%s15631_s1 + $0x1880] ss:$16 sps:$4 sm:$0xff]   ;;  %v11478_v44 = vld [vmem:[%s15631_s1 + $0x1888] ss:$16 sps:$4 sm:$0xff]  }
 0x2d7   :  { %7459 = vmatpush1.bf16.msra.mxu0 %v11382_v45  ;;  %8233 = vmatpush1.bf16.msra.mxu1 %v11385_v46  ;;  %v11483_v45 = vld [vmem:[%s15631_s1 + $0x18a4] ss:$16 sps:$4 sm:$0xff]   ;;  %v11486_v46 = vld [vmem:[%s15631_s1 + $0x18ac] ss:$16 sps:$4 sm:$0xff]  }
 0x2d8   :  { %7460 = vmatprep.subr.bf16.mxu0 %v11390_v47  ;;  %8234 = vmatprep.subr.bf16.mxu1 %v11393_v48  ;;  %v11481_v47 = vld [vmem:[%s15631_s1 + $0x18a0] ss:$16 sps:$4 sm:$0xff]   ;;  %v11484_v48 = vld [vmem:[%s15631_s1 + $0x18a8] ss:$16 sps:$4 sm:$0xff]  }
 0x2db   :  { %7461 = vmatpush1.bf16.msra.mxu0 %v11388_v49  ;;  %8235 = vmatpush1.bf16.msra.mxu1 %v11391_v50  ;;  %v11489_v49 = vld [vmem:[%s15631_s1 + $0x18c4] ss:$16 sps:$4 sm:$0xff]   ;;  %v11492_v50 = vld [vmem:[%s15631_s1 + $0x18cc] ss:$16 sps:$4 sm:$0xff]  }
 0x2dc   :  { %7462 = vmatprep.subr.bf16.mxu0 %v11396_v51  ;;  %8236 = vmatprep.subr.bf16.mxu1 %v11399_v52  ;;  %v11487_v51 = vld [vmem:[%s15631_s1 + $0x18c0] ss:$16 sps:$4 sm:$0xff]   ;;  %v11490_v52 = vld [vmem:[%s15631_s1 + $0x18c8] ss:$16 sps:$4 sm:$0xff]  }
 0x2df   :  { %7463 = vmatpush1.bf16.msra.mxu0 %v11394_v53  ;;  %8237 = vmatpush1.bf16.msra.mxu1 %v11397_v54  ;;  %v11495_v53 = vld [vmem:[%s15631_s1 + $0x18e4] ss:$16 sps:$4 sm:$0xff]   ;;  %v11498_v54 = vld [vmem:[%s15631_s1 + $0x18ec] ss:$16 sps:$4 sm:$0xff]  }
 0x2e0   :  { %7464 = vmatprep.subr.bf16.mxu0 %v11402_v55  ;;  %8238 = vmatprep.subr.bf16.mxu1 %v11405_v56  ;;  %v11493_v55 = vld [vmem:[%s15631_s1 + $0x18e0] ss:$16 sps:$4 sm:$0xff]   ;;  %v11496_v56 = vld [vmem:[%s15631_s1 + $0x18e8] ss:$16 sps:$4 sm:$0xff]  }
 0x2e3   :  { %7465 = vmatpush1.bf16.msra.mxu0 %v11400_v57  ;;  %8239 = vmatpush1.bf16.msra.mxu1 %v11403_v58  ;;  %v11501_v57 = vld [vmem:[%s15631_s1 + $0x1904] ss:$16 sps:$4 sm:$0xff]   ;;  %v11504_v58 = vld [vmem:[%s15631_s1 + $0x190c] ss:$16 sps:$4 sm:$0xff]  }
 0x2e4   :  { %7466 = vmatprep.subr.bf16.mxu0 %v11408_v59  ;;  %8240 = vmatprep.subr.bf16.mxu1 %v11411_v60  ;;  %v11499_v59 = vld [vmem:[%s15631_s1 + $0x1900] ss:$16 sps:$4 sm:$0xff]   ;;  %v11502_v60 = vld [vmem:[%s15631_s1 + $0x1908] ss:$16 sps:$4 sm:$0xff]  }
 0x2e7   :  { %7467 = vmatpush1.bf16.msra.mxu0 %v11406_v61  ;;  %8241 = vmatpush1.bf16.msra.mxu1 %v11409_v62  ;;  %v11507_v61 = vld [vmem:[%s15631_s1 + $0x1924] ss:$16 sps:$4 sm:$0xff]   ;;  %v11510_v62 = vld [vmem:[%s15631_s1 + $0x192c] ss:$16 sps:$4 sm:$0xff]  }
 0x2e8   :  { %7468 = vmatprep.subr.bf16.mxu0 %v11414_v63  ;;  %8242 = vmatprep.subr.bf16.mxu1 %v11417_v0  ;;  %v11505_v63 = vld [vmem:[%s15631_s1 + $0x1920] ss:$16 sps:$4 sm:$0xff]   ;;  %v11508_v0 = vld [vmem:[%s15631_s1 + $0x1928] ss:$16 sps:$4 sm:$0xff]  }
 0x2eb   :  { %7469 = vmatpush1.bf16.msra.mxu0 %v11412_v1  ;;  %8243 = vmatpush1.bf16.msra.mxu1 %v11415_v2  ;;  %v11513_v1 = vld [vmem:[%s15631_s1 + $0x1944] ss:$16 sps:$4 sm:$0xff]   ;;  %v11516_v2 = vld [vmem:[%s15631_s1 + $0x194c] ss:$16 sps:$4 sm:$0xff]  }
 0x2ec   :  { %7470 = vmatprep.subr.bf16.mxu0 %v11420_v3  ;;  %8244 = vmatprep.subr.bf16.mxu1 %v11423_v4  ;;  %v11511_v3 = vld [vmem:[%s15631_s1 + $0x1940] ss:$16 sps:$4 sm:$0xff]   ;;  %v11514_v4 = vld [vmem:[%s15631_s1 + $0x1948] ss:$16 sps:$4 sm:$0xff]  }
 0x2ef   :  { %7471 = vmatpush1.bf16.msra.mxu0 %v11418_v5  ;;  %8245 = vmatpush1.bf16.msra.mxu1 %v11421_v6  ;;  %v11519_v5 = vld [vmem:[%s15631_s1 + $0x1964] ss:$16 sps:$4 sm:$0xff]   ;;  %v11522_v6 = vld [vmem:[%s15631_s1 + $0x196c] ss:$16 sps:$4 sm:$0xff]  }
 0x2f0   :  { %7472 = vmatprep.subr.bf16.mxu0 %v11426_v7  ;;  %8246 = vmatprep.subr.bf16.mxu1 %v11429_v8  ;;  %v11517_v7 = vld [vmem:[%s15631_s1 + $0x1960] ss:$16 sps:$4 sm:$0xff]   ;;  %v11520_v8 = vld [vmem:[%s15631_s1 + $0x1968] ss:$16 sps:$4 sm:$0xff]  }
 0x2f3   :  { %7473 = vmatpush1.bf16.msra.mxu0 %v11424_v9  ;;  %8247 = vmatpush1.bf16.msra.mxu1 %v11427_v10  ;;  %v11525_v9 = vld [vmem:[%s15631_s1 + $0x1984] ss:$16 sps:$4 sm:$0xff]   ;;  %v11528_v10 = vld [vmem:[%s15631_s1 + $0x198c] ss:$16 sps:$4 sm:$0xff]  }
 0x2f4   :  { %7474 = vmatprep.subr.bf16.mxu0 %v11432_v11  ;;  %8248 = vmatprep.subr.bf16.mxu1 %v11435_v12  ;;  %v11523_v11 = vld [vmem:[%s15631_s1 + $0x1980] ss:$16 sps:$4 sm:$0xff]   ;;  %v11526_v12 = vld [vmem:[%s15631_s1 + $0x1988] ss:$16 sps:$4 sm:$0xff]  }
 0x2f7   :  { %7475 = vmatpush1.bf16.msra.mxu0 %v11430_v13  ;;  %8249 = vmatpush1.bf16.msra.mxu1 %v11433_v14  ;;  %v11531_v13 = vld [vmem:[%s15631_s1 + $0x19a4] ss:$16 sps:$4 sm:$0xff]   ;;  %v11534_v14 = vld [vmem:[%s15631_s1 + $0x19ac] ss:$16 sps:$4 sm:$0xff]  }
 0x2f8   :  { %7476 = vmatprep.subr.bf16.mxu0 %v11438_v15  ;;  %8250 = vmatprep.subr.bf16.mxu1 %v11441_v16  ;;  %v11529_v15 = vld [vmem:[%s15631_s1 + $0x19a0] ss:$16 sps:$4 sm:$0xff]   ;;  %v11532_v16 = vld [vmem:[%s15631_s1 + $0x19a8] ss:$16 sps:$4 sm:$0xff]  }
 0x2fb   :  { %7477 = vmatpush1.bf16.msra.mxu0 %v11436_v17  ;;  %8251 = vmatpush1.bf16.msra.mxu1 %v11439_v18  ;;  %v11537_v17 = vld [vmem:[%s15631_s1 + $0x19c4] ss:$16 sps:$4 sm:$0xff]   ;;  %v11540_v18 = vld [vmem:[%s15631_s1 + $0x19cc] ss:$16 sps:$4 sm:$0xff]  }
 0x2fc   :  { %7478 = vmatprep.subr.bf16.mxu0 %v11444_v19  ;;  %8252 = vmatprep.subr.bf16.mxu1 %v11447_v20  ;;  %v11535_v19 = vld [vmem:[%s15631_s1 + $0x19c0] ss:$16 sps:$4 sm:$0xff]   ;;  %v11538_v20 = vld [vmem:[%s15631_s1 + $0x19c8] ss:$16 sps:$4 sm:$0xff]  }
 0x2ff   :  { %7479 = vmatpush1.bf16.msra.mxu0 %v11442_v21  ;;  %8253 = vmatpush1.bf16.msra.mxu1 %v11445_v22  ;;  %v11543_v21 = vld [vmem:[%s15631_s1 + $0x19e4] ss:$16 sps:$4 sm:$0xff]   ;;  %v11546_v22 = vld [vmem:[%s15631_s1 + $0x19ec] ss:$16 sps:$4 sm:$0xff]  }
 0x300   :  { %7491 = vmatprep.subr.bf16.mxu0 %v11453_v23  ;;  %8265 = vmatprep.subr.bf16.mxu1 %v11456_v24  ;;  %v11541_v23 = vld [vmem:[%s15631_s1 + $0x19e0] ss:$16 sps:$4 sm:$0xff]   ;;  %v11544_v24 = vld [vmem:[%s15631_s1 + $0x19e8] ss:$16 sps:$4 sm:$0xff]  }
 0x302   :  { %7481 = vmatmul.mubr.bf16.vlgmr.msra.gmra.mrb[0].mxu0 %v11448_v25  ;;  %8255 = vmatmul.mubr.bf16.vlgmr.msra.gmra.mrb[0].mxu1 %v11448_v25  ;;  %v11552_v25 = vld [vmem:[%s15631_s1 + $0x1a04] ss:$16 sps:$4 sm:$0xff]  }
 0x303   :  { %7492 = vmatpush1.bf16.msra.mxu0 %v11451_v26  ;;  %8266 = vmatpush1.bf16.msra.mxu1 %v11454_v27  ;;  %v11555_v26 = vld [vmem:[%s15631_s1 + $0x1a0c] ss:$16 sps:$4 sm:$0xff]  }
 0x304   :  { %7493 = vmatprep.subr.bf16.mxu0 %v11459_v28  ;;  %8267 = vmatprep.subr.bf16.mxu1 %v11462_v29  ;;  %v11547_v27 = vld [vmem:[%s15632_s0 + $0x60] ss:$140 sps:$4 sm:$0xff]   ;;  %v11553_v29 = vld [vmem:[%s15631_s1 + $0x1a08] ss:$16 sps:$4 sm:$0xff]  }
 0x305   :  { %7523 = vmatprep.mubr.bf16.mxu0 %v11549_v30  ;;  %8297 = vmatprep.mubr.bf16.mxu1 %v11549_v30  ;;  %v11550_v28 = vld [vmem:[%s15631_s1 + $0x1a00] ss:$16 sps:$4 sm:$0xff]   ;;  %v11558_v30 = vld [vmem:[%s15631_s1 + $0x1a24] ss:$16 sps:$4 sm:$0xff]  }
 0x307   :  { %7494 = vmatpush1.bf16.msra.mxu0 %v11457_v31  ;;  %8268 = vmatpush1.bf16.msra.mxu1 %v11460_v32  ;;  %v11561_v31 = vld [vmem:[%s15631_s1 + $0x1a2c] ss:$16 sps:$4 sm:$0xff]  }
 0x308   :  { %7495 = vmatprep.subr.bf16.mxu0 %v11465_v33  ;;  %8269 = vmatprep.subr.bf16.mxu1 %v11468_v34  ;;  %v11648_v32 = vld [vmem:[%s15632_s0 + $0x6c] ss:$140 sps:$4 sm:$0xff]   ;;  %v11556_v33 = vld [vmem:[%s15631_s1 + $0x1a20] ss:$16 sps:$4 sm:$0xff]  }
 0x309   :  { %v11559_v34 = vld [vmem:[%s15631_s1 + $0x1a28] ss:$16 sps:$4 sm:$0xff]  }
 0x30b   :  { %7496 = vmatpush1.bf16.msra.mxu0 %v11463_v35  ;;  %8270 = vmatpush1.bf16.msra.mxu1 %v11466_v36  ;;  %v11564_v35 = vld [vmem:[%s15631_s1 + $0x1a44] ss:$16 sps:$4 sm:$0xff]   ;;  %v11567_v36 = vld [vmem:[%s15631_s1 + $0x1a4c] ss:$16 sps:$4 sm:$0xff]  }
 0x30c   :  { %7497 = vmatprep.subr.bf16.mxu0 %v11471_v37  ;;  %8271 = vmatprep.subr.bf16.mxu1 %v11474_v38  ;;  %v11562_v37 = vld [vmem:[%s15631_s1 + $0x1a40] ss:$16 sps:$4 sm:$0xff]   ;;  %v11565_v38 = vld [vmem:[%s15631_s1 + $0x1a48] ss:$16 sps:$4 sm:$0xff]  }
 0x30f   :  { %7498 = vmatpush1.bf16.msra.mxu0 %v11469_v39  ;;  %8272 = vmatpush1.bf16.msra.mxu1 %v11472_v40  ;;  %v11570_v39 = vld [vmem:[%s15631_s1 + $0x1a64] ss:$16 sps:$4 sm:$0xff]   ;;  %v11573_v40 = vld [vmem:[%s15631_s1 + $0x1a6c] ss:$16 sps:$4 sm:$0xff]  }
 0x310   :  { %7499 = vmatprep.subr.bf16.mxu0 %v11477_v41  ;;  %8273 = vmatprep.subr.bf16.mxu1 %v11480_v42  ;;  %v11568_v41 = vld [vmem:[%s15631_s1 + $0x1a60] ss:$16 sps:$4 sm:$0xff]   ;;  %v11571_v42 = vld [vmem:[%s15631_s1 + $0x1a68] ss:$16 sps:$4 sm:$0xff]  }
 0x313   :  { %7500 = vmatpush1.bf16.msra.mxu0 %v11475_v43  ;;  %8274 = vmatpush1.bf16.msra.mxu1 %v11478_v44  ;;  %v11576_v43 = vld [vmem:[%s15631_s1 + $0x1a84] ss:$16 sps:$4 sm:$0xff]   ;;  %v11579_v44 = vld [vmem:[%s15631_s1 + $0x1a8c] ss:$16 sps:$4 sm:$0xff]  }
 0x314   :  { %7501 = vmatprep.subr.bf16.mxu0 %v11483_v45  ;;  %8275 = vmatprep.subr.bf16.mxu1 %v11486_v46  ;;  %v11574_v45 = vld [vmem:[%s15631_s1 + $0x1a80] ss:$16 sps:$4 sm:$0xff]   ;;  %v11577_v46 = vld [vmem:[%s15631_s1 + $0x1a88] ss:$16 sps:$4 sm:$0xff]  }
 0x317   :  { %7502 = vmatpush1.bf16.msra.mxu0 %v11481_v47  ;;  %8276 = vmatpush1.bf16.msra.mxu1 %v11484_v48  ;;  %v11582_v47 = vld [vmem:[%s15631_s1 + $0x1aa4] ss:$16 sps:$4 sm:$0xff]   ;;  %v11585_v48 = vld [vmem:[%s15631_s1 + $0x1aac] ss:$16 sps:$4 sm:$0xff]  }
 0x318   :  { %7503 = vmatprep.subr.bf16.mxu0 %v11489_v49  ;;  %8277 = vmatprep.subr.bf16.mxu1 %v11492_v50  ;;  %v11580_v49 = vld [vmem:[%s15631_s1 + $0x1aa0] ss:$16 sps:$4 sm:$0xff]   ;;  %v11583_v50 = vld [vmem:[%s15631_s1 + $0x1aa8] ss:$16 sps:$4 sm:$0xff]  }
 0x31b   :  { %7504 = vmatpush1.bf16.msra.mxu0 %v11487_v51  ;;  %8278 = vmatpush1.bf16.msra.mxu1 %v11490_v52  ;;  %v11588_v51 = vld [vmem:[%s15631_s1 + $0x1ac4] ss:$16 sps:$4 sm:$0xff]   ;;  %v11591_v52 = vld [vmem:[%s15631_s1 + $0x1acc] ss:$16 sps:$4 sm:$0xff]  }
 0x31c   :  { %7505 = vmatprep.subr.bf16.mxu0 %v11495_v53  ;;  %8279 = vmatprep.subr.bf16.mxu1 %v11498_v54  ;;  %v11586_v53 = vld [vmem:[%s15631_s1 + $0x1ac0] ss:$16 sps:$4 sm:$0xff]   ;;  %v11589_v54 = vld [vmem:[%s15631_s1 + $0x1ac8] ss:$16 sps:$4 sm:$0xff]  }
 0x31f   :  { %7506 = vmatpush1.bf16.msra.mxu0 %v11493_v55  ;;  %8280 = vmatpush1.bf16.msra.mxu1 %v11496_v56  ;;  %v11594_v55 = vld [vmem:[%s15631_s1 + $0x1ae4] ss:$16 sps:$4 sm:$0xff]   ;;  %v11597_v56 = vld [vmem:[%s15631_s1 + $0x1aec] ss:$16 sps:$4 sm:$0xff]  }
 0x320   :  { %7507 = vmatprep.subr.bf16.mxu0 %v11501_v57  ;;  %8281 = vmatprep.subr.bf16.mxu1 %v11504_v58  ;;  %v11592_v57 = vld [vmem:[%s15631_s1 + $0x1ae0] ss:$16 sps:$4 sm:$0xff]   ;;  %v11595_v58 = vld [vmem:[%s15631_s1 + $0x1ae8] ss:$16 sps:$4 sm:$0xff]  }
 0x323   :  { %7508 = vmatpush1.bf16.msra.mxu0 %v11499_v59  ;;  %8282 = vmatpush1.bf16.msra.mxu1 %v11502_v60  ;;  %v11600_v59 = vld [vmem:[%s15631_s1 + $0x1b04] ss:$16 sps:$4 sm:$0xff]   ;;  %v11603_v60 = vld [vmem:[%s15631_s1 + $0x1b0c] ss:$16 sps:$4 sm:$0xff]  }
 0x324   :  { %7509 = vmatprep.subr.bf16.mxu0 %v11507_v61  ;;  %8283 = vmatprep.subr.bf16.mxu1 %v11510_v62  ;;  %v11598_v61 = vld [vmem:[%s15631_s1 + $0x1b00] ss:$16 sps:$4 sm:$0xff]   ;;  %v11601_v62 = vld [vmem:[%s15631_s1 + $0x1b08] ss:$16 sps:$4 sm:$0xff]  }
 0x327   :  { %7510 = vmatpush1.bf16.msra.mxu0 %v11505_v63  ;;  %8284 = vmatpush1.bf16.msra.mxu1 %v11508_v0  ;;  %v11606_v63 = vld [vmem:[%s15631_s1 + $0x1b24] ss:$16 sps:$4 sm:$0xff]   ;;  %v11609_v0 = vld [vmem:[%s15631_s1 + $0x1b2c] ss:$16 sps:$4 sm:$0xff]  }
 0x328   :  { %7511 = vmatprep.subr.bf16.mxu0 %v11513_v1  ;;  %8285 = vmatprep.subr.bf16.mxu1 %v11516_v2  ;;  %v11604_v1 = vld [vmem:[%s15631_s1 + $0x1b20] ss:$16 sps:$4 sm:$0xff]   ;;  %v11607_v2 = vld [vmem:[%s15631_s1 + $0x1b28] ss:$16 sps:$4 sm:$0xff]  }
 0x32b   :  { %7512 = vmatpush1.bf16.msra.mxu0 %v11511_v3  ;;  %8286 = vmatpush1.bf16.msra.mxu1 %v11514_v4  ;;  %v11612_v3 = vld [vmem:[%s15631_s1 + $0x1b44] ss:$16 sps:$4 sm:$0xff]   ;;  %v11615_v4 = vld [vmem:[%s15631_s1 + $0x1b4c] ss:$16 sps:$4 sm:$0xff]  }
 0x32c   :  { %7513 = vmatprep.subr.bf16.mxu0 %v11519_v5  ;;  %8287 = vmatprep.subr.bf16.mxu1 %v11522_v6  ;;  %v11610_v5 = vld [vmem:[%s15631_s1 + $0x1b40] ss:$16 sps:$4 sm:$0xff]   ;;  %v11613_v6 = vld [vmem:[%s15631_s1 + $0x1b48] ss:$16 sps:$4 sm:$0xff]  }
 0x32f   :  { %7514 = vmatpush1.bf16.msra.mxu0 %v11517_v7  ;;  %8288 = vmatpush1.bf16.msra.mxu1 %v11520_v8  ;;  %v11618_v7 = vld [vmem:[%s15631_s1 + $0x1b64] ss:$16 sps:$4 sm:$0xff]   ;;  %v11621_v8 = vld [vmem:[%s15631_s1 + $0x1b6c] ss:$16 sps:$4 sm:$0xff]  }
 0x330   :  { %7515 = vmatprep.subr.bf16.mxu0 %v11525_v9  ;;  %8289 = vmatprep.subr.bf16.mxu1 %v11528_v10  ;;  %v11616_v9 = vld [vmem:[%s15631_s1 + $0x1b60] ss:$16 sps:$4 sm:$0xff]   ;;  %v11619_v10 = vld [vmem:[%s15631_s1 + $0x1b68] ss:$16 sps:$4 sm:$0xff]  }
 0x333   :  { %7516 = vmatpush1.bf16.msra.mxu0 %v11523_v11  ;;  %8290 = vmatpush1.bf16.msra.mxu1 %v11526_v12  ;;  %v11624_v11 = vld [vmem:[%s15631_s1 + $0x1b84] ss:$16 sps:$4 sm:$0xff]   ;;  %v11627_v12 = vld [vmem:[%s15631_s1 + $0x1b8c] ss:$16 sps:$4 sm:$0xff]  }
 0x334   :  { %7517 = vmatprep.subr.bf16.mxu0 %v11531_v13  ;;  %8291 = vmatprep.subr.bf16.mxu1 %v11534_v14  ;;  %v11622_v13 = vld [vmem:[%s15631_s1 + $0x1b80] ss:$16 sps:$4 sm:$0xff]   ;;  %v11625_v14 = vld [vmem:[%s15631_s1 + $0x1b88] ss:$16 sps:$4 sm:$0xff]  }
 0x337   :  { %7518 = vmatpush1.bf16.msra.mxu0 %v11529_v15  ;;  %8292 = vmatpush1.bf16.msra.mxu1 %v11532_v16  ;;  %v11630_v15 = vld [vmem:[%s15631_s1 + $0x1ba4] ss:$16 sps:$4 sm:$0xff]   ;;  %v11633_v16 = vld [vmem:[%s15631_s1 + $0x1bac] ss:$16 sps:$4 sm:$0xff]  }
 0x338   :  { %7519 = vmatprep.subr.bf16.mxu0 %v11537_v17  ;;  %8293 = vmatprep.subr.bf16.mxu1 %v11540_v18  ;;  %v11628_v17 = vld [vmem:[%s15631_s1 + $0x1ba0] ss:$16 sps:$4 sm:$0xff]   ;;  %v11631_v18 = vld [vmem:[%s15631_s1 + $0x1ba8] ss:$16 sps:$4 sm:$0xff]  }
 0x33b   :  { %7520 = vmatpush1.bf16.msra.mxu0 %v11535_v19  ;;  %8294 = vmatpush1.bf16.msra.mxu1 %v11538_v20  ;;  %v11636_v19 = vld [vmem:[%s15631_s1 + $0x1bc4] ss:$16 sps:$4 sm:$0xff]   ;;  %v11639_v20 = vld [vmem:[%s15631_s1 + $0x1bcc] ss:$16 sps:$4 sm:$0xff]  }
 0x33c   :  { %7521 = vmatprep.subr.bf16.mxu0 %v11543_v21  ;;  %8295 = vmatprep.subr.bf16.mxu1 %v11546_v22  ;;  %v11634_v21 = vld [vmem:[%s15631_s1 + $0x1bc0] ss:$16 sps:$4 sm:$0xff]   ;;  %v11637_v22 = vld [vmem:[%s15631_s1 + $0x1bc8] ss:$16 sps:$4 sm:$0xff]  }
 0x33f   :  { %7522 = vmatpush1.bf16.msra.mxu0 %v11541_v23  ;;  %8296 = vmatpush1.bf16.msra.mxu1 %v11544_v24  ;;  %v11642_v23 = vld [vmem:[%s15631_s1 + $0x1be4] ss:$16 sps:$4 sm:$0xff]   ;;  %v11645_v24 = vld [vmem:[%s15631_s1 + $0x1bec] ss:$16 sps:$4 sm:$0xff]  }
 0x340   :  { %7534 = vmatprep.subr.bf16.mxu0 %v11552_v25  ;;  %8308 = vmatprep.subr.bf16.mxu1 %v11555_v26  ;;  %v11640_v25 = vld [vmem:[%s15631_s1 + $0x1be0] ss:$16 sps:$4 sm:$0xff]   ;;  %v11643_v26 = vld [vmem:[%s15631_s1 + $0x1be8] ss:$16 sps:$4 sm:$0xff]  }
 0x342   :  { %7524 = vmatmul.mubr.bf16.vlgmr.msra.gmra.mrb[0].mxu0 %v11547_v27  ;;  %8298 = vmatmul.mubr.bf16.vlgmr.msra.gmra.mrb[0].mxu1 %v11547_v27  ;;  %v11651_v27 = vld [vmem:[%s15631_s1 + $0x1c04] ss:$16 sps:$4 sm:$0xff]  }
 0x343   :  { %7535 = vmatpush1.bf16.msra.mxu0 %v11550_v28  ;;  %8309 = vmatpush1.bf16.msra.mxu1 %v11553_v29  ;;  %v11654_v28 = vld [vmem:[%s15631_s1 + $0x1c0c] ss:$16 sps:$4 sm:$0xff]   ;;  %v11646_v29 = vld [vmem:[%s15632_s0 + $0x68] ss:$140 sps:$4 sm:$0xff]  }
 0x344   :  { %7536 = vmatprep.subr.bf16.mxu0 %v11558_v30  ;;  %8310 = vmatprep.subr.bf16.mxu1 %v11561_v31  ;;  %v11649_v30 = vld [vmem:[%s15631_s1 + $0x1c00] ss:$16 sps:$4 sm:$0xff]   ;;  %v11652_v31 = vld [vmem:[%s15631_s1 + $0x1c08] ss:$16 sps:$4 sm:$0xff]  }
 0x345   :  { %7566 = vmatprep.mubr.bf16.mxu0 %v11648_v32  ;;  %8340 = vmatprep.mubr.bf16.mxu1 %v11648_v32  ;;  %v11657_v32 = vld [vmem:[%s15631_s1 + $0x1c24] ss:$16 sps:$4 sm:$0xff]  }
 0x347   :  { %7537 = vmatpush1.bf16.msra.mxu0 %v11556_v33  ;;  %8311 = vmatpush1.bf16.msra.mxu1 %v11559_v34  ;;  %v11660_v33 = vld [vmem:[%s15631_s1 + $0x1c2c] ss:$16 sps:$4 sm:$0xff]   ;;  %v11747_v34 = vld [vmem:[%s15632_s0 + $0x74] ss:$140 sps:$4 sm:$0xff]  }
 0x348   :  { %7538 = vmatprep.subr.bf16.mxu0 %v11564_v35  ;;  %8312 = vmatprep.subr.bf16.mxu1 %v11567_v36  ;;  %v11655_v35 = vld [vmem:[%s15631_s1 + $0x1c20] ss:$16 sps:$4 sm:$0xff]   ;;  %v11658_v36 = vld [vmem:[%s15631_s1 + $0x1c28] ss:$16 sps:$4 sm:$0xff]  }
 0x34b   :  { %7539 = vmatpush1.bf16.msra.mxu0 %v11562_v37  ;;  %8313 = vmatpush1.bf16.msra.mxu1 %v11565_v38  ;;  %v11663_v37 = vld [vmem:[%s15631_s1 + $0x1c44] ss:$16 sps:$4 sm:$0xff]   ;;  %v11666_v38 = vld [vmem:[%s15631_s1 + $0x1c4c] ss:$16 sps:$4 sm:$0xff]  }
 0x34c   :  { %7540 = vmatprep.subr.bf16.mxu0 %v11570_v39  ;;  %8314 = vmatprep.subr.bf16.mxu1 %v11573_v40  ;;  %v11661_v39 = vld [vmem:[%s15631_s1 + $0x1c40] ss:$16 sps:$4 sm:$0xff]   ;;  %v11664_v40 = vld [vmem:[%s15631_s1 + $0x1c48] ss:$16 sps:$4 sm:$0xff]  }
 0x34f   :  { %7541 = vmatpush1.bf16.msra.mxu0 %v11568_v41  ;;  %8315 = vmatpush1.bf16.msra.mxu1 %v11571_v42  ;;  %v11669_v41 = vld [vmem:[%s15631_s1 + $0x1c64] ss:$16 sps:$4 sm:$0xff]   ;;  %v11672_v42 = vld [vmem:[%s15631_s1 + $0x1c6c] ss:$16 sps:$4 sm:$0xff]  }
 0x350   :  { %7542 = vmatprep.subr.bf16.mxu0 %v11576_v43  ;;  %8316 = vmatprep.subr.bf16.mxu1 %v11579_v44  ;;  %v11667_v43 = vld [vmem:[%s15631_s1 + $0x1c60] ss:$16 sps:$4 sm:$0xff]   ;;  %v11670_v44 = vld [vmem:[%s15631_s1 + $0x1c68] ss:$16 sps:$4 sm:$0xff]  }
 0x353   :  { %7543 = vmatpush1.bf16.msra.mxu0 %v11574_v45  ;;  %8317 = vmatpush1.bf16.msra.mxu1 %v11577_v46  ;;  %v11675_v45 = vld [vmem:[%s15631_s1 + $0x1c84] ss:$16 sps:$4 sm:$0xff]   ;;  %v11678_v46 = vld [vmem:[%s15631_s1 + $0x1c8c] ss:$16 sps:$4 sm:$0xff]  }
 0x354   :  { %7544 = vmatprep.subr.bf16.mxu0 %v11582_v47  ;;  %8318 = vmatprep.subr.bf16.mxu1 %v11585_v48  ;;  %v11673_v47 = vld [vmem:[%s15631_s1 + $0x1c80] ss:$16 sps:$4 sm:$0xff]   ;;  %v11676_v48 = vld [vmem:[%s15631_s1 + $0x1c88] ss:$16 sps:$4 sm:$0xff]  }
 0x357   :  { %7545 = vmatpush1.bf16.msra.mxu0 %v11580_v49  ;;  %8319 = vmatpush1.bf16.msra.mxu1 %v11583_v50  ;;  %v11681_v49 = vld [vmem:[%s15631_s1 + $0x1ca4] ss:$16 sps:$4 sm:$0xff]   ;;  %v11684_v50 = vld [vmem:[%s15631_s1 + $0x1cac] ss:$16 sps:$4 sm:$0xff]  }
 0x358   :  { %7546 = vmatprep.subr.bf16.mxu0 %v11588_v51  ;;  %8320 = vmatprep.subr.bf16.mxu1 %v11591_v52  ;;  %v11679_v51 = vld [vmem:[%s15631_s1 + $0x1ca0] ss:$16 sps:$4 sm:$0xff]   ;;  %v11682_v52 = vld [vmem:[%s15631_s1 + $0x1ca8] ss:$16 sps:$4 sm:$0xff]  }
 0x35b   :  { %7547 = vmatpush1.bf16.msra.mxu0 %v11586_v53  ;;  %8321 = vmatpush1.bf16.msra.mxu1 %v11589_v54  ;;  %v11687_v53 = vld [vmem:[%s15631_s1 + $0x1cc4] ss:$16 sps:$4 sm:$0xff]   ;;  %v11690_v54 = vld [vmem:[%s15631_s1 + $0x1ccc] ss:$16 sps:$4 sm:$0xff]  }
 0x35c   :  { %7548 = vmatprep.subr.bf16.mxu0 %v11594_v55  ;;  %8322 = vmatprep.subr.bf16.mxu1 %v11597_v56  ;;  %v11685_v55 = vld [vmem:[%s15631_s1 + $0x1cc0] ss:$16 sps:$4 sm:$0xff]   ;;  %v11688_v56 = vld [vmem:[%s15631_s1 + $0x1cc8] ss:$16 sps:$4 sm:$0xff]  }
 0x35f   :  { %7549 = vmatpush1.bf16.msra.mxu0 %v11592_v57  ;;  %8323 = vmatpush1.bf16.msra.mxu1 %v11595_v58  ;;  %v11693_v57 = vld [vmem:[%s15631_s1 + $0x1ce4] ss:$16 sps:$4 sm:$0xff]   ;;  %v11696_v58 = vld [vmem:[%s15631_s1 + $0x1cec] ss:$16 sps:$4 sm:$0xff]  }
 0x360   :  { %7550 = vmatprep.subr.bf16.mxu0 %v11600_v59  ;;  %8324 = vmatprep.subr.bf16.mxu1 %v11603_v60  ;;  %v11691_v59 = vld [vmem:[%s15631_s1 + $0x1ce0] ss:$16 sps:$4 sm:$0xff]   ;;  %v11694_v60 = vld [vmem:[%s15631_s1 + $0x1ce8] ss:$16 sps:$4 sm:$0xff]  }
 0x363   :  { %7551 = vmatpush1.bf16.msra.mxu0 %v11598_v61  ;;  %8325 = vmatpush1.bf16.msra.mxu1 %v11601_v62  ;;  %v11699_v61 = vld [vmem:[%s15631_s1 + $0x1d04] ss:$16 sps:$4 sm:$0xff]   ;;  %v11702_v62 = vld [vmem:[%s15631_s1 + $0x1d0c] ss:$16 sps:$4 sm:$0xff]  }
 0x364   :  { %7552 = vmatprep.subr.bf16.mxu0 %v11606_v63  ;;  %8326 = vmatprep.subr.bf16.mxu1 %v11609_v0  ;;  %v11697_v63 = vld [vmem:[%s15631_s1 + $0x1d00] ss:$16 sps:$4 sm:$0xff]   ;;  %v11700_v0 = vld [vmem:[%s15631_s1 + $0x1d08] ss:$16 sps:$4 sm:$0xff]  }
 0x367   :  { %7553 = vmatpush1.bf16.msra.mxu0 %v11604_v1  ;;  %8327 = vmatpush1.bf16.msra.mxu1 %v11607_v2  ;;  %v11705_v1 = vld [vmem:[%s15631_s1 + $0x1d24] ss:$16 sps:$4 sm:$0xff]   ;;  %v11708_v2 = vld [vmem:[%s15631_s1 + $0x1d2c] ss:$16 sps:$4 sm:$0xff]  }
 0x368   :  { %7554 = vmatprep.subr.bf16.mxu0 %v11612_v3  ;;  %8328 = vmatprep.subr.bf16.mxu1 %v11615_v4  ;;  %v11703_v3 = vld [vmem:[%s15631_s1 + $0x1d20] ss:$16 sps:$4 sm:$0xff]   ;;  %v11706_v4 = vld [vmem:[%s15631_s1 + $0x1d28] ss:$16 sps:$4 sm:$0xff]  }
 0x36b   :  { %7555 = vmatpush1.bf16.msra.mxu0 %v11610_v5  ;;  %8329 = vmatpush1.bf16.msra.mxu1 %v11613_v6  ;;  %v11711_v5 = vld [vmem:[%s15631_s1 + $0x1d44] ss:$16 sps:$4 sm:$0xff]   ;;  %v11714_v6 = vld [vmem:[%s15631_s1 + $0x1d4c] ss:$16 sps:$4 sm:$0xff]  }
 0x36c   :  { %7556 = vmatprep.subr.bf16.mxu0 %v11618_v7  ;;  %8330 = vmatprep.subr.bf16.mxu1 %v11621_v8  ;;  %v11709_v7 = vld [vmem:[%s15631_s1 + $0x1d40] ss:$16 sps:$4 sm:$0xff]   ;;  %v11712_v8 = vld [vmem:[%s15631_s1 + $0x1d48] ss:$16 sps:$4 sm:$0xff]  }
 0x36f   :  { %7557 = vmatpush1.bf16.msra.mxu0 %v11616_v9  ;;  %8331 = vmatpush1.bf16.msra.mxu1 %v11619_v10  ;;  %v11717_v9 = vld [vmem:[%s15631_s1 + $0x1d64] ss:$16 sps:$4 sm:$0xff]   ;;  %v11720_v10 = vld [vmem:[%s15631_s1 + $0x1d6c] ss:$16 sps:$4 sm:$0xff]  }
 0x370   :  { %7558 = vmatprep.subr.bf16.mxu0 %v11624_v11  ;;  %8332 = vmatprep.subr.bf16.mxu1 %v11627_v12  ;;  %v11715_v11 = vld [vmem:[%s15631_s1 + $0x1d60] ss:$16 sps:$4 sm:$0xff]   ;;  %v11718_v12 = vld [vmem:[%s15631_s1 + $0x1d68] ss:$16 sps:$4 sm:$0xff]  }
 0x373   :  { %7559 = vmatpush1.bf16.msra.mxu0 %v11622_v13  ;;  %8333 = vmatpush1.bf16.msra.mxu1 %v11625_v14  ;;  %v11723_v13 = vld [vmem:[%s15631_s1 + $0x1d84] ss:$16 sps:$4 sm:$0xff]   ;;  %v11726_v14 = vld [vmem:[%s15631_s1 + $0x1d8c] ss:$16 sps:$4 sm:$0xff]  }
 0x374   :  { %7560 = vmatprep.subr.bf16.mxu0 %v11630_v15  ;;  %8334 = vmatprep.subr.bf16.mxu1 %v11633_v16  ;;  %v11721_v15 = vld [vmem:[%s15631_s1 + $0x1d80] ss:$16 sps:$4 sm:$0xff]   ;;  %v11724_v16 = vld [vmem:[%s15631_s1 + $0x1d88] ss:$16 sps:$4 sm:$0xff]  }
 0x377   :  { %7561 = vmatpush1.bf16.msra.mxu0 %v11628_v17  ;;  %8335 = vmatpush1.bf16.msra.mxu1 %v11631_v18  ;;  %v11729_v17 = vld [vmem:[%s15631_s1 + $0x1da4] ss:$16 sps:$4 sm:$0xff]   ;;  %v11732_v18 = vld [vmem:[%s15631_s1 + $0x1dac] ss:$16 sps:$4 sm:$0xff]  }
 0x378   :  { %7562 = vmatprep.subr.bf16.mxu0 %v11636_v19  ;;  %8336 = vmatprep.subr.bf16.mxu1 %v11639_v20  ;;  %v11727_v19 = vld [vmem:[%s15631_s1 + $0x1da0] ss:$16 sps:$4 sm:$0xff]   ;;  %v11730_v20 = vld [vmem:[%s15631_s1 + $0x1da8] ss:$16 sps:$4 sm:$0xff]  }
 0x37b   :  { %7563 = vmatpush1.bf16.msra.mxu0 %v11634_v21  ;;  %8337 = vmatpush1.bf16.msra.mxu1 %v11637_v22  ;;  %v11735_v21 = vld [vmem:[%s15631_s1 + $0x1dc4] ss:$16 sps:$4 sm:$0xff]   ;;  %v11738_v22 = vld [vmem:[%s15631_s1 + $0x1dcc] ss:$16 sps:$4 sm:$0xff]  }
 0x37c   :  { %7564 = vmatprep.subr.bf16.mxu0 %v11642_v23  ;;  %8338 = vmatprep.subr.bf16.mxu1 %v11645_v24  ;;  %v11733_v23 = vld [vmem:[%s15631_s1 + $0x1dc0] ss:$16 sps:$4 sm:$0xff]   ;;  %v11736_v24 = vld [vmem:[%s15631_s1 + $0x1dc8] ss:$16 sps:$4 sm:$0xff]  }
 0x37f   :  { %7565 = vmatpush1.bf16.msra.mxu0 %v11640_v25  ;;  %8339 = vmatpush1.bf16.msra.mxu1 %v11643_v26  ;;  %v11741_v25 = vld [vmem:[%s15631_s1 + $0x1de4] ss:$16 sps:$4 sm:$0xff]   ;;  %v11744_v26 = vld [vmem:[%s15631_s1 + $0x1dec] ss:$16 sps:$4 sm:$0xff]  }
 0x380   :  { %7577 = vmatprep.subr.bf16.mxu0 %v11651_v27  ;;  %8351 = vmatprep.subr.bf16.mxu1 %v11654_v28  ;;  %v11739_v27 = vld [vmem:[%s15631_s1 + $0x1de0] ss:$16 sps:$4 sm:$0xff]   ;;  %v11742_v28 = vld [vmem:[%s15631_s1 + $0x1de8] ss:$16 sps:$4 sm:$0xff]  }
 0x382   :  { %7567 = vmatmul.mubr.bf16.vlgmr.msra.gmra.mrb[0].mxu0 %v11646_v29  ;;  %8341 = vmatmul.mubr.bf16.vlgmr.msra.gmra.mrb[0].mxu1 %v11646_v29  ;;  %v11750_v29 = vld [vmem:[%s15631_s1 + $0x1e04] ss:$16 sps:$4 sm:$0xff]  }
 0x383   :  { %7578 = vmatpush1.bf16.msra.mxu0 %v11649_v30  ;;  %8352 = vmatpush1.bf16.msra.mxu1 %v11652_v31  ;;  %v11753_v30 = vld [vmem:[%s15631_s1 + $0x1e0c] ss:$16 sps:$4 sm:$0xff]  }
 0x384   :  { %7579 = vmatprep.subr.bf16.mxu0 %v11657_v32  ;;  %8353 = vmatprep.subr.bf16.mxu1 %v11660_v33  ;;  %v11745_v31 = vld [vmem:[%s15632_s0 + $0x70] ss:$140 sps:$4 sm:$0xff]   ;;  %v11751_v33 = vld [vmem:[%s15631_s1 + $0x1e08] ss:$16 sps:$4 sm:$0xff]  }
 0x385   :  { %7609 = vmatprep.mubr.bf16.mxu0 %v11747_v34  ;;  %8383 = vmatprep.mubr.bf16.mxu1 %v11747_v34  ;;  %v11748_v32 = vld [vmem:[%s15631_s1 + $0x1e00] ss:$16 sps:$4 sm:$0xff]   ;;  %v11756_v34 = vld [vmem:[%s15631_s1 + $0x1e24] ss:$16 sps:$4 sm:$0xff]  }
 0x387   :  { %7580 = vmatpush1.bf16.msra.mxu0 %v11655_v35  ;;  %8354 = vmatpush1.bf16.msra.mxu1 %v11658_v36  ;;  %v11759_v35 = vld [vmem:[%s15631_s1 + $0x1e2c] ss:$16 sps:$4 sm:$0xff]  }
 0x388   :  { %7581 = vmatprep.subr.bf16.mxu0 %v11663_v37  ;;  %8355 = vmatprep.subr.bf16.mxu1 %v11666_v38  ;;  %v11846_v36 = vld [vmem:[%s15632_s0 + $0x7c] ss:$140 sps:$4 sm:$0xff]   ;;  %v11754_v37 = vld [vmem:[%s15631_s1 + $0x1e20] ss:$16 sps:$4 sm:$0xff]  }
 0x389   :  { %v11757_v38 = vld [vmem:[%s15631_s1 + $0x1e28] ss:$16 sps:$4 sm:$0xff]  }
 0x38b   :  { %7582 = vmatpush1.bf16.msra.mxu0 %v11661_v39  ;;  %8356 = vmatpush1.bf16.msra.mxu1 %v11664_v40  ;;  %v11762_v39 = vld [vmem:[%s15631_s1 + $0x1e44] ss:$16 sps:$4 sm:$0xff]   ;;  %v11765_v40 = vld [vmem:[%s15631_s1 + $0x1e4c] ss:$16 sps:$4 sm:$0xff]  }
 0x38c   :  { %7583 = vmatprep.subr.bf16.mxu0 %v11669_v41  ;;  %8357 = vmatprep.subr.bf16.mxu1 %v11672_v42  ;;  %v11760_v41 = vld [vmem:[%s15631_s1 + $0x1e40] ss:$16 sps:$4 sm:$0xff]   ;;  %v11763_v42 = vld [vmem:[%s15631_s1 + $0x1e48] ss:$16 sps:$4 sm:$0xff]  }
 0x38f   :  { %7584 = vmatpush1.bf16.msra.mxu0 %v11667_v43  ;;  %8358 = vmatpush1.bf16.msra.mxu1 %v11670_v44  ;;  %v11768_v43 = vld [vmem:[%s15631_s1 + $0x1e64] ss:$16 sps:$4 sm:$0xff]   ;;  %v11771_v44 = vld [vmem:[%s15631_s1 + $0x1e6c] ss:$16 sps:$4 sm:$0xff]  }
 0x390   :  { %7585 = vmatprep.subr.bf16.mxu0 %v11675_v45  ;;  %8359 = vmatprep.subr.bf16.mxu1 %v11678_v46  ;;  %v11766_v45 = vld [vmem:[%s15631_s1 + $0x1e60] ss:$16 sps:$4 sm:$0xff]   ;;  %v11769_v46 = vld [vmem:[%s15631_s1 + $0x1e68] ss:$16 sps:$4 sm:$0xff]  }
 0x393   :  { %7586 = vmatpush1.bf16.msra.mxu0 %v11673_v47  ;;  %8360 = vmatpush1.bf16.msra.mxu1 %v11676_v48  ;;  %v11774_v47 = vld [vmem:[%s15631_s1 + $0x1e84] ss:$16 sps:$4 sm:$0xff]   ;;  %v11777_v48 = vld [vmem:[%s15631_s1 + $0x1e8c] ss:$16 sps:$4 sm:$0xff]  }
 0x394   :  { %7587 = vmatprep.subr.bf16.mxu0 %v11681_v49  ;;  %8361 = vmatprep.subr.bf16.mxu1 %v11684_v50  ;;  %v11772_v49 = vld [vmem:[%s15631_s1 + $0x1e80] ss:$16 sps:$4 sm:$0xff]   ;;  %v11775_v50 = vld [vmem:[%s15631_s1 + $0x1e88] ss:$16 sps:$4 sm:$0xff]  }
 0x397   :  { %7588 = vmatpush1.bf16.msra.mxu0 %v11679_v51  ;;  %8362 = vmatpush1.bf16.msra.mxu1 %v11682_v52  ;;  %v11780_v51 = vld [vmem:[%s15631_s1 + $0x1ea4] ss:$16 sps:$4 sm:$0xff]   ;;  %v11783_v52 = vld [vmem:[%s15631_s1 + $0x1eac] ss:$16 sps:$4 sm:$0xff]  }
 0x398   :  { %7589 = vmatprep.subr.bf16.mxu0 %v11687_v53  ;;  %8363 = vmatprep.subr.bf16.mxu1 %v11690_v54  ;;  %v11778_v53 = vld [vmem:[%s15631_s1 + $0x1ea0] ss:$16 sps:$4 sm:$0xff]   ;;  %v11781_v54 = vld [vmem:[%s15631_s1 + $0x1ea8] ss:$16 sps:$4 sm:$0xff]  }
 0x39b   :  { %7590 = vmatpush1.bf16.msra.mxu0 %v11685_v55  ;;  %8364 = vmatpush1.bf16.msra.mxu1 %v11688_v56  ;;  %v11786_v55 = vld [vmem:[%s15631_s1 + $0x1ec4] ss:$16 sps:$4 sm:$0xff]   ;;  %v11789_v56 = vld [vmem:[%s15631_s1 + $0x1ecc] ss:$16 sps:$4 sm:$0xff]  }
 0x39c   :  { %7591 = vmatprep.subr.bf16.mxu0 %v11693_v57  ;;  %8365 = vmatprep.subr.bf16.mxu1 %v11696_v58  ;;  %v11784_v57 = vld [vmem:[%s15631_s1 + $0x1ec0] ss:$16 sps:$4 sm:$0xff]   ;;  %v11787_v58 = vld [vmem:[%s15631_s1 + $0x1ec8] ss:$16 sps:$4 sm:$0xff]  }
 0x39f   :  { %7592 = vmatpush1.bf16.msra.mxu0 %v11691_v59  ;;  %8366 = vmatpush1.bf16.msra.mxu1 %v11694_v60  ;;  %v11792_v59 = vld [vmem:[%s15631_s1 + $0x1ee4] ss:$16 sps:$4 sm:$0xff]   ;;  %v11795_v60 = vld [vmem:[%s15631_s1 + $0x1eec] ss:$16 sps:$4 sm:$0xff]  }
 0x3a0   :  { %7593 = vmatprep.subr.bf16.mxu0 %v11699_v61  ;;  %8367 = vmatprep.subr.bf16.mxu1 %v11702_v62  ;;  %v11790_v61 = vld [vmem:[%s15631_s1 + $0x1ee0] ss:$16 sps:$4 sm:$0xff]   ;;  %v11793_v62 = vld [vmem:[%s15631_s1 + $0x1ee8] ss:$16 sps:$4 sm:$0xff]  }
 0x3a3   :  { %7594 = vmatpush1.bf16.msra.mxu0 %v11697_v63  ;;  %8368 = vmatpush1.bf16.msra.mxu1 %v11700_v0  ;;  %v11798_v63 = vld [vmem:[%s15631_s1 + $0x1f04] ss:$16 sps:$4 sm:$0xff]   ;;  %v11801_v0 = vld [vmem:[%s15631_s1 + $0x1f0c] ss:$16 sps:$4 sm:$0xff]  }
 0x3a4   :  { %7595 = vmatprep.subr.bf16.mxu0 %v11705_v1  ;;  %8369 = vmatprep.subr.bf16.mxu1 %v11708_v2  ;;  %v11796_v1 = vld [vmem:[%s15631_s1 + $0x1f00] ss:$16 sps:$4 sm:$0xff]   ;;  %v11799_v2 = vld [vmem:[%s15631_s1 + $0x1f08] ss:$16 sps:$4 sm:$0xff]  }
 0x3a7   :  { %7596 = vmatpush1.bf16.msra.mxu0 %v11703_v3  ;;  %8370 = vmatpush1.bf16.msra.mxu1 %v11706_v4  ;;  %v11804_v3 = vld [vmem:[%s15631_s1 + $0x1f24] ss:$16 sps:$4 sm:$0xff]   ;;  %v11807_v4 = vld [vmem:[%s15631_s1 + $0x1f2c] ss:$16 sps:$4 sm:$0xff]  }
 0x3a8   :  { %7597 = vmatprep.subr.bf16.mxu0 %v11711_v5  ;;  %8371 = vmatprep.subr.bf16.mxu1 %v11714_v6  ;;  %v11802_v5 = vld [vmem:[%s15631_s1 + $0x1f20] ss:$16 sps:$4 sm:$0xff]   ;;  %v11805_v6 = vld [vmem:[%s15631_s1 + $0x1f28] ss:$16 sps:$4 sm:$0xff]  }
 0x3ab   :  { %7598 = vmatpush1.bf16.msra.mxu0 %v11709_v7  ;;  %8372 = vmatpush1.bf16.msra.mxu1 %v11712_v8  ;;  %v11810_v7 = vld [vmem:[%s15631_s1 + $0x1f44] ss:$16 sps:$4 sm:$0xff]   ;;  %v11813_v8 = vld [vmem:[%s15631_s1 + $0x1f4c] ss:$16 sps:$4 sm:$0xff]  }
 0x3ac   :  { %7599 = vmatprep.subr.bf16.mxu0 %v11717_v9  ;;  %8373 = vmatprep.subr.bf16.mxu1 %v11720_v10  ;;  %v11808_v9 = vld [vmem:[%s15631_s1 + $0x1f40] ss:$16 sps:$4 sm:$0xff]   ;;  %v11811_v10 = vld [vmem:[%s15631_s1 + $0x1f48] ss:$16 sps:$4 sm:$0xff]  }
 0x3af   :  { %7600 = vmatpush1.bf16.msra.mxu0 %v11715_v11  ;;  %8374 = vmatpush1.bf16.msra.mxu1 %v11718_v12  ;;  %v11816_v11 = vld [vmem:[%s15631_s1 + $0x1f64] ss:$16 sps:$4 sm:$0xff]   ;;  %v11819_v12 = vld [vmem:[%s15631_s1 + $0x1f6c] ss:$16 sps:$4 sm:$0xff]  }
 0x3b0   :  { %7601 = vmatprep.subr.bf16.mxu0 %v11723_v13  ;;  %8375 = vmatprep.subr.bf16.mxu1 %v11726_v14  ;;  %v11814_v13 = vld [vmem:[%s15631_s1 + $0x1f60] ss:$16 sps:$4 sm:$0xff]   ;;  %v11817_v14 = vld [vmem:[%s15631_s1 + $0x1f68] ss:$16 sps:$4 sm:$0xff]  }
 0x3b3   :  { %7602 = vmatpush1.bf16.msra.mxu0 %v11721_v15  ;;  %8376 = vmatpush1.bf16.msra.mxu1 %v11724_v16  ;;  %v11822_v15 = vld [vmem:[%s15631_s1 + $0x1f84] ss:$16 sps:$4 sm:$0xff]   ;;  %v11825_v16 = vld [vmem:[%s15631_s1 + $0x1f8c] ss:$16 sps:$4 sm:$0xff]  }
 0x3b4   :  { %7603 = vmatprep.subr.bf16.mxu0 %v11729_v17  ;;  %8377 = vmatprep.subr.bf16.mxu1 %v11732_v18  ;;  %v11820_v17 = vld [vmem:[%s15631_s1 + $0x1f80] ss:$16 sps:$4 sm:$0xff]   ;;  %v11823_v18 = vld [vmem:[%s15631_s1 + $0x1f88] ss:$16 sps:$4 sm:$0xff]  }
 0x3b7   :  { %7604 = vmatpush1.bf16.msra.mxu0 %v11727_v19  ;;  %8378 = vmatpush1.bf16.msra.mxu1 %v11730_v20  ;;  %v11828_v19 = vld [vmem:[%s15631_s1 + $0x1fa4] ss:$16 sps:$4 sm:$0xff]   ;;  %v11831_v20 = vld [vmem:[%s15631_s1 + $0x1fac] ss:$16 sps:$4 sm:$0xff]  }
 0x3b8   :  { %7605 = vmatprep.subr.bf16.mxu0 %v11735_v21  ;;  %8379 = vmatprep.subr.bf16.mxu1 %v11738_v22  ;;  %v11826_v21 = vld [vmem:[%s15631_s1 + $0x1fa0] ss:$16 sps:$4 sm:$0xff]   ;;  %v11829_v22 = vld [vmem:[%s15631_s1 + $0x1fa8] ss:$16 sps:$4 sm:$0xff]  }
 0x3bb   :  { %7606 = vmatpush1.bf16.msra.mxu0 %v11733_v23  ;;  %8380 = vmatpush1.bf16.msra.mxu1 %v11736_v24  ;;  %v11834_v23 = vld [vmem:[%s15631_s1 + $0x1fc4] ss:$16 sps:$4 sm:$0xff]   ;;  %v11837_v24 = vld [vmem:[%s15631_s1 + $0x1fcc] ss:$16 sps:$4 sm:$0xff]  }
 0x3bc   :  { %7607 = vmatprep.subr.bf16.mxu0 %v11741_v25  ;;  %8381 = vmatprep.subr.bf16.mxu1 %v11744_v26  ;;  %v11832_v25 = vld [vmem:[%s15631_s1 + $0x1fc0] ss:$16 sps:$4 sm:$0xff]   ;;  %v11835_v26 = vld [vmem:[%s15631_s1 + $0x1fc8] ss:$16 sps:$4 sm:$0xff]  }
 0x3bf   :  { %7608 = vmatpush1.bf16.msra.mxu0 %v11739_v27  ;;  %8382 = vmatpush1.bf16.msra.mxu1 %v11742_v28  ;;  %v11840_v27 = vld [vmem:[%s15631_s1 + $0x1fe4] ss:$16 sps:$4 sm:$0xff]   ;;  %v11843_v28 = vld [vmem:[%s15631_s1 + $0x1fec] ss:$16 sps:$4 sm:$0xff]  }
 0x3c0   :  { %7620 = vmatprep.subr.bf16.mxu0 %v11750_v29  ;;  %8394 = vmatprep.subr.bf16.mxu1 %v11753_v30  ;;  %v11838_v29 = vld [vmem:[%s15631_s1 + $0x1fe0] ss:$16 sps:$4 sm:$0xff]   ;;  %v11841_v30 = vld [vmem:[%s15631_s1 + $0x1fe8] ss:$16 sps:$4 sm:$0xff]  }
 0x3c2   :  { %7610 = vmatmul.mubr.bf16.vlgmr.msra.gmra.mrb[0].mxu0 %v11745_v31  ;;  %8384 = vmatmul.mubr.bf16.vlgmr.msra.gmra.mrb[0].mxu1 %v11745_v31  ;;  %v11849_v31 = vld [vmem:[%s15631_s1 + $0x2004] ss:$16 sps:$4 sm:$0xff]  }
 0x3c3   :  { %7621 = vmatpush1.bf16.msra.mxu0 %v11748_v32  ;;  %8395 = vmatpush1.bf16.msra.mxu1 %v11751_v33  ;;  %v11852_v32 = vld [vmem:[%s15631_s1 + $0x200c] ss:$16 sps:$4 sm:$0xff]   ;;  %v11844_v33 = vld [vmem:[%s15632_s0 + $0x78] ss:$140 sps:$4 sm:$0xff]  }
 0x3c4   :  { %7622 = vmatprep.subr.bf16.mxu0 %v11756_v34  ;;  %8396 = vmatprep.subr.bf16.mxu1 %v11759_v35  ;;  %v11847_v34 = vld [vmem:[%s15631_s1 + $0x2000] ss:$16 sps:$4 sm:$0xff]   ;;  %v11850_v35 = vld [vmem:[%s15631_s1 + $0x2008] ss:$16 sps:$4 sm:$0xff]  }
 0x3c5   :  { %7652 = vmatprep.mubr.bf16.mxu0 %v11846_v36  ;;  %8426 = vmatprep.mubr.bf16.mxu1 %v11846_v36  ;;  %v11855_v36 = vld [vmem:[%s15631_s1 + $0x2024] ss:$16 sps:$4 sm:$0xff]  }
 0x3c7   :  { %7623 = vmatpush1.bf16.msra.mxu0 %v11754_v37  ;;  %8397 = vmatpush1.bf16.msra.mxu1 %v11757_v38  ;;  %v11858_v37 = vld [vmem:[%s15631_s1 + $0x202c] ss:$16 sps:$4 sm:$0xff]   ;;  %v11945_v38 = vld [vmem:[%s15632_s0 + $0x84] ss:$140 sps:$4 sm:$0xff]  }
 0x3c8   :  { %7624 = vmatprep.subr.bf16.mxu0 %v11762_v39  ;;  %8398 = vmatprep.subr.bf16.mxu1 %v11765_v40  ;;  %v11853_v39 = vld [vmem:[%s15631_s1 + $0x2020] ss:$16 sps:$4 sm:$0xff]   ;;  %v11856_v40 = vld [vmem:[%s15631_s1 + $0x2028] ss:$16 sps:$4 sm:$0xff]  }
 0x3cb   :  { %7625 = vmatpush1.bf16.msra.mxu0 %v11760_v41  ;;  %8399 = vmatpush1.bf16.msra.mxu1 %v11763_v42  ;;  %v11861_v41 = vld [vmem:[%s15631_s1 + $0x2044] ss:$16 sps:$4 sm:$0xff]   ;;  %v11864_v42 = vld [vmem:[%s15631_s1 + $0x204c] ss:$16 sps:$4 sm:$0xff]  }
 0x3cc   :  { %7626 = vmatprep.subr.bf16.mxu0 %v11768_v43  ;;  %8400 = vmatprep.subr.bf16.mxu1 %v11771_v44  ;;  %v11859_v43 = vld [vmem:[%s15631_s1 + $0x2040] ss:$16 sps:$4 sm:$0xff]   ;;  %v11862_v44 = vld [vmem:[%s15631_s1 + $0x2048] ss:$16 sps:$4 sm:$0xff]  }
 0x3cf   :  { %7627 = vmatpush1.bf16.msra.mxu0 %v11766_v45  ;;  %8401 = vmatpush1.bf16.msra.mxu1 %v11769_v46  ;;  %v11867_v45 = vld [vmem:[%s15631_s1 + $0x2064] ss:$16 sps:$4 sm:$0xff]   ;;  %v11870_v46 = vld [vmem:[%s15631_s1 + $0x206c] ss:$16 sps:$4 sm:$0xff]  }
 0x3d0   :  { %7628 = vmatprep.subr.bf16.mxu0 %v11774_v47  ;;  %8402 = vmatprep.subr.bf16.mxu1 %v11777_v48  ;;  %v11865_v47 = vld [vmem:[%s15631_s1 + $0x2060] ss:$16 sps:$4 sm:$0xff]   ;;  %v11868_v48 = vld [vmem:[%s15631_s1 + $0x2068] ss:$16 sps:$4 sm:$0xff]  }
 0x3d3   :  { %7629 = vmatpush1.bf16.msra.mxu0 %v11772_v49  ;;  %8403 = vmatpush1.bf16.msra.mxu1 %v11775_v50  ;;  %v11873_v49 = vld [vmem:[%s15631_s1 + $0x2084] ss:$16 sps:$4 sm:$0xff]   ;;  %v11876_v50 = vld [vmem:[%s15631_s1 + $0x208c] ss:$16 sps:$4 sm:$0xff]  }
 0x3d4   :  { %7630 = vmatprep.subr.bf16.mxu0 %v11780_v51  ;;  %8404 = vmatprep.subr.bf16.mxu1 %v11783_v52  ;;  %v11871_v51 = vld [vmem:[%s15631_s1 + $0x2080] ss:$16 sps:$4 sm:$0xff]   ;;  %v11874_v52 = vld [vmem:[%s15631_s1 + $0x2088] ss:$16 sps:$4 sm:$0xff]  }
 0x3d7   :  { %7631 = vmatpush1.bf16.msra.mxu0 %v11778_v53  ;;  %8405 = vmatpush1.bf16.msra.mxu1 %v11781_v54  ;;  %v11879_v53 = vld [vmem:[%s15631_s1 + $0x20a4] ss:$16 sps:$4 sm:$0xff]   ;;  %v11882_v54 = vld [vmem:[%s15631_s1 + $0x20ac] ss:$16 sps:$4 sm:$0xff]  }
 0x3d8   :  { %7632 = vmatprep.subr.bf16.mxu0 %v11786_v55  ;;  %8406 = vmatprep.subr.bf16.mxu1 %v11789_v56  ;;  %v11877_v55 = vld [vmem:[%s15631_s1 + $0x20a0] ss:$16 sps:$4 sm:$0xff]   ;;  %v11880_v56 = vld [vmem:[%s15631_s1 + $0x20a8] ss:$16 sps:$4 sm:$0xff]  }
 0x3db   :  { %7633 = vmatpush1.bf16.msra.mxu0 %v11784_v57  ;;  %8407 = vmatpush1.bf16.msra.mxu1 %v11787_v58  ;;  %v11885_v57 = vld [vmem:[%s15631_s1 + $0x20c4] ss:$16 sps:$4 sm:$0xff]   ;;  %v11888_v58 = vld [vmem:[%s15631_s1 + $0x20cc] ss:$16 sps:$4 sm:$0xff]  }
 0x3dc   :  { %7634 = vmatprep.subr.bf16.mxu0 %v11792_v59  ;;  %8408 = vmatprep.subr.bf16.mxu1 %v11795_v60  ;;  %v11883_v59 = vld [vmem:[%s15631_s1 + $0x20c0] ss:$16 sps:$4 sm:$0xff]   ;;  %v11886_v60 = vld [vmem:[%s15631_s1 + $0x20c8] ss:$16 sps:$4 sm:$0xff]  }
 0x3df   :  { %7635 = vmatpush1.bf16.msra.mxu0 %v11790_v61  ;;  %8409 = vmatpush1.bf16.msra.mxu1 %v11793_v62  ;;  %v11891_v61 = vld [vmem:[%s15631_s1 + $0x20e4] ss:$16 sps:$4 sm:$0xff]   ;;  %v11894_v62 = vld [vmem:[%s15631_s1 + $0x20ec] ss:$16 sps:$4 sm:$0xff]  }
 0x3e0   :  { %7636 = vmatprep.subr.bf16.mxu0 %v11798_v63  ;;  %8410 = vmatprep.subr.bf16.mxu1 %v11801_v0  ;;  %v11889_v63 = vld [vmem:[%s15631_s1 + $0x20e0] ss:$16 sps:$4 sm:$0xff]   ;;  %v11892_v0 = vld [vmem:[%s15631_s1 + $0x20e8] ss:$16 sps:$4 sm:$0xff]  }
 0x3e3   :  { %7637 = vmatpush1.bf16.msra.mxu0 %v11796_v1  ;;  %8411 = vmatpush1.bf16.msra.mxu1 %v11799_v2  ;;  %v11897_v1 = vld [vmem:[%s15631_s1 + $0x2104] ss:$16 sps:$4 sm:$0xff]   ;;  %v11900_v2 = vld [vmem:[%s15631_s1 + $0x210c] ss:$16 sps:$4 sm:$0xff]  }
 0x3e4   :  { %7638 = vmatprep.subr.bf16.mxu0 %v11804_v3  ;;  %8412 = vmatprep.subr.bf16.mxu1 %v11807_v4  ;;  %v11895_v3 = vld [vmem:[%s15631_s1 + $0x2100] ss:$16 sps:$4 sm:$0xff]   ;;  %v11898_v4 = vld [vmem:[%s15631_s1 + $0x2108] ss:$16 sps:$4 sm:$0xff]  }
 0x3e7   :  { %7639 = vmatpush1.bf16.msra.mxu0 %v11802_v5  ;;  %8413 = vmatpush1.bf16.msra.mxu1 %v11805_v6  ;;  %v11903_v5 = vld [vmem:[%s15631_s1 + $0x2124] ss:$16 sps:$4 sm:$0xff]   ;;  %v11906_v6 = vld [vmem:[%s15631_s1 + $0x212c] ss:$16 sps:$4 sm:$0xff]  }
 0x3e8   :  { %7640 = vmatprep.subr.bf16.mxu0 %v11810_v7  ;;  %8414 = vmatprep.subr.bf16.mxu1 %v11813_v8  ;;  %v11901_v7 = vld [vmem:[%s15631_s1 + $0x2120] ss:$16 sps:$4 sm:$0xff]   ;;  %v11904_v8 = vld [vmem:[%s15631_s1 + $0x2128] ss:$16 sps:$4 sm:$0xff]  }
 0x3eb   :  { %7641 = vmatpush1.bf16.msra.mxu0 %v11808_v9  ;;  %8415 = vmatpush1.bf16.msra.mxu1 %v11811_v10  ;;  %v11909_v9 = vld [vmem:[%s15631_s1 + $0x2144] ss:$16 sps:$4 sm:$0xff]   ;;  %v11912_v10 = vld [vmem:[%s15631_s1 + $0x214c] ss:$16 sps:$4 sm:$0xff]  }
 0x3ec   :  { %7642 = vmatprep.subr.bf16.mxu0 %v11816_v11  ;;  %8416 = vmatprep.subr.bf16.mxu1 %v11819_v12  ;;  %v11907_v11 = vld [vmem:[%s15631_s1 + $0x2140] ss:$16 sps:$4 sm:$0xff]   ;;  %v11910_v12 = vld [vmem:[%s15631_s1 + $0x2148] ss:$16 sps:$4 sm:$0xff]  }
 0x3ef   :  { %7643 = vmatpush1.bf16.msra.mxu0 %v11814_v13  ;;  %8417 = vmatpush1.bf16.msra.mxu1 %v11817_v14  ;;  %v11915_v13 = vld [vmem:[%s15631_s1 + $0x2164] ss:$16 sps:$4 sm:$0xff]   ;;  %v11918_v14 = vld [vmem:[%s15631_s1 + $0x216c] ss:$16 sps:$4 sm:$0xff]  }
 0x3f0   :  { %7644 = vmatprep.subr.bf16.mxu0 %v11822_v15  ;;  %8418 = vmatprep.subr.bf16.mxu1 %v11825_v16  ;;  %v11913_v15 = vld [vmem:[%s15631_s1 + $0x2160] ss:$16 sps:$4 sm:$0xff]   ;;  %v11916_v16 = vld [vmem:[%s15631_s1 + $0x2168] ss:$16 sps:$4 sm:$0xff]  }
 0x3f3   :  { %7645 = vmatpush1.bf16.msra.mxu0 %v11820_v17  ;;  %8419 = vmatpush1.bf16.msra.mxu1 %v11823_v18  ;;  %v11921_v17 = vld [vmem:[%s15631_s1 + $0x2184] ss:$16 sps:$4 sm:$0xff]   ;;  %v11924_v18 = vld [vmem:[%s15631_s1 + $0x218c] ss:$16 sps:$4 sm:$0xff]  }
 0x3f4   :  { %7646 = vmatprep.subr.bf16.mxu0 %v11828_v19  ;;  %8420 = vmatprep.subr.bf16.mxu1 %v11831_v20  ;;  %v11919_v19 = vld [vmem:[%s15631_s1 + $0x2180] ss:$16 sps:$4 sm:$0xff]   ;;  %v11922_v20 = vld [vmem:[%s15631_s1 + $0x2188] ss:$16 sps:$4 sm:$0xff]  }
 0x3f7   :  { %7647 = vmatpush1.bf16.msra.mxu0 %v11826_v21  ;;  %8421 = vmatpush1.bf16.msra.mxu1 %v11829_v22  ;;  %v11927_v21 = vld [vmem:[%s15631_s1 + $0x21a4] ss:$16 sps:$4 sm:$0xff]   ;;  %v11930_v22 = vld [vmem:[%s15631_s1 + $0x21ac] ss:$16 sps:$4 sm:$0xff]  }
 0x3f8   :  { %7648 = vmatprep.subr.bf16.mxu0 %v11834_v23  ;;  %8422 = vmatprep.subr.bf16.mxu1 %v11837_v24  ;;  %v11925_v23 = vld [vmem:[%s15631_s1 + $0x21a0] ss:$16 sps:$4 sm:$0xff]   ;;  %v11928_v24 = vld [vmem:[%s15631_s1 + $0x21a8] ss:$16 sps:$4 sm:$0xff]  }
 0x3fb   :  { %7649 = vmatpush1.bf16.msra.mxu0 %v11832_v25  ;;  %8423 = vmatpush1.bf16.msra.mxu1 %v11835_v26  ;;  %v11933_v25 = vld [vmem:[%s15631_s1 + $0x21c4] ss:$16 sps:$4 sm:$0xff]   ;;  %v11936_v26 = vld [vmem:[%s15631_s1 + $0x21cc] ss:$16 sps:$4 sm:$0xff]  }
 0x3fc   :  { %7650 = vmatprep.subr.bf16.mxu0 %v11840_v27  ;;  %8424 = vmatprep.subr.bf16.mxu1 %v11843_v28  ;;  %v11931_v27 = vld [vmem:[%s15631_s1 + $0x21c0] ss:$16 sps:$4 sm:$0xff]   ;;  %v11934_v28 = vld [vmem:[%s15631_s1 + $0x21c8] ss:$16 sps:$4 sm:$0xff]  }
 0x3ff   :  { %7651 = vmatpush1.bf16.msra.mxu0 %v11838_v29  ;;  %8425 = vmatpush1.bf16.msra.mxu1 %v11841_v30  ;;  %v11939_v29 = vld [vmem:[%s15631_s1 + $0x21e4] ss:$16 sps:$4 sm:$0xff]   ;;  %v11942_v30 = vld [vmem:[%s15631_s1 + $0x21ec] ss:$16 sps:$4 sm:$0xff]  }
 0x400   :  { %7663 = vmatprep.subr.bf16.mxu0 %v11849_v31  ;;  %8437 = vmatprep.subr.bf16.mxu1 %v11852_v32  ;;  %v11937_v31 = vld [vmem:[%s15631_s1 + $0x21e0] ss:$16 sps:$4 sm:$0xff]   ;;  %v11940_v32 = vld [vmem:[%s15631_s1 + $0x21e8] ss:$16 sps:$4 sm:$0xff]  }
 0x402   :  { %7653 = vmatmul.mubr.bf16.vlgmr.msra.gmra.mrb[0].mxu0 %v11844_v33  ;;  %8427 = vmatmul.mubr.bf16.vlgmr.msra.gmra.mrb[0].mxu1 %v11844_v33  ;;  %v11948_v33 = vld [vmem:[%s15631_s1 + $0x2204] ss:$16 sps:$4 sm:$0xff]  }
 0x403   :  { %7664 = vmatpush1.bf16.msra.mxu0 %v11847_v34  ;;  %8438 = vmatpush1.bf16.msra.mxu1 %v11850_v35  ;;  %v11951_v34 = vld [vmem:[%s15631_s1 + $0x220c] ss:$16 sps:$4 sm:$0xff]  }
 0x404   :  { %7665 = vmatprep.subr.bf16.mxu0 %v11855_v36  ;;  %8439 = vmatprep.subr.bf16.mxu1 %v11858_v37  ;;  %v11943_v35 = vld [vmem:[%s15632_s0 + $0x80] ss:$140 sps:$4 sm:$0xff]   ;;  %v11949_v37 = vld [vmem:[%s15631_s1 + $0x2208] ss:$16 sps:$4 sm:$0xff]  }
 0x405   :  { %7695 = vmatprep.mubr.bf16.mxu0 %v11945_v38  ;;  %8469 = vmatprep.mubr.bf16.mxu1 %v11945_v38  ;;  %v11946_v36 = vld [vmem:[%s15631_s1 + $0x2200] ss:$16 sps:$4 sm:$0xff]   ;;  %v11954_v38 = vld [vmem:[%s15631_s1 + $0x2224] ss:$16 sps:$4 sm:$0xff]  }
 0x407   :  { %7666 = vmatpush1.bf16.msra.mxu0 %v11853_v39  ;;  %8440 = vmatpush1.bf16.msra.mxu1 %v11856_v40  ;;  %v11957_v39 = vld [vmem:[%s15631_s1 + $0x222c] ss:$16 sps:$4 sm:$0xff]   ;;  %v11952_v40 = vld [vmem:[%s15631_s1 + $0x2220] ss:$16 sps:$4 sm:$0xff]  }
 0x408   :  { %7667 = vmatprep.subr.bf16.mxu0 %v11861_v41  ;;  %8441 = vmatprep.subr.bf16.mxu1 %v11864_v42  ;;  %v11955_v41 = vld [vmem:[%s15631_s1 + $0x2228] ss:$16 sps:$4 sm:$0xff]   ;;  %v11960_v42 = vld [vmem:[%s15631_s1 + $0x2244] ss:$16 sps:$4 sm:$0xff]  }
 0x40b   :  { %7668 = vmatpush1.bf16.msra.mxu0 %v11859_v43  ;;  %8442 = vmatpush1.bf16.msra.mxu1 %v11862_v44  ;;  %v11963_v43 = vld [vmem:[%s15631_s1 + $0x224c] ss:$16 sps:$4 sm:$0xff]   ;;  %v12027_v44 = vmov 0  }
 0x40c   :  { %7669 = vmatprep.subr.bf16.mxu0 %v11867_v45  ;;  %8443 = vmatprep.subr.bf16.mxu1 %v11870_v46  ;;  %v11958_v45 = vld [vmem:[%s15631_s1 + $0x2240] ss:$16 sps:$4 sm:$0xff]   ;;  %v11961_v46 = vld [vmem:[%s15631_s1 + $0x2248] ss:$16 sps:$4 sm:$0xff]  }
 0x40f   :  { %7670 = vmatpush1.bf16.msra.mxu0 %v11865_v47  ;;  %8444 = vmatpush1.bf16.msra.mxu1 %v11868_v48  ;;  %v11966_v47 = vld [vmem:[%s15631_s1 + $0x2264] ss:$16 sps:$4 sm:$0xff]   ;;  %v11969_v48 = vld [vmem:[%s15631_s1 + $0x226c] ss:$16 sps:$4 sm:$0xff]  }
 0x410   :  { %7671 = vmatprep.subr.bf16.mxu0 %v11873_v49  ;;  %8445 = vmatprep.subr.bf16.mxu1 %v11876_v50  ;;  %v11964_v49 = vld [vmem:[%s15631_s1 + $0x2260] ss:$16 sps:$4 sm:$0xff]   ;;  %v11967_v50 = vld [vmem:[%s15631_s1 + $0x2268] ss:$16 sps:$4 sm:$0xff]  }
 0x413   :  { %7672 = vmatpush1.bf16.msra.mxu0 %v11871_v51  ;;  %8446 = vmatpush1.bf16.msra.mxu1 %v11874_v52  ;;  %v11972_v51 = vld [vmem:[%s15631_s1 + $0x2284] ss:$16 sps:$4 sm:$0xff]   ;;  %v11975_v52 = vld [vmem:[%s15631_s1 + $0x228c] ss:$16 sps:$4 sm:$0xff]  }
 0x414   :  { %7673 = vmatprep.subr.bf16.mxu0 %v11879_v53  ;;  %8447 = vmatprep.subr.bf16.mxu1 %v11882_v54  ;;  %v11970_v53 = vld [vmem:[%s15631_s1 + $0x2280] ss:$16 sps:$4 sm:$0xff]   ;;  %v11973_v54 = vld [vmem:[%s15631_s1 + $0x2288] ss:$16 sps:$4 sm:$0xff]  }
 0x417   :  { %7674 = vmatpush1.bf16.msra.mxu0 %v11877_v55  ;;  %8448 = vmatpush1.bf16.msra.mxu1 %v11880_v56  ;;  %v11978_v55 = vld [vmem:[%s15631_s1 + $0x22a4] ss:$16 sps:$4 sm:$0xff]   ;;  %v11981_v56 = vld [vmem:[%s15631_s1 + $0x22ac] ss:$16 sps:$4 sm:$0xff]  }
 0x418   :  { %7675 = vmatprep.subr.bf16.mxu0 %v11885_v57  ;;  %8449 = vmatprep.subr.bf16.mxu1 %v11888_v58  ;;  %v11976_v57 = vld [vmem:[%s15631_s1 + $0x22a0] ss:$16 sps:$4 sm:$0xff]   ;;  %v11979_v58 = vld [vmem:[%s15631_s1 + $0x22a8] ss:$16 sps:$4 sm:$0xff]  }
 0x41b   :  { %7676 = vmatpush1.bf16.msra.mxu0 %v11883_v59  ;;  %8450 = vmatpush1.bf16.msra.mxu1 %v11886_v60  ;;  %v11984_v59 = vld [vmem:[%s15631_s1 + $0x22c4] ss:$16 sps:$4 sm:$0xff]   ;;  %v11987_v60 = vld [vmem:[%s15631_s1 + $0x22cc] ss:$16 sps:$4 sm:$0xff]  }
 0x41c   :  { %7677 = vmatprep.subr.bf16.mxu0 %v11891_v61  ;;  %8451 = vmatprep.subr.bf16.mxu1 %v11894_v62  ;;  %v11982_v61 = vld [vmem:[%s15631_s1 + $0x22c0] ss:$16 sps:$4 sm:$0xff]   ;;  %v11985_v62 = vld [vmem:[%s15631_s1 + $0x22c8] ss:$16 sps:$4 sm:$0xff]  }
 0x41f   :  { %7678 = vmatpush1.bf16.msra.mxu0 %v11889_v63  ;;  %8452 = vmatpush1.bf16.msra.mxu1 %v11892_v0  ;;  %v11990_v63 = vld [vmem:[%s15631_s1 + $0x22e4] ss:$16 sps:$4 sm:$0xff]   ;;  %v11993_v0 = vld [vmem:[%s15631_s1 + $0x22ec] ss:$16 sps:$4 sm:$0xff]  }
 0x420   :  { %7679 = vmatprep.subr.bf16.mxu0 %v11897_v1  ;;  %8453 = vmatprep.subr.bf16.mxu1 %v11900_v2  ;;  %v11988_v1 = vld [vmem:[%s15631_s1 + $0x22e0] ss:$16 sps:$4 sm:$0xff]   ;;  %v11991_v2 = vld [vmem:[%s15631_s1 + $0x22e8] ss:$16 sps:$4 sm:$0xff]  }
 0x423   :  { %7680 = vmatpush1.bf16.msra.mxu0 %v11895_v3  ;;  %8454 = vmatpush1.bf16.msra.mxu1 %v11898_v4  ;;  %v11995_v3 = vld [vmem:[%s15633_s3 + $0x40] sm:$0xff]  }
 0x424   :  { %7681 = vmatprep.subr.bf16.mxu0 %v11903_v5  ;;  %8455 = vmatprep.subr.bf16.mxu1 %v11906_v6  ;;  %v11996_v4 = vld [vmem:[%s15633_s3 + $0xc0] sm:$0xff]   ;;  %v11994_v5 = vld [vmem:[%s15632_s0 + $0x88] ss:$140 sps:$4 sm:$0xff]  }
 0x425   :  { %v11997_v6 = vld [vmem:[%s15633_s3] sm:$0xff]  }
 0x427   :  { %7682 = vmatpush1.bf16.msra.mxu0 %v11901_v7  ;;  %8456 = vmatpush1.bf16.msra.mxu1 %v11904_v8  ;;  %v11998_v7 = vld [vmem:[%s15633_s3 + $0x80] sm:$0xff]   ;;  %v11999_v8 = vld [vmem:[%s15633_s3 + $0x48] sm:$0xff]  }
 0x428   :  { %7683 = vmatprep.subr.bf16.mxu0 %v11909_v9  ;;  %8457 = vmatprep.subr.bf16.mxu1 %v11912_v10  ;;  %v12000_v9 = vld [vmem:[%s15633_s3 + $0xc8] sm:$0xff]  }
 0x429   :  { %v12001_v10 = vld [vmem:[%s15633_s3 + $0x8] sm:$0xff]  }
 0x42b   :  { %7684 = vmatpush1.bf16.msra.mxu0 %v11907_v11  ;;  %8458 = vmatpush1.bf16.msra.mxu1 %v11910_v12  ;;  %v12002_v11 = vld [vmem:[%s15633_s3 + $0x88] sm:$0xff]   ;;  %v12003_v12 = vld [vmem:[%s15633_s3 + $0x50] sm:$0xff]  }
 0x42c   :  { %7685 = vmatprep.subr.bf16.mxu0 %v11915_v13  ;;  %8459 = vmatprep.subr.bf16.mxu1 %v11918_v14  ;;  %v12004_v13 = vld [vmem:[%s15633_s3 + $0xd0] sm:$0xff]  }
 0x42d   :  { %v12005_v14 = vld [vmem:[%s15633_s3 + $0x10] sm:$0xff]  }
 0x42f   :  { %7686 = vmatpush1.bf16.msra.mxu0 %v11913_v15  ;;  %8460 = vmatpush1.bf16.msra.mxu1 %v11916_v16  ;;  %v12006_v15 = vld [vmem:[%s15633_s3 + $0x90] sm:$0xff]   ;;  %v12007_v16 = vld [vmem:[%s15633_s3 + $0x58] sm:$0xff]  }
 0x430   :  { %7687 = vmatprep.subr.bf16.mxu0 %v11921_v17  ;;  %8461 = vmatprep.subr.bf16.mxu1 %v11924_v18  ;;  %v12008_v17 = vld [vmem:[%s15633_s3 + $0xd8] sm:$0xff]  }
 0x431   :  { %v12009_v18 = vld [vmem:[%s15633_s3 + $0x18] sm:$0xff]  }
 0x433   :  { %7688 = vmatpush1.bf16.msra.mxu0 %v11919_v19  ;;  %8462 = vmatpush1.bf16.msra.mxu1 %v11922_v20  ;;  %v12010_v19 = vld [vmem:[%s15633_s3 + $0x98] sm:$0xff]   ;;  %v12011_v20 = vld [vmem:[%s15633_s3 + $0x60] sm:$0xff]  }
 0x434   :  { %7689 = vmatprep.subr.bf16.mxu0 %v11927_v21  ;;  %8463 = vmatprep.subr.bf16.mxu1 %v11930_v22  ;;  %v12012_v21 = vld [vmem:[%s15633_s3 + $0xe0] sm:$0xff]  }
 0x435   :  { %v12013_v22 = vld [vmem:[%s15633_s3 + $0x20] sm:$0xff]  }
 0x437   :  { %7690 = vmatpush1.bf16.msra.mxu0 %v11925_v23  ;;  %8464 = vmatpush1.bf16.msra.mxu1 %v11928_v24  ;;  %v12014_v23 = vld [vmem:[%s15633_s3 + $0xa0] sm:$0xff]   ;;  %v12015_v24 = vld [vmem:[%s15633_s3 + $0x68] sm:$0xff]  }
 0x438   :  { %7691 = vmatprep.subr.bf16.mxu0 %v11933_v25  ;;  %8465 = vmatprep.subr.bf16.mxu1 %v11936_v26  ;;  %v12016_v25 = vld [vmem:[%s15633_s3 + $0xe8] sm:$0xff]  }
 0x439   :  { %v12017_v26 = vld [vmem:[%s15633_s3 + $0x28] sm:$0xff]  }
 0x43b   :  { %7692 = vmatpush1.bf16.msra.mxu0 %v11931_v27  ;;  %8466 = vmatpush1.bf16.msra.mxu1 %v11934_v28  ;;  %v12018_v27 = vld [vmem:[%s15633_s3 + $0xa8] sm:$0xff]   ;;  %v12019_v28 = vld [vmem:[%s15633_s3 + $0x70] sm:$0xff]  }
 0x43c   :  { %7693 = vmatprep.subr.bf16.mxu0 %v11939_v29  ;;  %8467 = vmatprep.subr.bf16.mxu1 %v11942_v30  ;;  %v12020_v29 = vld [vmem:[%s15633_s3 + $0xf0] sm:$0xff]  }
 0x43d   :  { %v12021_v30 = vld [vmem:[%s15633_s3 + $0x30] sm:$0xff]  }
 0x43f   :  { %7694 = vmatpush1.bf16.msra.mxu0 %v11937_v31  ;;  %8468 = vmatpush1.bf16.msra.mxu1 %v11940_v32  ;;  %v12022_v31 = vld [vmem:[%s15633_s3 + $0xb0] sm:$0xff]   ;;  %v12023_v32 = vld [vmem:[%s15633_s3 + $0x78] sm:$0xff]  }
 0x440   :  { %7706 = vmatprep.subr.bf16.mxu0 %v11948_v33  ;;  %8480 = vmatprep.subr.bf16.mxu1 %v11951_v34  ;;  %v12024_v33 = vld [vmem:[%s15633_s3 + $0xf8] sm:$0xff]  }
 0x441   :  { %v12025_v34 = vld [vmem:[%s15633_s3 + $0x38] sm:$0xff]  }
 0x442   :  { %7696 = vmatmul.mubr.bf16.vlgmr.msra.gmra.mrb[0].mxu0 %v11943_v35  ;;  %8470 = vmatmul.mubr.bf16.vlgmr.msra.gmra.mrb[0].mxu1 %v11943_v35  ;;  %v12026_v35 = vld [vmem:[%s15633_s3 + $0xb8] sm:$0xff]  }
 0x443   :  { %7707 = vmatpush1.bf16.msra.mxu0 %v11946_v36  ;;  %8481 = vmatpush1.bf16.msra.mxu1 %v11949_v37  ;;  %v1179_v36 = vlaneseq }
 0x444   :  { %7708 = vmatprep.subr.bf16.mxu0 %v11954_v38  ;;  %8482 = vmatprep.subr.bf16.mxu1 %v11957_v39 }
 0x445   :  { %7738 = vmatprep.mubr.bf16.mxu0 %v12027_v44  ;;  %8512 = vmatprep.mubr.bf16.mxu1 %v12027_v44  ;;  %v1180_v37 = vshrl.u32 %v1179_v36, 7 }
 0x447   :  { %7709 = vmatpush1.bf16.msra.mxu0 %v11952_v40  ;;  %8483 = vmatpush1.bf16.msra.mxu1 %v11955_v41  ;;  %v1181_v38 = vsub.s32 0, %v1180_v37  ;;  %v1189_v39 = vsub.s32 2, %v1180_v37  ;;  %v1177_v40 = vld [vmem:[%s15634_s2] sm:$0xf]  ;;  %v1185_v41 = vsub.s32 1, %v1180_v37 }
 0x448   :  { %7710 = vmatprep.subr.bf16.mxu0 %v11960_v42  ;;  %8484 = vmatprep.subr.bf16.mxu1 %v11963_v43  ;;  %v1193_v42 = vsub.s32 3, %v1180_v37 }
 0x449   :  { %v1182_v43 = vrot.slane %v1177_v40, %v1181_v38  ;;  %v1190_v44 = vrot.slane %v1177_v40, %v1189_v39 }
 0x44b   :  { %7711 = vmatpush1.bf16.msra.mxu0 %v11958_v45  ;;  %8485 = vmatpush1.bf16.msra.mxu1 %v11961_v46  ;;  %v1186_v45 = vrot.slane %v1177_v40, %v1185_v41  ;;  %v1194_v46 = vrot.slane %v1177_v40, %v1193_v42 }
 0x44c   :  { %7712 = vmatprep.subr.bf16.mxu0 %v11966_v47  ;;  %8486 = vmatprep.subr.bf16.mxu1 %v11969_v48 }
 0x44f   :  { %7713 = vmatpush1.bf16.msra.mxu0 %v11964_v49  ;;  %8487 = vmatpush1.bf16.msra.mxu1 %v11967_v50 }
 0x450   :  { %7714 = vmatprep.subr.bf16.mxu0 %v11972_v51  ;;  %8488 = vmatprep.subr.bf16.mxu1 %v11975_v52 }
 0x453   :  { %7715 = vmatpush1.bf16.msra.mxu0 %v11970_v53  ;;  %8489 = vmatpush1.bf16.msra.mxu1 %v11973_v54 }
 0x454   :  { %7716 = vmatprep.subr.bf16.mxu0 %v11978_v55  ;;  %8490 = vmatprep.subr.bf16.mxu1 %v11981_v56 }
 0x457   :  { %7717 = vmatpush1.bf16.msra.mxu0 %v11976_v57  ;;  %8491 = vmatpush1.bf16.msra.mxu1 %v11979_v58 }
 0x458   :  { %7718 = vmatprep.subr.bf16.mxu0 %v11984_v59  ;;  %8492 = vmatprep.subr.bf16.mxu1 %v11987_v60 }
 0x45b   :  { %7719 = vmatpush1.bf16.msra.mxu0 %v11982_v61  ;;  %8493 = vmatpush1.bf16.msra.mxu1 %v11985_v62 }
 0x45c   :  { %7720 = vmatprep.subr.bf16.mxu0 %v11990_v63  ;;  %8494 = vmatprep.subr.bf16.mxu1 %v11993_v0 }
 0x45f   :  { %7721 = vmatpush1.bf16.msra.mxu0 %v11988_v1  ;;  %8495 = vmatpush1.bf16.msra.mxu1 %v11991_v2 }
 0x460   :  { %10074 = vmatprep.subr.bf16.mxu0 %v11995_v3  ;;  %10096 = vmatprep.subr.bf16.mxu1 %v11996_v4 }
 0x462   :  { %7739 = vmatmul.mubr.bf16.vlgmr.msra.gmra.mrb[0].mxu0 %v11994_v5  ;;  %8513 = vmatmul.mubr.bf16.vlgmr.msra.gmra.mrb[0].mxu1 %v11994_v5 }
 0x463   :  { %10075 = vmatpush3.bf16.msra.mxu0 %v11997_v6  ;;  %10097 = vmatpush3.bf16.msra.mxu1 %v11998_v7 }
 0x464   :  { %10076 = vmatprep.subr.bf16.mxu0 %v11999_v8  ;;  %10098 = vmatprep.subr.bf16.mxu1 %v12000_v9 }
 0x467   :  { %10077 = vmatpush3.bf16.msra.mxu0 %v12001_v10  ;;  %10099 = vmatpush3.bf16.msra.mxu1 %v12002_v11 }
 0x468   :  { %10078 = vmatprep.subr.bf16.mxu0 %v12003_v12  ;;  %10100 = vmatprep.subr.bf16.mxu1 %v12004_v13  ;;  %v10041_v13 = vld [vmem:[%s15635_s4] ss:$0 sm:$0xff] }
 0x46b   :  { %10079 = vmatpush3.bf16.msra.mxu0 %v12005_v14  ;;  %10101 = vmatpush3.bf16.msra.mxu1 %v12006_v15 }
 0x46c   :  { %10080 = vmatprep.subr.bf16.mxu0 %v12007_v16  ;;  %10102 = vmatprep.subr.bf16.mxu1 %v12008_v17 }
 0x46f   :  { %10081 = vmatpush3.bf16.msra.mxu0 %v12009_v18  ;;  %10103 = vmatpush3.bf16.msra.mxu1 %v12010_v19 }
 0x470   :  { %10082 = vmatprep.subr.bf16.mxu0 %v12011_v20  ;;  %10104 = vmatprep.subr.bf16.mxu1 %v12012_v21 }
 0x473   :  { %10083 = vmatpush3.bf16.msra.mxu0 %v12013_v22  ;;  %10105 = vmatpush3.bf16.msra.mxu1 %v12014_v23 }
 0x474   :  { %10084 = vmatprep.subr.bf16.mxu0 %v12015_v24  ;;  %10106 = vmatprep.subr.bf16.mxu1 %v12016_v25 }
 0x477   :  { %10085 = vmatpush3.bf16.msra.mxu0 %v12017_v26  ;;  %10107 = vmatpush3.bf16.msra.mxu1 %v12018_v27 }
 0x478   :  { %10086 = vmatprep.subr.bf16.mxu0 %v12019_v28  ;;  %10108 = vmatprep.subr.bf16.mxu1 %v12020_v29 }
 0x47b   :  { %10087 = vmatpush3.bf16.msra.mxu0 %v12021_v30  ;;  %10109 = vmatpush3.bf16.msra.mxu1 %v12022_v31 }
 0x47c   :  { %10088 = vmatprep.subr.bf16.mxu0 %v12023_v32  ;;  %10110 = vmatprep.subr.bf16.mxu1 %v12024_v33 }
 0x47f   :  { %10089 = vmatpush3.bf16.msra.mxu0 %v12025_v34  ;;  %10111 = vmatpush3.bf16.msra.mxu1 %v12026_v35 }
 0x535   :  { %v7740_v47 = vpop.f32.mrb[0].mxu0  ;;  %v8514_v48 = vpop.f32.mrb[0].mxu1 }
 0x536   :  { %v10118_v49 = vadd.f32 %v7740_v47, %v1182_v43  ;;  %v10122_v50 = vadd.f32 %v8514_v48, %v1190_v44  ;;  %v7742_v51 = vpop.f32.mrb[1].mxu0  ;;  %v8516_v52 = vpop.f32.mrb[1].mxu1 }
 0x537   :  { %v10119_v53 = vadd.f32 %v7742_v51, %v1186_v45  ;;  %v10123_v54 = vadd.f32 %v8516_v52, %v1194_v46  ;;  %v7744_v55 = vpop.f32.mrb[2].mxu0  ;;  %v8518_v56 = vpop.f32.mrb[2].mxu1 }
 0x538   :  { %v10120_v57 = vadd.f32 %v7744_v55, %v1182_v43  ;;  %v10124_v58 = vadd.f32 %v8518_v56, %v1190_v44  ;;  %v7746_v59 = vpop.f32.mrb[3].mxu0  ;;  %v8520_v60 = vpop.f32.mrb[3].mxu1  ;;  %v8523_v63 = vmax.f32 %v10118_v49, 0.0  ;;  %v8525_v0 = vmax.f32 %v10122_v50, 0.0 }
 0x539   :  { %v10121_v61 = vadd.f32 %v7746_v59, %v1186_v45  ;;  %v10125_v62 = vadd.f32 %v8520_v60, %v1194_v46  ;;  %v8524_v3 = vmax.f32 %v10119_v53, 0.0  ;;  %v8526_v4 = vmax.f32 %v10123_v54, 0.0 }
 0x53a   :  { %v8527_v1 = vmax.f32 %v10120_v57, 0.0  ;;  %v8529_v2 = vmax.f32 %v10124_v58, 0.0 }
 0x53b   :  { %v8528_v5 = vmax.f32 %v10121_v61, 0.0  ;;  %v8530_v6 = vmax.f32 %v10125_v62, 0.0 }
 0x53c   :  { %v8531_v7 = vpack.c.bf16 %v8527_v1, %v8523_v63  ;;  %v8533_v8 = vpack.c.bf16 %v8529_v2, %v8525_v0 }
 0x53d   :  { %v8532_v9 = vpack.c.bf16 %v8528_v5, %v8524_v3  ;;  %v8534_v10 = vpack.c.bf16 %v8530_v6, %v8526_v4 }
 0x53f   :  { %8830 = vmatprep.mubr.bf16.mxu0 %v8532_v9  ;;  %8871 = vmatprep.mubr.bf16.mxu1 %v8534_v10 }
 0x540   :  { %8831 = vmatmul.mubr.bf16.vlgmr.msra.gmra.mrb[4].mxu0 %v8531_v7  ;;  %8872 = vmatmul.mubr.bf16.vlgmr.msra.gmra.mrb[4].mxu1 %v8533_v8 }
 0x613   :  { %v10090_v11 = vpop.f32.mrb[4].mxu0  ;;  %v10112_v12 = vpop.f32.mrb[4].mxu1 }
 0x614   :  { %v10091_v14 = vpop.f32.mrb[5].mxu0  ;;  %v10113_v15 = vpop.f32.mrb[5].mxu1 }
 0x615   :  { %v10092_v16 = vadd.f32 %v10091_v14, %v10090_v11  ;;  %v10114_v17 = vadd.f32 %v10113_v15, %v10112_v12  ;;  %v10093_v18 = vpop.f32.mrb[6].mxu0  ;;  %v10115_v19 = vpop.f32.mrb[6].mxu1 }
 0x616   :  { %v10094_v20 = vpop.f32.mrb[7].mxu0  ;;  %v10116_v21 = vpop.f32.mrb[7].mxu1 }
 0x617   :  { %v8833_v22 = vadd.f32 %v10092_v16, %v10041_v13  ;;  %v10095_v23 = vadd.f32 %v10094_v20, %v10093_v18  ;;  %v10117_v24 = vadd.f32 %v10116_v21, %v10115_v19 }
 0x619   :  { %v8874_v25 = vadd.f32 %v10114_v17, %v8833_v22  ;;  %v8836_v26 = vadd.f32 %v10095_v23, %v10041_v13 }
 0x61b   :  { %8880 = vst [vmem:[%s15636_s5] sm:$0xff] %v8874_v25  ;;  %v8877_v27 = vadd.f32 %v10117_v24, %v8836_v26 }
 0x61d   :  { %8881 = vst [vmem:[%s15636_s5 + $0x8] sm:$0xff] %v8877_v27 }

</bundles_post_ra>
